<compile_context>
chip_gen: v7x
topology: tpu7x:2x2x1
jax: 0.10.0
libtpu: 0.0.40
codegen_flags: <defaults>
</compile_context>

<pallas_src>
import functools

import jax
import jax.numpy as jnp
from jax import lax
from jax.experimental import pallas as pl
from jax.experimental.pallas import tpu as pltpu


# ----------------------------- configuration (small, deterministic) -----------------------------
B, IN_CH, T_IN, H_IN, W_IN = 2, 3, 8, 16, 16
EMBED_DIM = 32
PATCH_KERNEL = (3, 7, 7)
PATCH_STRIDE = (2, 4, 4)
PATCH_PAD = (1, 3, 3)
POOL_KERNEL = (3, 3, 3)
MLP_RATIO = 4.0
LN_EPS = 1e-6

T_P = (T_IN + 2 * PATCH_PAD[0] - PATCH_KERNEL[0]) // PATCH_STRIDE[0] + 1   # 4
H_P = (H_IN + 2 * PATCH_PAD[1] - PATCH_KERNEL[1]) // PATCH_STRIDE[1] + 1   # 4
W_P = (W_IN + 2 * PATCH_PAD[2] - PATCH_KERNEL[2]) // PATCH_STRIDE[2] + 1   # 4

# two MultiScaleBlocks: block 0 pools only k/v, block 1 pools q (strided skip) and doubles the dim
BLOCKS = (
    dict(dim=32, dim_out=32, num_heads=2, q_stride=(1, 1, 1), kv_stride=(1, 2, 2)),
    dict(dim=32, dim_out=64, num_heads=4, q_stride=(1, 2, 2), kv_stride=(1, 2, 2)),
)

# rows per grid step for token-parallel kernels; at real MViT dims drop to 256 on v7x (64 MiB VMEM)
ROW_TILE = 512
VMEM_LIMIT_BYTES = 48 * 1024 * 1024


def _round_up(x, m):
    return ((x + m - 1) // m) * m


def _row_tiling(m):
    # always try to produce >=2 grid steps so v7x's second TensorCore is used
    tile = min(ROW_TILE, max(8, _round_up((m + 1) // 2, 8)))
    mp = _round_up(m, tile)
    return tile, mp, mp // tile


def _cparams(*sems):
    return pltpu.CompilerParams(dimension_semantics=sems,
                                vmem_limit_bytes=VMEM_LIMIT_BYTES)


# ------------------------------------------ Pallas kernels ---------------------------------------
def _gelu(x):
    # tanh-approx GELU: transcendental runs on the EUP slot (esp. on v5e); <~1e-3 vs exact erf.
    c = 0.7978845608028654  # sqrt(2/pi)
    return 0.5 * x * (1.0 + jnp.tanh(c * (x + 0.044715 * x * x * x)))


def _ln(x, g, b, eps):
    mu = jnp.mean(x, axis=-1, keepdims=True)
    xc = x - mu
    var = jnp.mean(xc * xc, axis=-1, keepdims=True)
    return xc * lax.rsqrt(var + eps) * g + b


def _linear_kernel(x_ref, w_ref, b_ref, o_ref):
    # bf16 MXU operands, f32 accumulation
    y = jnp.dot(x_ref[...].astype(jnp.bfloat16), w_ref[...],
                preferred_element_type=jnp.float32)
    o_ref[...] = (y + b_ref[...].astype(jnp.float32)).astype(o_ref.dtype)


def _ln_kernel(x_ref, g_ref, b_ref, o_ref, *, eps):
    x = x_ref[...].astype(jnp.float32)
    o_ref[...] = _ln(x, g_ref[...].astype(jnp.float32),
                     b_ref[...].astype(jnp.float32), eps).astype(o_ref.dtype)


def _ln_qkv_kernel(x_ref, g_ref, b_ref, wq_ref, bq_ref, wkv_ref, bkv_ref,
                   q_ref, kv_ref, *, eps):
    # fused LayerNorm1 (f32) + q projection + packed k/v projection (bf16 MXU, two outputs)
    x = x_ref[...].astype(jnp.float32)
    xn = _ln(x, g_ref[...].astype(jnp.float32), b_ref[...].astype(jnp.float32),
             eps).astype(jnp.bfloat16)
    q = jnp.dot(xn, wq_ref[...], preferred_element_type=jnp.float32)
    kv = jnp.dot(xn, wkv_ref[...], preferred_element_type=jnp.float32)
    q_ref[...] = (q + bq_ref[...].astype(jnp.float32)).astype(q_ref.dtype)
    kv_ref[...] = (kv + bkv_ref[...].astype(jnp.float32)).astype(kv_ref.dtype)


def _pool_headln_kernel(c_ref, p_ref, w_ref, g_ref, b_ref, a_ref, at_ref, o_ref, *, hd, eps):
    # fused depthwise-conv pooling (all heads packed along lanes) + per-head LayerNorm.
    # [cls; pooled] is built in-register so head-LN runs ONCE and a single full-tile store is made.
    p = p_ref[0].astype(jnp.float32)                     # (Lp, K, C)
    w = w_ref[...].astype(jnp.float32)                   # (K, C)
    pooled = jnp.sum(p * w[None, :, :], axis=1)          # (Lp, C)
    cls = c_ref[0].astype(jnp.float32)                   # (1, C)
    x = jnp.concatenate([cls, pooled], axis=0)           # (Lp+1, C)

    # head-group LayerNorm via hoisted indicator matmuls (keeps lanes dense, no in-kernel reshape)
    A = a_ref[...]                                       # (C, groups) f32
    AT = at_ref[...]                                     # (groups, C) f32
    g = g_ref[...].astype(jnp.float32)
    b = b_ref[...].astype(jnp.float32)
    inv = 1.0 / hd
    mu = jnp.dot(jnp.dot(x, A, preferred_element_type=jnp.float32) * inv, AT,
                 preferred_element_type=jnp.float32)
    xc = x - mu
    var = jnp.dot(jnp.dot(xc * xc, A, preferred_element_type=jnp.float32) * inv, AT,
                  preferred_element_type=jnp.float32)
    o_ref[0] = (xc * lax.rsqrt(var + eps) * g + b).astype(o_ref.dtype)


def _attn_proj_res_kernel(q_ref, kv_ref, res_ref, w_ref, b_ref, o_ref, *, nh, hd, scale):
    # fused multi-head attention + output projection + residual for ONE batch element.
    # softmax scale folded into q at cast time; per-head projection accumulated (no lane concat).
    dim = nh * hd
    q = (q_ref[0].astype(jnp.float32) * scale).astype(jnp.bfloat16)   # (Lq, dim)
    kv = kv_ref[0]                                                    # (Lk, 2*dim) bf16
    lq = q.shape[0]
    y = jnp.zeros((lq, dim), jnp.float32)
    for h in range(nh):                                               # static unroll (nh <= 4)
        qh = q[:, h * hd:(h + 1) * hd]
        kh = kv[:, h * hd:(h + 1) * hd]
        vh = kv[:, dim + h * hd: dim + (h + 1) * hd]
        s = lax.dot_general(qh, kh, (((1,), (1,)), ((), ())),
                            preferred_element_type=jnp.float32)       # (Lq, Lk)
        s = s - jnp.max(s, axis=-1, keepdims=True)
        e = jnp.exp(s)
        # approx reciprocal on the EUP; ~1e-4 rel. error vs exact division (fine for inference)
        p = e * pl.reciprocal(jnp.sum(e, axis=-1, keepdims=True), approx=True)
        oh = jnp.dot(p.astype(jnp.bfloat16), vh, preferred_element_type=jnp.float32)
        y = y + jnp.dot(oh.astype(jnp.bfloat16), w_ref[h * hd:(h + 1) * hd, :],
                        preferred_element_type=jnp.float32)
    y = y + b_ref[...].astype(jnp.float32)
    o_ref[0] = (y + res_ref[0].astype(jnp.float32)).astype(o_ref.dtype)


def _mlp_kernel(refs, *, eps, res_proj):
    # fused LayerNorm2 + fc1 + GELU + fc2 + residual (identity or Linear projection on dim change)
    if res_proj:
        (x_ref, g_ref, be_ref, w1_ref, b1_ref, w2_ref, b2_ref,
         wr_ref, br_ref, o_ref) = refs
    else:
        x_ref, g_ref, be_ref, w1_ref, b1_ref, w2_ref, b2_ref, o_ref = refs
        wr_ref = br_ref = None
    x = x_ref[...].astype(jnp.float32)
    xn = _ln(x, g_ref[...].astype(jnp.float32), be_ref[...].astype(jnp.float32), eps)
    xnb = xn.astype(jnp.bfloat16)
    h = jnp.dot(xnb, w1_ref[...], preferred_element_type=jnp.float32)
    h = _gelu(h + b1_ref[...].astype(jnp.float32))
    y = jnp.dot(h.astype(jnp.bfloat16), w2_ref[...], preferred_element_type=jnp.float32)
    y = y + b2_ref[...].astype(jnp.float32)
    if res_proj:
        res = jnp.dot(xnb, wr_ref[...], preferred_element_type=jnp.float32)
        res = res + br_ref[...].astype(jnp.float32)
    else:
        res = x
    o_ref[...] = (res + y).astype(o_ref.dtype)


# ------------------------------------------ call wrappers ----------------------------------------
def _row_call(kernel_fn, x2d, extras, n_out, out_dtype=jnp.bfloat16):
    # token-parallel kernels: rows tiled to >=2 "parallel" grid steps; bf16 intermediates in HBM.
    M, C = x2d.shape
    tile, Mp, steps = _row_tiling(M)
    if Mp != M:
        x2d = jnp.pad(x2d, ((0, Mp - M), (0, 0)))
    in_specs = [pl.BlockSpec((tile, C), lambda i: (i, 0))]
    in_specs += [pl.BlockSpec(e.shape, lambda i, _nd=e.ndim: (0,) * _nd) for e in extras]
    out = pl.pallas_call(
        kernel_fn,
        out_shape=jax.ShapeDtypeStruct((Mp, n_out), out_dtype),
        grid=(steps,),
        in_specs=in_specs,
        out_specs=pl.BlockSpec((tile, n_out), lambda i: (i, 0)),
        compiler_params=_cparams("parallel"),
    )(x2d, *extras)
    return out[:M] if Mp != M else out


def linear(x2d, w, b):
    return _row_call(_linear_kernel, x2d, [w, b], w.shape[1])


def layernorm(x2d, g, bt):
    kern = functools.partial(_ln_kernel, eps=LN_EPS)
    return _row_call(kern, x2d, [g, bt], x2d.shape[1], out_dtype=jnp.float32)


def ln_qkv(x2d, g, bt, wq, bq, wkv, bkv):
    # fused LayerNorm1 + q / packed-kv projection with two bf16 outputs
    M, C = x2d.shape
    dim = wq.shape[1]
    tile, Mp, steps = _row_tiling(M)
    if Mp != M:
        x2d = jnp.pad(x2d, ((0, Mp - M), (0, 0)))
    extras = (g, bt, wq, bq, wkv, bkv)
    in_specs = [pl.BlockSpec((tile, C), lambda i: (i, 0))]
    in_specs += [pl.BlockSpec(e.shape, lambda i, _nd=e.ndim: (0,) * _nd) for e in extras]
    q, kv = pl.pallas_call(
        functools.partial(_ln_qkv_kernel, eps=LN_EPS),
        out_shape=(jax.ShapeDtypeStruct((Mp, dim), jnp.bfloat16),
                   jax.ShapeDtypeStruct((Mp, 2 * dim), jnp.bfloat16)),
        grid=(steps,),
        in_specs=in_specs,
        out_specs=(pl.BlockSpec((tile, dim), lambda i: (i, 0)),
                   pl.BlockSpec((tile, 2 * dim), lambda i: (i, 0))),
        compiler_params=_cparams("parallel"),
    )(x2d, *extras)
    return q[:M], kv[:M]


def mlp_block(x2d, g, bt, w1, b1, w2, b2, wr=None, br=None):
    extras = [g, bt, w1, b1, w2, b2]
    res_proj = wr is not None
    if res_proj:
        extras += [wr, br]
    kern = lambda *refs: _mlp_kernel(refs, eps=LN_EPS, res_proj=res_proj)
    return _row_call(kern, x2d, extras, w2.shape[1])


def pool_tokens(x, thw, stride, w_kd, g, b, A, AT, groups):
    # depthwise Conv3d pooling (weights pre-tiled head-major, all heads on lanes) + per-head LN;
    # cls token written through in the same single-store kernel. w_kd=None -> identity.
    if w_kd is None:
        return x, thw
    Bn, L, C = x.shape
    T, H, W = thw
    hd = C // groups
    K = w_kd.shape[0]
    cls = x[:, :1, :]
    tok = x[:, 1:, :].reshape(Bn, T, H, W, C)
    pad = tuple(k // 2 for k in POOL_KERNEL)
    patches, thw_new = _im2col_3d(tok, POOL_KERNEL, stride, pad, 0.0)
    To, Ho, Wo = thw_new
    Lp = To * Ho * Wo
    patches = patches.reshape(Bn, Lp, K, C)
    out = pl.pallas_call(
        functools.partial(_pool_headln_kernel, hd=hd, eps=LN_EPS),
        out_shape=jax.ShapeDtypeStruct((Bn, Lp + 1, C), jnp.bfloat16),
        grid=(Bn,),
        in_specs=[
            pl.BlockSpec((1, 1, C), lambda i: (i, 0, 0)),
            pl.BlockSpec((1, Lp, K, C), lambda i: (i, 0, 0, 0)),
            pl.BlockSpec((K, C), lambda i: (0, 0)),
            pl.BlockSpec((1, C), lambda i: (0, 0)),
            pl.BlockSpec((1, C), lambda i: (0, 0)),
            pl.BlockSpec((C, groups), lambda i: (0, 0)),
            pl.BlockSpec((groups, C), lambda i: (0, 0)),
        ],
        out_specs=pl.BlockSpec((1, Lp + 1, C), lambda i: (i, 0, 0)),
        compiler_params=_cparams("parallel"),
    )(cls, patches, w_kd, g, b, A, AT)
    return out, thw_new


def attn_proj_res(q, kv, res, w, b, nh, hd, scale):
    Bn, Lq, dim = q.shape
    Lk = kv.shape[1]
    return pl.pallas_call(
        functools.partial(_attn_proj_res_kernel, nh=nh, hd=hd, scale=scale),
        out_shape=jax.ShapeDtypeStruct((Bn, Lq, dim), jnp.bfloat16),
        grid=(Bn,),
        in_specs=[
            pl.BlockSpec((1, Lq, dim), lambda i: (i, 0, 0)),
            pl.BlockSpec((1, Lk, 2 * dim), lambda i: (i, 0, 0)),
            pl.BlockSpec((1, Lq, dim), lambda i: (i, 0, 0)),
            pl.BlockSpec((dim, dim), lambda i: (0, 0)),
            pl.BlockSpec((1, dim), lambda i: (0, 0)),
        ],
        out_specs=pl.BlockSpec((1, Lq, dim), lambda i: (i, 0, 0)),
        compiler_params=_cparams("parallel"),
    )(q, kv, res, w, b)


# ------------------------------------------- JAX glue --------------------------------------------
def _im2col_3d(x, kernel, stride, padding, pad_value=0.0):
    # x: (M0, T, H, W, C) channel-last -> patches (M0, T', H', W', K, C), K in (kt,kh,kw) order
    kT, kH, kW = kernel
    sT, sH, sW = stride
    pT, pH, pW = padding
    M0, T, H, W, C = x.shape
    xp = jnp.pad(x, ((0, 0), (pT, pT), (pH, pH), (pW, pW), (0, 0)), constant_values=pad_value)
    To = (T + 2 * pT - kT) // sT + 1
    Ho = (H + 2 * pH - kH) // sH + 1
    Wo = (W + 2 * pW - kW) // sW + 1
    cols = []
    for kt in range(kT):
        for kh in range(kH):
            for kw in range(kW):
                sl = xp[:, kt:kt + sT * (To - 1) + 1:sT,
                           kh:kh + sH * (Ho - 1) + 1:sH,
                           kw:kw + sW * (Wo - 1) + 1:sW, :]
                cols.append(sl)
    patches = jnp.stack(cols, axis=-2)  # (M0, To, Ho, Wo, K, C)
    return patches, (To, Ho, Wo)


def patch_embed(x, w, bias):
    # x: (B, C, T, H, W) NCTHW; w: pre-flattened (C*kT*kH*kW, E) bf16; returns (B, T'*H'*W', E)
    xc = jnp.transpose(x, (0, 2, 3, 4, 1)).astype(jnp.bfloat16)   # channel-last, bf16 DMA
    patches, thw = _im2col_3d(xc, PATCH_KERNEL, PATCH_STRIDE, PATCH_PAD)
    M0, To, Ho, Wo, K, C = patches.shape
    # per-token vector ordered (c, kt, kh, kw) to match PyTorch Conv3d weight flattening
    p = jnp.transpose(patches, (0, 1, 2, 3, 5, 4)).reshape(M0 * To * Ho * Wo, C * K)
    y = linear(p, w, bias)
    return y.reshape(M0, To * Ho * Wo, EMBED_DIM), thw


def cls_pos_encode(tok, params, thw):
    Bn, N, C = tok.shape
    T, H, W = thw
    cls = jnp.broadcast_to(params["cls_token"], (Bn, 1, C))
    x = jnp.concatenate([cls, tok.astype(jnp.float32)], axis=1)
    pos = (jnp.tile(params["pos_spatial"], (1, T, 1))
           + jnp.repeat(params["pos_temporal"], H * W, axis=1))
    pos = jnp.concatenate([params["pos_class"], pos], axis=1)
    return x + pos


def multiscale_block(x, thw, p, cfg):
    Bn, L, _ = x.shape
    dim, dim_out, nh = cfg["dim"], cfg["dim_out"], cfg["num_heads"]
    hd = dim // nh
    scale = hd ** -0.5
    T, H, W = thw

    # --- fused LayerNorm1 + q / packed-kv projections (one kernel, two bf16 outputs) ---
    q2d, kv2d = ln_qkv(x.reshape(Bn * L, dim), p["norm1_g"], p["norm1_b"],
                       p["wq"], p["bq"], p["wkv"], p["bkv"])
    q = q2d.reshape(Bn, L, dim)
    kv = kv2d.reshape(Bn, L, 2 * dim)

    # --- fused conv pooling + per-head LN + cls passthrough: q kernel + merged k/v kernel ---
    q, q_thw = pool_tokens(q, thw, cfg["q_stride"], p.get("pool_q_w"),
                           p.get("norm_q_g"), p.get("norm_q_b"),
                           p.get("A_q"), p.get("AT_q"), nh)
    kv, _ = pool_tokens(kv, thw, cfg["kv_stride"], p.get("pool_kv_w"),
                        p.get("norm_kv_g"), p.get("norm_kv_b"),
                        p.get("A_kv"), p.get("AT_kv"), 2 * nh)
    Lq = q.shape[1]

    # --- MaxPool3d residual skip (only when q is strided) via reduce_window (no Kp blow-up) ---
    if max(cfg["q_stride"]) > 1:
        kern = tuple(s + 1 if s > 1 else s for s in cfg["q_stride"])
        pad = tuple(k // 2 for k in kern)
        tok = x[:, 1:, :].reshape(Bn, T, H, W, dim)
        pooled = lax.reduce_window(
            tok, jnp.array(-jnp.inf, tok.dtype), lax.max,
            (1,) + kern + (1,), (1,) + cfg["q_stride"] + (1,),
            ((0, 0),) + tuple((pp, pp) for pp in pad) + ((0, 0),))
        res = jnp.concatenate([x[:, :1, :], pooled.reshape(Bn, Lq - 1, dim)], axis=1)
    else:
        res = x

    # --- fused attention (all heads) + output projection + residual (one kernel, grid over batch) ---
    x = attn_proj_res(q, kv, res, p["proj_w"], p["proj_b"], nh=nh, hd=hd, scale=scale)

    # --- fused LayerNorm2 + fc1 + GELU + fc2 + residual (+Linear residual proj on dim change) ---
    y = mlp_block(x.reshape(Bn * Lq, dim), p["norm2_g"], p["norm2_b"],
                  p["fc1_w"], p["fc1_b"], p["fc2_w"], p["fc2_b"],
                  p.get("res_w"), p.get("res_b"))
    return y.reshape(Bn, Lq, dim_out), q_thw


def mvit_forward(x, params):
    tok, thw = patch_embed(x, params["patch_w"], params["patch_b"])
    tok = cls_pos_encode(tok, params, thw)
    for cfg, bp in zip(BLOCKS, params["blocks"]):
        tok, thw = multiscale_block(tok, thw, bp, cfg)
    # final LayerNorm is row-wise, so normalizing only the returned cls row is exact
    cls = tok[:, 0, :]
    return layernorm(cls, params["norm_g"], params["norm_b"])


# --------------------------------------- parameter init ------------------------------------------
def init_params(key):
    keys = iter(jax.random.split(key, 160))
    bf = jnp.bfloat16  # MXU weights stored bf16; LN/bias/pool params stay f32

    def nrm(shape, std=0.02, dtype=jnp.float32):
        return (std * jax.random.normal(next(keys), shape)).astype(dtype)

    K_patch = IN_CH * PATCH_KERNEL[0] * PATCH_KERNEL[1] * PATCH_KERNEL[2]
    Kp = POOL_KERNEL[0] * POOL_KERNEL[1] * POOL_KERNEL[2]
    params = {
        "patch_w": nrm((K_patch, EMBED_DIM), dtype=bf),     # Conv3d weight pre-flattened (c,kt,kh,kw)
        "patch_b": jnp.zeros((1, EMBED_DIM), jnp.float32),
        "cls_token": nrm((1, 1, EMBED_DIM)),
        "pos_spatial": nrm((1, H_P * W_P, EMBED_DIM)),
        "pos_temporal": nrm((1, T_P, EMBED_DIM)),
        "pos_class": nrm((1, 1, EMBED_DIM)),
        "blocks": [],
    }
    for cfg in BLOCKS:
        dim, dim_out, nh = cfg["dim"], cfg["dim_out"], cfg["num_heads"]
        hd = dim // nh
        hidden = int(dim * MLP_RATIO)
        bp = {
            "norm1_g": jnp.ones((1, dim), jnp.float32), "norm1_b": jnp.zeros((1, dim), jnp.float32),
            "wq": nrm((dim, dim), dtype=bf), "bq": jnp.zeros((1, dim), jnp.float32),
            "wkv": nrm((dim, 2 * dim), dtype=bf), "bkv": jnp.zeros((1, 2 * dim), jnp.float32),
            "proj_w": nrm((dim, dim), dtype=bf), "proj_b": jnp.zeros((1, dim), jnp.float32),
            "norm2_g": jnp.ones((1, dim), jnp.float32), "norm2_b": jnp.zeros((1, dim), jnp.float32),
            "fc1_w": nrm((dim, hidden), dtype=bf), "fc1_b": jnp.zeros((1, hidden), jnp.float32),
            "fc2_w": nrm((hidden, dim_out), dtype=bf), "fc2_b": jnp.zeros((1, dim_out), jnp.float32),
        }
        if max(cfg["q_stride"]) > 1:
            # depthwise Conv3d taps shared across heads, pre-tiled head-major onto dim lanes
            wq_dw = nrm((hd, Kp))
            bp["pool_q_w"] = jnp.tile(wq_dw.T, (1, nh))                       # (Kp, dim)
            bp["norm_q_g"] = jnp.ones((1, dim), jnp.float32)
            bp["norm_q_b"] = jnp.zeros((1, dim), jnp.float32)
            Aq = jnp.repeat(jnp.eye(nh, dtype=jnp.float32), hd, axis=0)       # (dim, nh)
            bp["A_q"], bp["AT_q"] = Aq, Aq.T
        if max(cfg["kv_stride"]) > 1:
            wk_dw, wv_dw = nrm((hd, Kp)), nrm((hd, Kp))
            bp["pool_kv_w"] = jnp.concatenate(
                [jnp.tile(wk_dw.T, (1, nh)), jnp.tile(wv_dw.T, (1, nh))], axis=1)   # (Kp, 2*dim)
            bp["norm_kv_g"] = jnp.ones((1, 2 * dim), jnp.float32)
            bp["norm_kv_b"] = jnp.zeros((1, 2 * dim), jnp.float32)
            Akv = jnp.repeat(jnp.eye(2 * nh, dtype=jnp.float32), hd, axis=0)  # (2*dim, 2*nh)
            bp["A_kv"], bp["AT_kv"] = Akv, Akv.T
        if dim != dim_out:
            bp["res_w"] = nrm((dim, dim_out), dtype=bf)
            bp["res_b"] = jnp.zeros((1, dim_out), jnp.float32)
        params["blocks"].append(bp)
    params["norm_g"] = jnp.ones((1, BLOCKS[-1]["dim_out"]), jnp.float32)
    params["norm_b"] = jnp.zeros((1, BLOCKS[-1]["dim_out"]), jnp.float32)
    return params


# ------------------------------------------------ main -------------------------------------------
if __name__ == "__main__":
    key = jax.random.PRNGKey(0)
    pkey, xkey = jax.random.split(key)
    params = init_params(pkey)
    x = jax.random.normal(xkey, (B, IN_CH, T_IN, H_IN, W_IN), dtype=jnp.float32)

    fwd = jax.jit(mvit_forward)
    out = jax.block_until_ready(fwd(x, params))

    assert out.shape == (B, BLOCKS[-1]["dim_out"]), out.shape
    assert bool(jnp.all(jnp.isfinite(out)))
    print("KERNEL_OK")
</pallas_src>

<mosaic_0001>
module attributes {stable_mosaic.version = 11 : i64} {
  func.func @_linear_kernel(%arg0: i32, %arg1: memref<64x441xbf16, #tpu.memory_space<vmem>>, %arg2: memref<441x32xbf16, #tpu.memory_space<vmem>>, %arg3: memref<1x32xf32, #tpu.memory_space<vmem>>, %arg4: memref<64x32xbf16, #tpu.memory_space<vmem>>) attributes {dimension_semantics = [#tpu.dimension_semantics<parallel>], iteration_bounds = array<i64: 2>, scalar_prefetch = 0 : i64, scratch_operands = 0 : i64, tpu.core_type = #tpu.core_type<tc>, window_params = [{transform_indices = @transform_0, window_bounds = array<i64: 64, 441>}, {pipeline_mode = #tpu.pipeline_mode<synchronous>, transform_indices = @transform_1, window_bounds = array<i64: 441, 32>}, {pipeline_mode = #tpu.pipeline_mode<synchronous>, transform_indices = @transform_2, window_bounds = array<i64: 1, 32>}, {transform_indices = @transform_3, window_bounds = array<i64: 64, 32>}]} {
    %c0 = arith.constant 0 : index
    %c0_0 = arith.constant 0 : index
    %0 = vector.load %arg1[%c0, %c0_0] : memref<64x441xbf16, #tpu.memory_space<vmem>>, vector<64x441xbf16>
    %c0_1 = arith.constant 0 : index
    %c0_2 = arith.constant 0 : index
    %1 = vector.load %arg2[%c0_1, %c0_2] : memref<441x32xbf16, #tpu.memory_space<vmem>>, vector<441x32xbf16>
    %cst = arith.constant dense<0.000000e+00> : vector<64x32xf32>
    %2 = tpu.matmul %0, %1, %cst {dimension_numbers = #tpu.dot_dimension_numbers<[1], [0], [0], [1], [0, 0, 1, 1], [], []>} : vector<64x441xbf16>, vector<441x32xbf16>, vector<64x32xf32> -> vector<64x32xf32>
    %c0_3 = arith.constant 0 : index
    %c0_4 = arith.constant 0 : index
    %3 = vector.load %arg3[%c0_3, %c0_4] : memref<1x32xf32, #tpu.memory_space<vmem>>, vector<1x32xf32>
    %4 = vector.broadcast %3 : vector<1x32xf32> to vector<64x32xf32>
    %5 = arith.addf %2, %4 : vector<64x32xf32>
    %6 = arith.truncf %5 : vector<64x32xf32> to vector<64x32xbf16>
    %c0_5 = arith.constant 0 : index
    %c0_6 = arith.constant 0 : index
    %7 = vector.load %arg4[%c0_5, %c0_6] : memref<64x32xbf16, #tpu.memory_space<vmem>>, vector<64x32xbf16>
    tpu.vector_store %arg4[%c0_5, %c0_6], %6 {strides = array<i32>} : memref<64x32xbf16, #tpu.memory_space<vmem>>, vector<64x32xbf16>,
    return
  }
  func.func @transform_0(%arg0: i32) -> (i32, i32) {
    %c0_i32 = arith.constant 0 : i32
    %c0_i32_0 = arith.constant 0 : i32
    return %arg0, %c0_i32 : i32, i32
  }
  func.func @transform_1(%arg0: i32) -> (i32, i32) {
    %c0_i32 = arith.constant 0 : i32
    %c0_i32_0 = arith.constant 0 : i32
    %c0_i32_1 = arith.constant 0 : i32
    return %c0_i32, %c0_i32_0 : i32, i32
  }
  func.func @transform_2(%arg0: i32) -> (i32, i32) {
    %c0_i32 = arith.constant 0 : i32
    %c0_i32_0 = arith.constant 0 : i32
    %c0_i32_1 = arith.constant 0 : i32
    return %c0_i32, %c0_i32_0 : i32, i32
  }
  func.func @transform_3(%arg0: i32) -> (i32, i32) {
    %c0_i32 = arith.constant 0 : i32
    %c0_i32_0 = arith.constant 0 : i32
    return %arg0, %c0_i32 : i32, i32
  }
}

module attributes {stable_mosaic.version = 11 : i64} {
  func.func @_ln_qkv_kernel(%arg0: i32, %arg1: memref<72x32xf32, #tpu.memory_space<vmem>>, %arg2: memref<1x32xf32, #tpu.memory_space<vmem>>, %arg3: memref<1x32xf32, #tpu.memory_space<vmem>>, %arg4: memref<32x32xbf16, #tpu.memory_space<vmem>>, %arg5: memref<1x32xf32, #tpu.memory_space<vmem>>, %arg6: memref<32x64xbf16, #tpu.memory_space<vmem>>, %arg7: memref<1x64xf32, #tpu.memory_space<vmem>>, %arg8: memref<72x32xbf16, #tpu.memory_space<vmem>>, %arg9: memref<72x64xbf16, #tpu.memory_space<vmem>>) attributes {dimension_semantics = [#tpu.dimension_semantics<parallel>], iteration_bounds = array<i64: 2>, scalar_prefetch = 0 : i64, scratch_operands = 0 : i64, tpu.core_type = #tpu.core_type<tc>, window_params = [{transform_indices = @transform_0, window_bounds = array<i64: 72, 32>}, {pipeline_mode = #tpu.pipeline_mode<synchronous>, transform_indices = @transform_1, window_bounds = array<i64: 1, 32>}, {pipeline_mode = #tpu.pipeline_mode<synchronous>, transform_indices = @transform_2, window_bounds = array<i64: 1, 32>}, {pipeline_mode = #tpu.pipeline_mode<synchronous>, transform_indices = @transform_3, window_bounds = array<i64: 32, 32>}, {pipeline_mode = #tpu.pipeline_mode<synchronous>, transform_indices = @transform_4, window_bounds = array<i64: 1, 32>}, {pipeline_mode = #tpu.pipeline_mode<synchronous>, transform_indices = @transform_5, window_bounds = array<i64: 32, 64>}, {pipeline_mode = #tpu.pipeline_mode<synchronous>, transform_indices = @transform_6, window_bounds = array<i64: 1, 64>}, {transform_indices = @transform_7, window_bounds = array<i64: 72, 32>}, {transform_indices = @transform_8, window_bounds = array<i64: 72, 64>}]} {
    %c0 = arith.constant 0 : index
    %c0_0 = arith.constant 0 : index
    %0 = vector.load %arg1[%c0, %c0_0] : memref<72x32xf32, #tpu.memory_space<vmem>>, vector<72x32xf32>
    %c0_1 = arith.constant 0 : index
    %c0_2 = arith.constant 0 : index
    %1 = vector.load %arg2[%c0_1, %c0_2] : memref<1x32xf32, #tpu.memory_space<vmem>>, vector<1x32xf32>
    %c0_3 = arith.constant 0 : index
    %c0_4 = arith.constant 0 : index
    %2 = vector.load %arg3[%c0_3, %c0_4] : memref<1x32xf32, #tpu.memory_space<vmem>>, vector<1x32xf32>
    %cst = arith.constant dense<0.000000e+00> : vector<72xf32>
    %3 = vector.multi_reduction <add>, %0, %cst [1] : vector<72x32xf32> to vector<72xf32>
    %4 = vector.shape_cast %3 : vector<72xf32> to vector<72x1xf32>
    %cst_5 = arith.constant 3.200000e+01 : f32
    %5 = vector.broadcast %cst_5 : f32 to vector<72x1xf32>
    %6 = arith.divf %4, %5 : vector<72x1xf32>
    %7 = vector.broadcast %6 : vector<72x1xf32> to vector<72x32xf32>
    %8 = arith.subf %0, %7 : vector<72x32xf32>
    %9 = arith.mulf %8, %8 : vector<72x32xf32>
    %cst_6 = arith.constant dense<0.000000e+00> : vector<72xf32>
    %10 = vector.multi_reduction <add>, %9, %cst_6 [1] : vector<72x32xf32> to vector<72xf32>
    %11 = vector.shape_cast %10 : vector<72xf32> to vector<72x1xf32>
    %cst_7 = arith.constant 3.200000e+01 : f32
    %12 = vector.broadcast %cst_7 : f32 to vector<72x1xf32>
    %13 = arith.divf %11, %12 : vector<72x1xf32>
    %cst_8 = arith.constant 9.99999997E-7 : f32
    %14 = vector.broadcast %cst_8 : f32 to vector<72x1xf32>
    %15 = arith.addf %13, %14 : vector<72x1xf32>
    %16 = math.rsqrt %15 : vector<72x1xf32>
    %17 = vector.broadcast %16 : vector<72x1xf32> to vector<72x32xf32>
    %18 = arith.mulf %8, %17 : vector<72x32xf32>
    %19 = vector.broadcast %1 : vector<1x32xf32> to vector<72x32xf32>
    %20 = arith.mulf %18, %19 : vector<72x32xf32>
    %21 = vector.broadcast %2 : vector<1x32xf32> to vector<72x32xf32>
    %22 = arith.addf %20, %21 : vector<72x32xf32>
    %23 = arith.truncf %22 : vector<72x32xf32> to vector<72x32xbf16>
    %c0_9 = arith.constant 0 : index
    %c0_10 = arith.constant 0 : index
    %24 = vector.load %arg4[%c0_9, %c0_10] : memref<32x32xbf16, #tpu.memory_space<vmem>>, vector<32x32xbf16>
    %cst_11 = arith.constant dense<0.000000e+00> : vector<72x32xf32>
    %25 = tpu.matmul %23, %24, %cst_11 {dimension_numbers = #tpu.dot_dimension_numbers<[1], [0], [0], [1], [0, 0, 1, 1], [], []>} : vector<72x32xbf16>, vector<32x32xbf16>, vector<72x32xf32> -> vector<72x32xf32>
    %c0_12 = arith.constant 0 : index
    %c0_13 = arith.constant 0 : index
    %26 = vector.load %arg6[%c0_12, %c0_13] : memref<32x64xbf16, #tpu.memory_space<vmem>>, vector<32x64xbf16>
    %cst_14 = arith.constant dense<0.000000e+00> : vector<72x64xf32>
    %27 = tpu.matmul %23, %26, %cst_14 {dimension_numbers = #tpu.dot_dimension_numbers<[1], [0], [0], [1], [0, 0, 1, 1], [], []>} : vector<72x32xbf16>, vector<32x64xbf16>, vector<72x64xf32> -> vector<72x64xf32>
    %c0_15 = arith.constant 0 : index
    %c0_16 = arith.constant 0 : index
    %28 = vector.load %arg5[%c0_15, %c0_16] : memref<1x32xf32, #tpu.memory_space<vmem>>, vector<1x32xf32>
    %29 = vector.broadcast %28 : vector<1x32xf32> to vector<72x32xf32>
    %30 = arith.addf %25, %29 : vector<72x32xf32>
    %31 = arith.truncf %30 : vector<72x32xf32> to vector<72x32xbf16>
    %c0_17 = arith.constant 0 : index
    %c0_18 = arith.constant 0 : index
    %32 = vector.load %arg8[%c0_17, %c0_18] : memref<72x32xbf16, #tpu.memory_space<vmem>>, vector<72x32xbf16>
    tpu.vector_store %arg8[%c0_17, %c0_18], %31 {strides = array<i32>} : memref<72x32xbf16, #tpu.memory_space<vmem>>, vector<72x32xbf16>,
    %c0_19 = arith.constant 0 : index
    %c0_20 = arith.constant 0 : index
    %33 = vector.load %arg7[%c0_19, %c0_20] : memref<1x64xf32, #tpu.memory_space<vmem>>, vector<1x64xf32>
    %34 = vector.broadcast %33 : vector<1x64xf32> to vector<72x64xf32>
    %35 = arith.addf %27, %34 : vector<72x64xf32>
    %36 = arith.truncf %35 : vector<72x64xf32> to vector<72x64xbf16>
    %c0_21 = arith.constant 0 : index
    %c0_22 = arith.constant 0 : index
    %37 = vector.load %arg9[%c0_21, %c0_22] : memref<72x64xbf16, #tpu.memory_space<vmem>>, vector<72x64xbf16>
    tpu.vector_store %arg9[%c0_21, %c0_22], %36 {strides = array<i32>} : memref<72x64xbf16, #tpu.memory_space<vmem>>, vector<72x64xbf16>,
    return
  }
  func.func @transform_0(%arg0: i32) -> (i32, i32) {
    %c0_i32 = arith.constant 0 : i32
    %c0_i32_0 = arith.constant 0 : i32
    return %arg0, %c0_i32 : i32, i32
  }
  func.func @transform_1(%arg0: i32) -> (i32, i32) {
    %c0_i32 = arith.constant 0 : i32
    %c0_i32_0 = arith.constant 0 : i32
    %c0_i32_1 = arith.constant 0 : i32
    return %c0_i32, %c0_i32_0 : i32, i32
  }
  func.func @transform_2(%arg0: i32) -> (i32, i32) {
    %c0_i32 = arith.constant 0 : i32
    %c0_i32_0 = arith.constant 0 : i32
    %c0_i32_1 = arith.constant 0 : i32
    return %c0_i32, %c0_i32_0 : i32, i32
  }
  func.func @transform_3(%arg0: i32) -> (i32, i32) {
    %c0_i32 = arith.constant 0 : i32
    %c0_i32_0 = arith.constant 0 : i32
    %c0_i32_1 = arith.constant 0 : i32
    return %c0_i32, %c0_i32_0 : i32, i32
  }
  func.func @transform_4(%arg0: i32) -> (i32, i32) {
    %c0_i32 = arith.constant 0 : i32
    %c0_i32_0 = arith.constant 0 : i32
    %c0_i32_1 = arith.constant 0 : i32
    return %c0_i32, %c0_i32_0 : i32, i32
  }
  func.func @transform_5(%arg0: i32) -> (i32, i32) {
    %c0_i32 = arith.constant 0 : i32
    %c0_i32_0 = arith.constant 0 : i32
    %c0_i32_1 = arith.constant 0 : i32
    return %c0_i32, %c0_i32_0 : i32, i32
  }
  func.func @transform_6(%arg0: i32) -> (i32, i32) {
    %c0_i32 = arith.constant 0 : i32
    %c0_i32_0 = arith.constant 0 : i32
    %c0_i32_1 = arith.constant 0 : i32
    return %c0_i32, %c0_i32_0 : i32, i32
  }
  func.func @transform_7(%arg0: i32) -> (i32, i32) {
    %c0_i32 = arith.constant 0 : i32
    %c0_i32_0 = arith.constant 0 : i32
    return %arg0, %c0_i32 : i32, i32
  }
  func.func @transform_8(%arg0: i32) -> (i32, i32) {
    %c0_i32 = arith.constant 0 : i32
    %c0_i32_0 = arith.constant 0 : i32
    return %arg0, %c0_i32 : i32, i32
  }
}

module attributes {stable_mosaic.version = 11 : i64} {
  func.func @_pool_headln_kernel(%arg0: i32, %arg1: memref<1x1x64xbf16, #tpu.memory_space<vmem>>, %arg2: memref<1x16x27x64xbf16, #tpu.memory_space<vmem>>, %arg3: memref<27x64xf32, #tpu.memory_space<vmem>>, %arg4: memref<1x64xf32, #tpu.memory_space<vmem>>, %arg5: memref<1x64xf32, #tpu.memory_space<vmem>>, %arg6: memref<64x4xf32, #tpu.memory_space<vmem>>, %arg7: memref<4x64xf32, #tpu.memory_space<vmem>>, %arg8: memref<1x17x64xbf16, #tpu.memory_space<vmem>>) attributes {dimension_semantics = [#tpu.dimension_semantics<parallel>], iteration_bounds = array<i64: 2>, scalar_prefetch = 0 : i64, scratch_operands = 0 : i64, tpu.core_type = #tpu.core_type<tc>, window_params = [{transform_indices = @transform_0, window_bounds = array<i64: 1, 1, 64>}, {transform_indices = @transform_1, window_bounds = array<i64: 1, 16, 27, 64>}, {pipeline_mode = #tpu.pipeline_mode<synchronous>, transform_indices = @transform_2, window_bounds = array<i64: 27, 64>}, {pipeline_mode = #tpu.pipeline_mode<synchronous>, transform_indices = @transform_3, window_bounds = array<i64: 1, 64>}, {pipeline_mode = #tpu.pipeline_mode<synchronous>, transform_indices = @transform_4, window_bounds = array<i64: 1, 64>}, {pipeline_mode = #tpu.pipeline_mode<synchronous>, transform_indices = @transform_5, window_bounds = array<i64: 64, 4>}, {pipeline_mode = #tpu.pipeline_mode<synchronous>, transform_indices = @transform_6, window_bounds = array<i64: 4, 64>}, {transform_indices = @transform_7, window_bounds = array<i64: 1, 17, 64>}]} {
    %c0 = arith.constant 0 : index
    %c0_0 = arith.constant 0 : index
    %c0_1 = arith.constant 0 : index
    %c0_2 = arith.constant 0 : index
    %0 = vector.load %arg2[%c0, %c0_0, %c0_1, %c0_2] : memref<1x16x27x64xbf16, #tpu.memory_space<vmem>>, vector<1x16x27x64xbf16>
    %1 = vector.shape_cast %0 : vector<1x16x27x64xbf16> to vector<16x27x64xbf16>
    %2 = arith.extf %1 : vector<16x27x64xbf16> to vector<16x27x64xf32>
    %c0_3 = arith.constant 0 : index
    %c0_4 = arith.constant 0 : index
    %3 = vector.load %arg3[%c0_3, %c0_4] : memref<27x64xf32, #tpu.memory_space<vmem>>, vector<27x64xf32>
    %4 = vector.shape_cast %3 : vector<27x64xf32> to vector<1x27x64xf32>
    %5 = vector.broadcast %4 : vector<1x27x64xf32> to vector<16x27x64xf32>
    %6 = arith.mulf %2, %5 : vector<16x27x64xf32>
    %cst = arith.constant dense<0.000000e+00> : vector<16x64xf32>
    %7 = vector.multi_reduction <add>, %6, %cst [1] : vector<16x27x64xf32> to vector<16x64xf32>
    %c0_5 = arith.constant 0 : index
    %c0_6 = arith.constant 0 : index
    %c0_7 = arith.constant 0 : index
    %8 = vector.load %arg1[%c0_5, %c0_6, %c0_7] : memref<1x1x64xbf16, #tpu.memory_space<vmem>>, vector<1x1x64xbf16>
    %9 = vector.shape_cast %8 : vector<1x1x64xbf16> to vector<1x64xbf16>
    %10 = arith.extf %9 : vector<1x64xbf16> to vector<1x64xf32>
    %11 = tpu.concatenate %10, %7 in 0 : vector<1x64xf32>, vector<16x64xf32> -> vector<17x64xf32>
    %c0_8 = arith.constant 0 : index
    %c0_9 = arith.constant 0 : index
    %12 = vector.load %arg6[%c0_8, %c0_9] : memref<64x4xf32, #tpu.memory_space<vmem>>, vector<64x4xf32>
    %c0_10 = arith.constant 0 : index
    %c0_11 = arith.constant 0 : index
    %13 = vector.load %arg7[%c0_10, %c0_11] : memref<4x64xf32, #tpu.memory_space<vmem>>, vector<4x64xf32>
    %c0_12 = arith.constant 0 : index
    %c0_13 = arith.constant 0 : index
    %14 = vector.load %arg4[%c0_12, %c0_13] : memref<1x64xf32, #tpu.memory_space<vmem>>, vector<1x64xf32>
    %c0_14 = arith.constant 0 : index
    %c0_15 = arith.constant 0 : index
    %15 = vector.load %arg5[%c0_14, %c0_15] : memref<1x64xf32, #tpu.memory_space<vmem>>, vector<1x64xf32>
    %cst_16 = arith.constant dense<0.000000e+00> : vector<17x4xf32>
    %16 = tpu.matmul %11, %12, %cst_16 {dimension_numbers = #tpu.dot_dimension_numbers<[1], [0], [0], [1], [0, 0, 1, 1], [], []>} : vector<17x64xf32>, vector<64x4xf32>, vector<17x4xf32> -> vector<17x4xf32>
    %cst_17 = arith.constant 6.250000e-02 : f32
    %17 = vector.broadcast %cst_17 : f32 to vector<17x4xf32>
    %18 = arith.mulf %16, %17 : vector<17x4xf32>
    %cst_18 = arith.constant dense<0.000000e+00> : vector<17x64xf32>
    %19 = tpu.matmul %18, %13, %cst_18 {dimension_numbers = #tpu.dot_dimension_numbers<[1], [0], [0], [1], [0, 0, 1, 1], [], []>} : vector<17x4xf32>, vector<4x64xf32>, vector<17x64xf32> -> vector<17x64xf32>
    %20 = arith.subf %11, %19 : vector<17x64xf32>
    %21 = arith.mulf %20, %20 : vector<17x64xf32>
    %cst_19 = arith.constant dense<0.000000e+00> : vector<17x4xf32>
    %22 = tpu.matmul %21, %12, %cst_19 {dimension_numbers = #tpu.dot_dimension_numbers<[1], [0], [0], [1], [0, 0, 1, 1], [], []>} : vector<17x64xf32>, vector<64x4xf32>, vector<17x4xf32> -> vector<17x4xf32>
    %cst_20 = arith.constant 6.250000e-02 : f32
    %23 = vector.broadcast %cst_20 : f32 to vector<17x4xf32>
    %24 = arith.mulf %22, %23 : vector<17x4xf32>
    %cst_21 = arith.constant dense<0.000000e+00> : vector<17x64xf32>
    %25 = tpu.matmul %24, %13, %cst_21 {dimension_numbers = #tpu.dot_dimension_numbers<[1], [0], [0], [1], [0, 0, 1, 1], [], []>} : vector<17x4xf32>, vector<4x64xf32>, vector<17x64xf32> -> vector<17x64xf32>
    %cst_22 = arith.constant 9.99999997E-7 : f32
    %26 = vector.broadcast %cst_22 : f32 to vector<17x64xf32>
    %27 = arith.addf %25, %26 : vector<17x64xf32>
    %28 = math.rsqrt %27 : vector<17x64xf32>
    %29 = arith.mulf %20, %28 : vector<17x64xf32>
    %30 = vector.broadcast %14 : vector<1x64xf32> to vector<17x64xf32>
    %31 = arith.mulf %29, %30 : vector<17x64xf32>
    %32 = vector.broadcast %15 : vector<1x64xf32> to vector<17x64xf32>
    %33 = arith.addf %31, %32 : vector<17x64xf32>
    %34 = arith.truncf %33 : vector<17x64xf32> to vector<17x64xbf16>
    %c0_23 = arith.constant 0 : index
    %c0_24 = arith.constant 0 : index
    %c0_25 = arith.constant 0 : index
    %35 = vector.load %arg8[%c0_23, %c0_24, %c0_25] : memref<1x17x64xbf16, #tpu.memory_space<vmem>>, vector<1x17x64xbf16>
    %36 = vector.shape_cast %35 : vector<1x17x64xbf16> to vector<17x64xbf16>
    %37 = vector.shape_cast %34 : vector<17x64xbf16> to vector<1x17x64xbf16>
    tpu.vector_store %arg8[%c0_23, %c0_24, %c0_25], %37 {strides = array<i32>} : memref<1x17x64xbf16, #tpu.memory_space<vmem>>, vector<1x17x64xbf16>,
    return
  }
  func.func @transform_0(%arg0: i32) -> (i32, i32, i32) {
    %c0_i32 = arith.constant 0 : i32
    %c0_i32_0 = arith.constant 0 : i32
    %c0_i32_1 = arith.constant 0 : i32
    return %arg0, %c0_i32, %c0_i32_0 : i32, i32, i32
  }
  func.func @transform_1(%arg0: i32) -> (i32, i32, i32, i32) {
    %c0_i32 = arith.constant 0 : i32
    %c0_i32_0 = arith.constant 0 : i32
    %c0_i32_1 = arith.constant 0 : i32
    %c0_i32_2 = arith.constant 0 : i32
    return %arg0, %c0_i32, %c0_i32_0, %c0_i32_1 : i32, i32, i32, i32
  }
  func.func @transform_2(%arg0: i32) -> (i32, i32) {
    %c0_i32 = arith.constant 0 : i32
    %c0_i32_0 = arith.constant 0 : i32
    %c0_i32_1 = arith.constant 0 : i32
    return %c0_i32, %c0_i32_0 : i32, i32
  }
  func.func @transform_3(%arg0: i32) -> (i32, i32) {
    %c0_i32 = arith.constant 0 : i32
    %c0_i32_0 = arith.constant 0 : i32
    %c0_i32_1 = arith.constant 0 : i32
    return %c0_i32, %c0_i32_0 : i32, i32
  }
  func.func @transform_4(%arg0: i32) -> (i32, i32) {
    %c0_i32 = arith.constant 0 : i32
    %c0_i32_0 = arith.constant 0 : i32
    %c0_i32_1 = arith.constant 0 : i32
    return %c0_i32, %c0_i32_0 : i32, i32
  }
  func.func @transform_5(%arg0: i32) -> (i32, i32) {
    %c0_i32 = arith.constant 0 : i32
    %c0_i32_0 = arith.constant 0 : i32
    %c0_i32_1 = arith.constant 0 : i32
    return %c0_i32, %c0_i32_0 : i32, i32
  }
  func.func @transform_6(%arg0: i32) -> (i32, i32) {
    %c0_i32 = arith.constant 0 : i32
    %c0_i32_0 = arith.constant 0 : i32
    %c0_i32_1 = arith.constant 0 : i32
    return %c0_i32, %c0_i32_0 : i32, i32
  }
  func.func @transform_7(%arg0: i32) -> (i32, i32, i32) {
    %c0_i32 = arith.constant 0 : i32
    %c0_i32_0 = arith.constant 0 : i32
    %c0_i32_1 = arith.constant 0 : i32
    return %arg0, %c0_i32, %c0_i32_0 : i32, i32, i32
  }
}

module attributes {stable_mosaic.version = 11 : i64} {
  func.func @_attn_proj_res_kernel(%arg0: i32, %arg1: memref<1x65x32xbf16, #tpu.memory_space<vmem>>, %arg2: memref<1x17x64xbf16, #tpu.memory_space<vmem>>, %arg3: memref<1x65x32xf32, #tpu.memory_space<vmem>>, %arg4: memref<32x32xbf16, #tpu.memory_space<vmem>>, %arg5: memref<1x32xf32, #tpu.memory_space<vmem>>, %arg6: memref<1x65x32xbf16, #tpu.memory_space<vmem>>) attributes {dimension_semantics = [#tpu.dimension_semantics<parallel>], iteration_bounds = array<i64: 2>, scalar_prefetch = 0 : i64, scratch_operands = 0 : i64, tpu.core_type = #tpu.core_type<tc>, window_params = [{transform_indices = @transform_0, window_bounds = array<i64: 1, 65, 32>}, {transform_indices = @transform_1, window_bounds = array<i64: 1, 17, 64>}, {transform_indices = @transform_2, window_bounds = array<i64: 1, 65, 32>}, {pipeline_mode = #tpu.pipeline_mode<synchronous>, transform_indices = @transform_3, window_bounds = array<i64: 32, 32>}, {pipeline_mode = #tpu.pipeline_mode<synchronous>, transform_indices = @transform_4, window_bounds = array<i64: 1, 32>}, {transform_indices = @transform_5, window_bounds = array<i64: 1, 65, 32>}]} {
    %c0 = arith.constant 0 : index
    %c0_0 = arith.constant 0 : index
    %c0_1 = arith.constant 0 : index
    %0 = vector.load %arg1[%c0, %c0_0, %c0_1] : memref<1x65x32xbf16, #tpu.memory_space<vmem>>, vector<1x65x32xbf16>
    %1 = vector.shape_cast %0 : vector<1x65x32xbf16> to vector<65x32xbf16>
    %2 = arith.extf %1 : vector<65x32xbf16> to vector<65x32xf32>
    %cst = arith.constant 2.500000e-01 : f32
    %3 = vector.broadcast %cst : f32 to vector<65x32xf32>
    %4 = arith.mulf %2, %3 : vector<65x32xf32>
    %5 = arith.truncf %4 : vector<65x32xf32> to vector<65x32xbf16>
    %c0_2 = arith.constant 0 : index
    %c0_3 = arith.constant 0 : index
    %c0_4 = arith.constant 0 : index
    %6 = vector.load %arg2[%c0_2, %c0_3, %c0_4] : memref<1x17x64xbf16, #tpu.memory_space<vmem>>, vector<1x17x64xbf16>
    %7 = vector.shape_cast %6 : vector<1x17x64xbf16> to vector<17x64xbf16>
    %cst_5 = arith.constant 0.000000e+00 : f32
    %8 = vector.broadcast %cst_5 : f32 to vector<65x32xf32>
    %9 = vector.extract_strided_slice %5 {offsets = [0, 0], sizes = [65, 16], strides = [1, 1]} : vector<65x32xbf16> to vector<65x16xbf16>
    %10 = vector.extract_strided_slice %7 {offsets = [0, 0], sizes = [17, 16], strides = [1, 1]} : vector<17x64xbf16> to vector<17x16xbf16>
    %11 = vector.extract_strided_slice %7 {offsets = [0, 32], sizes = [17, 16], strides = [1, 1]} : vector<17x64xbf16> to vector<17x16xbf16>
    %cst_6 = arith.constant dense<0.000000e+00> : vector<65x17xf32>
    %12 = tpu.matmul %9, %10, %cst_6 {dimension_numbers = #tpu.dot_dimension_numbers<[1], [1], [0], [0], [0, 0, 1, 0], [], []>} : vector<65x16xbf16>, vector<17x16xbf16>, vector<65x17xf32> -> vector<65x17xf32>
    %cst_7 = arith.constant dense<0xFF800000> : vector<65xf32>
    %13 = vector.multi_reduction <maximumf>, %12, %cst_7 [1] : vector<65x17xf32> to vector<65xf32>
    %14 = vector.shape_cast %13 : vector<65xf32> to vector<65x1xf32>
    %15 = vector.broadcast %14 : vector<65x1xf32> to vector<65x17xf32>
    %16 = arith.subf %12, %15 : vector<65x17xf32>
    %17 = math.exp %16 : vector<65x17xf32>
    %cst_8 = arith.constant dense<0.000000e+00> : vector<65xf32>
    %18 = vector.multi_reduction <add>, %17, %cst_8 [1] : vector<65x17xf32> to vector<65xf32>
    %19 = vector.shape_cast %18 : vector<65xf32> to vector<65x1xf32>
    %20 = tpu.reciprocal %19 {approx = true} : vector<65x1xf32> -> vector<65x1xf32>
    %21 = vector.broadcast %20 : vector<65x1xf32> to vector<65x17xf32>
    %22 = arith.mulf %17, %21 : vector<65x17xf32>
    %23 = arith.truncf %22 : vector<65x17xf32> to vector<65x17xbf16>
    %cst_9 = arith.constant dense<0.000000e+00> : vector<65x16xf32>
    %24 = tpu.matmul %23, %11, %cst_9 {dimension_numbers = #tpu.dot_dimension_numbers<[1], [0], [0], [1], [0, 0, 1, 1], [], []>} : vector<65x17xbf16>, vector<17x16xbf16>, vector<65x16xf32> -> vector<65x16xf32>
    %25 = arith.truncf %24 : vector<65x16xf32> to vector<65x16xbf16>
    %c0_10 = arith.constant 0 : index
    %c0_11 = arith.constant 0 : index
    %26 = vector.load %arg4[%c0_10, %c0_11] : memref<32x32xbf16, #tpu.memory_space<vmem>>, vector<16x32xbf16>
    %cst_12 = arith.constant dense<0.000000e+00> : vector<65x32xf32>
    %27 = tpu.matmul %25, %26, %cst_12 {dimension_numbers = #tpu.dot_dimension_numbers<[1], [0], [0], [1], [0, 0, 1, 1], [], []>} : vector<65x16xbf16>, vector<16x32xbf16>, vector<65x32xf32> -> vector<65x32xf32>
    %28 = arith.addf %8, %27 : vector<65x32xf32>
    %29 = vector.extract_strided_slice %5 {offsets = [0, 16], sizes = [65, 16], strides = [1, 1]} : vector<65x32xbf16> to vector<65x16xbf16>
    %30 = vector.extract_strided_slice %7 {offsets = [0, 16], sizes = [17, 16], strides = [1, 1]} : vector<17x64xbf16> to vector<17x16xbf16>
    %31 = vector.extract_strided_slice %7 {offsets = [0, 48], sizes = [17, 16], strides = [1, 1]} : vector<17x64xbf16> to vector<17x16xbf16>
    %cst_13 = arith.constant dense<0.000000e+00> : vector<65x17xf32>
    %32 = tpu.matmul %29, %30, %cst_13 {dimension_numbers = #tpu.dot_dimension_numbers<[1], [1], [0], [0], [0, 0, 1, 0], [], []>} : vector<65x16xbf16>, vector<17x16xbf16>, vector<65x17xf32> -> vector<65x17xf32>
    %cst_14 = arith.constant dense<0xFF800000> : vector<65xf32>
    %33 = vector.multi_reduction <maximumf>, %32, %cst_14 [1] : vector<65x17xf32> to vector<65xf32>
    %34 = vector.shape_cast %33 : vector<65xf32> to vector<65x1xf32>
    %35 = vector.broadcast %34 : vector<65x1xf32> to vector<65x17xf32>
    %36 = arith.subf %32, %35 : vector<65x17xf32>
    %37 = math.exp %36 : vector<65x17xf32>
    %cst_15 = arith.constant dense<0.000000e+00> : vector<65xf32>
    %38 = vector.multi_reduction <add>, %37, %cst_15 [1] : vector<65x17xf32> to vector<65xf32>
    %39 = vector.shape_cast %38 : vector<65xf32> to vector<65x1xf32>
    %40 = tpu.reciprocal %39 {approx = true} : vector<65x1xf32> -> vector<65x1xf32>
    %41 = vector.broadcast %40 : vector<65x1xf32> to vector<65x17xf32>
    %42 = arith.mulf %37, %41 : vector<65x17xf32>
    %43 = arith.truncf %42 : vector<65x17xf32> to vector<65x17xbf16>
    %cst_16 = arith.constant dense<0.000000e+00> : vector<65x16xf32>
    %44 = tpu.matmul %43, %31, %cst_16 {dimension_numbers = #tpu.dot_dimension_numbers<[1], [0], [0], [1], [0, 0, 1, 1], [], []>} : vector<65x17xbf16>, vector<17x16xbf16>, vector<65x16xf32> -> vector<65x16xf32>
    %45 = arith.truncf %44 : vector<65x16xf32> to vector<65x16xbf16>
    %c16 = arith.constant 16 : index
    %c0_17 = arith.constant 0 : index
    %46 = vector.load %arg4[%c16, %c0_17] : memref<32x32xbf16, #tpu.memory_space<vmem>>, vector<16x32xbf16>
    %cst_18 = arith.constant dense<0.000000e+00> : vector<65x32xf32>
    %47 = tpu.matmul %45, %46, %cst_18 {dimension_numbers = #tpu.dot_dimension_numbers<[1], [0], [0], [1], [0, 0, 1, 1], [], []>} : vector<65x16xbf16>, vector<16x32xbf16>, vector<65x32xf32> -> vector<65x32xf32>
    %48 = arith.addf %28, %47 : vector<65x32xf32>
    %c0_19 = arith.constant 0 : index
    %c0_20 = arith.constant 0 : index
    %49 = vector.load %arg5[%c0_19, %c0_20] : memref<1x32xf32, #tpu.memory_space<vmem>>, vector<1x32xf32>
    %50 = vector.broadcast %49 : vector<1x32xf32> to vector<65x32xf32>
    %51 = arith.addf %48, %50 : vector<65x32xf32>
    %c0_21 = arith.constant 0 : index
    %c0_22 = arith.constant 0 : index
    %c0_23 = arith.constant 0 : index
    %52 = vector.load %arg3[%c0_21, %c0_22, %c0_23] : memref<1x65x32xf32, #tpu.memory_space<vmem>>, vector<1x65x32xf32>
    %53 = vector.shape_cast %52 : vector<1x65x32xf32> to vector<65x32xf32>
    %54 = arith.addf %51, %53 : vector<65x32xf32>
    %55 = arith.truncf %54 : vector<65x32xf32> to vector<65x32xbf16>
    %c0_24 = arith.constant 0 : index
    %c0_25 = arith.constant 0 : index
    %c0_26 = arith.constant 0 : index
    %56 = vector.load %arg6[%c0_24, %c0_25, %c0_26] : memref<1x65x32xbf16, #tpu.memory_space<vmem>>, vector<1x65x32xbf16>
    %57 = vector.shape_cast %56 : vector<1x65x32xbf16> to vector<65x32xbf16>
    %58 = vector.shape_cast %55 : vector<65x32xbf16> to vector<1x65x32xbf16>
    tpu.vector_store %arg6[%c0_24, %c0_25, %c0_26], %58 {strides = array<i32>} : memref<1x65x32xbf16, #tpu.memory_space<vmem>>, vector<1x65x32xbf16>,
    return
  }
  func.func @transform_0(%arg0: i32) -> (i32, i32, i32) {
    %c0_i32 = arith.constant 0 : i32
    %c0_i32_0 = arith.constant 0 : i32
    %c0_i32_1 = arith.constant 0 : i32
    return %arg0, %c0_i32, %c0_i32_0 : i32, i32, i32
  }
  func.func @transform_1(%arg0: i32) -> (i32, i32, i32) {
    %c0_i32 = arith.constant 0 : i32
    %c0_i32_0 = arith.constant 0 : i32
    %c0_i32_1 = arith.constant 0 : i32
    return %arg0, %c0_i32, %c0_i32_0 : i32, i32, i32
  }
  func.func @transform_2(%arg0: i32) -> (i32, i32, i32) {
    %c0_i32 = arith.constant 0 : i32
    %c0_i32_0 = arith.constant 0 : i32
    %c0_i32_1 = arith.constant 0 : i32
    return %arg0, %c0_i32, %c0_i32_0 : i32, i32, i32
  }
  func.func @transform_3(%arg0: i32) -> (i32, i32) {
    %c0_i32 = arith.constant 0 : i32
    %c0_i32_0 = arith.constant 0 : i32
    %c0_i32_1 = arith.constant 0 : i32
    return %c0_i32, %c0_i32_0 : i32, i32
  }
  func.func @transform_4(%arg0: i32) -> (i32, i32) {
    %c0_i32 = arith.constant 0 : i32
    %c0_i32_0 = arith.constant 0 : i32
    %c0_i32_1 = arith.constant 0 : i32
    return %c0_i32, %c0_i32_0 : i32, i32
  }
  func.func @transform_5(%arg0: i32) -> (i32, i32, i32) {
    %c0_i32 = arith.constant 0 : i32
    %c0_i32_0 = arith.constant 0 : i32
    %c0_i32_1 = arith.constant 0 : i32
    return %arg0, %c0_i32, %c0_i32_0 : i32, i32, i32
  }
}

module attributes {stable_mosaic.version = 11 : i64} {
  func.func @_lambda_(%arg0: i32, %arg1: memref<72x32xbf16, #tpu.memory_space<vmem>>, %arg2: memref<1x32xf32, #tpu.memory_space<vmem>>, %arg3: memref<1x32xf32, #tpu.memory_space<vmem>>, %arg4: memref<32x128xbf16, #tpu.memory_space<vmem>>, %arg5: memref<1x128xf32, #tpu.memory_space<vmem>>, %arg6: memref<128x32xbf16, #tpu.memory_space<vmem>>, %arg7: memref<1x32xf32, #tpu.memory_space<vmem>>, %arg8: memref<72x32xbf16, #tpu.memory_space<vmem>>) attributes {dimension_semantics = [#tpu.dimension_semantics<parallel>], iteration_bounds = array<i64: 2>, scalar_prefetch = 0 : i64, scratch_operands = 0 : i64, tpu.core_type = #tpu.core_type<tc>, window_params = [{transform_indices = @transform_0, window_bounds = array<i64: 72, 32>}, {pipeline_mode = #tpu.pipeline_mode<synchronous>, transform_indices = @transform_1, window_bounds = array<i64: 1, 32>}, {pipeline_mode = #tpu.pipeline_mode<synchronous>, transform_indices = @transform_2, window_bounds = array<i64: 1, 32>}, {pipeline_mode = #tpu.pipeline_mode<synchronous>, transform_indices = @transform_3, window_bounds = array<i64: 32, 128>}, {pipeline_mode = #tpu.pipeline_mode<synchronous>, transform_indices = @transform_4, window_bounds = array<i64: 1, 128>}, {pipeline_mode = #tpu.pipeline_mode<synchronous>, transform_indices = @transform_5, window_bounds = array<i64: 128, 32>}, {pipeline_mode = #tpu.pipeline_mode<synchronous>, transform_indices = @transform_6, window_bounds = array<i64: 1, 32>}, {transform_indices = @transform_7, window_bounds = array<i64: 72, 32>}]} {
    %c0 = arith.constant 0 : index
    %c0_0 = arith.constant 0 : index
    %0 = vector.load %arg1[%c0, %c0_0] : memref<72x32xbf16, #tpu.memory_space<vmem>>, vector<72x32xbf16>
    %1 = arith.extf %0 : vector<72x32xbf16> to vector<72x32xf32>
    %c0_1 = arith.constant 0 : index
    %c0_2 = arith.constant 0 : index
    %2 = vector.load %arg2[%c0_1, %c0_2] : memref<1x32xf32, #tpu.memory_space<vmem>>, vector<1x32xf32>
    %c0_3 = arith.constant 0 : index
    %c0_4 = arith.constant 0 : index
    %3 = vector.load %arg3[%c0_3, %c0_4] : memref<1x32xf32, #tpu.memory_space<vmem>>, vector<1x32xf32>
    %cst = arith.constant dense<0.000000e+00> : vector<72xf32>
    %4 = vector.multi_reduction <add>, %1, %cst [1] : vector<72x32xf32> to vector<72xf32>
    %5 = vector.shape_cast %4 : vector<72xf32> to vector<72x1xf32>
    %cst_5 = arith.constant 3.200000e+01 : f32
    %6 = vector.broadcast %cst_5 : f32 to vector<72x1xf32>
    %7 = arith.divf %5, %6 : vector<72x1xf32>
    %8 = vector.broadcast %7 : vector<72x1xf32> to vector<72x32xf32>
    %9 = arith.subf %1, %8 : vector<72x32xf32>
    %10 = arith.mulf %9, %9 : vector<72x32xf32>
    %cst_6 = arith.constant dense<0.000000e+00> : vector<72xf32>
    %11 = vector.multi_reduction <add>, %10, %cst_6 [1] : vector<72x32xf32> to vector<72xf32>
    %12 = vector.shape_cast %11 : vector<72xf32> to vector<72x1xf32>
    %cst_7 = arith.constant 3.200000e+01 : f32
    %13 = vector.broadcast %cst_7 : f32 to vector<72x1xf32>
    %14 = arith.divf %12, %13 : vector<72x1xf32>
    %cst_8 = arith.constant 9.99999997E-7 : f32
    %15 = vector.broadcast %cst_8 : f32 to vector<72x1xf32>
    %16 = arith.addf %14, %15 : vector<72x1xf32>
    %17 = math.rsqrt %16 : vector<72x1xf32>
    %18 = vector.broadcast %17 : vector<72x1xf32> to vector<72x32xf32>
    %19 = arith.mulf %9, %18 : vector<72x32xf32>
    %20 = vector.broadcast %2 : vector<1x32xf32> to vector<72x32xf32>
    %21 = arith.mulf %19, %20 : vector<72x32xf32>
    %22 = vector.broadcast %3 : vector<1x32xf32> to vector<72x32xf32>
    %23 = arith.addf %21, %22 : vector<72x32xf32>
    %24 = arith.truncf %23 : vector<72x32xf32> to vector<72x32xbf16>
    %c0_9 = arith.constant 0 : index
    %c0_10 = arith.constant 0 : index
    %25 = vector.load %arg4[%c0_9, %c0_10] : memref<32x128xbf16, #tpu.memory_space<vmem>>, vector<32x128xbf16>
    %cst_11 = arith.constant dense<0.000000e+00> : vector<72x128xf32>
    %26 = tpu.matmul %24, %25, %cst_11 {dimension_numbers = #tpu.dot_dimension_numbers<[1], [0], [0], [1], [0, 0, 1, 1], [], []>} : vector<72x32xbf16>, vector<32x128xbf16>, vector<72x128xf32> -> vector<72x128xf32>
    %c0_12 = arith.constant 0 : index
    %c0_13 = arith.constant 0 : index
    %27 = vector.load %arg5[%c0_12, %c0_13] : memref<1x128xf32, #tpu.memory_space<vmem>>, vector<1x128xf32>
    %28 = vector.broadcast %27 : vector<1x128xf32> to vector<72x128xf32>
    %29 = arith.addf %26, %28 : vector<72x128xf32>
    %cst_14 = arith.constant 5.000000e-01 : f32
    %30 = vector.broadcast %cst_14 : f32 to vector<72x128xf32>
    %31 = arith.mulf %30, %29 : vector<72x128xf32>
    %cst_15 = arith.constant 4.471500e-02 : f32
    %32 = vector.broadcast %cst_15 : f32 to vector<72x128xf32>
    %33 = arith.mulf %32, %29 : vector<72x128xf32>
    %34 = arith.mulf %33, %29 : vector<72x128xf32>
    %35 = arith.mulf %34, %29 : vector<72x128xf32>
    %36 = arith.addf %29, %35 : vector<72x128xf32>
    %cst_16 = arith.constant 0.797884583 : f32
    %37 = vector.broadcast %cst_16 : f32 to vector<72x128xf32>
    %38 = arith.mulf %37, %36 : vector<72x128xf32>
    %39 = math.tanh %38 : vector<72x128xf32>
    %cst_17 = arith.constant 1.000000e+00 : f32
    %40 = vector.broadcast %cst_17 : f32 to vector<72x128xf32>
    %41 = arith.addf %40, %39 : vector<72x128xf32>
    %42 = arith.mulf %31, %41 : vector<72x128xf32>
    %43 = arith.truncf %42 : vector<72x128xf32> to vector<72x128xbf16>
    %c0_18 = arith.constant 0 : index
    %c0_19 = arith.constant 0 : index
    %44 = vector.load %arg6[%c0_18, %c0_19] : memref<128x32xbf16, #tpu.memory_space<vmem>>, vector<128x32xbf16>
    %cst_20 = arith.constant dense<0.000000e+00> : vector<72x32xf32>
    %45 = tpu.matmul %43, %44, %cst_20 {dimension_numbers = #tpu.dot_dimension_numbers<[1], [0], [0], [1], [0, 0, 1, 1], [], []>} : vector<72x128xbf16>, vector<128x32xbf16>, vector<72x32xf32> -> vector<72x32xf32>
    %c0_21 = arith.constant 0 : index
    %c0_22 = arith.constant 0 : index
    %46 = vector.load %arg7[%c0_21, %c0_22] : memref<1x32xf32, #tpu.memory_space<vmem>>, vector<1x32xf32>
    %47 = vector.broadcast %46 : vector<1x32xf32> to vector<72x32xf32>
    %48 = arith.addf %45, %47 : vector<72x32xf32>
    %49 = arith.addf %1, %48 : vector<72x32xf32>
    %50 = arith.truncf %49 : vector<72x32xf32> to vector<72x32xbf16>
    %c0_23 = arith.constant 0 : index
    %c0_24 = arith.constant 0 : index
    %51 = vector.load %arg8[%c0_23, %c0_24] : memref<72x32xbf16, #tpu.memory_space<vmem>>, vector<72x32xbf16>
    tpu.vector_store %arg8[%c0_23, %c0_24], %50 {strides = array<i32>} : memref<72x32xbf16, #tpu.memory_space<vmem>>, vector<72x32xbf16>,
    return
  }
  func.func @transform_0(%arg0: i32) -> (i32, i32) {
    %c0_i32 = arith.constant 0 : i32
    %c0_i32_0 = arith.constant 0 : i32
    return %arg0, %c0_i32 : i32, i32
  }
  func.func @transform_1(%arg0: i32) -> (i32, i32) {
    %c0_i32 = arith.constant 0 : i32
    %c0_i32_0 = arith.constant 0 : i32
    %c0_i32_1 = arith.constant 0 : i32
    return %c0_i32, %c0_i32_0 : i32, i32
  }
  func.func @transform_2(%arg0: i32) -> (i32, i32) {
    %c0_i32 = arith.constant 0 : i32
    %c0_i32_0 = arith.constant 0 : i32
    %c0_i32_1 = arith.constant 0 : i32
    return %c0_i32, %c0_i32_0 : i32, i32
  }
  func.func @transform_3(%arg0: i32) -> (i32, i32) {
    %c0_i32 = arith.constant 0 : i32
    %c0_i32_0 = arith.constant 0 : i32
    %c0_i32_1 = arith.constant 0 : i32
    return %c0_i32, %c0_i32_0 : i32, i32
  }
  func.func @transform_4(%arg0: i32) -> (i32, i32) {
    %c0_i32 = arith.constant 0 : i32
    %c0_i32_0 = arith.constant 0 : i32
    %c0_i32_1 = arith.constant 0 : i32
    return %c0_i32, %c0_i32_0 : i32, i32
  }
  func.func @transform_5(%arg0: i32) -> (i32, i32) {
    %c0_i32 = arith.constant 0 : i32
    %c0_i32_0 = arith.constant 0 : i32
    %c0_i32_1 = arith.constant 0 : i32
    return %c0_i32, %c0_i32_0 : i32, i32
  }
  func.func @transform_6(%arg0: i32) -> (i32, i32) {
    %c0_i32 = arith.constant 0 : i32
    %c0_i32_0 = arith.constant 0 : i32
    %c0_i32_1 = arith.constant 0 : i32
    return %c0_i32, %c0_i32_0 : i32, i32
  }
  func.func @transform_7(%arg0: i32) -> (i32, i32) {
    %c0_i32 = arith.constant 0 : i32
    %c0_i32_0 = arith.constant 0 : i32
    return %arg0, %c0_i32 : i32, i32
  }
}

module attributes {stable_mosaic.version = 11 : i64} {
  func.func @_ln_qkv_kernel(%arg0: i32, %arg1: memref<72x32xbf16, #tpu.memory_space<vmem>>, %arg2: memref<1x32xf32, #tpu.memory_space<vmem>>, %arg3: memref<1x32xf32, #tpu.memory_space<vmem>>, %arg4: memref<32x32xbf16, #tpu.memory_space<vmem>>, %arg5: memref<1x32xf32, #tpu.memory_space<vmem>>, %arg6: memref<32x64xbf16, #tpu.memory_space<vmem>>, %arg7: memref<1x64xf32, #tpu.memory_space<vmem>>, %arg8: memref<72x32xbf16, #tpu.memory_space<vmem>>, %arg9: memref<72x64xbf16, #tpu.memory_space<vmem>>) attributes {dimension_semantics = [#tpu.dimension_semantics<parallel>], iteration_bounds = array<i64: 2>, scalar_prefetch = 0 : i64, scratch_operands = 0 : i64, tpu.core_type = #tpu.core_type<tc>, window_params = [{transform_indices = @transform_0, window_bounds = array<i64: 72, 32>}, {pipeline_mode = #tpu.pipeline_mode<synchronous>, transform_indices = @transform_1, window_bounds = array<i64: 1, 32>}, {pipeline_mode = #tpu.pipeline_mode<synchronous>, transform_indices = @transform_2, window_bounds = array<i64: 1, 32>}, {pipeline_mode = #tpu.pipeline_mode<synchronous>, transform_indices = @transform_3, window_bounds = array<i64: 32, 32>}, {pipeline_mode = #tpu.pipeline_mode<synchronous>, transform_indices = @transform_4, window_bounds = array<i64: 1, 32>}, {pipeline_mode = #tpu.pipeline_mode<synchronous>, transform_indices = @transform_5, window_bounds = array<i64: 32, 64>}, {pipeline_mode = #tpu.pipeline_mode<synchronous>, transform_indices = @transform_6, window_bounds = array<i64: 1, 64>}, {transform_indices = @transform_7, window_bounds = array<i64: 72, 32>}, {transform_indices = @transform_8, window_bounds = array<i64: 72, 64>}]} {
    %c0 = arith.constant 0 : index
    %c0_0 = arith.constant 0 : index
    %0 = vector.load %arg1[%c0, %c0_0] : memref<72x32xbf16, #tpu.memory_space<vmem>>, vector<72x32xbf16>
    %1 = arith.extf %0 : vector<72x32xbf16> to vector<72x32xf32>
    %c0_1 = arith.constant 0 : index
    %c0_2 = arith.constant 0 : index
    %2 = vector.load %arg2[%c0_1, %c0_2] : memref<1x32xf32, #tpu.memory_space<vmem>>, vector<1x32xf32>
    %c0_3 = arith.constant 0 : index
    %c0_4 = arith.constant 0 : index
    %3 = vector.load %arg3[%c0_3, %c0_4] : memref<1x32xf32, #tpu.memory_space<vmem>>, vector<1x32xf32>
    %cst = arith.constant dense<0.000000e+00> : vector<72xf32>
    %4 = vector.multi_reduction <add>, %1, %cst [1] : vector<72x32xf32> to vector<72xf32>
    %5 = vector.shape_cast %4 : vector<72xf32> to vector<72x1xf32>
    %cst_5 = arith.constant 3.200000e+01 : f32
    %6 = vector.broadcast %cst_5 : f32 to vector<72x1xf32>
    %7 = arith.divf %5, %6 : vector<72x1xf32>
    %8 = vector.broadcast %7 : vector<72x1xf32> to vector<72x32xf32>
    %9 = arith.subf %1, %8 : vector<72x32xf32>
    %10 = arith.mulf %9, %9 : vector<72x32xf32>
    %cst_6 = arith.constant dense<0.000000e+00> : vector<72xf32>
    %11 = vector.multi_reduction <add>, %10, %cst_6 [1] : vector<72x32xf32> to vector<72xf32>
    %12 = vector.shape_cast %11 : vector<72xf32> to vector<72x1xf32>
    %cst_7 = arith.constant 3.200000e+01 : f32
    %13 = vector.broadcast %cst_7 : f32 to vector<72x1xf32>
    %14 = arith.divf %12, %13 : vector<72x1xf32>
    %cst_8 = arith.constant 9.99999997E-7 : f32
    %15 = vector.broadcast %cst_8 : f32 to vector<72x1xf32>
    %16 = arith.addf %14, %15 : vector<72x1xf32>
    %17 = math.rsqrt %16 : vector<72x1xf32>
    %18 = vector.broadcast %17 : vector<72x1xf32> to vector<72x32xf32>
    %19 = arith.mulf %9, %18 : vector<72x32xf32>
    %20 = vector.broadcast %2 : vector<1x32xf32> to vector<72x32xf32>
    %21 = arith.mulf %19, %20 : vector<72x32xf32>
    %22 = vector.broadcast %3 : vector<1x32xf32> to vector<72x32xf32>
    %23 = arith.addf %21, %22 : vector<72x32xf32>
    %24 = arith.truncf %23 : vector<72x32xf32> to vector<72x32xbf16>
    %c0_9 = arith.constant 0 : index
    %c0_10 = arith.constant 0 : index
    %25 = vector.load %arg4[%c0_9, %c0_10] : memref<32x32xbf16, #tpu.memory_space<vmem>>, vector<32x32xbf16>
    %cst_11 = arith.constant dense<0.000000e+00> : vector<72x32xf32>
    %26 = tpu.matmul %24, %25, %cst_11 {dimension_numbers = #tpu.dot_dimension_numbers<[1], [0], [0], [1], [0, 0, 1, 1], [], []>} : vector<72x32xbf16>, vector<32x32xbf16>, vector<72x32xf32> -> vector<72x32xf32>
    %c0_12 = arith.constant 0 : index
    %c0_13 = arith.constant 0 : index
    %27 = vector.load %arg6[%c0_12, %c0_13] : memref<32x64xbf16, #tpu.memory_space<vmem>>, vector<32x64xbf16>
    %cst_14 = arith.constant dense<0.000000e+00> : vector<72x64xf32>
    %28 = tpu.matmul %24, %27, %cst_14 {dimension_numbers = #tpu.dot_dimension_numbers<[1], [0], [0], [1], [0, 0, 1, 1], [], []>} : vector<72x32xbf16>, vector<32x64xbf16>, vector<72x64xf32> -> vector<72x64xf32>
    %c0_15 = arith.constant 0 : index
    %c0_16 = arith.constant 0 : index
    %29 = vector.load %arg5[%c0_15, %c0_16] : memref<1x32xf32, #tpu.memory_space<vmem>>, vector<1x32xf32>
    %30 = vector.broadcast %29 : vector<1x32xf32> to vector<72x32xf32>
    %31 = arith.addf %26, %30 : vector<72x32xf32>
    %32 = arith.truncf %31 : vector<72x32xf32> to vector<72x32xbf16>
    %c0_17 = arith.constant 0 : index
    %c0_18 = arith.constant 0 : index
    %33 = vector.load %arg8[%c0_17, %c0_18] : memref<72x32xbf16, #tpu.memory_space<vmem>>, vector<72x32xbf16>
    tpu.vector_store %arg8[%c0_17, %c0_18], %32 {strides = array<i32>} : memref<72x32xbf16, #tpu.memory_space<vmem>>, vector<72x32xbf16>,
    %c0_19 = arith.constant 0 : index
    %c0_20 = arith.constant 0 : index
    %34 = vector.load %arg7[%c0_19, %c0_20] : memref<1x64xf32, #tpu.memory_space<vmem>>, vector<1x64xf32>
    %35 = vector.broadcast %34 : vector<1x64xf32> to vector<72x64xf32>
    %36 = arith.addf %28, %35 : vector<72x64xf32>
    %37 = arith.truncf %36 : vector<72x64xf32> to vector<72x64xbf16>
    %c0_21 = arith.constant 0 : index
    %c0_22 = arith.constant 0 : index
    %38 = vector.load %arg9[%c0_21, %c0_22] : memref<72x64xbf16, #tpu.memory_space<vmem>>, vector<72x64xbf16>
    tpu.vector_store %arg9[%c0_21, %c0_22], %37 {strides = array<i32>} : memref<72x64xbf16, #tpu.memory_space<vmem>>, vector<72x64xbf16>,
    return
  }
  func.func @transform_0(%arg0: i32) -> (i32, i32) {
    %c0_i32 = arith.constant 0 : i32
    %c0_i32_0 = arith.constant 0 : i32
    return %arg0, %c0_i32 : i32, i32
  }
  func.func @transform_1(%arg0: i32) -> (i32, i32) {
    %c0_i32 = arith.constant 0 : i32
    %c0_i32_0 = arith.constant 0 : i32
    %c0_i32_1 = arith.constant 0 : i32
    return %c0_i32, %c0_i32_0 : i32, i32
  }
  func.func @transform_2(%arg0: i32) -> (i32, i32) {
    %c0_i32 = arith.constant 0 : i32
    %c0_i32_0 = arith.constant 0 : i32
    %c0_i32_1 = arith.constant 0 : i32
    return %c0_i32, %c0_i32_0 : i32, i32
  }
  func.func @transform_3(%arg0: i32) -> (i32, i32) {
    %c0_i32 = arith.constant 0 : i32
    %c0_i32_0 = arith.constant 0 : i32
    %c0_i32_1 = arith.constant 0 : i32
    return %c0_i32, %c0_i32_0 : i32, i32
  }
  func.func @transform_4(%arg0: i32) -> (i32, i32) {
    %c0_i32 = arith.constant 0 : i32
    %c0_i32_0 = arith.constant 0 : i32
    %c0_i32_1 = arith.constant 0 : i32
    return %c0_i32, %c0_i32_0 : i32, i32
  }
  func.func @transform_5(%arg0: i32) -> (i32, i32) {
    %c0_i32 = arith.constant 0 : i32
    %c0_i32_0 = arith.constant 0 : i32
    %c0_i32_1 = arith.constant 0 : i32
    return %c0_i32, %c0_i32_0 : i32, i32
  }
  func.func @transform_6(%arg0: i32) -> (i32, i32) {
    %c0_i32 = arith.constant 0 : i32
    %c0_i32_0 = arith.constant 0 : i32
    %c0_i32_1 = arith.constant 0 : i32
    return %c0_i32, %c0_i32_0 : i32, i32
  }
  func.func @transform_7(%arg0: i32) -> (i32, i32) {
    %c0_i32 = arith.constant 0 : i32
    %c0_i32_0 = arith.constant 0 : i32
    return %arg0, %c0_i32 : i32, i32
  }
  func.func @transform_8(%arg0: i32) -> (i32, i32) {
    %c0_i32 = arith.constant 0 : i32
    %c0_i32_0 = arith.constant 0 : i32
    return %arg0, %c0_i32 : i32, i32
  }
}

module attributes {stable_mosaic.version = 11 : i64} {
  func.func @_pool_headln_kernel(%arg0: i32, %arg1: memref<1x1x64xbf16, #tpu.memory_space<vmem>>, %arg2: memref<1x16x27x64xbf16, #tpu.memory_space<vmem>>, %arg3: memref<27x64xf32, #tpu.memory_space<vmem>>, %arg4: memref<1x64xf32, #tpu.memory_space<vmem>>, %arg5: memref<1x64xf32, #tpu.memory_space<vmem>>, %arg6: memref<64x8xf32, #tpu.memory_space<vmem>>, %arg7: memref<8x64xf32, #tpu.memory_space<vmem>>, %arg8: memref<1x17x64xbf16, #tpu.memory_space<vmem>>) attributes {dimension_semantics = [#tpu.dimension_semantics<parallel>], iteration_bounds = array<i64: 2>, scalar_prefetch = 0 : i64, scratch_operands = 0 : i64, tpu.core_type = #tpu.core_type<tc>, window_params = [{transform_indices = @transform_0, window_bounds = array<i64: 1, 1, 64>}, {transform_indices = @transform_1, window_bounds = array<i64: 1, 16, 27, 64>}, {pipeline_mode = #tpu.pipeline_mode<synchronous>, transform_indices = @transform_2, window_bounds = array<i64: 27, 64>}, {pipeline_mode = #tpu.pipeline_mode<synchronous>, transform_indices = @transform_3, window_bounds = array<i64: 1, 64>}, {pipeline_mode = #tpu.pipeline_mode<synchronous>, transform_indices = @transform_4, window_bounds = array<i64: 1, 64>}, {pipeline_mode = #tpu.pipeline_mode<synchronous>, transform_indices = @transform_5, window_bounds = array<i64: 64, 8>}, {pipeline_mode = #tpu.pipeline_mode<synchronous>, transform_indices = @transform_6, window_bounds = array<i64: 8, 64>}, {transform_indices = @transform_7, window_bounds = array<i64: 1, 17, 64>}]} {
    %c0 = arith.constant 0 : index
    %c0_0 = arith.constant 0 : index
    %c0_1 = arith.constant 0 : index
    %c0_2 = arith.constant 0 : index
    %0 = vector.load %arg2[%c0, %c0_0, %c0_1, %c0_2] : memref<1x16x27x64xbf16, #tpu.memory_space<vmem>>, vector<1x16x27x64xbf16>
    %1 = vector.shape_cast %0 : vector<1x16x27x64xbf16> to vector<16x27x64xbf16>
    %2 = arith.extf %1 : vector<16x27x64xbf16> to vector<16x27x64xf32>
    %c0_3 = arith.constant 0 : index
    %c0_4 = arith.constant 0 : index
    %3 = vector.load %arg3[%c0_3, %c0_4] : memref<27x64xf32, #tpu.memory_space<vmem>>, vector<27x64xf32>
    %4 = vector.shape_cast %3 : vector<27x64xf32> to vector<1x27x64xf32>
    %5 = vector.broadcast %4 : vector<1x27x64xf32> to vector<16x27x64xf32>
    %6 = arith.mulf %2, %5 : vector<16x27x64xf32>
    %cst = arith.constant dense<0.000000e+00> : vector<16x64xf32>
    %7 = vector.multi_reduction <add>, %6, %cst [1] : vector<16x27x64xf32> to vector<16x64xf32>
    %c0_5 = arith.constant 0 : index
    %c0_6 = arith.constant 0 : index
    %c0_7 = arith.constant 0 : index
    %8 = vector.load %arg1[%c0_5, %c0_6, %c0_7] : memref<1x1x64xbf16, #tpu.memory_space<vmem>>, vector<1x1x64xbf16>
    %9 = vector.shape_cast %8 : vector<1x1x64xbf16> to vector<1x64xbf16>
    %10 = arith.extf %9 : vector<1x64xbf16> to vector<1x64xf32>
    %11 = tpu.concatenate %10, %7 in 0 : vector<1x64xf32>, vector<16x64xf32> -> vector<17x64xf32>
    %c0_8 = arith.constant 0 : index
    %c0_9 = arith.constant 0 : index
    %12 = vector.load %arg6[%c0_8, %c0_9] : memref<64x8xf32, #tpu.memory_space<vmem>>, vector<64x8xf32>
    %c0_10 = arith.constant 0 : index
    %c0_11 = arith.constant 0 : index
    %13 = vector.load %arg7[%c0_10, %c0_11] : memref<8x64xf32, #tpu.memory_space<vmem>>, vector<8x64xf32>
    %c0_12 = arith.constant 0 : index
    %c0_13 = arith.constant 0 : index
    %14 = vector.load %arg4[%c0_12, %c0_13] : memref<1x64xf32, #tpu.memory_space<vmem>>, vector<1x64xf32>
    %c0_14 = arith.constant 0 : index
    %c0_15 = arith.constant 0 : index
    %15 = vector.load %arg5[%c0_14, %c0_15] : memref<1x64xf32, #tpu.memory_space<vmem>>, vector<1x64xf32>
    %cst_16 = arith.constant dense<0.000000e+00> : vector<17x8xf32>
    %16 = tpu.matmul %11, %12, %cst_16 {dimension_numbers = #tpu.dot_dimension_numbers<[1], [0], [0], [1], [0, 0, 1, 1], [], []>} : vector<17x64xf32>, vector<64x8xf32>, vector<17x8xf32> -> vector<17x8xf32>
    %cst_17 = arith.constant 1.250000e-01 : f32
    %17 = vector.broadcast %cst_17 : f32 to vector<17x8xf32>
    %18 = arith.mulf %16, %17 : vector<17x8xf32>
    %cst_18 = arith.constant dense<0.000000e+00> : vector<17x64xf32>
    %19 = tpu.matmul %18, %13, %cst_18 {dimension_numbers = #tpu.dot_dimension_numbers<[1], [0], [0], [1], [0, 0, 1, 1], [], []>} : vector<17x8xf32>, vector<8x64xf32>, vector<17x64xf32> -> vector<17x64xf32>
    %20 = arith.subf %11, %19 : vector<17x64xf32>
    %21 = arith.mulf %20, %20 : vector<17x64xf32>
    %cst_19 = arith.constant dense<0.000000e+00> : vector<17x8xf32>
    %22 = tpu.matmul %21, %12, %cst_19 {dimension_numbers = #tpu.dot_dimension_numbers<[1], [0], [0], [1], [0, 0, 1, 1], [], []>} : vector<17x64xf32>, vector<64x8xf32>, vector<17x8xf32> -> vector<17x8xf32>
    %cst_20 = arith.constant 1.250000e-01 : f32
    %23 = vector.broadcast %cst_20 : f32 to vector<17x8xf32>
    %24 = arith.mulf %22, %23 : vector<17x8xf32>
    %cst_21 = arith.constant dense<0.000000e+00> : vector<17x64xf32>
    %25 = tpu.matmul %24, %13, %cst_21 {dimension_numbers = #tpu.dot_dimension_numbers<[1], [0], [0], [1], [0, 0, 1, 1], [], []>} : vector<17x8xf32>, vector<8x64xf32>, vector<17x64xf32> -> vector<17x64xf32>
    %cst_22 = arith.constant 9.99999997E-7 : f32
    %26 = vector.broadcast %cst_22 : f32 to vector<17x64xf32>
    %27 = arith.addf %25, %26 : vector<17x64xf32>
    %28 = math.rsqrt %27 : vector<17x64xf32>
    %29 = arith.mulf %20, %28 : vector<17x64xf32>
    %30 = vector.broadcast %14 : vector<1x64xf32> to vector<17x64xf32>
    %31 = arith.mulf %29, %30 : vector<17x64xf32>
    %32 = vector.broadcast %15 : vector<1x64xf32> to vector<17x64xf32>
    %33 = arith.addf %31, %32 : vector<17x64xf32>
    %34 = arith.truncf %33 : vector<17x64xf32> to vector<17x64xbf16>
    %c0_23 = arith.constant 0 : index
    %c0_24 = arith.constant 0 : index
    %c0_25 = arith.constant 0 : index
    %35 = vector.load %arg8[%c0_23, %c0_24, %c0_25] : memref<1x17x64xbf16, #tpu.memory_space<vmem>>, vector<1x17x64xbf16>
    %36 = vector.shape_cast %35 : vector<1x17x64xbf16> to vector<17x64xbf16>
    %37 = vector.shape_cast %34 : vector<17x64xbf16> to vector<1x17x64xbf16>
    tpu.vector_store %arg8[%c0_23, %c0_24, %c0_25], %37 {strides = array<i32>} : memref<1x17x64xbf16, #tpu.memory_space<vmem>>, vector<1x17x64xbf16>,
    return
  }
  func.func @transform_0(%arg0: i32) -> (i32, i32, i32) {
    %c0_i32 = arith.constant 0 : i32
    %c0_i32_0 = arith.constant 0 : i32
    %c0_i32_1 = arith.constant 0 : i32
    return %arg0, %c0_i32, %c0_i32_0 : i32, i32, i32
  }
  func.func @transform_1(%arg0: i32) -> (i32, i32, i32, i32) {
    %c0_i32 = arith.constant 0 : i32
    %c0_i32_0 = arith.constant 0 : i32
    %c0_i32_1 = arith.constant 0 : i32
    %c0_i32_2 = arith.constant 0 : i32
    return %arg0, %c0_i32, %c0_i32_0, %c0_i32_1 : i32, i32, i32, i32
  }
  func.func @transform_2(%arg0: i32) -> (i32, i32) {
    %c0_i32 = arith.constant 0 : i32
    %c0_i32_0 = arith.constant 0 : i32
    %c0_i32_1 = arith.constant 0 : i32
    return %c0_i32, %c0_i32_0 : i32, i32
  }
  func.func @transform_3(%arg0: i32) -> (i32, i32) {
    %c0_i32 = arith.constant 0 : i32
    %c0_i32_0 = arith.constant 0 : i32
    %c0_i32_1 = arith.constant 0 : i32
    return %c0_i32, %c0_i32_0 : i32, i32
  }
  func.func @transform_4(%arg0: i32) -> (i32, i32) {
    %c0_i32 = arith.constant 0 : i32
    %c0_i32_0 = arith.constant 0 : i32
    %c0_i32_1 = arith.constant 0 : i32
    return %c0_i32, %c0_i32_0 : i32, i32
  }
  func.func @transform_5(%arg0: i32) -> (i32, i32) {
    %c0_i32 = arith.constant 0 : i32
    %c0_i32_0 = arith.constant 0 : i32
    %c0_i32_1 = arith.constant 0 : i32
    return %c0_i32, %c0_i32_0 : i32, i32
  }
  func.func @transform_6(%arg0: i32) -> (i32, i32) {
    %c0_i32 = arith.constant 0 : i32
    %c0_i32_0 = arith.constant 0 : i32
    %c0_i32_1 = arith.constant 0 : i32
    return %c0_i32, %c0_i32_0 : i32, i32
  }
  func.func @transform_7(%arg0: i32) -> (i32, i32, i32) {
    %c0_i32 = arith.constant 0 : i32
    %c0_i32_0 = arith.constant 0 : i32
    %c0_i32_1 = arith.constant 0 : i32
    return %arg0, %c0_i32, %c0_i32_0 : i32, i32, i32
  }
}

module attributes {stable_mosaic.version = 11 : i64} {
  func.func @_lambda_(%arg0: i32, %arg1: memref<24x32xbf16, #tpu.memory_space<vmem>>, %arg2: memref<1x32xf32, #tpu.memory_space<vmem>>, %arg3: memref<1x32xf32, #tpu.memory_space<vmem>>, %arg4: memref<32x128xbf16, #tpu.memory_space<vmem>>, %arg5: memref<1x128xf32, #tpu.memory_space<vmem>>, %arg6: memref<128x64xbf16, #tpu.memory_space<vmem>>, %arg7: memref<1x64xf32, #tpu.memory_space<vmem>>, %arg8: memref<32x64xbf16, #tpu.memory_space<vmem>>, %arg9: memref<1x64xf32, #tpu.memory_space<vmem>>, %arg10: memref<24x64xbf16, #tpu.memory_space<vmem>>) attributes {dimension_semantics = [#tpu.dimension_semantics<parallel>], iteration_bounds = array<i64: 2>, scalar_prefetch = 0 : i64, scratch_operands = 0 : i64, tpu.core_type = #tpu.core_type<tc>, window_params = [{transform_indices = @transform_0, window_bounds = array<i64: 24, 32>}, {pipeline_mode = #tpu.pipeline_mode<synchronous>, transform_indices = @transform_1, window_bounds = array<i64: 1, 32>}, {pipeline_mode = #tpu.pipeline_mode<synchronous>, transform_indices = @transform_2, window_bounds = array<i64: 1, 32>}, {pipeline_mode = #tpu.pipeline_mode<synchronous>, transform_indices = @transform_3, window_bounds = array<i64: 32, 128>}, {pipeline_mode = #tpu.pipeline_mode<synchronous>, transform_indices = @transform_4, window_bounds = array<i64: 1, 128>}, {pipeline_mode = #tpu.pipeline_mode<synchronous>, transform_indices = @transform_5, window_bounds = array<i64: 128, 64>}, {pipeline_mode = #tpu.pipeline_mode<synchronous>, transform_indices = @transform_6, window_bounds = array<i64: 1, 64>}, {pipeline_mode = #tpu.pipeline_mode<synchronous>, transform_indices = @transform_7, window_bounds = array<i64: 32, 64>}, {pipeline_mode = #tpu.pipeline_mode<synchronous>, transform_indices = @transform_8, window_bounds = array<i64: 1, 64>}, {transform_indices = @transform_9, window_bounds = array<i64: 24, 64>}]} {
    %c0 = arith.constant 0 : index
    %c0_0 = arith.constant 0 : index
    %0 = vector.load %arg1[%c0, %c0_0] : memref<24x32xbf16, #tpu.memory_space<vmem>>, vector<24x32xbf16>
    %1 = arith.extf %0 : vector<24x32xbf16> to vector<24x32xf32>
    %c0_1 = arith.constant 0 : index
    %c0_2 = arith.constant 0 : index
    %2 = vector.load %arg2[%c0_1, %c0_2] : memref<1x32xf32, #tpu.memory_space<vmem>>, vector<1x32xf32>
    %c0_3 = arith.constant 0 : index
    %c0_4 = arith.constant 0 : index
    %3 = vector.load %arg3[%c0_3, %c0_4] : memref<1x32xf32, #tpu.memory_space<vmem>>, vector<1x32xf32>
    %cst = arith.constant dense<0.000000e+00> : vector<24xf32>
    %4 = vector.multi_reduction <add>, %1, %cst [1] : vector<24x32xf32> to vector<24xf32>
    %5 = vector.shape_cast %4 : vector<24xf32> to vector<24x1xf32>
    %cst_5 = arith.constant 3.200000e+01 : f32
    %6 = vector.broadcast %cst_5 : f32 to vector<24x1xf32>
    %7 = arith.divf %5, %6 : vector<24x1xf32>
    %8 = vector.broadcast %7 : vector<24x1xf32> to vector<24x32xf32>
    %9 = arith.subf %1, %8 : vector<24x32xf32>
    %10 = arith.mulf %9, %9 : vector<24x32xf32>
    %cst_6 = arith.constant dense<0.000000e+00> : vector<24xf32>
    %11 = vector.multi_reduction <add>, %10, %cst_6 [1] : vector<24x32xf32> to vector<24xf32>
    %12 = vector.shape_cast %11 : vector<24xf32> to vector<24x1xf32>
    %cst_7 = arith.constant 3.200000e+01 : f32
    %13 = vector.broadcast %cst_7 : f32 to vector<24x1xf32>
    %14 = arith.divf %12, %13 : vector<24x1xf32>
    %cst_8 = arith.constant 9.99999997E-7 : f32
    %15 = vector.broadcast %cst_8 : f32 to vector<24x1xf32>
    %16 = arith.addf %14, %15 : vector<24x1xf32>
    %17 = math.rsqrt %16 : vector<24x1xf32>
    %18 = vector.broadcast %17 : vector<24x1xf32> to vector<24x32xf32>
    %19 = arith.mulf %9, %18 : vector<24x32xf32>
    %20 = vector.broadcast %2 : vector<1x32xf32> to vector<24x32xf32>
    %21 = arith.mulf %19, %20 : vector<24x32xf32>
    %22 = vector.broadcast %3 : vector<1x32xf32> to vector<24x32xf32>
    %23 = arith.addf %21, %22 : vector<24x32xf32>
    %24 = arith.truncf %23 : vector<24x32xf32> to vector<24x32xbf16>
    %c0_9 = arith.constant 0 : index
    %c0_10 = arith.constant 0 : index
    %25 = vector.load %arg4[%c0_9, %c0_10] : memref<32x128xbf16, #tpu.memory_space<vmem>>, vector<32x128xbf16>
    %cst_11 = arith.constant dense<0.000000e+00> : vector<24x128xf32>
    %26 = tpu.matmul %24, %25, %cst_11 {dimension_numbers = #tpu.dot_dimension_numbers<[1], [0], [0], [1], [0, 0, 1, 1], [], []>} : vector<24x32xbf16>, vector<32x128xbf16>, vector<24x128xf32> -> vector<24x128xf32>
    %c0_12 = arith.constant 0 : index
    %c0_13 = arith.constant 0 : index
    %27 = vector.load %arg5[%c0_12, %c0_13] : memref<1x128xf32, #tpu.memory_space<vmem>>, vector<1x128xf32>
    %28 = vector.broadcast %27 : vector<1x128xf32> to vector<24x128xf32>
    %29 = arith.addf %26, %28 : vector<24x128xf32>
    %cst_14 = arith.constant 5.000000e-01 : f32
    %30 = vector.broadcast %cst_14 : f32 to vector<24x128xf32>
    %31 = arith.mulf %30, %29 : vector<24x128xf32>
    %cst_15 = arith.constant 4.471500e-02 : f32
    %32 = vector.broadcast %cst_15 : f32 to vector<24x128xf32>
    %33 = arith.mulf %32, %29 : vector<24x128xf32>
    %34 = arith.mulf %33, %29 : vector<24x128xf32>
    %35 = arith.mulf %34, %29 : vector<24x128xf32>
    %36 = arith.addf %29, %35 : vector<24x128xf32>
    %cst_16 = arith.constant 0.797884583 : f32
    %37 = vector.broadcast %cst_16 : f32 to vector<24x128xf32>
    %38 = arith.mulf %37, %36 : vector<24x128xf32>
    %39 = math.tanh %38 : vector<24x128xf32>
    %cst_17 = arith.constant 1.000000e+00 : f32
    %40 = vector.broadcast %cst_17 : f32 to vector<24x128xf32>
    %41 = arith.addf %40, %39 : vector<24x128xf32>
    %42 = arith.mulf %31, %41 : vector<24x128xf32>
    %43 = arith.truncf %42 : vector<24x128xf32> to vector<24x128xbf16>
    %c0_18 = arith.constant 0 : index
    %c0_19 = arith.constant 0 : index
    %44 = vector.load %arg6[%c0_18, %c0_19] : memref<128x64xbf16, #tpu.memory_space<vmem>>, vector<128x64xbf16>
    %cst_20 = arith.constant dense<0.000000e+00> : vector<24x64xf32>
    %45 = tpu.matmul %43, %44, %cst_20 {dimension_numbers = #tpu.dot_dimension_numbers<[1], [0], [0], [1], [0, 0, 1, 1], [], []>} : vector<24x128xbf16>, vector<128x64xbf16>, vector<24x64xf32> -> vector<24x64xf32>
    %c0_21 = arith.constant 0 : index
    %c0_22 = arith.constant 0 : index
    %46 = vector.load %arg7[%c0_21, %c0_22] : memref<1x64xf32, #tpu.memory_space<vmem>>, vector<1x64xf32>
    %47 = vector.broadcast %46 : vector<1x64xf32> to vector<24x64xf32>
    %48 = arith.addf %45, %47 : vector<24x64xf32>
    %c0_23 = arith.constant 0 : index
    %c0_24 = arith.constant 0 : index
    %49 = vector.load %arg8[%c0_23, %c0_24] : memref<32x64xbf16, #tpu.memory_space<vmem>>, vector<32x64xbf16>
    %cst_25 = arith.constant dense<0.000000e+00> : vector<24x64xf32>
    %50 = tpu.matmul %24, %49, %cst_25 {dimension_numbers = #tpu.dot_dimension_numbers<[1], [0], [0], [1], [0, 0, 1, 1], [], []>} : vector<24x32xbf16>, vector<32x64xbf16>, vector<24x64xf32> -> vector<24x64xf32>
    %c0_26 = arith.constant 0 : index
    %c0_27 = arith.constant 0 : index
    %51 = vector.load %arg9[%c0_26, %c0_27] : memref<1x64xf32, #tpu.memory_space<vmem>>, vector<1x64xf32>
    %52 = vector.broadcast %51 : vector<1x64xf32> to vector<24x64xf32>
    %53 = arith.addf %50, %52 : vector<24x64xf32>
    %54 = arith.addf %53, %48 : vector<24x64xf32>
    %55 = arith.truncf %54 : vector<24x64xf32> to vector<24x64xbf16>
    %c0_28 = arith.constant 0 : index
    %c0_29 = arith.constant 0 : index
    %56 = vector.load %arg10[%c0_28, %c0_29] : memref<24x64xbf16, #tpu.memory_space<vmem>>, vector<24x64xbf16>
    tpu.vector_store %arg10[%c0_28, %c0_29], %55 {strides = array<i32>} : memref<24x64xbf16, #tpu.memory_space<vmem>>, vector<24x64xbf16>,
    return
  }
  func.func @transform_0(%arg0: i32) -> (i32, i32) {
    %c0_i32 = arith.constant 0 : i32
    %c0_i32_0 = arith.constant 0 : i32
    return %arg0, %c0_i32 : i32, i32
  }
  func.func @transform_1(%arg0: i32) -> (i32, i32) {
    %c0_i32 = arith.constant 0 : i32
    %c0_i32_0 = arith.constant 0 : i32
    %c0_i32_1 = arith.constant 0 : i32
    return %c0_i32, %c0_i32_0 : i32, i32
  }
  func.func @transform_2(%arg0: i32) -> (i32, i32) {
    %c0_i32 = arith.constant 0 : i32
    %c0_i32_0 = arith.constant 0 : i32
    %c0_i32_1 = arith.constant 0 : i32
    return %c0_i32, %c0_i32_0 : i32, i32
  }
  func.func @transform_3(%arg0: i32) -> (i32, i32) {
    %c0_i32 = arith.constant 0 : i32
    %c0_i32_0 = arith.constant 0 : i32
    %c0_i32_1 = arith.constant 0 : i32
    return %c0_i32, %c0_i32_0 : i32, i32
  }
  func.func @transform_4(%arg0: i32) -> (i32, i32) {
    %c0_i32 = arith.constant 0 : i32
    %c0_i32_0 = arith.constant 0 : i32
    %c0_i32_1 = arith.constant 0 : i32
    return %c0_i32, %c0_i32_0 : i32, i32
  }
  func.func @transform_5(%arg0: i32) -> (i32, i32) {
    %c0_i32 = arith.constant 0 : i32
    %c0_i32_0 = arith.constant 0 : i32
    %c0_i32_1 = arith.constant 0 : i32
    return %c0_i32, %c0_i32_0 : i32, i32
  }
  func.func @transform_6(%arg0: i32) -> (i32, i32) {
    %c0_i32 = arith.constant 0 : i32
    %c0_i32_0 = arith.constant 0 : i32
    %c0_i32_1 = arith.constant 0 : i32
    return %c0_i32, %c0_i32_0 : i32, i32
  }
  func.func @transform_7(%arg0: i32) -> (i32, i32) {
    %c0_i32 = arith.constant 0 : i32
    %c0_i32_0 = arith.constant 0 : i32
    %c0_i32_1 = arith.constant 0 : i32
    return %c0_i32, %c0_i32_0 : i32, i32
  }
  func.func @transform_8(%arg0: i32) -> (i32, i32) {
    %c0_i32 = arith.constant 0 : i32
    %c0_i32_0 = arith.constant 0 : i32
    %c0_i32_1 = arith.constant 0 : i32
    return %c0_i32, %c0_i32_0 : i32, i32
  }
  func.func @transform_9(%arg0: i32) -> (i32, i32) {
    %c0_i32 = arith.constant 0 : i32
    %c0_i32_0 = arith.constant 0 : i32
    return %arg0, %c0_i32 : i32, i32
  }
}

module attributes {stable_mosaic.version = 11 : i64} {
  func.func @_attn_proj_res_kernel(%arg0: i32, %arg1: memref<1x17x32xbf16, #tpu.memory_space<vmem>>, %arg2: memref<1x17x64xbf16, #tpu.memory_space<vmem>>, %arg3: memref<1x17x32xbf16, #tpu.memory_space<vmem>>, %arg4: memref<32x32xbf16, #tpu.memory_space<vmem>>, %arg5: memref<1x32xf32, #tpu.memory_space<vmem>>, %arg6: memref<1x17x32xbf16, #tpu.memory_space<vmem>>) attributes {dimension_semantics = [#tpu.dimension_semantics<parallel>], iteration_bounds = array<i64: 2>, scalar_prefetch = 0 : i64, scratch_operands = 0 : i64, tpu.core_type = #tpu.core_type<tc>, window_params = [{transform_indices = @transform_0, window_bounds = array<i64: 1, 17, 32>}, {transform_indices = @transform_1, window_bounds = array<i64: 1, 17, 64>}, {transform_indices = @transform_2, window_bounds = array<i64: 1, 17, 32>}, {pipeline_mode = #tpu.pipeline_mode<synchronous>, transform_indices = @transform_3, window_bounds = array<i64: 32, 32>}, {pipeline_mode = #tpu.pipeline_mode<synchronous>, transform_indices = @transform_4, window_bounds = array<i64: 1, 32>}, {transform_indices = @transform_5, window_bounds = array<i64: 1, 17, 32>}]} {
    %c0 = arith.constant 0 : index
    %c0_0 = arith.constant 0 : index
    %c0_1 = arith.constant 0 : index
    %0 = vector.load %arg1[%c0, %c0_0, %c0_1] : memref<1x17x32xbf16, #tpu.memory_space<vmem>>, vector<1x17x32xbf16>
    %1 = vector.shape_cast %0 : vector<1x17x32xbf16> to vector<17x32xbf16>
    %2 = arith.extf %1 : vector<17x32xbf16> to vector<17x32xf32>
    %cst = arith.constant 0.353553385 : f32
    %3 = vector.broadcast %cst : f32 to vector<17x32xf32>
    %4 = arith.mulf %2, %3 : vector<17x32xf32>
    %5 = arith.truncf %4 : vector<17x32xf32> to vector<17x32xbf16>
    %c0_2 = arith.constant 0 : index
    %c0_3 = arith.constant 0 : index
    %c0_4 = arith.constant 0 : index
    %6 = vector.load %arg2[%c0_2, %c0_3, %c0_4] : memref<1x17x64xbf16, #tpu.memory_space<vmem>>, vector<1x17x64xbf16>
    %7 = vector.shape_cast %6 : vector<1x17x64xbf16> to vector<17x64xbf16>
    %cst_5 = arith.constant 0.000000e+00 : f32
    %8 = vector.broadcast %cst_5 : f32 to vector<17x32xf32>
    %9 = vector.extract_strided_slice %5 {offsets = [0, 0], sizes = [17, 8], strides = [1, 1]} : vector<17x32xbf16> to vector<17x8xbf16>
    %10 = vector.extract_strided_slice %7 {offsets = [0, 0], sizes = [17, 8], strides = [1, 1]} : vector<17x64xbf16> to vector<17x8xbf16>
    %11 = vector.extract_strided_slice %7 {offsets = [0, 32], sizes = [17, 8], strides = [1, 1]} : vector<17x64xbf16> to vector<17x8xbf16>
    %cst_6 = arith.constant dense<0.000000e+00> : vector<17x17xf32>
    %12 = tpu.matmul %9, %10, %cst_6 {dimension_numbers = #tpu.dot_dimension_numbers<[1], [1], [0], [0], [0, 0, 1, 0], [], []>} : vector<17x8xbf16>, vector<17x8xbf16>, vector<17x17xf32> -> vector<17x17xf32>
    %cst_7 = arith.constant dense<0xFF800000> : vector<17xf32>
    %13 = vector.multi_reduction <maximumf>, %12, %cst_7 [1] : vector<17x17xf32> to vector<17xf32>
    %14 = vector.shape_cast %13 : vector<17xf32> to vector<17x1xf32>
    %15 = vector.broadcast %14 : vector<17x1xf32> to vector<17x17xf32>
    %16 = arith.subf %12, %15 : vector<17x17xf32>
    %17 = math.exp %16 : vector<17x17xf32>
    %cst_8 = arith.constant dense<0.000000e+00> : vector<17xf32>
    %18 = vector.multi_reduction <add>, %17, %cst_8 [1] : vector<17x17xf32> to vector<17xf32>
    %19 = vector.shape_cast %18 : vector<17xf32> to vector<17x1xf32>
    %20 = tpu.reciprocal %19 {approx = true} : vector<17x1xf32> -> vector<17x1xf32>
    %21 = vector.broadcast %20 : vector<17x1xf32> to vector<17x17xf32>
    %22 = arith.mulf %17, %21 : vector<17x17xf32>
    %23 = arith.truncf %22 : vector<17x17xf32> to vector<17x17xbf16>
    %cst_9 = arith.constant dense<0.000000e+00> : vector<17x8xf32>
    %24 = tpu.matmul %23, %11, %cst_9 {dimension_numbers = #tpu.dot_dimension_numbers<[1], [0], [0], [1], [0, 0, 1, 1], [], []>} : vector<17x17xbf16>, vector<17x8xbf16>, vector<17x8xf32> -> vector<17x8xf32>
    %25 = arith.truncf %24 : vector<17x8xf32> to vector<17x8xbf16>
    %c0_10 = arith.constant 0 : index
    %c0_11 = arith.constant 0 : index
    %26 = vector.load %arg4[%c0_10, %c0_11] : memref<32x32xbf16, #tpu.memory_space<vmem>>, vector<8x32xbf16>
    %cst_12 = arith.constant dense<0.000000e+00> : vector<17x32xf32>
    %27 = tpu.matmul %25, %26, %cst_12 {dimension_numbers = #tpu.dot_dimension_numbers<[1], [0], [0], [1], [0, 0, 1, 1], [], []>} : vector<17x8xbf16>, vector<8x32xbf16>, vector<17x32xf32> -> vector<17x32xf32>
    %28 = arith.addf %8, %27 : vector<17x32xf32>
    %29 = vector.extract_strided_slice %5 {offsets = [0, 8], sizes = [17, 8], strides = [1, 1]} : vector<17x32xbf16> to vector<17x8xbf16>
    %30 = vector.extract_strided_slice %7 {offsets = [0, 8], sizes = [17, 8], strides = [1, 1]} : vector<17x64xbf16> to vector<17x8xbf16>
    %31 = vector.extract_strided_slice %7 {offsets = [0, 40], sizes = [17, 8], strides = [1, 1]} : vector<17x64xbf16> to vector<17x8xbf16>
    %cst_13 = arith.constant dense<0.000000e+00> : vector<17x17xf32>
    %32 = tpu.matmul %29, %30, %cst_13 {dimension_numbers = #tpu.dot_dimension_numbers<[1], [1], [0], [0], [0, 0, 1, 0], [], []>} : vector<17x8xbf16>, vector<17x8xbf16>, vector<17x17xf32> -> vector<17x17xf32>
    %cst_14 = arith.constant dense<0xFF800000> : vector<17xf32>
    %33 = vector.multi_reduction <maximumf>, %32, %cst_14 [1] : vector<17x17xf32> to vector<17xf32>
    %34 = vector.shape_cast %33 : vector<17xf32> to vector<17x1xf32>
    %35 = vector.broadcast %34 : vector<17x1xf32> to vector<17x17xf32>
    %36 = arith.subf %32, %35 : vector<17x17xf32>
    %37 = math.exp %36 : vector<17x17xf32>
    %cst_15 = arith.constant dense<0.000000e+00> : vector<17xf32>
    %38 = vector.multi_reduction <add>, %37, %cst_15 [1] : vector<17x17xf32> to vector<17xf32>
    %39 = vector.shape_cast %38 : vector<17xf32> to vector<17x1xf32>
    %40 = tpu.reciprocal %39 {approx = true} : vector<17x1xf32> -> vector<17x1xf32>
    %41 = vector.broadcast %40 : vector<17x1xf32> to vector<17x17xf32>
    %42 = arith.mulf %37, %41 : vector<17x17xf32>
    %43 = arith.truncf %42 : vector<17x17xf32> to vector<17x17xbf16>
    %cst_16 = arith.constant dense<0.000000e+00> : vector<17x8xf32>
    %44 = tpu.matmul %43, %31, %cst_16 {dimension_numbers = #tpu.dot_dimension_numbers<[1], [0], [0], [1], [0, 0, 1, 1], [], []>} : vector<17x17xbf16>, vector<17x8xbf16>, vector<17x8xf32> -> vector<17x8xf32>
    %45 = arith.truncf %44 : vector<17x8xf32> to vector<17x8xbf16>
    %c8 = arith.constant 8 : index
    %c0_17 = arith.constant 0 : index
    %46 = vector.load %arg4[%c8, %c0_17] : memref<32x32xbf16, #tpu.memory_space<vmem>>, vector<8x32xbf16>
    %cst_18 = arith.constant dense<0.000000e+00> : vector<17x32xf32>
    %47 = tpu.matmul %45, %46, %cst_18 {dimension_numbers = #tpu.dot_dimension_numbers<[1], [0], [0], [1], [0, 0, 1, 1], [], []>} : vector<17x8xbf16>, vector<8x32xbf16>, vector<17x32xf32> -> vector<17x32xf32>
    %48 = arith.addf %28, %47 : vector<17x32xf32>
    %49 = vector.extract_strided_slice %5 {offsets = [0, 16], sizes = [17, 8], strides = [1, 1]} : vector<17x32xbf16> to vector<17x8xbf16>
    %50 = vector.extract_strided_slice %7 {offsets = [0, 16], sizes = [17, 8], strides = [1, 1]} : vector<17x64xbf16> to vector<17x8xbf16>
    %51 = vector.extract_strided_slice %7 {offsets = [0, 48], sizes = [17, 8], strides = [1, 1]} : vector<17x64xbf16> to vector<17x8xbf16>
    %cst_19 = arith.constant dense<0.000000e+00> : vector<17x17xf32>
    %52 = tpu.matmul %49, %50, %cst_19 {dimension_numbers = #tpu.dot_dimension_numbers<[1], [1], [0], [0], [0, 0, 1, 0], [], []>} : vector<17x8xbf16>, vector<17x8xbf16>, vector<17x17xf32> -> vector<17x17xf32>
    %cst_20 = arith.constant dense<0xFF800000> : vector<17xf32>
    %53 = vector.multi_reduction <maximumf>, %52, %cst_20 [1] : vector<17x17xf32> to vector<17xf32>
    %54 = vector.shape_cast %53 : vector<17xf32> to vector<17x1xf32>
    %55 = vector.broadcast %54 : vector<17x1xf32> to vector<17x17xf32>
    %56 = arith.subf %52, %55 : vector<17x17xf32>
    %57 = math.exp %56 : vector<17x17xf32>
    %cst_21 = arith.constant dense<0.000000e+00> : vector<17xf32>
    %58 = vector.multi_reduction <add>, %57, %cst_21 [1] : vector<17x17xf32> to vector<17xf32>
    %59 = vector.shape_cast %58 : vector<17xf32> to vector<17x1xf32>
    %60 = tpu.reciprocal %59 {approx = true} : vector<17x1xf32> -> vector<17x1xf32>
    %61 = vector.broadcast %60 : vector<17x1xf32> to vector<17x17xf32>
    %62 = arith.mulf %57, %61 : vector<17x17xf32>
    %63 = arith.truncf %62 : vector<17x17xf32> to vector<17x17xbf16>
    %cst_22 = arith.constant dense<0.000000e+00> : vector<17x8xf32>
    %64 = tpu.matmul %63, %51, %cst_22 {dimension_numbers = #tpu.dot_dimension_numbers<[1], [0], [0], [1], [0, 0, 1, 1], [], []>} : vector<17x17xbf16>, vector<17x8xbf16>, vector<17x8xf32> -> vector<17x8xf32>
    %65 = arith.truncf %64 : vector<17x8xf32> to vector<17x8xbf16>
    %c16 = arith.constant 16 : index
    %c0_23 = arith.constant 0 : index
    %66 = vector.load %arg4[%c16, %c0_23] : memref<32x32xbf16, #tpu.memory_space<vmem>>, vector<8x32xbf16>
    %cst_24 = arith.constant dense<0.000000e+00> : vector<17x32xf32>
    %67 = tpu.matmul %65, %66, %cst_24 {dimension_numbers = #tpu.dot_dimension_numbers<[1], [0], [0], [1], [0, 0, 1, 1], [], []>} : vector<17x8xbf16>, vector<8x32xbf16>, vector<17x32xf32> -> vector<17x32xf32>
    %68 = arith.addf %48, %67 : vector<17x32xf32>
    %69 = vector.extract_strided_slice %5 {offsets = [0, 24], sizes = [17, 8], strides = [1, 1]} : vector<17x32xbf16> to vector<17x8xbf16>
    %70 = vector.extract_strided_slice %7 {offsets = [0, 24], sizes = [17, 8], strides = [1, 1]} : vector<17x64xbf16> to vector<17x8xbf16>
    %71 = vector.extract_strided_slice %7 {offsets = [0, 56], sizes = [17, 8], strides = [1, 1]} : vector<17x64xbf16> to vector<17x8xbf16>
    %cst_25 = arith.constant dense<0.000000e+00> : vector<17x17xf32>
    %72 = tpu.matmul %69, %70, %cst_25 {dimension_numbers = #tpu.dot_dimension_numbers<[1], [1], [0], [0], [0, 0, 1, 0], [], []>} : vector<17x8xbf16>, vector<17x8xbf16>, vector<17x17xf32> -> vector<17x17xf32>
    %cst_26 = arith.constant dense<0xFF800000> : vector<17xf32>
    %73 = vector.multi_reduction <maximumf>, %72, %cst_26 [1] : vector<17x17xf32> to vector<17xf32>
    %74 = vector.shape_cast %73 : vector<17xf32> to vector<17x1xf32>
    %75 = vector.broadcast %74 : vector<17x1xf32> to vector<17x17xf32>
    %76 = arith.subf %72, %75 : vector<17x17xf32>
    %77 = math.exp %76 : vector<17x17xf32>
    %cst_27 = arith.constant dense<0.000000e+00> : vector<17xf32>
    %78 = vector.multi_reduction <add>, %77, %cst_27 [1] : vector<17x17xf32> to vector<17xf32>
    %79 = vector.shape_cast %78 : vector<17xf32> to vector<17x1xf32>
    %80 = tpu.reciprocal %79 {approx = true} : vector<17x1xf32> -> vector<17x1xf32>
    %81 = vector.broadcast %80 : vector<17x1xf32> to vector<17x17xf32>
    %82 = arith.mulf %77, %81 : vector<17x17xf32>
    %83 = arith.truncf %82 : vector<17x17xf32> to vector<17x17xbf16>
    %cst_28 = arith.constant dense<0.000000e+00> : vector<17x8xf32>
    %84 = tpu.matmul %83, %71, %cst_28 {dimension_numbers = #tpu.dot_dimension_numbers<[1], [0], [0], [1], [0, 0, 1, 1], [], []>} : vector<17x17xbf16>, vector<17x8xbf16>, vector<17x8xf32> -> vector<17x8xf32>
    %85 = arith.truncf %84 : vector<17x8xf32> to vector<17x8xbf16>
    %c24 = arith.constant 24 : index
    %c0_29 = arith.constant 0 : index
    %86 = vector.load %arg4[%c24, %c0_29] : memref<32x32xbf16, #tpu.memory_space<vmem>>, vector<8x32xbf16>
    %cst_30 = arith.constant dense<0.000000e+00> : vector<17x32xf32>
    %87 = tpu.matmul %85, %86, %cst_30 {dimension_numbers = #tpu.dot_dimension_numbers<[1], [0], [0], [1], [0, 0, 1, 1], [], []>} : vector<17x8xbf16>, vector<8x32xbf16>, vector<17x32xf32> -> vector<17x32xf32>
    %88 = arith.addf %68, %87 : vector<17x32xf32>
    %c0_31 = arith.constant 0 : index
    %c0_32 = arith.constant 0 : index
    %89 = vector.load %arg5[%c0_31, %c0_32] : memref<1x32xf32, #tpu.memory_space<vmem>>, vector<1x32xf32>
    %90 = vector.broadcast %89 : vector<1x32xf32> to vector<17x32xf32>
    %91 = arith.addf %88, %90 : vector<17x32xf32>
    %c0_33 = arith.constant 0 : index
    %c0_34 = arith.constant 0 : index
    %c0_35 = arith.constant 0 : index
    %92 = vector.load %arg3[%c0_33, %c0_34, %c0_35] : memref<1x17x32xbf16, #tpu.memory_space<vmem>>, vector<1x17x32xbf16>
    %93 = vector.shape_cast %92 : vector<1x17x32xbf16> to vector<17x32xbf16>
    %94 = arith.extf %93 : vector<17x32xbf16> to vector<17x32xf32>
    %95 = arith.addf %91, %94 : vector<17x32xf32>
    %96 = arith.truncf %95 : vector<17x32xf32> to vector<17x32xbf16>
    %c0_36 = arith.constant 0 : index
    %c0_37 = arith.constant 0 : index
    %c0_38 = arith.constant 0 : index
    %97 = vector.load %arg6[%c0_36, %c0_37, %c0_38] : memref<1x17x32xbf16, #tpu.memory_space<vmem>>, vector<1x17x32xbf16>
    %98 = vector.shape_cast %97 : vector<1x17x32xbf16> to vector<17x32xbf16>
    %99 = vector.shape_cast %96 : vector<17x32xbf16> to vector<1x17x32xbf16>
    tpu.vector_store %arg6[%c0_36, %c0_37, %c0_38], %99 {strides = array<i32>} : memref<1x17x32xbf16, #tpu.memory_space<vmem>>, vector<1x17x32xbf16>,
    return
  }
  func.func @transform_0(%arg0: i32) -> (i32, i32, i32) {
    %c0_i32 = arith.constant 0 : i32
    %c0_i32_0 = arith.constant 0 : i32
    %c0_i32_1 = arith.constant 0 : i32
    return %arg0, %c0_i32, %c0_i32_0 : i32, i32, i32
  }
  func.func @transform_1(%arg0: i32) -> (i32, i32, i32) {
    %c0_i32 = arith.constant 0 : i32
    %c0_i32_0 = arith.constant 0 : i32
    %c0_i32_1 = arith.constant 0 : i32
    return %arg0, %c0_i32, %c0_i32_0 : i32, i32, i32
  }
  func.func @transform_2(%arg0: i32) -> (i32, i32, i32) {
    %c0_i32 = arith.constant 0 : i32
    %c0_i32_0 = arith.constant 0 : i32
    %c0_i32_1 = arith.constant 0 : i32
    return %arg0, %c0_i32, %c0_i32_0 : i32, i32, i32
  }
  func.func @transform_3(%arg0: i32) -> (i32, i32) {
    %c0_i32 = arith.constant 0 : i32
    %c0_i32_0 = arith.constant 0 : i32
    %c0_i32_1 = arith.constant 0 : i32
    return %c0_i32, %c0_i32_0 : i32, i32
  }
  func.func @transform_4(%arg0: i32) -> (i32, i32) {
    %c0_i32 = arith.constant 0 : i32
    %c0_i32_0 = arith.constant 0 : i32
    %c0_i32_1 = arith.constant 0 : i32
    return %c0_i32, %c0_i32_0 : i32, i32
  }
  func.func @transform_5(%arg0: i32) -> (i32, i32, i32) {
    %c0_i32 = arith.constant 0 : i32
    %c0_i32_0 = arith.constant 0 : i32
    %c0_i32_1 = arith.constant 0 : i32
    return %arg0, %c0_i32, %c0_i32_0 : i32, i32, i32
  }
}

module attributes {stable_mosaic.version = 11 : i64} {
  func.func @_pool_headln_kernel(%arg0: i32, %arg1: memref<1x1x32xbf16, #tpu.memory_space<vmem>>, %arg2: memref<1x16x27x32xbf16, #tpu.memory_space<vmem>>, %arg3: memref<27x32xf32, #tpu.memory_space<vmem>>, %arg4: memref<1x32xf32, #tpu.memory_space<vmem>>, %arg5: memref<1x32xf32, #tpu.memory_space<vmem>>, %arg6: memref<32x4xf32, #tpu.memory_space<vmem>>, %arg7: memref<4x32xf32, #tpu.memory_space<vmem>>, %arg8: memref<1x17x32xbf16, #tpu.memory_space<vmem>>) attributes {dimension_semantics = [#tpu.dimension_semantics<parallel>], iteration_bounds = array<i64: 2>, scalar_prefetch = 0 : i64, scratch_operands = 0 : i64, tpu.core_type = #tpu.core_type<tc>, window_params = [{transform_indices = @transform_0, window_bounds = array<i64: 1, 1, 32>}, {transform_indices = @transform_1, window_bounds = array<i64: 1, 16, 27, 32>}, {pipeline_mode = #tpu.pipeline_mode<synchronous>, transform_indices = @transform_2, window_bounds = array<i64: 27, 32>}, {pipeline_mode = #tpu.pipeline_mode<synchronous>, transform_indices = @transform_3, window_bounds = array<i64: 1, 32>}, {pipeline_mode = #tpu.pipeline_mode<synchronous>, transform_indices = @transform_4, window_bounds = array<i64: 1, 32>}, {pipeline_mode = #tpu.pipeline_mode<synchronous>, transform_indices = @transform_5, window_bounds = array<i64: 32, 4>}, {pipeline_mode = #tpu.pipeline_mode<synchronous>, transform_indices = @transform_6, window_bounds = array<i64: 4, 32>}, {transform_indices = @transform_7, window_bounds = array<i64: 1, 17, 32>}]} {
    %c0 = arith.constant 0 : index
    %c0_0 = arith.constant 0 : index
    %c0_1 = arith.constant 0 : index
    %c0_2 = arith.constant 0 : index
    %0 = vector.load %arg2[%c0, %c0_0, %c0_1, %c0_2] : memref<1x16x27x32xbf16, #tpu.memory_space<vmem>>, vector<1x16x27x32xbf16>
    %1 = vector.shape_cast %0 : vector<1x16x27x32xbf16> to vector<16x27x32xbf16>
    %2 = arith.extf %1 : vector<16x27x32xbf16> to vector<16x27x32xf32>
    %c0_3 = arith.constant 0 : index
    %c0_4 = arith.constant 0 : index
    %3 = vector.load %arg3[%c0_3, %c0_4] : memref<27x32xf32, #tpu.memory_space<vmem>>, vector<27x32xf32>
    %4 = vector.shape_cast %3 : vector<27x32xf32> to vector<1x27x32xf32>
    %5 = vector.broadcast %4 : vector<1x27x32xf32> to vector<16x27x32xf32>
    %6 = arith.mulf %2, %5 : vector<16x27x32xf32>
    %cst = arith.constant dense<0.000000e+00> : vector<16x32xf32>
    %7 = vector.multi_reduction <add>, %6, %cst [1] : vector<16x27x32xf32> to vector<16x32xf32>
    %c0_5 = arith.constant 0 : index
    %c0_6 = arith.constant 0 : index
    %c0_7 = arith.constant 0 : index
    %8 = vector.load %arg1[%c0_5, %c0_6, %c0_7] : memref<1x1x32xbf16, #tpu.memory_space<vmem>>, vector<1x1x32xbf16>
    %9 = vector.shape_cast %8 : vector<1x1x32xbf16> to vector<1x32xbf16>
    %10 = arith.extf %9 : vector<1x32xbf16> to vector<1x32xf32>
    %11 = tpu.concatenate %10, %7 in 0 : vector<1x32xf32>, vector<16x32xf32> -> vector<17x32xf32>
    %c0_8 = arith.constant 0 : index
    %c0_9 = arith.constant 0 : index
    %12 = vector.load %arg6[%c0_8, %c0_9] : memref<32x4xf32, #tpu.memory_space<vmem>>, vector<32x4xf32>
    %c0_10 = arith.constant 0 : index
    %c0_11 = arith.constant 0 : index
    %13 = vector.load %arg7[%c0_10, %c0_11] : memref<4x32xf32, #tpu.memory_space<vmem>>, vector<4x32xf32>
    %c0_12 = arith.constant 0 : index
    %c0_13 = arith.constant 0 : index
    %14 = vector.load %arg4[%c0_12, %c0_13] : memref<1x32xf32, #tpu.memory_space<vmem>>, vector<1x32xf32>
    %c0_14 = arith.constant 0 : index
    %c0_15 = arith.constant 0 : index
    %15 = vector.load %arg5[%c0_14, %c0_15] : memref<1x32xf32, #tpu.memory_space<vmem>>, vector<1x32xf32>
    %cst_16 = arith.constant dense<0.000000e+00> : vector<17x4xf32>
    %16 = tpu.matmul %11, %12, %cst_16 {dimension_numbers = #tpu.dot_dimension_numbers<[1], [0], [0], [1], [0, 0, 1, 1], [], []>} : vector<17x32xf32>, vector<32x4xf32>, vector<17x4xf32> -> vector<17x4xf32>
    %cst_17 = arith.constant 1.250000e-01 : f32
    %17 = vector.broadcast %cst_17 : f32 to vector<17x4xf32>
    %18 = arith.mulf %16, %17 : vector<17x4xf32>
    %cst_18 = arith.constant dense<0.000000e+00> : vector<17x32xf32>
    %19 = tpu.matmul %18, %13, %cst_18 {dimension_numbers = #tpu.dot_dimension_numbers<[1], [0], [0], [1], [0, 0, 1, 1], [], []>} : vector<17x4xf32>, vector<4x32xf32>, vector<17x32xf32> -> vector<17x32xf32>
    %20 = arith.subf %11, %19 : vector<17x32xf32>
    %21 = arith.mulf %20, %20 : vector<17x32xf32>
    %cst_19 = arith.constant dense<0.000000e+00> : vector<17x4xf32>
    %22 = tpu.matmul %21, %12, %cst_19 {dimension_numbers = #tpu.dot_dimension_numbers<[1], [0], [0], [1], [0, 0, 1, 1], [], []>} : vector<17x32xf32>, vector<32x4xf32>, vector<17x4xf32> -> vector<17x4xf32>
    %cst_20 = arith.constant 1.250000e-01 : f32
    %23 = vector.broadcast %cst_20 : f32 to vector<17x4xf32>
    %24 = arith.mulf %22, %23 : vector<17x4xf32>
    %cst_21 = arith.constant dense<0.000000e+00> : vector<17x32xf32>
    %25 = tpu.matmul %24, %13, %cst_21 {dimension_numbers = #tpu.dot_dimension_numbers<[1], [0], [0], [1], [0, 0, 1, 1], [], []>} : vector<17x4xf32>, vector<4x32xf32>, vector<17x32xf32> -> vector<17x32xf32>
    %cst_22 = arith.constant 9.99999997E-7 : f32
    %26 = vector.broadcast %cst_22 : f32 to vector<17x32xf32>
    %27 = arith.addf %25, %26 : vector<17x32xf32>
    %28 = math.rsqrt %27 : vector<17x32xf32>
    %29 = arith.mulf %20, %28 : vector<17x32xf32>
    %30 = vector.broadcast %14 : vector<1x32xf32> to vector<17x32xf32>
    %31 = arith.mulf %29, %30 : vector<17x32xf32>
    %32 = vector.broadcast %15 : vector<1x32xf32> to vector<17x32xf32>
    %33 = arith.addf %31, %32 : vector<17x32xf32>
    %34 = arith.truncf %33 : vector<17x32xf32> to vector<17x32xbf16>
    %c0_23 = arith.constant 0 : index
    %c0_24 = arith.constant 0 : index
    %c0_25 = arith.constant 0 : index
    %35 = vector.load %arg8[%c0_23, %c0_24, %c0_25] : memref<1x17x32xbf16, #tpu.memory_space<vmem>>, vector<1x17x32xbf16>
    %36 = vector.shape_cast %35 : vector<1x17x32xbf16> to vector<17x32xbf16>
    %37 = vector.shape_cast %34 : vector<17x32xbf16> to vector<1x17x32xbf16>
    tpu.vector_store %arg8[%c0_23, %c0_24, %c0_25], %37 {strides = array<i32>} : memref<1x17x32xbf16, #tpu.memory_space<vmem>>, vector<1x17x32xbf16>,
    return
  }
  func.func @transform_0(%arg0: i32) -> (i32, i32, i32) {
    %c0_i32 = arith.constant 0 : i32
    %c0_i32_0 = arith.constant 0 : i32
    %c0_i32_1 = arith.constant 0 : i32
    return %arg0, %c0_i32, %c0_i32_0 : i32, i32, i32
  }
  func.func @transform_1(%arg0: i32) -> (i32, i32, i32, i32) {
    %c0_i32 = arith.constant 0 : i32
    %c0_i32_0 = arith.constant 0 : i32
    %c0_i32_1 = arith.constant 0 : i32
    %c0_i32_2 = arith.constant 0 : i32
    return %arg0, %c0_i32, %c0_i32_0, %c0_i32_1 : i32, i32, i32, i32
  }
  func.func @transform_2(%arg0: i32) -> (i32, i32) {
    %c0_i32 = arith.constant 0 : i32
    %c0_i32_0 = arith.constant 0 : i32
    %c0_i32_1 = arith.constant 0 : i32
    return %c0_i32, %c0_i32_0 : i32, i32
  }
  func.func @transform_3(%arg0: i32) -> (i32, i32) {
    %c0_i32 = arith.constant 0 : i32
    %c0_i32_0 = arith.constant 0 : i32
    %c0_i32_1 = arith.constant 0 : i32
    return %c0_i32, %c0_i32_0 : i32, i32
  }
  func.func @transform_4(%arg0: i32) -> (i32, i32) {
    %c0_i32 = arith.constant 0 : i32
    %c0_i32_0 = arith.constant 0 : i32
    %c0_i32_1 = arith.constant 0 : i32
    return %c0_i32, %c0_i32_0 : i32, i32
  }
  func.func @transform_5(%arg0: i32) -> (i32, i32) {
    %c0_i32 = arith.constant 0 : i32
    %c0_i32_0 = arith.constant 0 : i32
    %c0_i32_1 = arith.constant 0 : i32
    return %c0_i32, %c0_i32_0 : i32, i32
  }
  func.func @transform_6(%arg0: i32) -> (i32, i32) {
    %c0_i32 = arith.constant 0 : i32
    %c0_i32_0 = arith.constant 0 : i32
    %c0_i32_1 = arith.constant 0 : i32
    return %c0_i32, %c0_i32_0 : i32, i32
  }
  func.func @transform_7(%arg0: i32) -> (i32, i32, i32) {
    %c0_i32 = arith.constant 0 : i32
    %c0_i32_0 = arith.constant 0 : i32
    %c0_i32_1 = arith.constant 0 : i32
    return %arg0, %c0_i32, %c0_i32_0 : i32, i32, i32
  }
}

module attributes {stable_mosaic.version = 11 : i64} {
  func.func @_ln_kernel(%arg0: i32, %arg1: memref<8x64xbf16, #tpu.memory_space<vmem>>, %arg2: memref<1x64xf32, #tpu.memory_space<vmem>>, %arg3: memref<1x64xf32, #tpu.memory_space<vmem>>, %arg4: memref<8x64xf32, #tpu.memory_space<vmem>>) attributes {dimension_semantics = [#tpu.dimension_semantics<parallel>], iteration_bounds = array<i64: 1>, scalar_prefetch = 0 : i64, scratch_operands = 0 : i64, tpu.core_type = #tpu.core_type<tc>, window_params = [{transform_indices = @transform_0, window_bounds = array<i64: 8, 64>}, {pipeline_mode = #tpu.pipeline_mode<synchronous>, transform_indices = @transform_1, window_bounds = array<i64: 1, 64>}, {pipeline_mode = #tpu.pipeline_mode<synchronous>, transform_indices = @transform_2, window_bounds = array<i64: 1, 64>}, {transform_indices = @transform_3, window_bounds = array<i64: 8, 64>}]} {
    %c0 = arith.constant 0 : index
    %c0_0 = arith.constant 0 : index
    %0 = vector.load %arg1[%c0, %c0_0] : memref<8x64xbf16, #tpu.memory_space<vmem>>, vector<8x64xbf16>
    %1 = arith.extf %0 : vector<8x64xbf16> to vector<8x64xf32>
    %c0_1 = arith.constant 0 : index
    %c0_2 = arith.constant 0 : index
    %2 = vector.load %arg2[%c0_1, %c0_2] : memref<1x64xf32, #tpu.memory_space<vmem>>, vector<1x64xf32>
    %c0_3 = arith.constant 0 : index
    %c0_4 = arith.constant 0 : index
    %3 = vector.load %arg3[%c0_3, %c0_4] : memref<1x64xf32, #tpu.memory_space<vmem>>, vector<1x64xf32>
    %cst = arith.constant dense<0.000000e+00> : vector<8xf32>
    %4 = vector.multi_reduction <add>, %1, %cst [1] : vector<8x64xf32> to vector<8xf32>
    %5 = vector.shape_cast %4 : vector<8xf32> to vector<8x1xf32>
    %cst_5 = arith.constant 6.400000e+01 : f32
    %6 = vector.broadcast %cst_5 : f32 to vector<8x1xf32>
    %7 = arith.divf %5, %6 : vector<8x1xf32>
    %8 = vector.broadcast %7 : vector<8x1xf32> to vector<8x64xf32>
    %9 = arith.subf %1, %8 : vector<8x64xf32>
    %10 = arith.mulf %9, %9 : vector<8x64xf32>
    %cst_6 = arith.constant dense<0.000000e+00> : vector<8xf32>
    %11 = vector.multi_reduction <add>, %10, %cst_6 [1] : vector<8x64xf32> to vector<8xf32>
    %12 = vector.shape_cast %11 : vector<8xf32> to vector<8x1xf32>
    %cst_7 = arith.constant 6.400000e+01 : f32
    %13 = vector.broadcast %cst_7 : f32 to vector<8x1xf32>
    %14 = arith.divf %12, %13 : vector<8x1xf32>
    %cst_8 = arith.constant 9.99999997E-7 : f32
    %15 = vector.broadcast %cst_8 : f32 to vector<8x1xf32>
    %16 = arith.addf %14, %15 : vector<8x1xf32>
    %17 = math.rsqrt %16 : vector<8x1xf32>
    %18 = vector.broadcast %17 : vector<8x1xf32> to vector<8x64xf32>
    %19 = arith.mulf %9, %18 : vector<8x64xf32>
    %20 = vector.broadcast %2 : vector<1x64xf32> to vector<8x64xf32>
    %21 = arith.mulf %19, %20 : vector<8x64xf32>
    %22 = vector.broadcast %3 : vector<1x64xf32> to vector<8x64xf32>
    %23 = arith.addf %21, %22 : vector<8x64xf32>
    %c0_9 = arith.constant 0 : index
    %c0_10 = arith.constant 0 : index
    %24 = vector.load %arg4[%c0_9, %c0_10] : memref<8x64xf32, #tpu.memory_space<vmem>>, vector<8x64xf32>
    tpu.vector_store %arg4[%c0_9, %c0_10], %23 {strides = array<i32>} : memref<8x64xf32, #tpu.memory_space<vmem>>, vector<8x64xf32>,
    return
  }
  func.func @transform_0(%arg0: i32) -> (i32, i32) {
    %c0_i32 = arith.constant 0 : i32
    %c0_i32_0 = arith.constant 0 : i32
    return %arg0, %c0_i32 : i32, i32
  }
  func.func @transform_1(%arg0: i32) -> (i32, i32) {
    %c0_i32 = arith.constant 0 : i32
    %c0_i32_0 = arith.constant 0 : i32
    %c0_i32_1 = arith.constant 0 : i32
    return %c0_i32, %c0_i32_0 : i32, i32
  }
  func.func @transform_2(%arg0: i32) -> (i32, i32) {
    %c0_i32 = arith.constant 0 : i32
    %c0_i32_0 = arith.constant 0 : i32
    %c0_i32_1 = arith.constant 0 : i32
    return %c0_i32, %c0_i32_0 : i32, i32
  }
  func.func @transform_3(%arg0: i32) -> (i32, i32) {
    %c0_i32 = arith.constant 0 : i32
    %c0_i32_0 = arith.constant 0 : i32
    return %arg0, %c0_i32 : i32, i32
  }
}

</mosaic_0001>

<bundles_post_ra>
// kernel: mvit_forward.11
= control target key start
LH: loop header
LB: loop body
LE: loop exit
PB: predicated region body
PF: predicated region fallthrough
CT: control target
= control target key end

     0   :  { %s957_s12 = smov 0   ;;  %s1117_s0 = inlined_call_operand.vmem [shape: bf16[128,441], index: 0, kind: input, shape index: {}]   ;;  %s1118_s1 = inlined_call_operand.vmem [shape: bf16[441,32], index: 1, kind: input, shape index: {}]   ;;  %s1119_s2 = inlined_call_operand.vmem [shape: f32[1,32], index: 2, kind: input, shape index: {}]   ;;  %s1120_s3 = inlined_call_operand.vmem [shape: bf16[128,32], index: 3, kind: output, shape index: {}]  }
   0x1 LB: > { %s747_s13 = sadd.s32 4294967295, %s933_s12   ;;  %p751_p0 = scmp.ge.s32.totalorder %s933_s12, 1  ;;  %s933_s12 = sphi %s957_s12, %s13_s12  }
   0x2   : > { %p139_p1 = scmp.lt.s32.totalorder %s933_s12, 3 }
   0x4   : > { %p140_p2 = pnand %p751_p0, %p139_p1 }
   0x5   : > { %v875_v0 = vld [vmem:[%s1118_s1 + $0x80] sm:$0xff] (!%p140_p2)   ;;  %v935_v1 = vmov (!%p140_p2), 0   ;;  %v876_v2 = vld [vmem:[%s1118_s1 + $0x88] sm:$0xff] (!%p140_p2)   ;;  %v879_v5 = vld [vmem:[%s1118_s1 + $0x90] sm:$0xff] (!%p140_p2)   ;;  %s752_s7 = sshll.u32 (!%p140_p2), %s747_s13, 3  ;;  %vm500_vm0 = vcmask (!%p140_p2), 465920  }
   0x6   : > { %143 = sbr.rel (%p140_p2) target bundleno = 297 (0x129), region = 32  ;;  %585 = vmatprep.subr.bf16.mxu1 (!%p140_p2), %v935_v1  ;;  %v877_v3 = vld [vmem:[%s1118_s1 + $0x40] sm:$0xff] (!%p140_p2)   ;;  %v880_v6 = vld [vmem:[%s1118_s1 + $0x48] sm:$0xff] (!%p140_p2)   ;;  %v883_v8 = vld [vmem:[%s1118_s1 + $0x50] sm:$0xff] (!%p140_p2)   ;;  %p165_p3 = scmp.lt.s32.totalorder (!%p140_p2), %s752_s7, 15  ;;  %vm513_vm1 = vcmask (!%p140_p2), 1043456  }
   0x7   : > { %586 = vmatpush1.bf16.msra.mxu1 (!%p140_p2), %v875_v0  ;;  %v878_v4 = vld [vmem:[%s1118_s1] sm:$0xff] (!%p140_p2)   ;;  %825 = vmatprep.subr.bf16.mxu0 (!%p140_p2), %v877_v3  ;;  %v881_v7 = vld [vmem:[%s1118_s1 + $0x8] sm:$0xff] (!%p140_p2)   ;;  %v884_v9 = vld [vmem:[%s1118_s1 + $0x10] sm:$0xff] (!%p140_p2)   ;;  %vm514_vm2 = vcmask (!%p140_p2), 1044480   ;;  %v936_v31 = vmov (!%p140_p2), 65535   ;;  %vm682_vm3 = vcmask (!%p140_p2), 257024  }
   0x8   : > { %587 = vmatprep.subr.bf16.mxu1 (!%p140_p2), %v935_v1  ;;  %826 = vmatpush3.bf16.msra.mxu0 (!%p140_p2), %v878_v4  ;;  %v882_v10 = vld [vmem:[%s1118_s1 + $0x98] sm:$0xff] (!%p140_p2)   ;;  %v885_v12 = vld [vmem:[%s1118_s1 + $0xa0] sm:$0xff] (!%p140_p2)   ;;  %v888_v15 = vld [vmem:[%s1118_s1 + $0xa8] sm:$0xff] (!%p140_p2)   ;;  %v515_v32 = vsel (!%p140_p2), %vm513_vm1, 4294967295, %v936_v31 }
   0x9   : > { %827 = vmatprep.subr.bf16.mxu0 (!%p140_p2), %v880_v6  ;;  %v886_v11 = vld [vmem:[%s1118_s1 + $0x58] sm:$0xff] (!%p140_p2)   ;;  %v889_v14 = vld [vmem:[%s1118_s1 + $0x60] sm:$0xff] (!%p140_p2)   ;;  %v892_v17 = vld [vmem:[%s1118_s1 + $0x68] sm:$0xff] (!%p140_p2)   ;;  %v516_v35 = vsel (!%p140_p2), %vm514_vm2, %v515_v32, 0 }
   0xa   : > { %v887_v13 = vld [vmem:[%s1118_s1 + $0x18] sm:$0xff] (!%p140_p2)   ;;  %v890_v16 = vld [vmem:[%s1118_s1 + $0x20] sm:$0xff] (!%p140_p2)   ;;  %v891_v18 = vld [vmem:[%s1118_s1 + $0xb0] sm:$0xff] (!%p140_p2)  }
   0xb   : > { %588 = vmatpush1.bf16.msra.mxu1 (!%p140_p2), %v876_v2  ;;  %v893_v19 = vld [vmem:[%s1118_s1 + $0x28] sm:$0xff] (!%p140_p2)   ;;  %v895_v20 = vld [vmem:[%s1118_s1 + $0x70] sm:$0xff] (!%p140_p2)   ;;  %v894_v21 = vld [vmem:[%s1118_s1 + $0xb8] sm:$0xff] (!%p140_p2)  }
   0xc   : > { %589 = vmatprep.subr.bf16.mxu1 (!%p140_p2), %v935_v1  ;;  %828 = vmatpush3.bf16.msra.mxu0 (!%p140_p2), %v881_v7  ;;  %v896_v22 = vld [vmem:[%s1118_s1 + $0x30] sm:$0xff] (!%p140_p2)   ;;  %v898_v23 = vld [vmem:[%s1118_s1 + $0x78] sm:$0xff] (!%p140_p2)   ;;  %v897_v26 = vld [vmem:[%s1118_s1 + $0xc0] sm:$0xff] (!%p140_p2)  }
   0xd   : > { %829 = vmatprep.subr.bf16.mxu0 %v883_v8  ;;  %s1122_s7 = smov (!%p165_p3, %s752_s7), 15  ;;  %v899_v25 = vld [vmem:[%s1118_s1 + $0x38] sm:$0xff]   ;;  %v900_v30 = vld [vmem:[%s1118_s1 + $0xc8] sm:$0xff]   ;;  %v904_v33 = vld [vmem:[%s1118_s1 + $0xd0] sm:$0xff]  }
   0xe   : > { %s816_s27 = sshll.u32 %s1122_s7, 4  ;;  %v905_v34 = vld [vmem:[%s1118_s1 + $0xd8] sm:$0x1f]   ;;  %v757_v55 = vld [vmem:[%s1119_s2] ss:$0 sm:$0xff]  ;;  %s756_s26 = sshll.u32 %s1122_s7, 2 }
   0xf   : > { %590 = vmatpush1.bf16.msra.mxu1 %v879_v5  ;;  %s1041_s8 = scalar_lea.vmem %s1117_s0, %s816_s27  ;;  %v518_v38 = vand.u32 %v905_v34, %v516_v35  ;;  %s1096_s29 = scalar_lea.vmem %s1120_s3, %s756_s26 }
  0x10   : > { %591 = vmatprep.subr.bf16.mxu1 %v935_v1  ;;  %830 = vmatpush3.bf16.msra.mxu0 %v884_v9  ;;  %v903_v24 = vld [vmem:[%s1041_s8 + $0x4] ss:$16 sps:$4 sm:$0xff]   ;;  %v910_v27 = vld [vmem:[%s1041_s8 + $0xc] ss:$16 sps:$4 sm:$0xff]   ;;  %v901_v28 = vld [vmem:[%s1041_s8] ss:$16 sps:$4 sm:$0xff]  }
  0x11   : > { %831 = vmatprep.subr.bf16.mxu0 %v886_v11  ;;  %552 = vmatprep.mubr.bf16.mxu0 %v903_v24  ;;  %v906_v29 = vld [vmem:[%s1041_s8 + $0x24] ss:$16 sps:$4 sm:$0xff]   ;;  %v911_v36 = vld [vmem:[%s1041_s8 + $0x20] ss:$16 sps:$4 sm:$0xff]   ;;  %v908_v39 = vld [vmem:[%s1041_s8 + $0x8] ss:$16 sps:$4 sm:$0xff]  }
  0x12   : > { %802 = vmatprep.mubr.msk.bf16.mxu1 %vm500_vm0, %v910_v27  ;;  %v912_v37 = vld [vmem:[%s1041_s8 + $0x44] ss:$16 sps:$4 sm:$0xff]   ;;  %v914_v40 = vld [vmem:[%s1041_s8 + $0x2c] ss:$16 sps:$4 sm:$0xff]   ;;  %v916_v41 = vld [vmem:[%s1041_s8 + $0x40] ss:$16 sps:$4 sm:$0xff]  }
  0x13   : > { %592 = vmatpush1.bf16.msra.mxu1 %v882_v10  ;;  %v918_v42 = vld [vmem:[%s1041_s8 + $0x64] ss:$16 sps:$4 sm:$0xff]   ;;  %v917_v43 = vld [vmem:[%s1041_s8 + $0x28] ss:$16 sps:$4 sm:$0xff]   ;;  %v920_v44 = vld [vmem:[%s1041_s8 + $0x4c] ss:$16 sps:$4 sm:$0xff]  }
  0x14   : > { %593 = vmatprep.subr.bf16.mxu1 %v935_v1  ;;  %832 = vmatpush3.bf16.msra.mxu0 %v887_v13  ;;  %v922_v45 = vld [vmem:[%s1041_s8 + $0x60] ss:$16 sps:$4 sm:$0xff]   ;;  %v923_v46 = vld [vmem:[%s1041_s8 + $0x48] ss:$16 sps:$4 sm:$0xff]   ;;  %v924_v47 = vld [vmem:[%s1041_s8 + $0x6c] ss:$16 sps:$4 sm:$0xff]  }
  0x15   : > { %833 = vmatprep.subr.bf16.mxu0 %v889_v14  ;;  %v926_v48 = vld [vmem:[%s1041_s8 + $0x68] ss:$16 sps:$4 sm:$0xff]  }
  0x17   : > { %594 = vmatpush1.bf16.msra.mxu1 %v885_v12 }
  0x18   : > { %595 = vmatprep.subr.bf16.mxu1 %v935_v1  ;;  %834 = vmatpush3.bf16.msra.mxu0 %v890_v16 }
  0x19   : > { %835 = vmatprep.subr.bf16.mxu0 %v892_v17 }
  0x1b   : > { %596 = vmatpush1.bf16.msra.mxu1 %v888_v15 }
  0x1c   : > { %597 = vmatprep.subr.bf16.mxu1 %v935_v1  ;;  %836 = vmatpush3.bf16.msra.mxu0 %v893_v19 }
  0x1d   : > { %837 = vmatprep.subr.bf16.mxu0 %v895_v20 }
  0x1f   : > { %598 = vmatpush1.bf16.msra.mxu1 %v891_v18 }
  0x20   : > { %599 = vmatprep.subr.bf16.mxu1 %v935_v1  ;;  %838 = vmatpush3.bf16.msra.mxu0 %v896_v22 }
  0x21   : > { %839 = vmatprep.subr.bf16.mxu0 %v898_v23 }
  0x23   : > { %600 = vmatpush1.bf16.msra.mxu1 %v894_v21 }
  0x24   : > { %601 = vmatprep.subr.bf16.mxu1 %v935_v1  ;;  %840 = vmatpush3.bf16.msra.mxu0 %v899_v25 }
  0x27   : > { %602 = vmatpush1.bf16.msra.mxu1 %v897_v26  ;;  %553 = vmatmul.mubr.bf16.vlgmr.msra.gmra.mrb[0].mxu0 %v901_v28 }
  0x28   : > { %603 = vmatprep.subr.bf16.mxu1 %v935_v1  ;;  %560 = vmatprep.mubr.bf16.mxu0 %v906_v29 }
  0x2b   : > { %604 = vmatpush1.bf16.msra.mxu1 %v900_v30 }
  0x2c   : > { %605 = vmatprep.subr.bf16.mxu1 %v935_v1 }
  0x2f   : > { %606 = vmatpush1.bf16.msra.mxu1 %v904_v33  ;;  %561 = vmatmul.mubr.bf16.gmra.mrb[4].mxu0 %v911_v36 }
  0x30   : > { %607 = vmatprep.subr.bf16.mxu1 %v935_v1  ;;  %568 = vmatprep.mubr.bf16.mxu0 %v912_v37 }
  0x33   : > { %608 = vmatpush1.bf16.msra.mxu1 %v518_v38 }
  0x36   : > { %618 = vmatmul.mubr.bf16.vlgmr.msra.gmra.mrb[0].mxu1 %v908_v39 }
  0x37   : > { %803 = vmatprep.mubr.msk.bf16.mxu1 %vm500_vm0, %v914_v40  ;;  %569 = vmatmul.mubr.bf16.gmra.mrb[8].mxu0 %v916_v41 }
  0x38   : > { %576 = vmatprep.mubr.bf16.mxu0 %v918_v42 }
  0x3e   : > { %626 = vmatmul.mubr.bf16.gmra.mrb[4].mxu1 %v917_v43 }
  0x3f   : > { %804 = vmatprep.mubr.msk.bf16.mxu1 %vm500_vm0, %v920_v44  ;;  %577 = vmatmul.mubr.bf16.gmra.mrb[12].mxu0 %v922_v45 }
  0x46   : > { %634 = vmatmul.mubr.bf16.gmra.mrb[8].mxu1 %v923_v46 }
  0x47   : > { %805 = vmatprep.mubr.msk.bf16.mxu1 %vm500_vm0, %v924_v47 }
  0x4e   : > { %642 = vmatmul.mubr.bf16.gmra.mrb[12].mxu1 %v926_v48 }
  0xfa   : > { %v841_v49 = vpop.f32.mrb[0].mxu0 }
  0xfb   : > { %v842_v50 = vpop.f32.mrb[1].mxu0 }
  0xfc   : > { %v843_v51 = vadd.f32 %v842_v50, %v841_v49  ;;  %v844_v52 = vpop.f32.mrb[2].mxu0 }
  0xfd   : > { %v845_v53 = vpop.f32.mrb[3].mxu0 }
  0xfe   : > { %v846_v54 = vadd.f32 %v845_v53, %v844_v52  ;;  %v555_v58 = vadd.f32 %v843_v51, %v757_v55 }
 0x100   : > { %v558_v2 = vadd.f32 %v846_v54, %v757_v55 }
 0x102   : > { %v847_v56 = vpop.f32.mrb[4].mxu0 }
 0x103   : > { %v848_v57 = vpop.f32.mrb[5].mxu0 }
 0x104   : > { %v849_v59 = vadd.f32 %v848_v57, %v847_v56  ;;  %v850_v60 = vpop.f32.mrb[6].mxu0 }
 0x105   : > { %v851_v61 = vpop.f32.mrb[7].mxu0 }
 0x106   : > { %v852_v62 = vadd.f32 %v851_v61, %v850_v60  ;;  %v563_v10 = vadd.f32 %v849_v59, %v757_v55 }
 0x108   : > { %v566_v18 = vadd.f32 %v852_v62, %v757_v55 }
 0x109   : > { %v619_v63 = vpop.f32.mrb[0].mxu1 }
 0x10a   : > { %v620_v0 = vadd.f32 %v619_v63, %v555_v58  ;;  %v621_v1 = vpop.f32.mrb[1].mxu1  ;;  %v853_v7 = vpop.f32.mrb[8].mxu0 }
 0x10b   : > { %v622_v3 = vpop.f32.mrb[2].mxu1  ;;  %v854_v8 = vpop.f32.mrb[9].mxu0 }
 0x10c   : > { %v817_v4 = vpack.c.bf16 %v620_v0, %v620_v0  ;;  %v623_v5 = vadd.f32 %v622_v3, %v558_v2  ;;  %v624_v6 = vpop.f32.mrb[3].mxu1  ;;  %v855_v11 = vadd.f32 %v854_v8, %v853_v7  ;;  %v856_v12 = vpop.f32.mrb[10].mxu0 }
 0x10d   : > { %v857_v13 = vpop.f32.mrb[11].mxu0 }
 0x10e   : > { %683 = vst.msk [vmem:[%s1096_s29] sm:$0xf] %vm682_vm3, %v817_v4  ;;  %v818_v9 = vpack.c.bf16 %v623_v5, %v623_v5  ;;  %v858_v14 = vadd.f32 %v857_v13, %v856_v12  ;;  %v571_v26 = vadd.f32 %v855_v11, %v757_v55 }
 0x110   : > { %684 = vst.msk [vmem:[%s1096_s29 + $0x4] sm:$0xf] %vm682_vm3, %v818_v9  ;;  %v574_v34 = vadd.f32 %v858_v14, %v757_v55 }
 0x111   : > { %v627_v15 = vpop.f32.mrb[4].mxu1 }
 0x112   : > { %v628_v16 = vadd.f32 %v627_v15, %v563_v10  ;;  %v629_v17 = vpop.f32.mrb[5].mxu1  ;;  %v859_v23 = vpop.f32.mrb[12].mxu0 }
 0x113   : > { %v630_v19 = vpop.f32.mrb[6].mxu1  ;;  %v860_v24 = vpop.f32.mrb[13].mxu0 }
 0x114   : > { %v819_v20 = vpack.c.bf16 %v628_v16, %v628_v16  ;;  %v631_v21 = vadd.f32 %v630_v19, %v566_v18  ;;  %v632_v22 = vpop.f32.mrb[7].mxu1  ;;  %v861_v27 = vadd.f32 %v860_v24, %v859_v23  ;;  %v862_v28 = vpop.f32.mrb[14].mxu0 }
 0x115   : > { %v863_v29 = vpop.f32.mrb[15].mxu0 }
 0x116   : > { %685 = vst.msk [vmem:[%s1096_s29 + $0x8] sm:$0xf] %vm682_vm3, %v819_v20  ;;  %v820_v25 = vpack.c.bf16 %v631_v21, %v631_v21  ;;  %v864_v30 = vadd.f32 %v863_v29, %v862_v28  ;;  %v579_v40 = vadd.f32 %v861_v27, %v757_v55 }
 0x118   : > { %686 = vst.msk [vmem:[%s1096_s29 + $0xc] sm:$0xf] %vm682_vm3, %v820_v25  ;;  %v582_v44 = vadd.f32 %v864_v30, %v757_v55 }
 0x119   : > { %v635_v31 = vpop.f32.mrb[8].mxu1 }
 0x11a   : > { %v636_v32 = vadd.f32 %v635_v31, %v571_v26  ;;  %v637_v33 = vpop.f32.mrb[9].mxu1 }
 0x11b   : > { %v638_v35 = vpop.f32.mrb[10].mxu1 }
 0x11c   : > { %v821_v36 = vpack.c.bf16 %v636_v32, %v636_v32  ;;  %v639_v37 = vadd.f32 %v638_v35, %v574_v34  ;;  %v640_v38 = vpop.f32.mrb[11].mxu1 }
 0x11e   : > { %687 = vst.msk [vmem:[%s1096_s29 + $0x10] sm:$0xf] %vm682_vm3, %v821_v36  ;;  %v822_v39 = vpack.c.bf16 %v639_v37, %v639_v37 }
 0x120   : > { %688 = vst.msk [vmem:[%s1096_s29 + $0x14] sm:$0xf] %vm682_vm3, %v822_v39 }
 0x121   : > { %v643_v41 = vpop.f32.mrb[12].mxu1 }
 0x122   : > { %v644_v42 = vadd.f32 %v643_v41, %v579_v40  ;;  %v645_v43 = vpop.f32.mrb[13].mxu1 }
 0x123   : > { %v646_v45 = vpop.f32.mrb[14].mxu1 }
 0x124   : > { %v823_v46 = vpack.c.bf16 %v644_v42, %v644_v42  ;;  %v647_v47 = vadd.f32 %v646_v45, %v582_v44  ;;  %v648_v48 = vpop.f32.mrb[15].mxu1 }
 0x126   : > { %689 = vst.msk [vmem:[%s1096_s29 + $0x18] sm:$0xf] %vm682_vm3, %v823_v46  ;;  %v824_v49 = vpack.c.bf16 %v647_v47, %v647_v47 }
 0x128   : > { %690 = vst.msk [vmem:[%s1096_s29 + $0x1c] sm:$0xf] %vm682_vm3, %v824_v49 }
 0x129 PF: > { %s13_s12 = sadd.s32 1, %s933_s12  }
 0x12a   : > { %p10_p4 = scmp.ge.s32.totalorder %s13_s12, 4  }
 0x12c   :  { %12 = sbr.rel (!%p10_p4) target bundleno = 1 (0x1), region = 62 }

// kernel: mvit_forward.12
= control target key start
LH: loop header
LB: loop body
LE: loop exit
PB: predicated region body
PF: predicated region fallthrough
CT: control target
= control target key end

     0   :  { %s1091_s27 = smov 0   ;;  %s1298_s0 = inlined_call_operand.vmem [shape: f32[144,32], index: 0, kind: input, shape index: {}]   ;;  %s1299_s1 = inlined_call_operand.vmem [shape: f32[1,32], index: 1, kind: input, shape index: {}]   ;;  %s1300_s2 = inlined_call_operand.vmem [shape: f32[1,32], index: 2, kind: input, shape index: {}]   ;;  %s1301_s3 = inlined_call_operand.vmem [shape: bf16[32,32], index: 3, kind: input, shape index: {}]   ;;  %s1302_s4 = inlined_call_operand.vmem [shape: f32[1,32], index: 4, kind: input, shape index: {}]   ;;  %s1303_s5 = inlined_call_operand.vmem [shape: bf16[32,64], index: 5, kind: input, shape index: {}]   ;;  %s1304_s6 = inlined_call_operand.vmem [shape: f32[1,64], index: 6, kind: input, shape index: {}]   ;;  %s1305_s7 = inlined_call_operand.vmem [shape: bf16[144,32], index: 7, kind: output, shape index: {0}]   ;;  %s1306_s8 = inlined_call_operand.vmem [shape: bf16[144,64], index: 8, kind: output, shape index: {1}]  }
   0x1 LB: > { %s878_s28 = sadd.s32 4294967295, %s1042_s27   ;;  %p882_p0 = scmp.ge.s32.totalorder %s1042_s27, 1  ;;  %s1042_s27 = sphi %s1091_s27, %s19_s27  }
   0x2   : > { %p266_p1 = scmp.lt.s32.totalorder %s1042_s27, 3 }
   0x4   : > { %p267_p2 = pnand %p882_p0, %p266_p1 }
   0x5   : > { %s305_s29 = smul.u32 (!%p267_p2), 9, %s878_s28  ;;  %vm335_vm0 = vcmask (!%p267_p2), 261120   ;;  %v1014_v63 = vld [vmem:[%s1301_s3] sm:$0xff] (!%p267_p2)   ;;  %vm1045_vm1 = vmmov (!%p267_p2), 0   ;;  %vm640_vm2 = vcmask (!%p267_p2), 257024   ;;  %vm778_vm3 = vcmask (!%p267_p2), 519168  }
   0x6   : > { %270 = sbr.rel (%p267_p2) target bundleno = 586 (0x24a), region = 48 }
   0x7   : > { %p306_p3 = scmp.lt.s32.totalorder (!%p267_p2), %s305_s29, 17 }
   0xd   : > { %s1308_s29 = smov (!%p306_p3, %s305_s29), 17 }
   0xe   : > { %s883_s30 = sshll.u32 %s1308_s29, 3 }
   0xf   : > { %s309_s11 = scalar_lea.vmem %s1298_s0, %s883_s30  ;;  %s884_s30 = sshll.u32 %s1308_s29, 2 }
  0x10   : > { %v324_v0 = vld [vmem:[%s309_s11] sm:$0xff]  ;;  %v326_v1 = vld [vmem:[%s309_s11 + $0x10] sm:$0xff]  ;;  %v325_v2 = vld [vmem:[%s309_s11 + $0x8] sm:$0xff]  ;;  %s1241_s29 = scalar_lea.vmem %s1306_s8, %s884_s30 }
  0x11   : > { %v336_v3 = vsel %vm335_vm0, %v324_v0, 0.0  ;;  %v342_v4 = vsel %vm335_vm0, %v326_v1, 0.0  ;;  %v327_v5 = vld [vmem:[%s309_s11 + $0x18] sm:$0xff]  ;;  %v339_v6 = vsel %vm335_vm0, %v325_v2, 0.0  ;;  %v328_v8 = vld [vmem:[%s309_s11 + $0x20] sm:$0xff]  ;;  %v329_v9 = vld [vmem:[%s309_s11 + $0x28] sm:$0xff] }
  0x12   : > { %337 = vadd.xlane.f32.xlu0 %v336_v3  ;;  %343 = vadd.xlane.f32.xlu1 %v342_v4  ;;  %v345_v7 = vsel %vm335_vm0, %v327_v5, 0.0  ;;  %v348_v10 = vsel %vm335_vm0, %v328_v8, 0.0  ;;  %v351_v11 = vsel %vm335_vm0, %v329_v9, 0.0  ;;  %v330_v12 = vld [vmem:[%s309_s11 + $0x30] sm:$0xff]  ;;  %v331_v13 = vld [vmem:[%s309_s11 + $0x38] sm:$0xff]  ;;  %v332_v16 = vld [vmem:[%s309_s11 + $0x40] sm:$0xff]  ;;  %s1236_s11 = scalar_lea.vmem %s1305_s7, %s884_s30 }
  0x13   : > { %v354_v14 = vsel %vm335_vm0, %v330_v12, 0.0  ;;  %v357_v15 = vsel %vm335_vm0, %v331_v13, 0.0  ;;  %v360_v17 = vsel %vm335_vm0, %v332_v16, 0.0  ;;  %v1017_v3 = vld [vmem:[%s1303_s5 + $0x8] sm:$0xff]  }
  0x16   : > { %340 = vadd.xlane.f32.xlu0 %v339_v6  ;;  %346 = vadd.xlane.f32.xlu1 %v345_v7 }
  0x1a   : > { %349 = vadd.xlane.f32.xlu0 %v348_v10  ;;  %352 = vadd.xlane.f32.xlu1 %v351_v11 }
  0x1e   : > { %355 = vadd.xlane.f32.xlu0 %v354_v14  ;;  %358 = vadd.xlane.f32.xlu1 %v357_v15 }
  0x22   : > { %361 = vadd.xlane.f32.xlu0 %v360_v17 }
  0x9f   : > { %v338_v18 = vpop.xlane.xlu0 %337  ;;  %v344_v19 = vpop.xlane.xlu1 %343 }
  0xa0   : > { %v364_v20 = vmul.f32 0.03125, %v338_v18  ;;  %v366_v21 = vmul.f32 0.03125, %v344_v19 }
  0xa2   : > { %v1114_v22 = vsub.f32 %v324_v0, %v364_v20  ;;  %v1116_v23 = vsub.f32 %v326_v1, %v366_v21  ;;  %v1015_v0 = vld [vmem:[%s1303_s5] sm:$0xff]   ;;  %v1044_v1 = vmov 0.0  }
  0xa3   : > { %v341_v24 = vpop.xlane.xlu0 %340  ;;  %v347_v25 = vpop.xlane.xlu1 %346  ;;  %956 = vmatprep.subr.bf16.mxu0 %v1044_v1  ;;  %980 = vmatprep.subr.bf16.mxu1 %v1044_v1 }
  0xa4   : > { %v365_v26 = vmul.f32 0.03125, %v341_v24  ;;  %v367_v27 = vmul.f32 0.03125, %v347_v25  ;;  %v382_v28 = vmul.f32 %v1114_v22, %v1114_v22  ;;  %v384_v29 = vmul.f32 %v1116_v23, %v1116_v23  ;;  %957 = vmatpush3.bf16.msra.mxu0 %v1014_v63  ;;  %981 = vmatpush3.bf16.msra.mxu1 %v1015_v0 }
  0xa5   : > { %958 = vmatprep.subr.bf16.mxu0 %v1044_v1  ;;  %982 = vmatprep.subr.bf16.mxu1 %v1044_v1 }
  0xa6   : > { %v1122_v30 = vsub.f32 %v325_v2, %v365_v26  ;;  %v1124_v31 = vsub.f32 %v327_v5, %v367_v27  ;;  %v391_v32 = vsel %vm335_vm0, %v382_v28, 0.0  ;;  %v397_v35 = vsel %vm335_vm0, %v384_v29, 0.0  ;;  %v1016_v2 = vld [vmem:[%s1301_s3 + $0x8] sm:$0xff]   ;;  %960 = vmatprep.mubr.msk.bf16.mxu0 %vm1045_vm1, %v1044_v1  ;;  %984 = vmatprep.mubr.msk.bf16.mxu1 %vm1045_vm1, %v1044_v1  ;;  %v886_v29 = vld [vmem:[%s1299_s1] ss:$0 sm:$0xff] }
  0xa7   : > { %392 = vadd.xlane.f32.xlu1 %v391_v32  ;;  %v350_v33 = vpop.xlane.xlu0 %349  ;;  %v353_v34 = vpop.xlane.xlu1 %352 }
  0xa8   : > { %v368_v36 = vmul.f32 0.03125, %v350_v33  ;;  %v369_v37 = vmul.f32 0.03125, %v353_v34  ;;  %v383_v38 = vmul.f32 %v1122_v30, %v1122_v30  ;;  %v385_v39 = vmul.f32 %v1124_v31, %v1124_v31  ;;  %959 = vmatpush3.bf16.msra.mxu0 %v1016_v2  ;;  %983 = vmatpush3.bf16.msra.mxu1 %v1017_v3 }
  0xaa   : > { %v1132_v40 = vsub.f32 %v328_v8, %v368_v36  ;;  %v1134_v41 = vsub.f32 %v329_v9, %v369_v37  ;;  %v394_v42 = vsel %vm335_vm0, %v383_v38, 0.0  ;;  %v400_v45 = vsel %vm335_vm0, %v385_v39, 0.0  ;;  %v887_v38 = vld [vmem:[%s1300_s2] ss:$0 sm:$0xff] }
  0xab   : > { %398 = vadd.xlane.f32.xlu1 %v397_v35  ;;  %395 = vadd.xlane.f32.xlu0 %v394_v42  ;;  %v356_v43 = vpop.xlane.xlu0 %355  ;;  %v359_v44 = vpop.xlane.xlu1 %358 }
  0xac   : > { %v370_v46 = vmul.f32 0.03125, %v356_v43  ;;  %v371_v47 = vmul.f32 0.03125, %v359_v44  ;;  %v386_v48 = vmul.f32 %v1132_v40, %v1132_v40  ;;  %v387_v49 = vmul.f32 %v1134_v41, %v1134_v41 }
  0xae   : > { %v1142_v50 = vsub.f32 %v330_v12, %v370_v46  ;;  %v1144_v51 = vsub.f32 %v331_v13, %v371_v47  ;;  %v403_v52 = vsel %vm335_vm0, %v386_v48, 0.0  ;;  %v406_v55 = vsel %vm335_vm0, %v387_v49, 0.0 }
  0xaf   : > { %401 = vadd.xlane.f32.xlu0 %v400_v45  ;;  %404 = vadd.xlane.f32.xlu1 %v403_v52  ;;  %v362_v53 = vpop.xlane.xlu0 %361 }
  0xb0   : > { %v372_v54 = vmul.f32 0.03125, %v362_v53  ;;  %v388_v56 = vmul.f32 %v1142_v50, %v1142_v50  ;;  %v389_v57 = vmul.f32 %v1144_v51, %v1144_v51 }
  0xb2   : > { %v1152_v58 = vsub.f32 %v332_v16, %v372_v54  ;;  %v409_v59 = vsel %vm335_vm0, %v388_v56, 0.0  ;;  %v412_v60 = vsel %vm335_vm0, %v389_v57, 0.0 }
  0xb3   : > { %407 = vadd.xlane.f32.xlu0 %v406_v55  ;;  %410 = vadd.xlane.f32.xlu1 %v409_v59 }
  0xb4   : > { %v390_v61 = vmul.f32 %v1152_v58, %v1152_v58 }
  0xb6   : > { %v415_v62 = vsel %vm335_vm0, %v390_v61, 0.0 }
  0xb7   : > { %413 = vadd.xlane.f32.xlu0 %v412_v60  ;;  %416 = vadd.xlane.f32.xlu1 %v415_v62 }
 0x134   : > { %v393_v4 = vpop.xlane.xlu1 %392 }
 0x135   : > { %v418_v5 = vmul.f32 0.03125, %v393_v4 }
 0x137   : > { %v427_v6 = vadd.f32 1e-06, %v418_v5 }
 0x138   : > { %v399_v7 = vpop.xlane.xlu1 %398  ;;  %v396_v8 = vpop.xlane.xlu0 %395 }
 0x139   : > { %1018 = vrsqrt.f32 %v427_v6  ;;  %v420_v9 = vmul.f32 0.03125, %v399_v7  ;;  %v419_v10 = vmul.f32 0.03125, %v396_v8 }
 0x13b   : > { %v428_v11 = vadd.f32 1e-06, %v419_v10  ;;  %v429_v12 = vadd.f32 1e-06, %v420_v9 }
 0x13c   : > { %v402_v13 = vpop.xlane.xlu0 %401  ;;  %v405_v14 = vpop.xlane.xlu1 %404 }
 0x13d   : > { %v421_v15 = vmul.f32 0.03125, %v402_v13  ;;  %1020 = vrsqrt.f32 %v428_v11  ;;  %v422_v17 = vmul.f32 0.03125, %v405_v14 }
 0x13e   : > { %1022 = vrsqrt.f32 %v429_v12  ;;  %v1228_v12 = vld [vmem:[%s1304_s6] ss:$0 sm:$0xff] }
 0x13f   : > { %v430_v16 = vadd.f32 1e-06, %v421_v15  ;;  %v431_v24 = vadd.f32 1e-06, %v422_v17 }
 0x140   : > { %v408_v18 = vpop.xlane.xlu0 %407  ;;  %v411_v27 = vpop.xlane.xlu1 %410 }
 0x141   : > { %v423_v19 = vmul.f32 0.03125, %v408_v18  ;;  %1024 = vrsqrt.f32 %v430_v16  ;;  %v424_v33 = vmul.f32 0.03125, %v411_v27 }
 0x143   : > { %v1019_v20 = vpop.eup %1018  ;;  %v432_v21 = vadd.f32 1e-06, %v423_v19  ;;  %v433_v43 = vadd.f32 1e-06, %v424_v33 }
 0x144   : > { %v414_v25 = vpop.xlane.xlu0 %413  ;;  %v445_v26 = vmul.f32 %v1019_v20, %v1114_v22  ;;  %v417_v22 = vpop.xlane.xlu1 %416 }
 0x145   : > { %1026 = vrsqrt.f32 %v432_v21  ;;  %v425_v28 = vmul.f32 0.03125, %v414_v25  ;;  %v426_v48 = vmul.f32 0.03125, %v417_v22 }
 0x146   : > { %1028 = vrsqrt.f32 %v431_v24  ;;  %v460_v35 = vmul.f32 %v886_v29, %v445_v26 }
 0x147   : > { %v1021_v32 = vpop.eup %1020  ;;  %v434_v37 = vadd.f32 1e-06, %v425_v28  ;;  %v435_v55 = vadd.f32 1e-06, %v426_v48 }
 0x148   : > { %v446_v34 = vmul.f32 %v1021_v32, %v1122_v30  ;;  %v1023_v36 = vpop.eup %1022  ;;  %v475_v46 = vadd.f32 %v887_v38, %v460_v35 }
 0x149   : > { %v447_v44 = vmul.f32 %v1023_v36, %v1116_v23  ;;  %1030 = vrsqrt.f32 %v434_v37 }
 0x14a   : > { %v461_v39 = vmul.f32 %v886_v29, %v446_v34  ;;  %1032 = vrsqrt.f32 %v433_v43 }
 0x14b   : > { %v1025_v42 = vpop.eup %1024  ;;  %v462_v53 = vmul.f32 %v886_v29, %v447_v44  ;;  %1034 = vrsqrt.f32 %v435_v55 }
 0x14c   : > { %v448_v45 = vmul.f32 %v1025_v42, %v1124_v31  ;;  %v476_v47 = vadd.f32 %v887_v38, %v461_v39 }
 0x14d   : > { %v477_v57 = vadd.f32 %v887_v38, %v462_v53 }
 0x14e   : > { %v484_v30 = vpack.c.bf16 %v476_v47, %v475_v46  ;;  %v463_v49 = vmul.f32 %v886_v29, %v448_v45 }
 0x14f   : > { %v1027_v52 = vpop.eup %1026 }
 0x150   : > { %961 = vmatmul.mubr.msk.bf16.vlgmr.msra.gmra.mrb[0].mxu0 %vm335_vm0, %v484_v30  ;;  %985 = vmatmul.mubr.msk.bf16.vlgmr.msra.gmra.mrb[0].mxu1 %vm335_vm0, %v484_v30  ;;  %v1029_v54 = vpop.eup %1028  ;;  %v450_v23 = vmul.f32 %v1027_v52, %v1134_v41  ;;  %v478_v31 = vadd.f32 %v887_v38, %v463_v49 }
 0x151   : > { %964 = vmatprep.mubr.msk.bf16.mxu0 %vm1045_vm1, %v1044_v1  ;;  %988 = vmatprep.mubr.msk.bf16.mxu1 %vm1045_vm1, %v1044_v1  ;;  %v449_v56 = vmul.f32 %v1029_v54, %v1132_v40 }
 0x152   : > { %v485_v59 = vpack.c.bf16 %v478_v31, %v477_v57  ;;  %v465_v60 = vmul.f32 %v886_v29, %v450_v23 }
 0x153   : > { %v1031_v61 = vpop.eup %1030  ;;  %v464_v62 = vmul.f32 %v886_v29, %v449_v56 }
 0x154   : > { %v1033_v63 = vpop.eup %1032  ;;  %v452_v41 = vmul.f32 %v1031_v61, %v1144_v51  ;;  %v480_v40 = vadd.f32 %v887_v38, %v465_v60 }
 0x155   : > { %v451_v0 = vmul.f32 %v1033_v63, %v1142_v50  ;;  %v479_v2 = vadd.f32 %v887_v38, %v464_v62  ;;  %v1035_v5 = vpop.eup %1034 }
 0x156   : > { %v467_v4 = vmul.f32 %v886_v29, %v452_v41  ;;  %v453_v51 = vmul.f32 %v1035_v5, %v1152_v58  ;;  %v1223_v58 = vld [vmem:[%s1302_s4] ss:$0 sm:$0xff] }
 0x157   : > { %v486_v3 = vpack.c.bf16 %v480_v40, %v479_v2  ;;  %v466_v6 = vmul.f32 %v886_v29, %v451_v0 }
 0x158   : > { %965 = vmatmul.mubr.msk.bf16.gmra.mrb[4].mxu0 %vm335_vm0, %v485_v59  ;;  %989 = vmatmul.mubr.msk.bf16.gmra.mrb[4].mxu1 %vm335_vm0, %v485_v59  ;;  %v482_v7 = vadd.f32 %v887_v38, %v467_v4  ;;  %v468_v9 = vmul.f32 %v886_v29, %v453_v51 }
 0x159   : > { %968 = vmatprep.mubr.msk.bf16.mxu0 %vm1045_vm1, %v1044_v1  ;;  %992 = vmatprep.mubr.msk.bf16.mxu1 %vm1045_vm1, %v1044_v1  ;;  %v481_v50 = vadd.f32 %v887_v38, %v466_v6 }
 0x15a   : > { %v483_v10 = vadd.f32 %v887_v38, %v468_v9 }
 0x15b   : > { %v487_v8 = vpack.c.bf16 %v482_v7, %v481_v50 }
 0x15c   : > { %v488_v11 = vpack.c.bf16 %v483_v10, %v483_v10 }
 0x160   : > { %969 = vmatmul.mubr.msk.bf16.gmra.mrb[8].mxu0 %vm335_vm0, %v486_v3  ;;  %993 = vmatmul.mubr.msk.bf16.gmra.mrb[8].mxu1 %vm335_vm0, %v486_v3 }
 0x161   : > { %972 = vmatprep.mubr.msk.bf16.mxu0 %vm1045_vm1, %v1044_v1  ;;  %996 = vmatprep.mubr.msk.bf16.mxu1 %vm1045_vm1, %v1044_v1 }
 0x168   : > { %973 = vmatmul.mubr.msk.bf16.gmra.mrb[12].mxu0 %vm335_vm0, %v487_v8  ;;  %997 = vmatmul.mubr.msk.bf16.gmra.mrb[12].mxu1 %vm335_vm0, %v487_v8 }
 0x169   : > { %976 = vmatprep.mubr.msk.bf16.mxu0 %vm1045_vm1, %v1044_v1  ;;  %1000 = vmatprep.mubr.msk.bf16.mxu1 %vm1045_vm1, %v1044_v1 }
 0x170   : > { %977 = vmatmul.mubr.msk.bf16.gmra.mrb[16].mxu0 %vm335_vm0, %v488_v11  ;;  %1001 = vmatmul.mubr.msk.bf16.gmra.mrb[16].mxu1 %vm335_vm0, %v488_v11 }
 0x223   : > { %v565_v13 = vpop.f32.mrb[0].mxu0  ;;  %v703_v14 = vpop.f32.mrb[0].mxu1 }
 0x224   : > { %v566_v1 = vadd.f32 %v1223_v58, %v565_v13  ;;  %v704_v15 = vadd.f32 %v1228_v12, %v703_v14  ;;  %v962_v16 = vpop.f32.mrb[1].mxu0  ;;  %v986_v17 = vpop.f32.mrb[1].mxu1 }
 0x225   : > { %v568_v18 = vpop.f32.mrb[2].mxu0  ;;  %v706_v19 = vpop.f32.mrb[2].mxu1 }
 0x226   : > { %v924_v20 = vpack.c.bf16 %v566_v1, %v566_v1  ;;  %v933_v21 = vpack.c.bf16 %v704_v15, %v704_v15  ;;  %v569_v24 = vadd.f32 %v1223_v58, %v568_v18  ;;  %v707_v25 = vadd.f32 %v1228_v12, %v706_v19  ;;  %v963_v26 = vpop.f32.mrb[3].mxu0  ;;  %v987_v27 = vpop.f32.mrb[3].mxu1 }
 0x228   : > { %641 = vst.msk [vmem:[%s1236_s11] sm:$0xf] %vm640_vm2, %v924_v20  ;;  %v925_v28 = vpack.c.bf16 %v569_v24, %v569_v24  ;;  %v934_v29 = vpack.c.bf16 %v707_v25, %v707_v25 }
 0x229   : > { %779 = vst.msk [vmem:[%s1241_s29] sm:$0xf] %vm778_vm3, %v933_v21 }
 0x22a   : > { %642 = vst.msk [vmem:[%s1236_s11 + $0x4] sm:$0xf] %vm640_vm2, %v925_v28 }
 0x22b   : > { %780 = vst.msk [vmem:[%s1241_s29 + $0x4] sm:$0xf] %vm778_vm3, %v934_v29  ;;  %v573_v32 = vpop.f32.mrb[4].mxu0  ;;  %v711_v33 = vpop.f32.mrb[4].mxu1 }
 0x22c   : > { %v574_v34 = vadd.f32 %v1223_v58, %v573_v32  ;;  %v712_v35 = vadd.f32 %v1228_v12, %v711_v33  ;;  %v966_v36 = vpop.f32.mrb[5].mxu0  ;;  %v990_v37 = vpop.f32.mrb[5].mxu1 }
 0x22d   : > { %v576_v38 = vpop.f32.mrb[6].mxu0  ;;  %v714_v22 = vpop.f32.mrb[6].mxu1 }
 0x22e   : > { %v926_v39 = vpack.c.bf16 %v574_v34, %v574_v34  ;;  %v935_v42 = vpack.c.bf16 %v712_v35, %v712_v35  ;;  %v577_v43 = vadd.f32 %v1223_v58, %v576_v38  ;;  %v715_v44 = vadd.f32 %v1228_v12, %v714_v22  ;;  %v967_v45 = vpop.f32.mrb[7].mxu0  ;;  %v991_v46 = vpop.f32.mrb[7].mxu1 }
 0x230   : > { %643 = vst.msk [vmem:[%s1236_s11 + $0x8] sm:$0xf] %vm640_vm2, %v926_v39  ;;  %v927_v47 = vpack.c.bf16 %v577_v43, %v577_v43  ;;  %v936_v48 = vpack.c.bf16 %v715_v44, %v715_v44 }
 0x231   : > { %781 = vst.msk [vmem:[%s1241_s29 + $0x8] sm:$0xf] %vm778_vm3, %v935_v42 }
 0x232   : > { %644 = vst.msk [vmem:[%s1236_s11 + $0xc] sm:$0xf] %vm640_vm2, %v927_v47 }
 0x233   : > { %782 = vst.msk [vmem:[%s1241_s29 + $0xc] sm:$0xf] %vm778_vm3, %v936_v48  ;;  %v581_v30 = vpop.f32.mrb[8].mxu0  ;;  %v719_v49 = vpop.f32.mrb[8].mxu1 }
 0x234   : > { %v582_v52 = vadd.f32 %v1223_v58, %v581_v30  ;;  %v720_v53 = vadd.f32 %v1228_v12, %v719_v49  ;;  %v970_v54 = vpop.f32.mrb[9].mxu0  ;;  %v994_v55 = vpop.f32.mrb[9].mxu1 }
 0x235   : > { %v584_v23 = vpop.f32.mrb[10].mxu0  ;;  %v722_v31 = vpop.f32.mrb[10].mxu1 }
 0x236   : > { %v928_v56 = vpack.c.bf16 %v582_v52, %v582_v52  ;;  %v937_v57 = vpack.c.bf16 %v720_v53, %v720_v53  ;;  %v585_v59 = vadd.f32 %v1223_v58, %v584_v23  ;;  %v723_v60 = vadd.f32 %v1228_v12, %v722_v31  ;;  %v971_v61 = vpop.f32.mrb[11].mxu0  ;;  %v995_v62 = vpop.f32.mrb[11].mxu1 }
 0x238   : > { %645 = vst.msk [vmem:[%s1236_s11 + $0x10] sm:$0xf] %vm640_vm2, %v928_v56  ;;  %v929_v63 = vpack.c.bf16 %v585_v59, %v585_v59  ;;  %v938_v41 = vpack.c.bf16 %v723_v60, %v723_v60 }
 0x239   : > { %783 = vst.msk [vmem:[%s1241_s29 + $0x10] sm:$0xf] %vm778_vm3, %v937_v57 }
 0x23a   : > { %646 = vst.msk [vmem:[%s1236_s11 + $0x14] sm:$0xf] %vm640_vm2, %v929_v63 }
 0x23b   : > { %784 = vst.msk [vmem:[%s1241_s29 + $0x14] sm:$0xf] %vm778_vm3, %v938_v41  ;;  %v589_v40 = vpop.f32.mrb[12].mxu0  ;;  %v727_v0 = vpop.f32.mrb[12].mxu1 }
 0x23c   : > { %v590_v2 = vadd.f32 %v1223_v58, %v589_v40  ;;  %v728_v3 = vadd.f32 %v1228_v12, %v727_v0  ;;  %v974_v4 = vpop.f32.mrb[13].mxu0  ;;  %v998_v5 = vpop.f32.mrb[13].mxu1 }
 0x23d   : > { %v592_v6 = vpop.f32.mrb[14].mxu0  ;;  %v730_v51 = vpop.f32.mrb[14].mxu1 }
 0x23e   : > { %v930_v7 = vpack.c.bf16 %v590_v2, %v590_v2  ;;  %v939_v50 = vpack.c.bf16 %v728_v3, %v728_v3  ;;  %v593_v8 = vadd.f32 %v1223_v58, %v592_v6  ;;  %v731_v9 = vadd.f32 %v1228_v12, %v730_v51  ;;  %v975_v10 = vpop.f32.mrb[15].mxu0  ;;  %v999_v11 = vpop.f32.mrb[15].mxu1 }
 0x240   : > { %647 = vst.msk [vmem:[%s1236_s11 + $0x18] sm:$0xf] %vm640_vm2, %v930_v7  ;;  %v931_v13 = vpack.c.bf16 %v593_v8, %v593_v8  ;;  %v940_v14 = vpack.c.bf16 %v731_v9, %v731_v9 }
 0x241   : > { %785 = vst.msk [vmem:[%s1241_s29 + $0x18] sm:$0xf] %vm778_vm3, %v939_v50 }
 0x242   : > { %648 = vst.msk [vmem:[%s1236_s11 + $0x1c] sm:$0xf] %vm640_vm2, %v931_v13 }
 0x243   : > { %786 = vst.msk [vmem:[%s1241_s29 + $0x1c] sm:$0xf] %vm778_vm3, %v940_v14  ;;  %v597_v1 = vpop.f32.mrb[16].mxu0  ;;  %v735_v15 = vpop.f32.mrb[16].mxu1 }
 0x244   : > { %v598_v16 = vadd.f32 %v1223_v58, %v597_v1  ;;  %v736_v17 = vadd.f32 %v1228_v12, %v735_v15  ;;  %v978_v18 = vpop.f32.mrb[17].mxu0  ;;  %v1002_v19 = vpop.f32.mrb[17].mxu1 }
 0x245   : > { %v600_v20 = vpop.f32.mrb[18].mxu0  ;;  %v738_v21 = vpop.f32.mrb[18].mxu1 }
 0x246   : > { %v932_v24 = vpack.c.bf16 %v598_v16, %v598_v16  ;;  %v941_v25 = vpack.c.bf16 %v736_v17, %v736_v17  ;;  %v979_v26 = vpop.f32.mrb[19].mxu0  ;;  %v1003_v27 = vpop.f32.mrb[19].mxu1 }
 0x248   : > { %649 = vst.msk [vmem:[%s1236_s11 + $0x20] sm:$0xf] %vm640_vm2, %v932_v24 }
 0x249   : > { %787 = vst.msk [vmem:[%s1241_s29 + $0x20] sm:$0xf] %vm778_vm3, %v941_v25 }
 0x24a PF: > { %s19_s27 = sadd.s32 1, %s1042_s27  }
 0x24b   : > { %p16_p4 = scmp.ge.s32.totalorder %s19_s27, 4  }
 0x24d   :  { %18 = sbr.rel (!%p16_p4) target bundleno = 1 (0x1), region = 90 }

// kernel: mvit_forward.13
= control target key start
LH: loop header
LB: loop body
LE: loop exit
PB: predicated region body
PF: predicated region fallthrough
CT: control target
= control target key end

     0   :  { %s1543_s24 = smov 0   ;;  %s1966_s0 = inlined_call_operand.vmem [shape: bf16[2,1,64], index: 0, kind: input, shape index: {}]   ;;  %s1967_s1 = inlined_call_operand.vmem [shape: bf16[2,16,27,64], index: 1, kind: input, shape index: {}]   ;;  %s1968_s2 = inlined_call_operand.vmem [shape: f32[27,64], index: 2, kind: input, shape index: {}]   ;;  %s1969_s3 = inlined_call_operand.vmem [shape: f32[1,64], index: 3, kind: input, shape index: {}]   ;;  %s1970_s4 = inlined_call_operand.vmem [shape: f32[1,64], index: 4, kind: input, shape index: {}]   ;;  %s1971_s5 = inlined_call_operand.vmem [shape: f32[64,4], index: 5, kind: input, shape index: {}]   ;;  %s1972_s6 = inlined_call_operand.vmem [shape: f32[4,64], index: 6, kind: input, shape index: {}]   ;;  %s1973_s7 = inlined_call_operand.vmem [shape: bf16[2,17,64], index: 7, kind: output, shape index: {}]  }
   0x1 LB: > { %s1234_s25 = sadd.s32 4294967295, %s1498_s24   ;;  %p1238_p0 = scmp.ge.s32.totalorder %s1498_s24, 1  ;;  %s1498_s24 = sphi %s1543_s24, %s17_s24  }
   0x2   : > { %p245_p1 = scmp.lt.s32.totalorder %s1498_s24, 3 }
   0x4   : > { %p246_p2 = pnand %p1238_p0, %p245_p1 }
   0x5   : > { %v742_v0 = vld [vmem:[%s1971_s5] sm:$0xff] (!%p246_p2)  ;;  %v743_v1 = vld [vmem:[%s1971_s5 + $0x8] sm:$0xff] (!%p246_p2)  ;;  %v744_v2 = vld [vmem:[%s1971_s5 + $0x10] sm:$0xff] (!%p246_p2)  ;;  %v1974_v3 = vmov (!%p246_p2), 0.0|0.0   ;;  %vm1501_vm0 = vmmov (!%p246_p2), 0   ;;  %v1502_v6 = vmov (!%p246_p2), 0.0  }
   0x6   : > { %249 = sbr.rel (%p246_p2) target bundleno = 996 (0x3e4), region = 48  ;;  %1448 = vmatprep.subr.bf16.mxu0 (!%p246_p2), %v1974_v3  ;;  %v1561_v4 = vpack.c.bf16 (!%p246_p2), %v743_v1, %v742_v0  ;;  %v745_v5 = vld [vmem:[%s1971_s5 + $0x18] sm:$0xff] (!%p246_p2)  ;;  %1392 = vmatprep.mubr.msk.f32.mxu0 (!%p246_p2), %vm1501_vm0, %v1502_v6  ;;  %p280_p3 = scmp.lt.s32.totalorder (!%p246_p2), %s1234_s25, 1  ;;  %v746_v8 = vld [vmem:[%s1971_s5 + $0x20] sm:$0xff] (!%p246_p2)  ;;  %v747_v9 = vld [vmem:[%s1971_s5 + $0x28] sm:$0xff] (!%p246_p2)  ;;  %vm489_vm1 = vcmask (!%p246_p2), 523264  }
   0x7   : > { %1401 = vmatprep.subr.mxu1 (!%p246_p2), %v1502_v6  ;;  %1403 = vmatprep.mubr.msk.f32.mxu1 (!%p246_p2), %vm1501_vm0, %v1502_v6  ;;  %v1572_v7 = vpack.c.bf16 (!%p246_p2), %v745_v5, %v744_v2  ;;  %v748_v10 = vld [vmem:[%s1971_s5 + $0x30] sm:$0xff] (!%p246_p2)  ;;  %v749_v11 = vld [vmem:[%s1971_s5 + $0x38] sm:$0xff] (!%p246_p2)  ;;  %v1602_v13 = vpack.c.bf16 (!%p246_p2), %v747_v9, %v746_v8  ;;  %v1627_v40 = vld [vmem:[%s1968_s2] sm:$0xff] (!%p246_p2)  ;;  %vm495_vm2 = vcmask (!%p246_p2), 518144   ;;  %vm717_vm3 = vcmask (!%p246_p2), 1042434  }
   0x8   : > { %1450 = vmatpush3.bf16.msra.mxu0 (!%p246_p2), %v1561_v4  ;;  %v1604_v14 = vpack.c.bf16 (!%p246_p2), %v749_v11, %v748_v10  ;;  %v1632_v41 = vld [vmem:[%s1968_s2 + $0x8] sm:$0xff] (!%p246_p2)  ;;  %v1637_v42 = vld [vmem:[%s1968_s2 + $0x10] sm:$0xff] (!%p246_p2)  ;;  %v1642_v43 = vld [vmem:[%s1968_s2 + $0x18] sm:$0x7] (!%p246_p2)  ;;  %vm719_vm4 = vcmask (!%p246_p2), 1043459   ;;  %vm721_vm5 = vcmask (!%p246_p2), 1044484  }
   0x9   : > { %1451 = vmatprep.subr.bf16.mxu0 (!%p246_p2), %v1974_v3  ;;  %vm723_vm6 = vcmask (!%p246_p2), 1045509   ;;  %vm725_vm7 = vcmask (!%p246_p2), 1046534   ;;  %vm727_vm8 = vcmask (!%p246_p2), 1047559   ;;  %vm740_vm9 = vcmask (!%p246_p2), 1040384  }
   0xa   : > { %vm729_vm10 = vcmask (!%p246_p2), 1041409   ;;  %vm853_vm11 = vcmask (!%p246_p2), 1043456   ;;  %vm843_vm12 = vcmask (!%p246_p2), 31744   ;;  %vm1161_vm13 = vcmask (!%p246_p2), 519168  }
   0xb   : > { %vm1164_vm14 = vcmask (!%p246_p2), 516096   ;;  %vm1165_vm15 = vsmask.f32 (!%p246_p2), 256 }
   0xc   : > { %1453 = vmatpush3.bf16.msra.mxu0 (!%p246_p2), %v1572_v7 }
   0xd   : > { %s1978_s25 = smov (!%p280_p3, %s1234_s25), 1  ;;  %1454 = vmatprep.subr.bf16.mxu0 %v1974_v3 }
   0xe   : > { %s282_s21 = scalar_lea.vmem %s1966_s0, %s1978_s25  ;;  %s1263_s22 = sshll.u32 %s1978_s25, 8 }
   0xf   : > { %s1597_s27 = scalar_lea.vmem %s1967_s1, %s1263_s22  ;;  %v1599_v12 = vld [vmem:[%s282_s21] sm:$0x1]  ;;  %s1474_s17 = smul.u32 12, %s1978_s25 }
  0x10   : > { %v1268_v15 = vld [vmem:[%s1597_s27] sm:$0xff]   ;;  %v1608_v16 = vld [vmem:[%s1597_s27 + $0x8] ss:$16 sps:$4 sm:$0xff]   ;;  %v296_v17 = vld [vmem:[%s1597_s27 + $0xc] sm:$0x3]  ;;  %v700_v18 = vunpack.c.l.bf16 %v1599_v12  ;;  %1456 = vmatpush3.bf16.msra.mxu0 %v1602_v13 }
  0x11   : > { %v1269_v19 = vunpack.c.l.bf16 %v1268_v15  ;;  %v1270_v20 = vunpack.c.h.bf16 %v1268_v15  ;;  %v1331_v21 = vld [vmem:[%s1597_s27 + $0x10] sm:$0xff]   ;;  %v300_v22 = vld [vmem:[%s1597_s27 + $0x1c] sm:$0x3]  ;;  %v1332_v23 = vld [vmem:[%s1597_s27 + $0x20] sm:$0xff]   ;;  %v359_v24 = vunpack.c.l.bf16 %v1608_v16  ;;  %v360_v25 = vunpack.c.l.bf16 %v296_v17  ;;  %1457 = vmatprep.subr.bf16.mxu0 %v1974_v3  ;;  %s292_s22 = scalar_lea.vmem %s1973_s7, %s1474_s17 }
  0x12   : > { %v1273_v26 = vunpack.c.l.bf16 %v1331_v21  ;;  %v1274_v27 = vunpack.c.h.bf16 %v1331_v21  ;;  %v1277_v28 = vunpack.c.l.bf16 %v1332_v23  ;;  %v1278_v29 = vunpack.c.h.bf16 %v1332_v23  ;;  %v303_v30 = vld [vmem:[%s1597_s27 + $0x28] ss:$16 sps:$4 sm:$0xff]   ;;  %v304_v31 = vld [vmem:[%s1597_s27 + $0x2c] sm:$0x3]  ;;  %v1333_v32 = vld [vmem:[%s1597_s27 + $0x30] sm:$0xff]  }
  0x13   : > { %v1281_v33 = vunpack.c.l.bf16 %v1333_v32  ;;  %v1282_v34 = vunpack.c.h.bf16 %v1333_v32  ;;  %v308_v35 = vld [vmem:[%s1597_s27 + $0x3c] sm:$0x3]  ;;  %v1334_v36 = vld [vmem:[%s1597_s27 + $0x40] sm:$0xff]   ;;  %v311_v37 = vld [vmem:[%s1597_s27 + $0x48] ss:$16 sps:$4 sm:$0xff]   ;;  %v363_v38 = vunpack.c.h.bf16 %v1608_v16  ;;  %v364_v39 = vunpack.c.l.bf16 %v300_v22 }
  0x14   : > { %v1285_v44 = vunpack.c.l.bf16 %v1334_v36  ;;  %v1286_v45 = vunpack.c.h.bf16 %v1334_v36  ;;  %v312_v46 = vld [vmem:[%s1597_s27 + $0x4c] sm:$0x3]  ;;  %v1335_v47 = vld [vmem:[%s1597_s27 + $0x50] sm:$0xff]   ;;  %v316_v48 = vld [vmem:[%s1597_s27 + $0x5c] sm:$0x3]  ;;  %v367_v49 = vunpack.c.l.bf16 %v303_v30  ;;  %v368_v50 = vunpack.c.l.bf16 %v304_v31  ;;  %1459 = vmatpush3.bf16.msra.mxu0 %v1604_v14 }
  0x15   : > { %v1289_v51 = vunpack.c.l.bf16 %v1335_v47  ;;  %v1290_v52 = vunpack.c.h.bf16 %v1335_v47  ;;  %v1336_v53 = vld [vmem:[%s1597_s27 + $0x60] sm:$0xff]   ;;  %v1651_v54 = vld [vmem:[%s1597_s27 + $0x68] ss:$16 sps:$4 sm:$0xff]   ;;  %v320_v55 = vld [vmem:[%s1597_s27 + $0x6c] sm:$0x3]  ;;  %v371_v56 = vunpack.c.h.bf16 %v303_v30  ;;  %v372_v57 = vunpack.c.l.bf16 %v308_v35  ;;  %1437 = vmatprep.subr.mxu0 %v1502_v6 }
  0x16   : > { %v1293_v58 = vunpack.c.l.bf16 %v1336_v53  ;;  %v1294_v59 = vunpack.c.h.bf16 %v1336_v53  ;;  %v375_v60 = vunpack.c.l.bf16 %v311_v37  ;;  %v376_v61 = vunpack.c.l.bf16 %v312_v46 }
  0x17   : > { %v379_v62 = vunpack.c.h.bf16 %v311_v37  ;;  %v380_v63 = vunpack.c.l.bf16 %v316_v48  ;;  %v383_v0 = vunpack.c.l.bf16 %v1651_v54  ;;  %v384_v1 = vunpack.c.l.bf16 %v320_v55 }
  0x18   : > { %v425_v2 = vmul.f32 %v1269_v19, %v1627_v40  ;;  %v426_v5 = vmul.f32 %v1270_v20, %v1632_v41  ;;  %v427_v8 = vmul.f32 %v1637_v42, %v359_v24  ;;  %v428_v9 = vmul.f32 %v1642_v43, %v360_v25 }
  0x19   : > { %v429_v10 = vmul.f32 %v1273_v26, %v1627_v40  ;;  %v430_v11 = vmul.f32 %v1274_v27, %v1632_v41  ;;  %v431_v15 = vmul.f32 %v1637_v42, %v363_v38  ;;  %v432_v16 = vmul.f32 %v1642_v43, %v364_v39 }
  0x1a   : > { %v433_v17 = vmul.f32 %v1277_v28, %v1627_v40  ;;  %v434_v19 = vmul.f32 %v1278_v29, %v1632_v41  ;;  %v435_v20 = vmul.f32 %v1637_v42, %v367_v49  ;;  %v436_v21 = vmul.f32 %v1642_v43, %v368_v50 }
  0x1b   : > { %v437_v22 = vmul.f32 %v1281_v33, %v1627_v40  ;;  %v438_v23 = vmul.f32 %v1282_v34, %v1632_v41  ;;  %v439_v24 = vmul.f32 %v1637_v42, %v371_v56  ;;  %v440_v25 = vmul.f32 %v1642_v43, %v372_v57 }
  0x1c   : > { %v441_v26 = vmul.f32 %v1285_v44, %v1627_v40  ;;  %v442_v27 = vmul.f32 %v1286_v45, %v1632_v41  ;;  %v443_v28 = vmul.f32 %v1637_v42, %v375_v60  ;;  %v444_v29 = vmul.f32 %v1642_v43, %v376_v61 }
  0x1d   : > { %v445_v30 = vmul.f32 %v1289_v51, %v1627_v40  ;;  %v446_v31 = vmul.f32 %v1290_v52, %v1632_v41  ;;  %v447_v32 = vmul.f32 %v1637_v42, %v379_v62  ;;  %v448_v33 = vmul.f32 %v1642_v43, %v380_v63 }
  0x1e   : > { %v449_v34 = vmul.f32 %v1293_v58, %v1627_v40  ;;  %v450_v35 = vmul.f32 %v1294_v59, %v1632_v41  ;;  %v1684_v36 = vmul.f32 %v1637_v42, %v383_v0  ;;  %v1687_v37 = vmul.f32 %v1642_v43, %v384_v1 }
  0x1f   : > { %v490_v38 = vsel %vm489_vm1, %v425_v2, 0.0  ;;  %v491_v39 = vsel %vm489_vm1, %v426_v5, 0.0  ;;  %v493_v44 = vsel %vm489_vm1, %v427_v8, 0.0  ;;  %v496_v45 = vsel %vm495_vm2, %v428_v9, 0.0 }
  0x20   : > { %v492_v46 = vadd.f32 %v491_v39, %v490_v38  ;;  %v504_v47 = vsel %vm489_vm1, %v429_v10, 0.0  ;;  %v505_v48 = vsel %vm489_vm1, %v430_v11, 0.0  ;;  %v507_v49 = vsel %vm489_vm1, %v431_v15, 0.0 }
  0x21   : > { %v506_v50 = vadd.f32 %v505_v48, %v504_v47  ;;  %v509_v51 = vsel %vm495_vm2, %v432_v16, 0.0  ;;  %v517_v52 = vsel %vm489_vm1, %v433_v17, 0.0  ;;  %v518_v53 = vsel %vm489_vm1, %v434_v19, 0.0 }
  0x22   : > { %v494_v55 = vadd.f32 %v493_v44, %v492_v46  ;;  %v519_v56 = vadd.f32 %v518_v53, %v517_v52  ;;  %v520_v57 = vsel %vm489_vm1, %v435_v20, 0.0  ;;  %v522_v58 = vsel %vm495_vm2, %v436_v21, 0.0 }
  0x23   : > { %v508_v59 = vadd.f32 %v507_v49, %v506_v50  ;;  %v530_v60 = vsel %vm489_vm1, %v437_v22, 0.0  ;;  %v531_v61 = vsel %vm489_vm1, %v438_v23, 0.0  ;;  %v533_v62 = vsel %vm489_vm1, %v439_v24, 0.0 }
  0x24   : > { %v497_v63 = vadd.f32 %v496_v45, %v494_v55  ;;  %v521_v0 = vadd.f32 %v520_v57, %v519_v56  ;;  %v532_v1 = vadd.f32 %v531_v61, %v530_v60  ;;  %v535_v2 = vsel %vm495_vm2, %v440_v25, 0.0 }
  0x25   : > { %v510_v5 = vadd.f32 %v509_v51, %v508_v59  ;;  %v543_v8 = vsel %vm489_vm1, %v441_v26, 0.0  ;;  %v544_v9 = vsel %vm489_vm1, %v442_v27, 0.0  ;;  %v546_v10 = vsel %vm489_vm1, %v443_v28, 0.0  ;;  %v1718_v59 = vld [vmem:[%s1597_s27 + $0x70] sm:$0xff]  }
  0x26   : > { %v498_v11 = vrot.slane %v497_v63, 4  ;;  %v523_v15 = vadd.f32 %v522_v58, %v521_v0  ;;  %v534_v16 = vadd.f32 %v533_v62, %v532_v1  ;;  %v545_v17 = vadd.f32 %v544_v9, %v543_v8 }
  0x27   : > { %v511_v19 = vrot.slane %v510_v5, 4  ;;  %v548_v20 = vsel %vm495_vm2, %v444_v29, 0.0  ;;  %v556_v21 = vsel %vm489_vm1, %v445_v30, 0.0  ;;  %v557_v22 = vsel %vm489_vm1, %v446_v31, 0.0 }
  0x28   : > { %v499_v23 = vadd.f32 %v498_v11, %v497_v63  ;;  %v524_v24 = vrot.slane %v523_v15, 4  ;;  %v536_v25 = vadd.f32 %v535_v2, %v534_v16  ;;  %v547_v38 = vadd.f32 %v546_v10, %v545_v17 }
  0x29   : > { %v512_v26 = vadd.f32 %v511_v19, %v510_v5  ;;  %v558_v27 = vadd.f32 %v557_v22, %v556_v21  ;;  %v559_v28 = vsel %vm489_vm1, %v447_v32, 0.0  ;;  %v561_v39 = vsel %vm495_vm2, %v448_v33, 0.0 }
  0x2a   : > { %v500_v44 = vrot.slane %v499_v23, 2  ;;  %v525_v45 = vadd.f32 %v524_v24, %v523_v15  ;;  %v537_v46 = vrot.slane %v536_v25, 4  ;;  %v549_v29 = vadd.f32 %v548_v20, %v547_v38 }
  0x2b   : > { %v513_v47 = vrot.slane %v512_v26, 2  ;;  %v560_v30 = vadd.f32 %v559_v28, %v558_v27  ;;  %v569_v31 = vsel %vm489_vm1, %v449_v34, 0.0  ;;  %v570_v48 = vsel %vm489_vm1, %v450_v35, 0.0  ;;  %v1738_v27 = vld [vmem:[%s1597_s27 + $0xb0] sm:$0xff]  }
  0x2c   : > { %v501_v49 = vadd.f32 %v500_v44, %v499_v23  ;;  %v526_v50 = vrot.slane %v525_v45, 2  ;;  %v538_v51 = vadd.f32 %v537_v46, %v536_v25  ;;  %v550_v52 = vrot.slane %v549_v29, 4  ;;  %v1733_v23 = vld [vmem:[%s1597_s27 + $0xa0] sm:$0xff]  }
  0x2d   : > { %v514_v32 = vadd.f32 %v513_v47, %v512_v26  ;;  %v562_v53 = vadd.f32 %v561_v39, %v560_v30  ;;  %v571_v33 = vadd.f32 %v570_v48, %v569_v31  ;;  %v572_v55 = vsel %vm489_vm1, %v1684_v36, 0.0  ;;  %v1723_v36 = vld [vmem:[%s1597_s27 + $0x80] sm:$0xff]  }
  0x2e   : > { %v502_v56 = vrot.slane %v501_v49, 1  ;;  %v527_v57 = vadd.f32 %v526_v50, %v525_v45  ;;  %v539_v58 = vrot.slane %v538_v51, 2  ;;  %v551_v34 = vadd.f32 %v550_v52, %v549_v29  ;;  %v1743_v46 = vld [vmem:[%s1597_s27 + $0xc0] sm:$0xff]   ;;  %v1746_v29 = vld [vmem:[%s1597_s27 + $0xd0] sm:$0xff]   ;;  %v324_v52 = vld [vmem:[%s1597_s27 + $0x7c] sm:$0x3] }
  0x2f   : > { %v515_v35 = vrot.slane %v514_v32, 1  ;;  %v563_v60 = vrot.slane %v562_v53, 4  ;;  %v573_v61 = vadd.f32 %v572_v55, %v571_v33  ;;  %v574_v62 = vsel %vm495_vm2, %v1687_v37, 0.0  ;;  %v1728_v37 = vld [vmem:[%s1597_s27 + $0x90] sm:$0xff]  }
  0x30   : > { %v503_v63 = vadd.f32 %v502_v56, %v501_v49  ;;  %v528_v0 = vrot.slane %v527_v57, 1  ;;  %v540_v1 = vadd.f32 %v539_v58, %v538_v51  ;;  %v552_v2 = vrot.slane %v551_v34, 2  ;;  %v1752_v49 = vld [vmem:[%s1597_s27 + $0xe0] sm:$0xff]   ;;  %v328_v56 = vld [vmem:[%s1597_s27 + $0x8c] sm:$0x3] }
  0x31   : > { %v516_v5 = vadd.f32 %v515_v35, %v514_v32  ;;  %v564_v8 = vadd.f32 %v563_v60, %v562_v53  ;;  %v575_v9 = vadd.f32 %v574_v62, %v573_v61  ;;  %v1297_v10 = vunpack.c.l.bf16 %v1718_v59  ;;  %v327_v32 = vld [vmem:[%s1597_s27 + $0x88] ss:$16 sps:$4 sm:$0xff]  }
  0x32   : > { %v529_v11 = vadd.f32 %v528_v0, %v527_v57  ;;  %v541_v15 = vrot.slane %v540_v1, 1  ;;  %v553_v16 = vadd.f32 %v552_v2, %v551_v34  ;;  %v1298_v17 = vunpack.c.h.bf16 %v1718_v59  ;;  %v332_v57 = vld [vmem:[%s1597_s27 + $0x9c] sm:$0x3]  ;;  %v335_v62 = vld [vmem:[%s1597_s27 + $0xa8] ss:$16 sps:$4 sm:$0xff]  }
  0x33   : > { %v565_v19 = vrot.slane %v564_v8, 2  ;;  %v576_v20 = vrot.slane %v575_v9, 4  ;;  %v718_v21 = vsel %vm717_vm3, %v516_v5, %v503_v63  ;;  %v1301_v22 = vunpack.c.l.bf16 %v1723_v36  ;;  %v336_v63 = vld [vmem:[%s1597_s27 + $0xac] sm:$0x3]  ;;  %v340_v0 = vld [vmem:[%s1597_s27 + $0xbc] sm:$0x3] }
  0x34   : > { %v542_v24 = vadd.f32 %v541_v15, %v540_v1  ;;  %v554_v25 = vrot.slane %v553_v16, 1  ;;  %v720_v38 = vsel %vm719_vm4, %v529_v11, %v718_v21  ;;  %v1302_v26 = vunpack.c.h.bf16 %v1723_v36  ;;  %v343_v5 = vld [vmem:[%s1597_s27 + $0xc8] ss:$16 sps:$4 sm:$0xff]  }
  0x35   : > { %v566_v28 = vadd.f32 %v565_v19, %v564_v8  ;;  %v577_v39 = vadd.f32 %v576_v20, %v575_v9  ;;  %v1305_v44 = vunpack.c.l.bf16 %v1728_v37  ;;  %v1306_v45 = vunpack.c.h.bf16 %v1728_v37  ;;  %v344_v8 = vld [vmem:[%s1597_s27 + $0xcc] sm:$0x3]  ;;  %v348_v9 = vld [vmem:[%s1597_s27 + $0xdc] sm:$0x3] }
  0x36   : > { %v555_v47 = vadd.f32 %v554_v25, %v553_v16  ;;  %v722_v30 = vsel %vm721_vm5, %v542_v24, %v720_v38  ;;  %v1309_v31 = vunpack.c.l.bf16 %v1733_v23  ;;  %v1310_v48 = vunpack.c.h.bf16 %v1733_v23  ;;  %v1776_v24 = vld [vmem:[%s1597_s27 + $0xe8] ss:$16 sps:$4 sm:$0xff]   ;;  %v352_v25 = vld [vmem:[%s1597_s27 + $0xec] sm:$0x3] }
  0x37   : > { %v567_v50 = vrot.slane %v566_v28, 1  ;;  %v578_v51 = vrot.slane %v577_v39, 2  ;;  %v1313_v53 = vunpack.c.l.bf16 %v1738_v27  ;;  %v1314_v33 = vunpack.c.h.bf16 %v1738_v27 }
  0x38   : > { %v724_v55 = vsel %vm723_vm6, %v555_v47, %v722_v30  ;;  %v1317_v58 = vunpack.c.l.bf16 %v1743_v46  ;;  %v1318_v34 = vunpack.c.h.bf16 %v1743_v46  ;;  %v1321_v35 = vunpack.c.l.bf16 %v1746_v29 }
  0x39   : > { %v568_v60 = vadd.f32 %v567_v50, %v566_v28  ;;  %v579_v61 = vadd.f32 %v578_v51, %v577_v39  ;;  %v1322_v1 = vunpack.c.h.bf16 %v1746_v29  ;;  %v1325_v2 = vunpack.c.l.bf16 %v1752_v49 }
  0x3a   : > { %v1326_v11 = vunpack.c.h.bf16 %v1752_v49  ;;  %v387_v15 = vunpack.c.h.bf16 %v1651_v54  ;;  %v388_v16 = vunpack.c.l.bf16 %v324_v52  ;;  %v391_v19 = vunpack.c.l.bf16 %v327_v32 }
  0x3b   : > { %v580_v20 = vrot.slane %v579_v61, 1  ;;  %v726_v21 = vsel %vm725_vm7, %v568_v60, %v724_v55  ;;  %v392_v38 = vunpack.c.l.bf16 %v328_v56  ;;  %v395_v27 = vunpack.c.h.bf16 %v327_v32 }
  0x3c   : > { %v396_v28 = vunpack.c.l.bf16 %v332_v57  ;;  %v399_v39 = vunpack.c.l.bf16 %v335_v62  ;;  %v400_v46 = vunpack.c.l.bf16 %v336_v63  ;;  %v403_v29 = vunpack.c.h.bf16 %v335_v62 }
  0x3d   : > { %v581_v47 = vadd.f32 %v580_v20, %v579_v61  ;;  %v404_v30 = vunpack.c.l.bf16 %v340_v0  ;;  %v407_v50 = vunpack.c.l.bf16 %v343_v5  ;;  %v408_v49 = vunpack.c.l.bf16 %v344_v8 }
  0x3e   : > { %v411_v51 = vunpack.c.h.bf16 %v343_v5  ;;  %v412_v54 = vunpack.c.l.bf16 %v348_v9  ;;  %v415_v52 = vunpack.c.l.bf16 %v1776_v24  ;;  %v416_v3 = vunpack.c.l.bf16 %v352_v25 }
  0x3f   : > { %v728_v55 = vsel %vm727_vm8, %v581_v47, %v726_v21  ;;  %v453_v56 = vmul.f32 %v1297_v10, %v1627_v40  ;;  %v454_v32 = vmul.f32 %v1298_v17, %v1632_v41  ;;  %v455_v57 = vmul.f32 %v1637_v42, %v387_v15 }
  0x40   : > { %v1791_v60 = vsel %vm740_vm9, %v700_v18, %v728_v55  ;;  %v456_v61 = vmul.f32 %v1642_v43, %v388_v16  ;;  %v457_v62 = vmul.f32 %v1301_v22, %v1627_v40  ;;  %v458_v10 = vmul.f32 %v1302_v26, %v1632_v41 }
  0x41   : > { %1393 = vmatmul.mubr.msk.f32.vlgmr.msra.gmra.mrb[0].mxu0 %vm489_vm1, %v1791_v60  ;;  %v459_v59 = vmul.f32 %v1637_v42, %v391_v19  ;;  %v460_v12 = vmul.f32 %v1642_v43, %v392_v38  ;;  %v461_v18 = vmul.f32 %v1305_v44, %v1627_v40  ;;  %v462_v17 = vmul.f32 %v1306_v45, %v1632_v41 }
  0x42   : > { %1395 = vmatprep.mubr.msk.f32.mxu0 %vm1501_vm0, %v1502_v6  ;;  %v463_v36 = vmul.f32 %v1637_v42, %v395_v27  ;;  %v464_v22 = vmul.f32 %v1642_v43, %v396_v28  ;;  %v465_v26 = vmul.f32 %v1309_v31, %v1627_v40  ;;  %v466_v63 = vmul.f32 %v1310_v48, %v1632_v41 }
  0x43   : > { %v467_v44 = vmul.f32 %v1637_v42, %v399_v39  ;;  %v468_v37 = vmul.f32 %v1642_v43, %v400_v46  ;;  %v469_v45 = vmul.f32 %v1313_v53, %v1627_v40  ;;  %v470_v0 = vmul.f32 %v1314_v33, %v1632_v41 }
  0x44   : > { %v471_v5 = vmul.f32 %v1637_v42, %v403_v29  ;;  %v472_v8 = vmul.f32 %v1642_v43, %v404_v30  ;;  %v473_v9 = vmul.f32 %v1317_v58, %v1627_v40  ;;  %v474_v31 = vmul.f32 %v1318_v34, %v1632_v41 }
  0x45   : > { %v475_v15 = vmul.f32 %v1637_v42, %v407_v50  ;;  %v476_v23 = vmul.f32 %v1642_v43, %v408_v49  ;;  %v477_v48 = vmul.f32 %v1321_v35, %v1627_v40  ;;  %v478_v16 = vmul.f32 %v1322_v1, %v1632_v41 }
  0x46   : > { %v1833_v53 = vmul.f32 %v1637_v42, %v411_v51  ;;  %v1836_v33 = vmul.f32 %v1642_v43, %v412_v54  ;;  %v1839_v19 = vmul.f32 %v1325_v2, %v1627_v40  ;;  %v1842_v58 = vmul.f32 %v1326_v11, %v1632_v41 }
  0x47   : > { %v1845_v34 = vmul.f32 %v1637_v42, %v415_v52  ;;  %v1848_v20 = vmul.f32 %v1642_v43, %v416_v3  ;;  %v582_v35 = vsel %vm489_vm1, %v453_v56, 0.0  ;;  %v583_v1 = vsel %vm489_vm1, %v454_v32, 0.0 }
  0x48   : > { %v584_v21 = vadd.f32 %v583_v1, %v582_v35  ;;  %v585_v25 = vsel %vm489_vm1, %v455_v57, 0.0  ;;  %v587_v38 = vsel %vm495_vm2, %v456_v61, 0.0  ;;  %v595_v2 = vsel %vm489_vm1, %v457_v62, 0.0 }
  0x49   : > { %v596_v11 = vsel %vm489_vm1, %v458_v10, 0.0  ;;  %v598_v27 = vsel %vm489_vm1, %v459_v59, 0.0  ;;  %v600_v28 = vsel %vm495_vm2, %v460_v12, 0.0  ;;  %v608_v3 = vsel %vm489_vm1, %v461_v18, 0.0 }
  0x4a   : > { %v586_v39 = vadd.f32 %v585_v25, %v584_v21  ;;  %v597_v46 = vadd.f32 %v596_v11, %v595_v2  ;;  %v609_v29 = vsel %vm489_vm1, %v462_v17, 0.0  ;;  %v611_v47 = vsel %vm489_vm1, %v463_v36, 0.0 }
  0x4b   : > { %v610_v30 = vadd.f32 %v609_v29, %v608_v3  ;;  %v613_v50 = vsel %vm495_vm2, %v464_v22, 0.0  ;;  %v621_v49 = vsel %vm489_vm1, %v465_v26, 0.0  ;;  %v622_v51 = vsel %vm489_vm1, %v466_v63, 0.0 }
  0x4c   : > { %v588_v54 = vadd.f32 %v587_v38, %v586_v39  ;;  %v599_v52 = vadd.f32 %v598_v27, %v597_v46  ;;  %v623_v55 = vadd.f32 %v622_v51, %v621_v49  ;;  %v624_v56 = vsel %vm489_vm1, %v467_v44, 0.0 }
  0x4d   : > { %v612_v32 = vadd.f32 %v611_v47, %v610_v30  ;;  %v626_v57 = vsel %vm495_vm2, %v468_v37, 0.0  ;;  %v634_v61 = vsel %vm489_vm1, %v469_v45, 0.0  ;;  %v635_v62 = vsel %vm489_vm1, %v470_v0, 0.0 }
  0x4e   : > { %v589_v10 = vrot.slane %v588_v54, 4  ;;  %v601_v59 = vadd.f32 %v600_v28, %v599_v52  ;;  %v625_v12 = vadd.f32 %v624_v56, %v623_v55  ;;  %v636_v18 = vadd.f32 %v635_v62, %v634_v61 }
  0x4f   : > { %v614_v17 = vadd.f32 %v613_v50, %v612_v32  ;;  %v637_v36 = vsel %vm489_vm1, %v471_v5, 0.0  ;;  %v639_v22 = vsel %vm495_vm2, %v472_v8, 0.0  ;;  %v647_v26 = vsel %vm489_vm1, %v473_v9, 0.0 }
  0x50   : > { %v590_v63 = vadd.f32 %v589_v10, %v588_v54  ;;  %v602_v44 = vrot.slane %v601_v59, 4  ;;  %v627_v35 = vadd.f32 %v626_v57, %v625_v12  ;;  %v638_v1 = vadd.f32 %v637_v36, %v636_v18 }
  0x51   : > { %v615_v37 = vrot.slane %v614_v17, 4  ;;  %v648_v45 = vsel %vm489_vm1, %v474_v31, 0.0  ;;  %v650_v0 = vsel %vm489_vm1, %v475_v15, 0.0  ;;  %v652_v21 = vsel %vm495_vm2, %v476_v23, 0.0 }
  0x52   : > { %v591_v25 = vrot.slane %v590_v63, 2  ;;  %v603_v38 = vadd.f32 %v602_v44, %v601_v59  ;;  %v628_v2 = vrot.slane %v627_v35, 4  ;;  %v640_v11 = vadd.f32 %v639_v22, %v638_v1 }
  0x53   : > { %v616_v5 = vadd.f32 %v615_v37, %v614_v17  ;;  %v649_v8 = vadd.f32 %v648_v45, %v647_v26  ;;  %v660_v9 = vsel %vm489_vm1, %v477_v48, 0.0  ;;  %v661_v27 = vsel %vm489_vm1, %v478_v16, 0.0  ;;  %v1345_v26 = vld [vmem:[%s1597_s27 + $0xf0] sm:$0xff]  }
  0x54   : > { %v592_v28 = vadd.f32 %v591_v25, %v590_v63  ;;  %v604_v3 = vrot.slane %v603_v38, 2  ;;  %v629_v39 = vadd.f32 %v628_v2, %v627_v35  ;;  %v641_v46 = vrot.slane %v640_v11, 4 }
  0x55   : > { %v617_v31 = vrot.slane %v616_v5, 2  ;;  %v651_v29 = vadd.f32 %v650_v0, %v649_v8  ;;  %v662_v15 = vadd.f32 %v661_v27, %v660_v9  ;;  %v663_v23 = vsel %vm489_vm1, %v1833_v53, 0.0 }
  0x56   : > { %v593_v47 = vrot.slane %v592_v28, 1  ;;  %v605_v30 = vadd.f32 %v604_v3, %v603_v38  ;;  %v630_v50 = vrot.slane %v629_v39, 2  ;;  %v642_v49 = vadd.f32 %v641_v46, %v640_v11 }
  0x57   : > { %v618_v51 = vadd.f32 %v617_v31, %v616_v5  ;;  %v653_v54 = vadd.f32 %v652_v21, %v651_v29  ;;  %v664_v52 = vadd.f32 %v663_v23, %v662_v15  ;;  %v665_v48 = vsel %vm495_vm2, %v1836_v33, 0.0  ;;  %v356_v21 = vld [vmem:[%s1597_s27 + $0xfc] sm:$0x3] }
  0x58   : > { %v594_v16 = vadd.f32 %v593_v47, %v592_v28  ;;  %v606_v55 = vrot.slane %v605_v30, 1  ;;  %v631_v56 = vadd.f32 %v630_v50, %v629_v39  ;;  %v643_v32 = vrot.slane %v642_v49, 2 }
  0x59   : > { %v619_v57 = vrot.slane %v618_v51, 1  ;;  %v654_v61 = vrot.slane %v653_v54, 4  ;;  %v666_v62 = vadd.f32 %v665_v48, %v664_v52  ;;  %v673_v53 = vsel %vm489_vm1, %v1839_v19, 0.0 }
  0x5a   : > { %v607_v10 = vadd.f32 %v606_v55, %v605_v30  ;;  %v632_v59 = vrot.slane %v631_v56, 1  ;;  %v644_v12 = vadd.f32 %v643_v32, %v642_v49  ;;  %v674_v18 = vsel %vm489_vm1, %v1842_v58, 0.0 }
  0x5b   : > { %v620_v17 = vadd.f32 %v619_v57, %v618_v51  ;;  %v655_v33 = vadd.f32 %v654_v61, %v653_v54  ;;  %v667_v36 = vrot.slane %v666_v62, 4  ;;  %v675_v22 = vadd.f32 %v674_v18, %v673_v53 }
  0x5c   : > { %v633_v63 = vadd.f32 %v632_v59, %v631_v56  ;;  %v645_v44 = vrot.slane %v644_v12, 1  ;;  %v676_v35 = vsel %vm489_vm1, %v1845_v34, 0.0  ;;  %v678_v19 = vsel %vm495_vm2, %v1848_v20, 0.0 }
  0x5d   : > { %v656_v1 = vrot.slane %v655_v33, 2  ;;  %v668_v37 = vadd.f32 %v667_v36, %v666_v62  ;;  %v677_v45 = vadd.f32 %v676_v35, %v675_v22  ;;  %v730_v0 = vsel %vm729_vm10, %v607_v10, %v594_v16 }
  0x5e   : > { %v731_v58 = vsel %vm717_vm3, %v620_v17, %v730_v0  ;;  %v1329_v25 = vunpack.c.l.bf16 %v1345_v26  ;;  %v1330_v38 = vunpack.c.h.bf16 %v1345_v26  ;;  %v646_v2 = vadd.f32 %v645_v44, %v644_v12  ;;  %v750_v12 = vld [vmem:[%s1972_s6] sm:$0xf] }
  0x5f   : > { %v657_v11 = vadd.f32 %v656_v1, %v655_v33  ;;  %v669_v5 = vrot.slane %v668_v37, 2  ;;  %v679_v8 = vadd.f32 %v678_v19, %v677_v45  ;;  %v732_v9 = vsel %vm719_vm4, %v633_v63, %v731_v58  ;;  %1402 = vmatpush3.msk.msra.mxu1 %vm853_vm11, %v750_v12  ;;  %1438 = vmatpush3.msk.msra.mxu0 %vm853_vm11, %v750_v12 }
  0x60   : > { %v419_v34 = vunpack.c.h.bf16 %v1776_v24  ;;  %v420_v27 = vunpack.c.l.bf16 %v356_v21  ;;  %v485_v20 = vmul.f32 %v1329_v25, %v1627_v40  ;;  %v486_v46 = vmul.f32 %v1330_v38, %v1632_v41 }
  0x61   : > { %v658_v28 = vrot.slane %v657_v11, 1  ;;  %v670_v3 = vadd.f32 %v669_v5, %v668_v37  ;;  %v680_v39 = vrot.slane %v679_v8, 4  ;;  %v733_v24 = vsel %vm721_vm5, %v646_v2, %v732_v9 }
  0x62   : > { %v487_v31 = vmul.f32 %v1637_v42, %v419_v34  ;;  %v488_v29 = vmul.f32 %v1642_v43, %v420_v27  ;;  %v686_v15 = vsel %vm489_vm1, %v485_v20, 0.0  ;;  %v687_v50 = vsel %vm489_vm1, %v486_v46, 0.0 }
  0x63   : > { %v659_v23 = vadd.f32 %v658_v28, %v657_v11  ;;  %v671_v47 = vrot.slane %v670_v3, 1  ;;  %v681_v30 = vadd.f32 %v680_v39, %v679_v8  ;;  %v688_v49 = vadd.f32 %v687_v50, %v686_v15 }
  0x64   : > { %v689_v40 = vsel %vm489_vm1, %v487_v31, 0.0  ;;  %v691_v54 = vsel %vm495_vm2, %v488_v29, 0.0  ;;  %v1976_v18 = vmov 0.0|0.0   ;;  %v1257_v29 = vld [vmem:[%s1970_s4] ss:$0 sm:$0xff] }
  0x65   : > { %v682_v51 = vrot.slane %v681_v30, 2  ;;  %v672_v41 = vadd.f32 %v671_v47, %v670_v3  ;;  %v690_v52 = vadd.f32 %v689_v40, %v688_v49  ;;  %v734_v43 = vsel %vm723_vm6, %v659_v23, %v733_v24  ;;  %1460 = vmatprep.subr.bf16.mxu1 %v1976_v18 }
  0x67   : > { %v683_v42 = vadd.f32 %v682_v51, %v681_v30  ;;  %v692_v48 = vadd.f32 %v691_v54, %v690_v52  ;;  %v735_v55 = vsel %vm725_vm7, %v672_v41, %v734_v43 }
  0x69   : > { %v684_v16 = vrot.slane %v683_v42, 1  ;;  %v693_v56 = vrot.slane %v692_v48, 4 }
  0x6b   : > { %v685_v32 = vadd.f32 %v684_v16, %v683_v42  ;;  %v694_v57 = vadd.f32 %v693_v56, %v692_v48 }
  0x6d   : > { %v736_v61 = vsel %vm727_vm8, %v685_v32, %v735_v55  ;;  %v695_v62 = vrot.slane %v694_v57, 2  ;;  %v1167_v32 = vld [vmem:[%s292_s22 + $0x8] sm:$0x1] }
  0x6e   : > { %1396 = vmatmul.mubr.msk.f32.gmra.mrb[2].mxu0 %vm489_vm1, %v736_v61 }
  0x6f   : > { %1398 = vmatprep.mubr.msk.f32.mxu0 %vm1501_vm0, %v1502_v6  ;;  %v696_v53 = vadd.f32 %v695_v62, %v694_v57 }
  0x71   : > { %v697_v10 = vrot.slane %v696_v53, 1 }
  0x73   : > { %v698_v59 = vadd.f32 %v697_v10, %v696_v53 }
  0x75   : > { %1399 = vmatmul.mubr.msk.f32.gmra.mrb[4].mxu0 %vm489_vm1, %v698_v59 }
  0x76   : > { %1439 = vmatprep.mubr.msk.f32.mxu0 %vm1501_vm0, %v1502_v6 }
 0x114   : > { %v826_v17 = vpop.f32.mrb[0].mxu0 }
 0x115   : > { %v840_v33 = vmul.f32 0.0625, %v826_v17  ;;  %v1394_v36 = vpop.f32.mrb[1].mxu0 }
 0x117   : > { %1404 = vmatmul.mubr.msk.f32.vlgmr.msra.gmra.mrb[0].mxu1 %vm843_vm12, %v840_v33 }
 0x118   : > { %1406 = vmatprep.mubr.msk.f32.mxu1 %vm1501_vm0, %v1502_v6  ;;  %1462 = vmatpush3.bf16.msra.mxu1 %v1561_v4 }
 0x119   : > { %1463 = vmatprep.subr.bf16.mxu1 %v1976_v18 }
 0x11c   : > { %1465 = vmatpush3.bf16.msra.mxu1 %v1572_v7 }
 0x11d   : > { %1466 = vmatprep.subr.bf16.mxu1 %v1976_v18 }
 0x120   : > { %1468 = vmatpush3.bf16.msra.mxu1 %v1602_v13 }
 0x121   : > { %1469 = vmatprep.subr.bf16.mxu1 %v1976_v18 }
 0x124   : > { %1471 = vmatpush3.bf16.msra.mxu1 %v1604_v14 }
 0x125   : > { %1472 = vmatprep.subr.mxu1 %v1502_v6 }
 0x141   : > { %v831_v22 = vpop.f32.mrb[2].mxu0 }
 0x142   : > { %v841_v26 = vmul.f32 0.0625, %v831_v22  ;;  %v1397_v63 = vpop.f32.mrb[3].mxu0 }
 0x144   : > { %1407 = vmatmul.mubr.msk.f32.gmra.mrb[2].mxu1 %vm843_vm12, %v841_v26 }
 0x145   : > { %1409 = vmatprep.mubr.msk.f32.mxu1 %vm1501_vm0, %v1502_v6 }
 0x148   : > { %v836_v4 = vpop.f32.mrb[4].mxu0 }
 0x149   : > { %v842_v7 = vmul.f32 0.0625, %v836_v4  ;;  %v1400_v44 = vpop.f32.mrb[5].mxu0 }
 0x14b   : > { %1410 = vmatmul.mubr.msk.f32.gmra.mrb[4].mxu1 %vm843_vm12, %v842_v7 }
 0x14c   : > { %1428 = vmatprep.mubr.msk.f32.mxu1 %vm1501_vm0, %v1502_v6 }
 0x1ea   : > { %v923_v13 = vpop.f32.mrb[0].mxu1 }
 0x1eb   : > { %v937_v14 = vsub.f32 %v1791_v60, %v923_v13  ;;  %v1405_v35 = vpop.f32.mrb[1].mxu1 }
 0x1ed   : > { %v940_v19 = vmul.f32 %v937_v14, %v937_v14 }
 0x1ef   : > { %1429 = vmatmul.mubr.msk.f32.vlgmr.msra.gmra.mrb[6].mxu1 %vm489_vm1, %v940_v19 }
 0x1f0   : > { %1431 = vmatprep.mubr.msk.f32.mxu1 %vm1501_vm0, %v1502_v6  ;;  %1473 = vmatpush3.msk.msra.mxu1 %vm853_vm11, %v750_v12 }
 0x217   : > { %v928_v1 = vpop.f32.mrb[2].mxu1 }
 0x218   : > { %v938_v37 = vsub.f32 %v736_v61, %v928_v1  ;;  %v1408_v45 = vpop.f32.mrb[3].mxu1 }
 0x21a   : > { %v941_v0 = vmul.f32 %v938_v37, %v938_v37 }
 0x21c   : > { %1432 = vmatmul.mubr.msk.f32.gmra.mrb[8].mxu1 %vm489_vm1, %v941_v0 }
 0x21d   : > { %1434 = vmatprep.mubr.msk.f32.mxu1 %vm1501_vm0, %v1502_v6 }
 0x21e   : > { %v933_v21 = vpop.f32.mrb[4].mxu1 }
 0x21f   : > { %v939_v60 = vsub.f32 %v698_v59, %v933_v21  ;;  %v1411_v58 = vpop.f32.mrb[5].mxu1 }
 0x221   : > { %v942_v25 = vmul.f32 %v939_v60, %v939_v60 }
 0x223   : > { %1435 = vmatmul.mubr.msk.f32.gmra.mrb[10].mxu1 %vm489_vm1, %v942_v25 }
 0x224   : > { %1445 = vmatprep.mubr.msk.f32.mxu1 %vm1501_vm0, %v1502_v6 }
 0x2c2   : > { %v1018_v38 = vpop.f32.mrb[6].mxu1 }
 0x2c3   : > { %v1032_v2 = vmul.f32 0.0625, %v1018_v38  ;;  %v1430_v11 = vpop.f32.mrb[7].mxu1 }
 0x2c5   : > { %1440 = vmatmul.mubr.msk.f32.vlgmr.msra.gmra.mrb[6].mxu0 %vm843_vm12, %v1032_v2 }
 0x2c6   : > { %1442 = vmatprep.mubr.msk.f32.mxu0 %vm1501_vm0, %v1502_v6  ;;  %v1256_v6 = vld [vmem:[%s1969_s3] ss:$0 sm:$0xff]  ;;  %vm1166_vm0 = vmand %vm1164_vm14, %vm1165_vm15 }
 0x2ef   : > { %v1023_v5 = vpop.f32.mrb[8].mxu1 }
 0x2f0   : > { %v1033_v8 = vmul.f32 0.0625, %v1023_v5  ;;  %v1433_v9 = vpop.f32.mrb[9].mxu1 }
 0x2f2   : > { %1443 = vmatmul.mubr.msk.f32.gmra.mrb[8].mxu0 %vm843_vm12, %v1033_v8 }
 0x2f6   : > { %v1028_v34 = vpop.f32.mrb[10].mxu1 }
 0x2f7   : > { %v1034_v27 = vmul.f32 0.0625, %v1028_v34  ;;  %v1436_v20 = vpop.f32.mrb[11].mxu1 }
 0x2f9   : > { %1446 = vmatmul.mubr.msk.f32.vlgmr.msra.gmra.mrb[12].mxu1 %vm843_vm12, %v1034_v27 }
 0x398   : > { %v1110_v28 = vpop.f32.mrb[6].mxu0 }
 0x399   : > { %v1111_v3 = vadd.f32 1e-06, %v1110_v28  ;;  %v1441_v39 = vpop.f32.mrb[7].mxu0 }
 0x39b   : > { %1486 = vrsqrt.f32 %v1111_v3 }
 0x3a5   : > { %v1487_v46 = vpop.eup %1486 }
 0x3a6   : > { %v1127_v31 = vmul.f32 %v1487_v46, %v937_v14 }
 0x3a8   : > { %v1136_v15 = vmul.f32 %v1256_v6, %v1127_v31 }
 0x3aa   : > { %v1145_v23 = vadd.f32 %v1257_v29, %v1136_v15 }
 0x3ac   : > { %v1264_v47 = vpack.c.bf16 %v1145_v23, %v1145_v23 }
 0x3ae   : > { %1162 = vst.msk [vmem:[%s292_s22] sm:$0xf] %vm1161_vm13, %v1264_v47 }
 0x3c5   : > { %v1115_v30 = vpop.f32.mrb[8].mxu0 }
 0x3c6   : > { %v1116_v50 = vadd.f32 1e-06, %v1115_v30  ;;  %v1444_v24 = vpop.f32.mrb[9].mxu0 }
 0x3c8   : > { %1488 = vrsqrt.f32 %v1116_v50 }
 0x3cc   : > { %v1120_v49 = vpop.f32.mrb[12].mxu1 }
 0x3cd   : > { %v1121_v40 = vadd.f32 1e-06, %v1120_v49  ;;  %v1447_v51 = vpop.f32.mrb[13].mxu1 }
 0x3cf   : > { %1490 = vrsqrt.f32 %v1121_v40 }
 0x3d2   : > { %v1489_v54 = vpop.eup %1488 }
 0x3d3   : > { %v1128_v41 = vmul.f32 %v1489_v54, %v938_v37 }
 0x3d5   : > { %v1137_v52 = vmul.f32 %v1256_v6, %v1128_v41 }
 0x3d7   : > { %v1146_v42 = vadd.f32 %v1257_v29, %v1137_v52 }
 0x3d9   : > { %v1265_v43 = vpack.c.bf16 %v1146_v42, %v1146_v42  ;;  %v1491_v48 = vpop.eup %1490 }
 0x3da   : > { %v1129_v16 = vmul.f32 %v1491_v48, %v939_v60 }
 0x3db   : > { %1163 = vst.msk [vmem:[%s292_s22 + $0x4] sm:$0xf] %vm1161_vm13, %v1265_v43 }
 0x3dc   : > { %v1138_v55 = vmul.f32 %v1256_v6, %v1129_v16 }
 0x3de   : > { %v1147_v56 = vadd.f32 %v1257_v29, %v1138_v55 }
 0x3e0   : > { %v1266_v57 = vpack.c.bf16 %v1147_v56, %v1147_v56 }
 0x3e2   : > { %v1168_v61 = vsel %vm1166_vm0, %v1266_v57, %v1167_v32 }
 0x3e3   : > { %1169 = vst [vmem:[%s292_s22 + $0x8] sm:$0x1] %v1168_v61 }
 0x3e4 PF: > { %s17_s24 = sadd.s32 1, %s1498_s24  }
 0x3e5   : > { %p14_p4 = scmp.ge.s32.totalorder %s17_s24, 4  }
 0x3e7   :  { %16 = sbr.rel (!%p14_p4) target bundleno = 1 (0x1), region = 81 }

// kernel: mvit_forward.14
= control target key start
LH: loop header
LB: loop body
LE: loop exit
PB: predicated region body
PF: predicated region fallthrough
CT: control target
= control target key end

     0   :  { %s1683_s18 = smov 0   ;;  %s2063_s0 = inlined_call_operand.vmem [shape: bf16[2,65,32], index: 0, kind: input, shape index: {}]   ;;  %s2064_s1 = inlined_call_operand.vmem [shape: bf16[2,17,64], index: 1, kind: input, shape index: {}]   ;;  %s2065_s2 = inlined_call_operand.vmem [shape: f32[2,65,32], index: 2, kind: input, shape index: {}]   ;;  %s2066_s3 = inlined_call_operand.vmem [shape: bf16[32,32], index: 3, kind: input, shape index: {}]   ;;  %s2067_s4 = inlined_call_operand.vmem [shape: f32[1,32], index: 4, kind: input, shape index: {}]   ;;  %s2068_s5 = inlined_call_operand.vmem [shape: bf16[2,65,32], index: 5, kind: output, shape index: {}]  }
   0x1 LB: > { %s1283_s19 = sadd.s32 4294967295, %s1645_s18   ;;  %p1287_p0 = scmp.ge.s32.totalorder %s1645_s18, 1  ;;  %s1645_s18 = sphi %s1683_s18, %s15_s18  }
   0x2   : > { %p207_p1 = scmp.lt.s32.totalorder %s1645_s18, 3 }
   0x4   : > { %p208_p2 = pnand %p1287_p0, %p207_p1 }
   0x5   : > { %p245_p3 = scmp.lt.s32.totalorder (!%p208_p2), %s1283_s19, 1  ;;  %v1647_v0 = vmov (!%p208_p2), 0.0   ;;  %vm1648_vm0 = vmmov (!%p208_p2), 0   ;;  %vm309_vm1 = vcmask (!%p208_p2), 130048   ;;  %vm403_vm2 = vcmask (!%p208_p2), 138240   ;;  %s1649_s28 = smov (!%p208_p2), 96  }
   0x6   : > { %211 = sbr.rel (%p208_p2) target bundleno = 1684 (0x694), region = 40  ;;  %1406 = vmatprep.subr.bf16.mxu0 (!%p208_p2), %v1647_v0  ;;  %1410 = vmatprep.mubr.msk.bf16.mxu0 (!%p208_p2), %vm1648_vm0, %v1647_v0  ;;  %vm428_vm3 = vcmask (!%p208_p2), 131072   ;;  %s1650_s29 = smov (!%p208_p2), 112   ;;  %vm529_vm4 = vcmask (!%p208_p2), 1040384   ;;  %vm1189_vm5 = vcmask (!%p208_p2), 257024   ;;  %vm1198_vm6 = vcmask (!%p208_p2), 253952  }
   0x7   : > { %1430 = vmatprep.subr.bf16.mxu1 (!%p208_p2), %v1647_v0  ;;  %1434 = vmatprep.mubr.msk.bf16.mxu1 (!%p208_p2), %vm1648_vm0, %v1647_v0  ;;  %s1652_s30 = smov (!%p208_p2), 80   ;;  %vm1199_vm7 = vsmask.f32 (!%p208_p2), 256 }
   0x8   : > { %vm1200_vm8 = vmand (!%p208_p2), %vm1198_vm6, %vm1199_vm7 }
   0xd   : > { %s2070_s19 = smov (!%p245_p3, %s1283_s19), 1 }
   0xe   : > { %s1547_s20 = smul.u32 12, %s2070_s19 }
   0xf   : > { %s1546_s24 = smul.u32 36, %s2070_s19 }
  0x10   : > { %s254_s23 = scalar_lea.vmem %s2064_s1, %s1547_s20  ;;  %s1548_s10 = smul.u32 72, %s2070_s19 }
  0x11   : > { %v1704_v1 = vld [vmem:[%s254_s23] sm:$0xff]   ;;  %s1711_s27 = scalar_lea.vmem %s2063_s0, %s1546_s24  ;;  %v1717_v4 = vld [vmem:[%s254_s23 + $0x8] ss:$0 sps:$4 sm:$0x11]   ;;  %s2024_s20 = scalar_lea.vmem %s2068_s5, %s1546_s24 }
  0x12   : > { %v326_v2 = vsel %vm309_vm1, %v1704_v1, 0  ;;  %v1348_v3 = vld [vmem:[%s1711_s27] sm:$0xff]   ;;  %v329_v7 = vsel %vm309_vm1, %v1717_v4, 0  ;;  %v1363_v10 = vld [vmem:[%s1711_s27 + $0x8] sm:$0xff]   ;;  %v1364_v16 = vld [vmem:[%s1711_s27 + $0x10] sm:$0xff]   ;;  %s2008_s13 = scalar_lea.vmem %s2065_s2, %s1548_s10 }
  0x13   : > { %1407 = vmatpush3.bf16.xpose.msra.mxu0 %v326_v2  ;;  %v1349_v5 = vunpack.c.l.bf16 %v1348_v3  ;;  %v1350_v6 = vunpack.c.h.bf16 %v1348_v3  ;;  %v1353_v12 = vunpack.c.l.bf16 %v1363_v10  ;;  %v1354_v13 = vunpack.c.h.bf16 %v1363_v10  ;;  %v1365_v22 = vld [vmem:[%s1711_s27 + $0x18] sm:$0xff]   ;;  %v274_v28 = vld [vmem:[%s1711_s27 + $0x20] sm:$0x1] }
  0x14   : > { %1408 = vmatprep.subr.bf16.mxu0 %v1647_v0  ;;  %v1357_v18 = vunpack.c.l.bf16 %v1364_v16  ;;  %v1358_v19 = vunpack.c.h.bf16 %v1364_v16  ;;  %v1361_v24 = vunpack.c.l.bf16 %v1365_v22  ;;  %v1362_v25 = vunpack.c.h.bf16 %v1365_v22 }
  0x15   : > { %v284_v8 = vmul.f32 0.25, %v1349_v5  ;;  %v285_v9 = vmul.f32 0.25, %v1350_v6  ;;  %v286_v14 = vmul.f32 0.25, %v1353_v12  ;;  %v287_v15 = vmul.f32 0.25, %v1354_v13 }
  0x16   : > { %v288_v20 = vmul.f32 0.25, %v1357_v18  ;;  %v289_v21 = vmul.f32 0.25, %v1358_v19  ;;  %v290_v26 = vmul.f32 0.25, %v1361_v24  ;;  %v291_v27 = vmul.f32 0.25, %v1362_v25 }
  0x17   : > { %v1723_v11 = vpack.c.bf16 %v285_v9, %v284_v8  ;;  %v1730_v17 = vpack.c.bf16 %v287_v15, %v286_v14  ;;  %v283_v30 = vunpack.c.l.bf16 %v274_v28 }
  0x18   : > { %v1737_v23 = vpack.c.bf16 %v289_v21, %v288_v20  ;;  %v1744_v29 = vpack.c.bf16 %v291_v27, %v290_v26 }
  0x19   : > { %v292_v31 = vmul.f32 0.25, %v283_v30 }
  0x1b   : > { %1409 = vmatpush3.bf16.xpose.msra.mxu0 %v329_v7  ;;  %v1750_v32 = vpack.c.bf16 %v292_v31, %v292_v31 }
  0x1c   : > { %1478 = vmatprep.subr.bf16.mxu0 %v1647_v0 }
  0x22   : > { %1411 = vmatmul.mubr.msk.bf16.vlgmr.msra.gmra.mrb[0].mxu0 %vm309_vm1, %v1723_v11 }
  0x23   : > { %1414 = vmatprep.mubr.msk.bf16.mxu0 %vm1648_vm0, %v1647_v0 }
  0x2a   : > { %1415 = vmatmul.mubr.msk.bf16.gmra.mrb[4].mxu0 %vm309_vm1, %v1730_v17 }
  0x2b   : > { %1418 = vmatprep.mubr.msk.bf16.mxu0 %vm1648_vm0, %v1647_v0 }
  0x32   : > { %1419 = vmatmul.mubr.msk.bf16.gmra.mrb[8].mxu0 %vm309_vm1, %v1737_v23 }
  0x33   : > { %1422 = vmatprep.mubr.msk.bf16.mxu0 %vm1648_vm0, %v1647_v0 }
  0x3a   : > { %1423 = vmatmul.mubr.msk.bf16.gmra.mrb[12].mxu0 %vm309_vm1, %v1744_v29 }
  0x3b   : > { %1426 = vmatprep.mubr.msk.bf16.mxu0 %vm1648_vm0, %v1647_v0 }
  0x42   : > { %1427 = vmatmul.mubr.msk.bf16.gmra.mrb[16].mxu0 %vm309_vm1, %v1750_v32 }
  0x43   : > { %1482 = vmatprep.mubr.msk.bf16.mxu0 %vm1648_vm0, %v1647_v0 }
  0xf5   : > { %v365_v33 = vpop.f32.mrb[0].mxu0 }
  0xf6   : > { %v1412_v34 = vpop.f32.mrb[1].mxu0  ;;  %v404_v35 = vsel %vm403_vm2, %v365_v33, -inf }
  0xf7   : > { %405 = vmax.xlane.f32.xlu0 %v404_v35  ;;  %v368_v36 = vpop.f32.mrb[2].mxu0 }
  0xf8   : > { %v1413_v37 = vpop.f32.mrb[3].mxu0  ;;  %v407_v38 = vsel %vm403_vm2, %v368_v36, -inf }
  0xfb   : > { %408 = vmax.xlane.f32.xlu0 %v407_v38 }
  0xfd   : > { %v373_v39 = vpop.f32.mrb[4].mxu0 }
  0xfe   : > { %v1416_v40 = vpop.f32.mrb[5].mxu0  ;;  %v410_v41 = vsel %vm403_vm2, %v373_v39, -inf }
  0xff   : > { %411 = vmax.xlane.f32.xlu1 %v410_v41  ;;  %v376_v42 = vpop.f32.mrb[6].mxu0 }
 0x100   : > { %v1417_v43 = vpop.f32.mrb[7].mxu0  ;;  %v413_v44 = vsel %vm403_vm2, %v376_v42, -inf }
 0x103   : > { %414 = vmax.xlane.f32.xlu1 %v413_v44 }
 0x105   : > { %v381_v45 = vpop.f32.mrb[8].mxu0 }
 0x106   : > { %v1420_v46 = vpop.f32.mrb[9].mxu0  ;;  %v416_v47 = vsel %vm403_vm2, %v381_v45, -inf }
 0x107   : > { %417 = vmax.xlane.f32.xlu0 %v416_v47  ;;  %v384_v48 = vpop.f32.mrb[10].mxu0 }
 0x108   : > { %v419_v49 = vsel %vm403_vm2, %v384_v48, -inf  ;;  %v1421_v50 = vpop.f32.mrb[11].mxu0 }
 0x109   : > { %420 = vmax.xlane.f32.xlu1 %v419_v49 }
 0x10d   : > { %v389_v51 = vpop.f32.mrb[12].mxu0 }
 0x10e   : > { %v1424_v52 = vpop.f32.mrb[13].mxu0  ;;  %v422_v53 = vsel %vm403_vm2, %v389_v51, -inf }
 0x10f   : > { %423 = vmax.xlane.f32.xlu0 %v422_v53  ;;  %v392_v54 = vpop.f32.mrb[14].mxu0 }
 0x110   : > { %v425_v55 = vsel %vm403_vm2, %v392_v54, -inf  ;;  %v1425_v56 = vpop.f32.mrb[15].mxu0 }
 0x111   : > { %426 = vmax.xlane.f32.xlu1 %v425_v55  ;;  %v1651_v56 = vmov 0  }
 0x115   : > { %v397_v57 = vpop.f32.mrb[16].mxu0 }
 0x116   : > { %v429_v58 = vsel %vm428_vm3, %v397_v57, -inf  ;;  %v1428_v59 = vpop.f32.mrb[17].mxu0 }
 0x117   : > { %430 = vmax.xlane.f32.xlu0 %v429_v58  ;;  %v400_v60 = vpop.f32.mrb[18].mxu0 }
 0x118   : > { %v1429_v61 = vpop.f32.mrb[19].mxu0 }
 0x184   : > { %v406_v62 = vpop.xlane.xlu0 %405 }
 0x185   : > { %v432_v63 = vsub.f32 %v365_v33, %v406_v62 }
 0x187   : > { %v441_v2 = vmul.f32 1.442695, %v432_v63 }
 0x188   : > { %v409_v3 = vpop.xlane.xlu0 %408 }
 0x189   : > { %1567 = vpow2.f32 %v441_v2  ;;  %v433_v5 = vsub.f32 %v368_v36, %v409_v3 }
 0x18b   : > { %v443_v6 = vmul.f32 1.442695, %v433_v5 }
 0x18c   : > { %v412_v7 = vpop.xlane.xlu1 %411 }
 0x18d   : > { %1569 = vpow2.f32 %v443_v6  ;;  %v434_v8 = vsub.f32 %v373_v39, %v412_v7 }
 0x18f   : > { %v445_v9 = vmul.f32 1.442695, %v434_v8 }
 0x190   : > { %v415_v10 = vpop.xlane.xlu1 %414 }
 0x191   : > { %1571 = vpow2.f32 %v445_v9  ;;  %v435_v12 = vsub.f32 %v376_v42, %v415_v10 }
 0x193   : > { %v1765_v13 = vpop.eup %1567  ;;  %v447_v14 = vmul.f32 1.442695, %v435_v12 }
 0x194   : > { %v418_v15 = vpop.xlane.xlu0 %417  ;;  %v459_v16 = vsel %vm403_vm2, %v1765_v13, 0.0 }
 0x195   : > { %1573 = vpow2.f32 %v447_v14  ;;  %v436_v18 = vsub.f32 %v381_v45, %v418_v15  ;;  %460 = vadd.xlane.f32.xlu1 %v459_v16 }
 0x196   : > { %v421_v30 = vpop.xlane.xlu1 %420 }
 0x197   : > { %v1769_v19 = vpop.eup %1569  ;;  %v449_v20 = vmul.f32 1.442695, %v436_v18  ;;  %v437_v33 = vsub.f32 %v384_v48, %v421_v30 }
 0x198   : > { %v462_v21 = vsel %vm403_vm2, %v1769_v19, 0.0 }
 0x199   : > { %1575 = vpow2.f32 %v449_v20  ;;  %463 = vadd.xlane.f32.xlu0 %v462_v21  ;;  %v451_v36 = vmul.f32 1.442695, %v437_v33 }
 0x19b   : > { %v1773_v22 = vpop.eup %1571  ;;  %1577 = vpow2.f32 %v451_v36 }
 0x19c   : > { %v465_v24 = vsel %vm403_vm2, %v1773_v22, 0.0  ;;  %v424_v31 = vpop.xlane.xlu0 %423 }
 0x19d   : > { %466 = vadd.xlane.f32.xlu1 %v465_v24  ;;  %v438_v35 = vsub.f32 %v389_v51, %v424_v31 }
 0x19e   : > { %v427_v38 = vpop.xlane.xlu1 %426 }
 0x19f   : > { %v1777_v25 = vpop.eup %1573  ;;  %v453_v39 = vmul.f32 1.442695, %v438_v35  ;;  %v439_v40 = vsub.f32 %v392_v54, %v427_v38 }
 0x1a0   : > { %v468_v26 = vsel %vm403_vm2, %v1777_v25, 0.0 }
 0x1a1   : > { %469 = vadd.xlane.f32.xlu0 %v468_v26  ;;  %1579 = vpow2.f32 %v453_v39  ;;  %v455_v42 = vmul.f32 1.442695, %v439_v40 }
 0x1a3   : > { %v1781_v27 = vpop.eup %1575 }
 0x1a4   : > { %v471_v28 = vsel %vm403_vm2, %v1781_v27, 0.0  ;;  %v431_v34 = vpop.xlane.xlu0 %430 }
 0x1a5   : > { %472 = vadd.xlane.f32.xlu1 %v471_v28  ;;  %v440_v37 = vsub.f32 %v397_v57, %v431_v34  ;;  %v1787_v43 = vpop.eup %1577  ;;  %v1810_v57 = vsel %vm529_vm4, 65535, %v1651_v56 }
 0x1a6   : > { %v474_v45 = vsel %vm403_vm2, %v1787_v43, 0.0 }
 0x1a7   : > { %v457_v41 = vmul.f32 1.442695, %v440_v37 }
 0x1a9   : > { %1581 = vpow2.f32 %v457_v41 }
 0x1aa   : > { %1583 = vpow2.f32 %v455_v42 }
 0x1ab   : > { %v1789_v44 = vpop.eup %1579 }
 0x1ac   : > { %v477_v47 = vsel %vm403_vm2, %v1789_v44, 0.0 }
 0x1b3   : > { %v1793_v46 = vpop.eup %1581 }
 0x1b4   : > { %v483_v48 = vsel %vm428_vm3, %v1793_v46, 0.0  ;;  %v1799_v49 = vpop.eup %1583 }
 0x1b5   : > { %v480_v50 = vsel %vm403_vm2, %v1799_v49, 0.0 }
 0x1b6   : > { %509 = vrot.lane.b32.xlu1 %v1704_v1, %s1649_s28 }
 0x1b7   : > { %511 = vrot.lane.b32.xlu0 %v1717_v4, %s1649_s28 }
 0x1d6   : > { %475 = vadd.xlane.f32.xlu0 %v474_v45 }
 0x1da   : > { %478 = vadd.xlane.f32.xlu0 %v477_v47  ;;  %484 = vadd.xlane.f32.xlu1 %v483_v48 }
 0x1de   : > { %481 = vadd.xlane.f32.xlu0 %v480_v50 }
 0x1eb   : > { %625 = vrot.lane.b32.xlu1 %v1744_v29, %s1650_s29 }
 0x1f4   : > { %629 = vrot.lane.b32.xlu0 %v1704_v1, %s1650_s29 }
 0x1f8   : > { %631 = vrot.lane.b32.xlu0 %v1717_v4, %s1650_s29 }
 0x1fc   : > { %619 = vrot.lane.b32.xlu0 %v1723_v11, %s1650_s29 }
 0x200   : > { %621 = vrot.lane.b32.xlu0 %v1730_v17, %s1650_s29 }
 0x204   : > { %623 = vrot.lane.b32.xlu0 %v1737_v23, %s1650_s29 }
 0x208   : > { %627 = vrot.lane.b32.xlu0 %v1750_v32, %s1650_s29 }
 0x222   : > { %v461_v52 = vpop.xlane.xlu1 %460 }
 0x226   : > { %v464_v51 = vpop.xlane.xlu0 %463 }
 0x227   : > { %1585 = vrcp.f32 %v464_v51 }
 0x228   : > { %1587 = vrcp.f32 %v461_v52 }
 0x22a   : > { %v467_v53 = vpop.xlane.xlu1 %466 }
 0x22e   : > { %v470_v54 = vpop.xlane.xlu0 %469 }
 0x22f   : > { %1589 = vrcp.f32 %v470_v54 }
 0x230   : > { %1591 = vrcp.f32 %v467_v53 }
 0x231   : > { %v1586_v29 = vpop.eup %1585 }
 0x232   : > { %v473_v55 = vpop.xlane.xlu1 %472  ;;  %v512_v11 = vpop.permute.xlu0 %511  ;;  %v496_v23 = vmul.f32 %v1586_v29, %v1769_v19 }
 0x233   : > { %v1588_v58 = vpop.eup %1587  ;;  %v533_v32 = vand.u32 %v1810_v57, %v512_v11  ;;  %1593 = vrcp.f32 %v473_v55 }
 0x234   : > { %v495_v59 = vmul.f32 %v1588_v58, %v1765_v13 }
 0x236   : > { %v510_v17 = vpop.permute.xlu1 %509  ;;  %v504_v60 = vpack.c.bf16 %v496_v23, %v495_v59 }
 0x237   : > { %1431 = vmatpush3.bf16.msra.mxu1 %v510_v17 }
 0x238   : > { %1432 = vmatprep.subr.bf16.mxu1 %v1647_v0 }
 0x239   : > { %v1590_v61 = vpop.eup %1589 }
 0x23a   : > { %v1592_v62 = vpop.eup %1591  ;;  %v498_v63 = vmul.f32 %v1590_v61, %v1777_v25 }
 0x23b   : > { %1433 = vmatpush3.bf16.msra.mxu1 %v533_v32  ;;  %v497_v2 = vmul.f32 %v1592_v62, %v1773_v22 }
 0x23c   : > { %1454 = vmatprep.subr.bf16.mxu1 %v1647_v0 }
 0x23d   : > { %v505_v3 = vpack.c.bf16 %v498_v63, %v497_v2  ;;  %v1594_v8 = vpop.eup %1593 }
 0x23e   : > { %1435 = vmatmul.mubr.msk.bf16.vlgmr.msra.gmra.mrb[0].mxu1 %vm403_vm2, %v504_v60  ;;  %v499_v13 = vmul.f32 %v1594_v8, %v1781_v27 }
 0x23f   : > { %1438 = vmatprep.mubr.msk.bf16.mxu1 %vm1648_vm0, %v1647_v0 }
 0x246   : > { %1439 = vmatmul.mubr.msk.bf16.gmra.mrb[4].mxu1 %vm403_vm2, %v505_v3 }
 0x247   : > { %1442 = vmatprep.mubr.msk.bf16.mxu1 %vm1648_vm0, %v1647_v0 }
 0x263   : > { %v476_v5 = vpop.xlane.xlu0 %475 }
 0x264   : > { %1595 = vrcp.f32 %v476_v5 }
 0x267   : > { %v479_v6 = vpop.xlane.xlu0 %478  ;;  %v485_v9 = vpop.xlane.xlu1 %484 }
 0x268   : > { %1597 = vrcp.f32 %v479_v6 }
 0x26b   : > { %v482_v7 = vpop.xlane.xlu0 %481  ;;  %v626_v34 = vpop.permute.xlu1 %625 }
 0x26c   : > { %1599 = vrcp.f32 %v482_v7 }
 0x26d   : > { %1601 = vrcp.f32 %v485_v9 }
 0x26e   : > { %v1596_v10 = vpop.eup %1595 }
 0x26f   : > { %v630_v12 = vpop.permute.xlu0 %629  ;;  %v500_v14 = vmul.f32 %v1596_v10, %v1787_v43 }
 0x270   : > { %v649_v15 = vsel %vm309_vm1, %v630_v12, 0 }
 0x271   : > { %1455 = vmatpush3.bf16.xpose.msra.mxu1 %v649_v15  ;;  %v506_v16 = vpack.c.bf16 %v500_v14, %v499_v13 }
 0x272   : > { %1456 = vmatprep.subr.bf16.mxu1 %v1647_v0  ;;  %v1598_v19 = vpop.eup %1597 }
 0x273   : > { %1443 = vmatmul.mubr.msk.bf16.gmra.mrb[8].mxu1 %vm403_vm2, %v506_v16  ;;  %v632_v18 = vpop.permute.xlu0 %631  ;;  %v501_v22 = vmul.f32 %v1598_v19, %v1789_v44 }
 0x274   : > { %1446 = vmatprep.mubr.msk.bf16.mxu1 %vm1648_vm0, %v1647_v0  ;;  %v652_v21 = vsel %vm309_vm1, %v632_v18, 0 }
 0x276   : > { %v1600_v20 = vpop.eup %1599 }
 0x277   : > { %v502_v24 = vmul.f32 %v1600_v20, %v1799_v49  ;;  %v1602_v26 = vpop.eup %1601  ;;  %v620_v30 = vpop.permute.xlu0 %619 }
 0x278   : > { %v503_v27 = vmul.f32 %v1602_v26, %v1793_v46 }
 0x279   : > { %v507_v25 = vpack.c.bf16 %v502_v24, %v501_v22  ;;  %1457 = vmatpush3.bf16.xpose.msra.mxu1 %v652_v21 }
 0x27a   : > { %1502 = vmatprep.subr.bf16.mxu1 %v1647_v0  ;;  %v508_v28 = vpack.c.bf16 %v503_v27, %v503_v27 }
 0x27b   : > { %1447 = vmatmul.mubr.msk.bf16.gmra.mrb[12].mxu1 %vm403_vm2, %v507_v25  ;;  %v622_v31 = vpop.permute.xlu0 %621 }
 0x27c   : > { %1450 = vmatprep.mubr.msk.bf16.mxu1 %vm1648_vm0, %v1647_v0 }
 0x27f   : > { %v624_v33 = vpop.permute.xlu0 %623 }
 0x283   : > { %1451 = vmatmul.mubr.msk.bf16.gmra.mrb[16].mxu1 %vm403_vm2, %v508_v28  ;;  %v628_v35 = vpop.permute.xlu0 %627 }
 0x284   : > { %1458 = vmatprep.mubr.msk.bf16.mxu1 %vm1648_vm0, %v1647_v0 }
 0x28b   : > { %1459 = vmatmul.mubr.msk.bf16.vlgmr.msra.gmra.mrb[20].mxu1 %vm309_vm1, %v620_v30 }
 0x28c   : > { %1462 = vmatprep.mubr.msk.bf16.mxu1 %vm1648_vm0, %v1647_v0 }
 0x293   : > { %1463 = vmatmul.mubr.msk.bf16.gmra.mrb[24].mxu1 %vm309_vm1, %v622_v31 }
 0x294   : > { %1466 = vmatprep.mubr.msk.bf16.mxu1 %vm1648_vm0, %v1647_v0 }
 0x29b   : > { %1467 = vmatmul.mubr.msk.bf16.gmra.mrb[28].mxu1 %vm309_vm1, %v624_v33 }
 0x29c   : > { %1470 = vmatprep.mubr.msk.bf16.mxu1 %vm1648_vm0, %v1647_v0 }
 0x2a3   : > { %1471 = vmatmul.mubr.msk.bf16.gmra.mrb[32].mxu1 %vm309_vm1, %v626_v34 }
 0x2a4   : > { %1474 = vmatprep.mubr.msk.bf16.mxu1 %vm1648_vm0, %v1647_v0 }
 0x2ab   : > { %1475 = vmatmul.mubr.msk.bf16.gmra.mrb[36].mxu1 %vm309_vm1, %v628_v35 }
 0x2ac   : > { %1504 = vmatprep.mubr.msk.bf16.mxu1 %vm1648_vm0, %v1647_v0 }
 0x311   : > { %v1858_v36 = vpop.f32.mrb[0].mxu1 }
 0x312   : > { %v1436_v37 = vpop.f32.mrb[1].mxu1 }
 0x313   : > { %v1860_v38 = vpop.f32.mrb[2].mxu1 }
 0x314   : > { %v607_v39 = vpack.c.bf16 %v1860_v38, %v1858_v36  ;;  %v1437_v40 = vpop.f32.mrb[3].mxu1 }
 0x319   : > { %v1864_v41 = vpop.f32.mrb[4].mxu1 }
 0x31a   : > { %v1440_v42 = vpop.f32.mrb[5].mxu1 }
 0x31b   : > { %v1866_v43 = vpop.f32.mrb[6].mxu1 }
 0x31c   : > { %v608_v44 = vpack.c.bf16 %v1866_v43, %v1864_v41  ;;  %v1441_v45 = vpop.f32.mrb[7].mxu1 }
 0x346   : > { %v1870_v46 = vpop.f32.mrb[8].mxu1 }
 0x347   : > { %v1444_v47 = vpop.f32.mrb[9].mxu1 }
 0x348   : > { %v1872_v48 = vpop.f32.mrb[10].mxu1 }
 0x349   : > { %v609_v49 = vpack.c.bf16 %v1872_v48, %v1870_v46  ;;  %v1445_v50 = vpop.f32.mrb[11].mxu1 }
 0x34e   : > { %v1876_v51 = vpop.f32.mrb[12].mxu1 }
 0x34f   : > { %v1448_v52 = vpop.f32.mrb[13].mxu1 }
 0x350   : > { %v1878_v53 = vpop.f32.mrb[14].mxu1 }
 0x351   : > { %v610_v54 = vpack.c.bf16 %v1878_v53, %v1876_v51  ;;  %v1449_v55 = vpop.f32.mrb[15].mxu1 }
 0x356   : > { %v1882_v29 = vpop.f32.mrb[16].mxu1 }
 0x357   : > { %v1452_v56 = vpop.f32.mrb[17].mxu1  ;;  %v611_v36 = vpack.c.bf16 %v1882_v29, %v1882_v29 }
 0x358   : > { %v604_v11 = vpop.f32.mrb[18].mxu1 }
 0x359   : > { %v1453_v17 = vpop.f32.mrb[19].mxu1 }
 0x35e   : > { %v688_v58 = vpop.f32.mrb[20].mxu1 }
 0x35f   : > { %v1460_v23 = vpop.f32.mrb[21].mxu1  ;;  %v726_v32 = vsel %vm403_vm2, %v688_v58, -inf }
 0x360   : > { %727 = vmax.xlane.f32.xlu0 %v726_v32  ;;  %v691_v59 = vpop.f32.mrb[22].mxu1 }
 0x361   : > { %v729_v60 = vsel %vm403_vm2, %v691_v59, -inf  ;;  %v1461_v61 = vpop.f32.mrb[23].mxu1 }
 0x362   : > { %730 = vmax.xlane.f32.xlu1 %v729_v60 }
 0x366   : > { %v696_v62 = vpop.f32.mrb[24].mxu1 }
 0x367   : > { %v732_v63 = vsel %vm403_vm2, %v696_v62, -inf  ;;  %v1464_v2 = vpop.f32.mrb[25].mxu1 }
 0x368   : > { %733 = vmax.xlane.f32.xlu0 %v732_v63  ;;  %v699_v3 = vpop.f32.mrb[26].mxu1 }
 0x369   : > { %v1465_v5 = vpop.f32.mrb[27].mxu1  ;;  %v735_v6 = vsel %vm403_vm2, %v699_v3, -inf }
 0x36c   : > { %736 = vmax.xlane.f32.xlu0 %v735_v6 }
 0x36e   : > { %v704_v7 = vpop.f32.mrb[28].mxu1 }
 0x36f   : > { %v738_v8 = vsel %vm403_vm2, %v704_v7, -inf  ;;  %v1468_v9 = vpop.f32.mrb[29].mxu1 }
 0x370   : > { %739 = vmax.xlane.f32.xlu0 %v738_v8  ;;  %v707_v10 = vpop.f32.mrb[30].mxu1 }
 0x371   : > { %v1469_v12 = vpop.f32.mrb[31].mxu1  ;;  %v741_v13 = vsel %vm403_vm2, %v707_v10, -inf }
 0x374   : > { %742 = vmax.xlane.f32.xlu0 %v741_v13 }
 0x376   : > { %v712_v14 = vpop.f32.mrb[32].mxu1 }
 0x377   : > { %v1472_v15 = vpop.f32.mrb[33].mxu1  ;;  %v744_v16 = vsel %vm403_vm2, %v712_v14, -inf }
 0x378   : > { %745 = vmax.xlane.f32.xlu0 %v744_v16  ;;  %v715_v18 = vpop.f32.mrb[34].mxu1 }
 0x379   : > { %v747_v19 = vsel %vm403_vm2, %v715_v18, -inf  ;;  %v1473_v20 = vpop.f32.mrb[35].mxu1 }
 0x37a   : > { %748 = vmax.xlane.f32.xlu1 %v747_v19 }
 0x37e   : > { %v1892_v21 = vpop.f32.mrb[36].mxu1 }
 0x37f   : > { %v750_v22 = vsel %vm428_vm3, %v1892_v21, -inf  ;;  %v1476_v24 = vpop.f32.mrb[37].mxu1 }
 0x380   : > { %751 = vmax.xlane.f32.xlu0 %v750_v22  ;;  %v723_v25 = vpop.f32.mrb[38].mxu1 }
 0x381   : > { %v1477_v26 = vpop.f32.mrb[39].mxu1 }
 0x382   : > { %v1566_v26 = vld [vmem:[%s2066_s3 + $0x8] sm:$0xff]  }
 0x383   : > { %1503 = vmatpush3.bf16.msra.mxu1 %v1566_v26 }
 0x3ed   : > { %v728_v27 = vpop.xlane.xlu0 %727 }
 0x3ee   : > { %v753_v28 = vsub.f32 %v688_v58, %v728_v27 }
 0x3ef   : > { %v731_v30 = vpop.xlane.xlu1 %730 }
 0x3f0   : > { %v762_v31 = vmul.f32 1.442695, %v753_v28  ;;  %v754_v33 = vsub.f32 %v691_v59, %v731_v30 }
 0x3f2   : > { %1603 = vpow2.f32 %v762_v31  ;;  %v764_v34 = vmul.f32 1.442695, %v754_v33 }
 0x3f4   : > { %1605 = vpow2.f32 %v764_v34 }
 0x3f5   : > { %v734_v35 = vpop.xlane.xlu0 %733 }
 0x3f6   : > { %v755_v37 = vsub.f32 %v696_v62, %v734_v35 }
 0x3f8   : > { %v766_v40 = vmul.f32 1.442695, %v755_v37 }
 0x3f9   : > { %v737_v42 = vpop.xlane.xlu0 %736 }
 0x3fa   : > { %1607 = vpow2.f32 %v766_v40  ;;  %v756_v45 = vsub.f32 %v699_v3, %v737_v42 }
 0x3fc   : > { %v1896_v47 = vpop.eup %1603  ;;  %v768_v50 = vmul.f32 1.442695, %v756_v45 }
 0x3fd   : > { %v740_v52 = vpop.xlane.xlu0 %739  ;;  %v780_v55 = vsel %vm403_vm2, %v1896_v47, 0.0 }
 0x3fe   : > { %v1900_v56 = vpop.eup %1605  ;;  %1609 = vpow2.f32 %v768_v50  ;;  %v757_v11 = vsub.f32 %v704_v7, %v740_v52  ;;  %781 = vadd.xlane.f32.xlu1 %v780_v55  ;;  %v1565_v52 = vld [vmem:[%s2066_s3] sm:$0xff]  }
 0x3ff   : > { %v783_v17 = vsel %vm403_vm2, %v1900_v56, 0.0 }
 0x400   : > { %v770_v58 = vmul.f32 1.442695, %v757_v11  ;;  %784 = vadd.xlane.f32.xlu0 %v783_v17 }
 0x401   : > { %v743_v23 = vpop.xlane.xlu0 %742 }
 0x402   : > { %1611 = vpow2.f32 %v770_v58  ;;  %v758_v32 = vsub.f32 %v707_v10, %v743_v23 }
 0x404   : > { %v1904_v59 = vpop.eup %1607  ;;  %v772_v60 = vmul.f32 1.442695, %v758_v32 }
 0x405   : > { %v746_v61 = vpop.xlane.xlu0 %745  ;;  %v786_v62 = vsel %vm403_vm2, %v1904_v59, 0.0 }
 0x406   : > { %1613 = vpow2.f32 %v772_v60  ;;  %v759_v63 = vsub.f32 %v712_v14, %v746_v61  ;;  %787 = vadd.xlane.f32.xlu1 %v786_v62 }
 0x407   : > { %v749_v2 = vpop.xlane.xlu1 %748 }
 0x408   : > { %v1908_v3 = vpop.eup %1609  ;;  %v774_v5 = vmul.f32 1.442695, %v759_v63  ;;  %v760_v6 = vsub.f32 %v715_v18, %v749_v2 }
 0x409   : > { %v789_v7 = vsel %vm403_vm2, %v1908_v3, 0.0 }
 0x40a   : > { %1615 = vpow2.f32 %v774_v5  ;;  %v776_v8 = vmul.f32 1.442695, %v760_v6  ;;  %790 = vadd.xlane.f32.xlu0 %v789_v7 }
 0x40c   : > { %v1912_v9 = vpop.eup %1611  ;;  %1617 = vpow2.f32 %v776_v8 }
 0x40d   : > { %v792_v10 = vsel %vm403_vm2, %v1912_v9, 0.0  ;;  %v752_v19 = vpop.xlane.xlu0 %751 }
 0x40e   : > { %793 = vadd.xlane.f32.xlu1 %v792_v10  ;;  %v761_v20 = vsub.f32 %v1892_v21, %v752_v19 }
 0x410   : > { %v1614_v12 = vpop.eup %1613  ;;  %v778_v22 = vmul.f32 1.442695, %v761_v20 }
 0x411   : > { %v795_v13 = vsel %vm403_vm2, %v1614_v12, 0.0 }
 0x412   : > { %796 = vadd.xlane.f32.xlu0 %v795_v13  ;;  %1619 = vpow2.f32 %v778_v22 }
 0x414   : > { %v1917_v14 = vpop.eup %1615 }
 0x415   : > { %v798_v15 = vsel %vm403_vm2, %v1917_v14, 0.0 }
 0x416   : > { %v1921_v16 = vpop.eup %1617  ;;  %799 = vadd.xlane.f32.xlu0 %v798_v15 }
 0x417   : > { %v801_v18 = vsel %vm403_vm2, %v1921_v16, 0.0 }
 0x41a   : > { %802 = vadd.xlane.f32.xlu0 %v801_v18 }
 0x41c   : > { %v1620_v24 = vpop.eup %1619 }
 0x41d   : > { %v804_v25 = vsel %vm428_vm3, %v1620_v24, 0.0 }
 0x41f   : > { %830 = vrot.lane.b32.xlu1 %v1704_v1, %s1652_s30 }
 0x430   : > { %832 = vrot.lane.b32.xlu0 %v1717_v4, %s1652_s30 }
 0x443   : > { %805 = vadd.xlane.f32.xlu1 %v804_v25 }
 0x48b   : > { %v782_v27 = vpop.xlane.xlu1 %781 }
 0x48d   : > { %v785_v28 = vpop.xlane.xlu0 %784 }
 0x48e   : > { %1621 = vrcp.f32 %v785_v28 }
 0x48f   : > { %1623 = vrcp.f32 %v782_v27 }
 0x493   : > { %v788_v30 = vpop.xlane.xlu1 %787 }
 0x497   : > { %v791_v1 = vpop.xlane.xlu0 %790 }
 0x498   : > { %1625 = vrcp.f32 %v791_v1  ;;  %v1622_v35 = vpop.eup %1621 }
 0x499   : > { %1627 = vrcp.f32 %v788_v30  ;;  %v1624_v37 = vpop.eup %1623  ;;  %v817_v40 = vmul.f32 %v1622_v35, %v1900_v56 }
 0x49a   : > { %v816_v50 = vmul.f32 %v1624_v37, %v1896_v47 }
 0x49b   : > { %v794_v31 = vpop.xlane.xlu1 %793 }
 0x49c   : > { %v825_v55 = vpack.c.bf16 %v817_v40, %v816_v50 }
 0x49f   : > { %v831_v21 = vpop.permute.xlu1 %830  ;;  %v797_v33 = vpop.xlane.xlu0 %796 }
 0x4a0   : > { %1479 = vmatpush3.bf16.msra.mxu0 %v831_v21  ;;  %1629 = vrcp.f32 %v797_v33 }
 0x4a1   : > { %1480 = vmatprep.subr.bf16.mxu0 %v1647_v0  ;;  %1631 = vrcp.f32 %v794_v31 }
 0x4a2   : > { %v1626_v11 = vpop.eup %1625 }
 0x4a3   : > { %v800_v4 = vpop.xlane.xlu0 %799  ;;  %v1628_v17 = vpop.eup %1627 }
 0x4a4   : > { %v818_v47 = vmul.f32 %v1628_v17, %v1904_v59 }
 0x4a7   : > { %v803_v34 = vpop.xlane.xlu0 %802 }
 0x4a8   : > { %1633 = vrcp.f32 %v803_v34 }
 0x4a9   : > { %1635 = vrcp.f32 %v800_v4 }
 0x4aa   : > { %v1630_v58 = vpop.eup %1629 }
 0x4ab   : > { %v833_v42 = vpop.permute.xlu0 %832  ;;  %v1632_v23 = vpop.eup %1631  ;;  %v821_v32 = vmul.f32 %v1630_v58, %v1614_v12  ;;  %v1134_v58 = vld [vmem:[%s2008_s13] sm:$0xff] }
 0x4ac   : > { %v851_v45 = vand.u32 %v833_v42, %v1810_v57  ;;  %v819_v57 = vmul.f32 %v1626_v11, %v1908_v3  ;;  %v820_v60 = vmul.f32 %v1632_v23, %v1912_v9 }
 0x4ae   : > { %1481 = vmatpush3.bf16.msra.mxu0 %v851_v45  ;;  %v826_v56 = vpack.c.bf16 %v819_v57, %v818_v47  ;;  %v827_v61 = vpack.c.bf16 %v821_v32, %v820_v60  ;;  %v2013_v57 = vld [vmem:[%s2067_s4] ss:$0 sm:$0xff] }
 0x4af   : > { %1524 = vmatprep.subr.bf16.mxu0 %v1647_v0 }
 0x4b1   : > { %1483 = vmatmul.mubr.msk.bf16.vlgmr.msra.gmra.mrb[20].mxu0 %vm403_vm2, %v825_v55 }
 0x4b2   : > { %1486 = vmatprep.mubr.msk.bf16.mxu0 %vm1648_vm0, %v1647_v0  ;;  %1525 = vmatpush3.bf16.msra.mxu0 %v1565_v52  ;;  %v1634_v62 = vpop.eup %1633 }
 0x4b3   : > { %v1636_v63 = vpop.eup %1635  ;;  %v823_v59 = vmul.f32 %v1634_v62, %v1921_v16  ;;  %v1135_v62 = vld [vmem:[%s2008_s13 + $0x8] sm:$0xff] }
 0x4b4   : > { %v822_v2 = vmul.f32 %v1636_v63, %v1917_v14 }
 0x4b6   : > { %v828_v3 = vpack.c.bf16 %v823_v59, %v822_v2 }
 0x4b9   : > { %1487 = vmatmul.mubr.msk.bf16.gmra.mrb[24].mxu0 %vm403_vm2, %v826_v56 }
 0x4ba   : > { %1490 = vmatprep.mubr.msk.bf16.mxu0 %vm1648_vm0, %v1647_v0 }
 0x4c1   : > { %1491 = vmatmul.mubr.msk.bf16.gmra.mrb[28].mxu0 %vm403_vm2, %v827_v61 }
 0x4c2   : > { %1494 = vmatprep.mubr.msk.bf16.mxu0 %vm1648_vm0, %v1647_v0 }
 0x4c9   : > { %1495 = vmatmul.mubr.msk.bf16.gmra.mrb[32].mxu0 %vm403_vm2, %v828_v3 }
 0x4ca   : > { %1498 = vmatprep.mubr.msk.bf16.mxu0 %vm1648_vm0, %v1647_v0 }
 0x4d0   : > { %v806_v5 = vpop.xlane.xlu1 %805 }
 0x4d1   : > { %1637 = vrcp.f32 %v806_v5 }
 0x4db   : > { %v1638_v6 = vpop.eup %1637 }
 0x4dc   : > { %v824_v7 = vmul.f32 %v1638_v6, %v1620_v24 }
 0x4de   : > { %v829_v8 = vpack.c.bf16 %v824_v7, %v824_v7 }
 0x4e0   : > { %1499 = vmatmul.mubr.msk.bf16.gmra.mrb[36].mxu0 %vm403_vm2, %v829_v8 }
 0x4e1   : > { %1526 = vmatprep.mubr.msk.bf16.mxu0 %vm1648_vm0, %v1647_v0 }
 0x4e8   : > { %1527 = vmatmul.mubr.msk.bf16.vlgmr.msra.gmra.mrb[40].mxu0 %vm309_vm1, %v607_v39 }
 0x4e9   : > { %1530 = vmatprep.mubr.msk.bf16.mxu0 %vm1648_vm0, %v1647_v0 }
 0x4f0   : > { %1531 = vmatmul.mubr.msk.bf16.gmra.mrb[44].mxu0 %vm309_vm1, %v608_v44 }
 0x4f1   : > { %1534 = vmatprep.mubr.msk.bf16.mxu0 %vm1648_vm0, %v1647_v0 }
 0x4f8   : > { %1535 = vmatmul.mubr.msk.bf16.gmra.mrb[48].mxu0 %vm309_vm1, %v609_v49 }
 0x4f9   : > { %1538 = vmatprep.mubr.msk.bf16.mxu0 %vm1648_vm0, %v1647_v0 }
 0x500   : > { %1539 = vmatmul.mubr.msk.bf16.gmra.mrb[52].mxu0 %vm309_vm1, %v610_v54 }
 0x501   : > { %1542 = vmatprep.mubr.msk.bf16.mxu0 %vm1648_vm0, %v1647_v0 }
 0x508   : > { %1543 = vmatmul.mubr.msk.bf16.gmra.mrb[56].mxu0 %vm309_vm1, %v611_v36  ;;  %v1136_v36 = vld [vmem:[%s2008_s13 + $0x10] sm:$0xff] }
 0x584   : > { %v887_v38 = vpop.f32.mrb[20].mxu0 }
 0x585   : > { %v1484_v39 = vpop.f32.mrb[21].mxu0 }
 0x586   : > { %v890_v41 = vpop.f32.mrb[22].mxu0 }
 0x587   : > { %v925_v43 = vpack.c.bf16 %v890_v41, %v887_v38  ;;  %v1485_v44 = vpop.f32.mrb[23].mxu0 }
 0x588   : > { %v1137_v44 = vld [vmem:[%s2008_s13 + $0x18] sm:$0xff] }
 0x589   : > { %1505 = vmatmul.mubr.msk.bf16.vlgmr.msra.gmra.mrb[40].mxu1 %vm309_vm1, %v925_v43 }
 0x58a   : > { %1508 = vmatprep.mubr.msk.bf16.mxu1 %vm1648_vm0, %v1647_v0 }
 0x58c   : > { %v895_v46 = vpop.f32.mrb[24].mxu0 }
 0x58d   : > { %v1488_v48 = vpop.f32.mrb[25].mxu0 }
 0x58e   : > { %v898_v49 = vpop.f32.mrb[26].mxu0 }
 0x58f   : > { %v926_v51 = vpack.c.bf16 %v898_v49, %v895_v46  ;;  %v1489_v53 = vpop.f32.mrb[27].mxu0 }
 0x591   : > { %1509 = vmatmul.mubr.msk.bf16.gmra.mrb[44].mxu1 %vm309_vm1, %v926_v51 }
 0x592   : > { %1512 = vmatprep.mubr.msk.bf16.mxu1 %vm1648_vm0, %v1647_v0 }
 0x594   : > { %v903_v54 = vpop.f32.mrb[28].mxu0 }
 0x595   : > { %v1492_v29 = vpop.f32.mrb[29].mxu0 }
 0x596   : > { %v906_v9 = vpop.f32.mrb[30].mxu0 }
 0x597   : > { %v927_v10 = vpack.c.bf16 %v906_v9, %v903_v54  ;;  %v1493_v12 = vpop.f32.mrb[31].mxu0 }
 0x599   : > { %1513 = vmatmul.mubr.msk.bf16.gmra.mrb[48].mxu1 %vm309_vm1, %v927_v10  ;;  %v1138_v10 = vld [vmem:[%s2008_s13 + $0x20] sm:$0xff] }
 0x59a   : > { %1516 = vmatprep.mubr.msk.bf16.mxu1 %vm1648_vm0, %v1647_v0 }
 0x59c   : > { %v911_v13 = vpop.f32.mrb[32].mxu0 }
 0x59d   : > { %v1496_v14 = vpop.f32.mrb[33].mxu0 }
 0x59e   : > { %v914_v15 = vpop.f32.mrb[34].mxu0 }
 0x59f   : > { %v928_v16 = vpack.c.bf16 %v914_v15, %v911_v13  ;;  %v1497_v18 = vpop.f32.mrb[35].mxu0 }
 0x5a1   : > { %1517 = vmatmul.mubr.msk.bf16.gmra.mrb[52].mxu1 %vm309_vm1, %v928_v16  ;;  %v1139_v16 = vld [vmem:[%s2008_s13 + $0x28] sm:$0xff] }
 0x5a2   : > { %1520 = vmatprep.mubr.msk.bf16.mxu1 %vm1648_vm0, %v1647_v0 }
 0x5b3   : > { %v919_v19 = vpop.f32.mrb[36].mxu0 }
 0x5b4   : > { %v929_v20 = vpack.c.bf16 %v919_v19, %v919_v19  ;;  %v1500_v22 = vpop.f32.mrb[37].mxu0 }
 0x5b5   : > { %v922_v24 = vpop.f32.mrb[38].mxu0 }
 0x5b6   : > { %v1501_v25 = vpop.f32.mrb[39].mxu0  ;;  %1521 = vmatmul.mubr.msk.bf16.gmra.mrb[56].mxu1 %vm309_vm1, %v929_v20 }
 0x5bb   : > { %v1080_v26 = vpop.f32.mrb[40].mxu0 }
 0x5bc   : > { %v1528_v27 = vpop.f32.mrb[41].mxu0 }
 0x5bd   : > { %v1083_v28 = vpop.f32.mrb[42].mxu0 }
 0x5be   : > { %v1529_v30 = vpop.f32.mrb[43].mxu0 }
 0x5c3   : > { %v1088_v1 = vpop.f32.mrb[44].mxu0 }
 0x5c4   : > { %v1532_v31 = vpop.f32.mrb[45].mxu0 }
 0x5c5   : > { %v1091_v21 = vpop.f32.mrb[46].mxu0 }
 0x5c6   : > { %v1533_v33 = vpop.f32.mrb[47].mxu0 }
 0x5c7   : > { %v1141_v33 = vld [vmem:[%s2008_s13 + $0x38] sm:$0xff] }
 0x5cb   : > { %v1096_v4 = vpop.f32.mrb[48].mxu0 }
 0x5cc   : > { %v1536_v34 = vpop.f32.mrb[49].mxu0 }
 0x5cd   : > { %v1099_v35 = vpop.f32.mrb[50].mxu0 }
 0x5ce   : > { %v1537_v0 = vpop.f32.mrb[51].mxu0 }
 0x5d3   : > { %v1104_v37 = vpop.f32.mrb[52].mxu0 }
 0x5d4   : > { %v1540_v40 = vpop.f32.mrb[53].mxu0 }
 0x5d5   : > { %v2000_v42 = vpop.f32.mrb[54].mxu0 }
 0x5d6   : > { %v1541_v45 = vpop.f32.mrb[55].mxu0 }
 0x5db   : > { %v2002_v50 = vpop.f32.mrb[56].mxu0 }
 0x5dc   : > { %v1544_v52 = vpop.f32.mrb[57].mxu0 }
 0x5dd   : > { %v1115_v55 = vpop.f32.mrb[58].mxu0 }
 0x5de   : > { %v1545_v11 = vpop.f32.mrb[59].mxu0  ;;  %v1142_v55 = vld [vmem:[%s2008_s13 + $0x40] sm:$0x1] }
 0x65c   : > { %v987_v17 = vpop.f32.mrb[40].mxu1 }
 0x65d   : > { %v1081_v47 = vadd.f32 %v1080_v26, %v987_v17  ;;  %v1506_v56 = vpop.f32.mrb[41].mxu1 }
 0x65e   : > { %v990_v23 = vpop.f32.mrb[42].mxu1  ;;  %v1201_v56 = vld [vmem:[%s2024_s20 + $0x20] sm:$0x1] }
 0x65f   : > { %v1125_v32 = vadd.f32 %v2013_v57, %v1081_v47  ;;  %v1084_v60 = vadd.f32 %v1083_v28, %v990_v23  ;;  %v1507_v61 = vpop.f32.mrb[43].mxu1  ;;  %v1140_v28 = vld [vmem:[%s2008_s13 + $0x30] sm:$0xff] }
 0x661   : > { %v1143_v63 = vadd.f32 %v1134_v58, %v1125_v32  ;;  %v1126_v59 = vadd.f32 %v2013_v57, %v1084_v60 }
 0x663   : > { %v1338_v2 = vpack.c.bf16 %v1143_v63, %v1143_v63  ;;  %v1144_v3 = vadd.f32 %v1135_v62, %v1126_v59 }
 0x664   : > { %v995_v5 = vpop.f32.mrb[44].mxu1 }
 0x665   : > { %1190 = vst.msk [vmem:[%s2024_s20] sm:$0xf] %vm1189_vm5, %v1338_v2  ;;  %v1339_v6 = vpack.c.bf16 %v1144_v3, %v1144_v3  ;;  %v1089_v7 = vadd.f32 %v1088_v1, %v995_v5  ;;  %v1510_v8 = vpop.f32.mrb[45].mxu1 }
 0x666   : > { %v998_v38 = vpop.f32.mrb[46].mxu1 }
 0x667   : > { %1191 = vst.msk [vmem:[%s2024_s20 + $0x4] sm:$0xf] %vm1189_vm5, %v1339_v6  ;;  %v1127_v39 = vadd.f32 %v2013_v57, %v1089_v7  ;;  %v1092_v41 = vadd.f32 %v1091_v21, %v998_v38  ;;  %v1511_v43 = vpop.f32.mrb[47].mxu1 }
 0x669   : > { %v1145_v46 = vadd.f32 %v1136_v36, %v1127_v39  ;;  %v1128_v48 = vadd.f32 %v2013_v57, %v1092_v41 }
 0x66b   : > { %v1340_v49 = vpack.c.bf16 %v1145_v46, %v1145_v46  ;;  %v1146_v51 = vadd.f32 %v1137_v44, %v1128_v48 }
 0x66c   : > { %v1003_v53 = vpop.f32.mrb[48].mxu1 }
 0x66d   : > { %1192 = vst.msk [vmem:[%s2024_s20 + $0x8] sm:$0xf] %vm1189_vm5, %v1340_v49  ;;  %v1341_v54 = vpack.c.bf16 %v1146_v51, %v1146_v51  ;;  %v1097_v29 = vadd.f32 %v1096_v4, %v1003_v53  ;;  %v1514_v9 = vpop.f32.mrb[49].mxu1 }
 0x66e   : > { %v1006_v12 = vpop.f32.mrb[50].mxu1 }
 0x66f   : > { %1193 = vst.msk [vmem:[%s2024_s20 + $0xc] sm:$0xf] %vm1189_vm5, %v1341_v54  ;;  %v1129_v13 = vadd.f32 %v2013_v57, %v1097_v29  ;;  %v1100_v14 = vadd.f32 %v1099_v35, %v1006_v12  ;;  %v1515_v15 = vpop.f32.mrb[51].mxu1 }
 0x671   : > { %v1147_v18 = vadd.f32 %v1138_v10, %v1129_v13  ;;  %v1130_v19 = vadd.f32 %v2013_v57, %v1100_v14 }
 0x673   : > { %v1342_v20 = vpack.c.bf16 %v1147_v18, %v1147_v18  ;;  %v1148_v22 = vadd.f32 %v1139_v16, %v1130_v19 }
 0x674   : > { %v1011_v24 = vpop.f32.mrb[52].mxu1 }
 0x675   : > { %1194 = vst.msk [vmem:[%s2024_s20 + $0x10] sm:$0xf] %vm1189_vm5, %v1342_v20  ;;  %v1343_v25 = vpack.c.bf16 %v1148_v22, %v1148_v22  ;;  %v1105_v26 = vadd.f32 %v1104_v37, %v1011_v24  ;;  %v1518_v27 = vpop.f32.mrb[53].mxu1 }
 0x676   : > { %v1014_v30 = vpop.f32.mrb[54].mxu1 }
 0x677   : > { %1195 = vst.msk [vmem:[%s2024_s20 + $0x14] sm:$0xf] %vm1189_vm5, %v1343_v25  ;;  %v1131_v1 = vadd.f32 %v2013_v57, %v1105_v26  ;;  %v1108_v31 = vadd.f32 %v2000_v42, %v1014_v30  ;;  %v1519_v21 = vpop.f32.mrb[55].mxu1 }
 0x679   : > { %v1149_v4 = vadd.f32 %v1140_v28, %v1131_v1  ;;  %v1132_v34 = vadd.f32 %v2013_v57, %v1108_v31 }
 0x67b   : > { %v1344_v35 = vpack.c.bf16 %v1149_v4, %v1149_v4  ;;  %v1150_v0 = vadd.f32 %v1141_v33, %v1132_v34 }
 0x67d   : > { %1196 = vst.msk [vmem:[%s2024_s20 + $0x18] sm:$0xf] %vm1189_vm5, %v1344_v35  ;;  %v1345_v37 = vpack.c.bf16 %v1150_v0, %v1150_v0 }
 0x67f   : > { %1197 = vst.msk [vmem:[%s2024_s20 + $0x1c] sm:$0xf] %vm1189_vm5, %v1345_v37 }
 0x689   : > { %v1019_v40 = vpop.f32.mrb[56].mxu1 }
 0x68a   : > { %v1113_v45 = vadd.f32 %v2002_v50, %v1019_v40  ;;  %v1522_v52 = vpop.f32.mrb[57].mxu1 }
 0x68b   : > { %v1022_v42 = vpop.f32.mrb[58].mxu1 }
 0x68c   : > { %v1133_v11 = vadd.f32 %v2013_v57, %v1113_v45  ;;  %v1523_v17 = vpop.f32.mrb[59].mxu1 }
 0x68e   : > { %v1151_v47 = vadd.f32 %v1142_v55, %v1133_v11 }
 0x690   : > { %v1346_v58 = vpack.c.bf16 %v1151_v47, %v1151_v47 }
 0x692   : > { %v1202_v23 = vsel %vm1200_vm8, %v1346_v58, %v1201_v56 }
 0x693   : > { %1203 = vst [vmem:[%s2024_s20 + $0x20] sm:$0x1] %v1202_v23 }
 0x694 PF: > { %s15_s18 = sadd.s32 1, %s1645_s18  }
 0x695   : > { %p12_p4 = scmp.ge.s32.totalorder %s15_s18, 4  }
 0x697   :  { %14 = sbr.rel (!%p12_p4) target bundleno = 1 (0x1), region = 76 }

// kernel: mvit_forward.15
= control target key start
LH: loop header
LB: loop body
LE: loop exit
PB: predicated region body
PF: predicated region fallthrough
CT: control target
= control target key end

     0   :  { %s1175_s24 = smov 0   ;;  %s1458_s0 = inlined_call_operand.vmem [shape: bf16[144,32], index: 0, kind: input, shape index: {}]   ;;  %s1459_s1 = inlined_call_operand.vmem [shape: f32[1,32], index: 1, kind: input, shape index: {}]   ;;  %s1460_s2 = inlined_call_operand.vmem [shape: f32[1,32], index: 2, kind: input, shape index: {}]   ;;  %s1461_s3 = inlined_call_operand.vmem [shape: bf16[32,128], index: 3, kind: input, shape index: {}]   ;;  %s1462_s4 = inlined_call_operand.vmem [shape: f32[1,128], index: 4, kind: input, shape index: {}]   ;;  %s1463_s5 = inlined_call_operand.vmem [shape: bf16[128,32], index: 5, kind: input, shape index: {}]   ;;  %s1464_s6 = inlined_call_operand.vmem [shape: f32[1,32], index: 6, kind: input, shape index: {}]   ;;  %s1465_s7 = inlined_call_operand.vmem [shape: bf16[144,32], index: 7, kind: output, shape index: {}]  }
   0x1 LB: > { %s908_s25 = sadd.s32 4294967295, %s1131_s24   ;;  %p912_p0 = scmp.ge.s32.totalorder %s1131_s24, 1  ;;  %s1131_s24 = sphi %s1175_s24, %s17_s24  }
   0x2   : > { %p238_p1 = scmp.lt.s32.totalorder %s1131_s24, 3 }
   0x4   : > { %p239_p2 = pnand %p912_p0, %p238_p1 }
   0x5   : > { %s270_s26 = smul.u32 (!%p239_p2), 9, %s908_s25  ;;  %vm303_vm0 = vcmask (!%p239_p2), 261120   ;;  %vm1134_vm1 = vmmov (!%p239_p2), 0   ;;  %vm842_vm2 = vcmask (!%p239_p2), 257024  }
   0x6   : > { %242 = sbr.rel (%p239_p2) target bundleno = 832 (0x340), region = 48 }
   0x7   : > { %p271_p3 = scmp.lt.s32.totalorder (!%p239_p2), %s270_s26, 17 }
   0xd   : > { %s1467_s26 = smov (!%p271_p3, %s270_s26), 17 }
   0xe   : > { %s913_s27 = sshll.u32 %s1467_s26, 2 }
   0xf   : > { %s274_s30 = scalar_lea.vmem %s1458_s0, %s913_s27  ;;  %s1427_s18 = scalar_lea.vmem %s1465_s7, %s913_s27 }
  0x10   : > { %v955_v0 = vld [vmem:[%s274_s30] sm:$0xff]   ;;  %v970_v1 = vld [vmem:[%s274_s30 + $0x8] sm:$0xff]   ;;  %v971_v6 = vld [vmem:[%s274_s30 + $0x10] sm:$0xff]  }
  0x11   : > { %v1191_v2 = vunpack.c.l.bf16 %v955_v0  ;;  %v1193_v3 = vunpack.c.l.bf16 %v970_v1  ;;  %v1195_v4 = vunpack.c.h.bf16 %v955_v0  ;;  %v1197_v5 = vunpack.c.h.bf16 %v970_v1  ;;  %v972_v13 = vld [vmem:[%s274_s30 + $0x18] sm:$0xff]   ;;  %v291_v18 = vld [vmem:[%s274_s30 + $0x20] sm:$0xf] }
  0x12   : > { %v1207_v11 = vunpack.c.l.bf16 %v971_v6  ;;  %v1209_v12 = vunpack.c.h.bf16 %v971_v6  ;;  %v1215_v16 = vunpack.c.l.bf16 %v972_v13  ;;  %v1217_v17 = vunpack.c.h.bf16 %v972_v13 }
  0x13   : > { %v304_v7 = vsel %vm303_vm0, %v1191_v2, 0.0  ;;  %v310_v8 = vsel %vm303_vm0, %v1193_v3, 0.0  ;;  %v307_v9 = vsel %vm303_vm0, %v1195_v4, 0.0  ;;  %v313_v10 = vsel %vm303_vm0, %v1197_v5, 0.0 }
  0x14   : > { %305 = vadd.xlane.f32.xlu0 %v304_v7  ;;  %311 = vadd.xlane.f32.xlu1 %v310_v8  ;;  %v316_v14 = vsel %vm303_vm0, %v1207_v11, 0.0  ;;  %v319_v15 = vsel %vm303_vm0, %v1209_v12, 0.0  ;;  %v322_v19 = vsel %vm303_vm0, %v1215_v16, 0.0  ;;  %v325_v20 = vsel %vm303_vm0, %v1217_v17, 0.0  ;;  %v1079_v8 = vld [vmem:[%s1461_s3] sm:$0xff]  }
  0x15   : > { %v1223_v21 = vunpack.c.l.bf16 %v291_v18 }
  0x17   : > { %v328_v22 = vsel %vm303_vm0, %v1223_v21, 0.0 }
  0x18   : > { %308 = vadd.xlane.f32.xlu0 %v307_v9  ;;  %314 = vadd.xlane.f32.xlu1 %v313_v10  ;;  %v1133_v9 = vmov 0.0   ;;  %v1080_v10 = vld [vmem:[%s1461_s3 + $0x8] sm:$0xff]  }
  0x19   : > { %993 = vmatprep.subr.bf16.mxu0 %v1133_v9  ;;  %1053 = vmatprep.subr.bf16.mxu1 %v1133_v9 }
  0x1a   : > { %994 = vmatpush3.bf16.msra.mxu0 %v1079_v8  ;;  %997 = vmatprep.mubr.msk.bf16.mxu0 %vm1134_vm1, %v1133_v9 }
  0x1b   : > { %995 = vmatprep.subr.bf16.mxu0 %v1133_v9  ;;  %1037 = vmatprep.mubr.msk.bf16.mxu1 %vm1134_vm1, %v1133_v9 }
  0x1c   : > { %317 = vadd.xlane.f32.xlu0 %v316_v14  ;;  %320 = vadd.xlane.f32.xlu1 %v319_v15 }
  0x1e   : > { %996 = vmatpush3.bf16.msra.mxu0 %v1080_v10 }
  0x1f   : > { %1017 = vmatprep.subr.bf16.mxu0 %v1133_v9 }
  0x20   : > { %323 = vadd.xlane.f32.xlu0 %v322_v19  ;;  %326 = vadd.xlane.f32.xlu1 %v325_v20 }
  0x24   : > { %329 = vadd.xlane.f32.xlu0 %v328_v22 }
  0xa1   : > { %v306_v23 = vpop.xlane.xlu0 %305  ;;  %v312_v24 = vpop.xlane.xlu1 %311 }
  0xa2   : > { %v332_v25 = vmul.f32 0.03125, %v306_v23  ;;  %v334_v26 = vmul.f32 0.03125, %v312_v24 }
  0xa4   : > { %v1228_v27 = vsub.f32 %v1191_v2, %v332_v25  ;;  %v1231_v28 = vsub.f32 %v1193_v3, %v334_v26 }
  0xa5   : > { %v309_v29 = vpop.xlane.xlu0 %308  ;;  %v315_v30 = vpop.xlane.xlu1 %314 }
  0xa6   : > { %v333_v31 = vmul.f32 0.03125, %v309_v29  ;;  %v335_v32 = vmul.f32 0.03125, %v315_v30  ;;  %v350_v33 = vmul.f32 %v1228_v27, %v1228_v27  ;;  %v352_v34 = vmul.f32 %v1231_v28, %v1231_v28 }
  0xa8   : > { %v1238_v35 = vsub.f32 %v1195_v4, %v333_v31  ;;  %v1241_v36 = vsub.f32 %v1197_v5, %v335_v32  ;;  %v359_v37 = vsel %vm303_vm0, %v350_v33, 0.0  ;;  %v365_v40 = vsel %vm303_vm0, %v352_v34, 0.0 }
  0xa9   : > { %360 = vadd.xlane.f32.xlu1 %v359_v37  ;;  %v318_v38 = vpop.xlane.xlu0 %317  ;;  %v321_v39 = vpop.xlane.xlu1 %320 }
  0xaa   : > { %v336_v41 = vmul.f32 0.03125, %v318_v38  ;;  %v337_v42 = vmul.f32 0.03125, %v321_v39  ;;  %v351_v43 = vmul.f32 %v1238_v35, %v1238_v35  ;;  %v353_v44 = vmul.f32 %v1241_v36, %v1241_v36 }
  0xac   : > { %v1250_v45 = vsub.f32 %v1207_v11, %v336_v41  ;;  %v1253_v46 = vsub.f32 %v1209_v12, %v337_v42  ;;  %v362_v47 = vsel %vm303_vm0, %v351_v43, 0.0  ;;  %v368_v50 = vsel %vm303_vm0, %v353_v44, 0.0  ;;  %v915_v43 = vld [vmem:[%s1459_s1] ss:$0 sm:$0xff] }
  0xad   : > { %366 = vadd.xlane.f32.xlu1 %v365_v40  ;;  %363 = vadd.xlane.f32.xlu0 %v362_v47  ;;  %v324_v48 = vpop.xlane.xlu0 %323  ;;  %v327_v49 = vpop.xlane.xlu1 %326 }
  0xae   : > { %v338_v51 = vmul.f32 0.03125, %v324_v48  ;;  %v339_v52 = vmul.f32 0.03125, %v327_v49  ;;  %v354_v53 = vmul.f32 %v1250_v45, %v1250_v45  ;;  %v355_v54 = vmul.f32 %v1253_v46, %v1253_v46 }
  0xb0   : > { %v1262_v55 = vsub.f32 %v1215_v16, %v338_v51  ;;  %v1265_v56 = vsub.f32 %v1217_v17, %v339_v52  ;;  %v371_v57 = vsel %vm303_vm0, %v354_v53, 0.0  ;;  %v374_v60 = vsel %vm303_vm0, %v355_v54, 0.0  ;;  %v916_v52 = vld [vmem:[%s1460_s2] ss:$0 sm:$0xff] }
  0xb1   : > { %369 = vadd.xlane.f32.xlu0 %v368_v50  ;;  %372 = vadd.xlane.f32.xlu1 %v371_v57  ;;  %v330_v58 = vpop.xlane.xlu0 %329 }
  0xb2   : > { %v340_v59 = vmul.f32 0.03125, %v330_v58  ;;  %v356_v61 = vmul.f32 %v1262_v55, %v1262_v55  ;;  %v357_v62 = vmul.f32 %v1265_v56, %v1265_v56 }
  0xb4   : > { %v1274_v63 = vsub.f32 %v1223_v21, %v340_v59  ;;  %v377_v0 = vsel %vm303_vm0, %v356_v61, 0.0  ;;  %v380_v1 = vsel %vm303_vm0, %v357_v62, 0.0 }
  0xb5   : > { %375 = vadd.xlane.f32.xlu0 %v374_v60  ;;  %378 = vadd.xlane.f32.xlu1 %v377_v0 }
  0xb6   : > { %v358_v6 = vmul.f32 %v1274_v63, %v1274_v63 }
  0xb8   : > { %v383_v7 = vsel %vm303_vm0, %v358_v6, 0.0 }
  0xb9   : > { %381 = vadd.xlane.f32.xlu0 %v380_v1  ;;  %384 = vadd.xlane.f32.xlu1 %v383_v7 }
 0x136   : > { %v361_v13 = vpop.xlane.xlu1 %360 }
 0x137   : > { %v386_v14 = vmul.f32 0.03125, %v361_v13 }
 0x139   : > { %v395_v15 = vadd.f32 1e-06, %v386_v14 }
 0x13a   : > { %v367_v18 = vpop.xlane.xlu1 %366  ;;  %v364_v19 = vpop.xlane.xlu0 %363 }
 0x13b   : > { %1089 = vrsqrt.f32 %v395_v15  ;;  %v388_v20 = vmul.f32 0.03125, %v367_v18  ;;  %v387_v22 = vmul.f32 0.03125, %v364_v19 }
 0x13d   : > { %v396_v23 = vadd.f32 1e-06, %v387_v22  ;;  %v397_v24 = vadd.f32 1e-06, %v388_v20 }
 0x13e   : > { %v370_v25 = vpop.xlane.xlu0 %369  ;;  %v373_v26 = vpop.xlane.xlu1 %372 }
 0x13f   : > { %v389_v29 = vmul.f32 0.03125, %v370_v25  ;;  %1091 = vrsqrt.f32 %v396_v23  ;;  %v390_v31 = vmul.f32 0.03125, %v373_v26 }
 0x140   : > { %1093 = vrsqrt.f32 %v397_v24 }
 0x141   : > { %v398_v30 = vadd.f32 1e-06, %v389_v29  ;;  %v399_v38 = vadd.f32 1e-06, %v390_v31 }
 0x142   : > { %v376_v32 = vpop.xlane.xlu0 %375  ;;  %v379_v41 = vpop.xlane.xlu1 %378 }
 0x143   : > { %v391_v33 = vmul.f32 0.03125, %v376_v32  ;;  %1095 = vrsqrt.f32 %v398_v30  ;;  %v392_v47 = vmul.f32 0.03125, %v379_v41  ;;  %v1086_v41 = vld [vmem:[%s1463_s5 + $0x28] sm:$0xff]  }
 0x145   : > { %v1090_v34 = vpop.eup %1089  ;;  %v400_v37 = vadd.f32 1e-06, %v391_v33  ;;  %v401_v57 = vadd.f32 1e-06, %v392_v47 }
 0x146   : > { %v382_v39 = vpop.xlane.xlu0 %381  ;;  %v413_v40 = vmul.f32 %v1090_v34, %v1228_v27  ;;  %v385_v27 = vpop.xlane.xlu1 %384 }
 0x147   : > { %1097 = vrsqrt.f32 %v400_v37  ;;  %v393_v42 = vmul.f32 0.03125, %v382_v39  ;;  %v394_v62 = vmul.f32 0.03125, %v385_v27  ;;  %v1082_v37 = vld [vmem:[%s1463_s5 + $0x8] sm:$0xff]   ;;  %v1084_v39 = vld [vmem:[%s1463_s5 + $0x18] sm:$0xff]  }
 0x148   : > { %1099 = vrsqrt.f32 %v399_v38  ;;  %v428_v49 = vmul.f32 %v915_v43, %v413_v40  ;;  %v1083_v38 = vld [vmem:[%s1463_s5 + $0x10] sm:$0xff]   ;;  %v1085_v40 = vld [vmem:[%s1463_s5 + $0x20] sm:$0xff]  }
 0x149   : > { %v1092_v44 = vpop.eup %1091  ;;  %v402_v51 = vadd.f32 1e-06, %v393_v42  ;;  %v403_v8 = vadd.f32 1e-06, %v394_v62  ;;  %v1087_v42 = vld [vmem:[%s1463_s5 + $0x30] sm:$0xff]  }
 0x14a   : > { %v414_v48 = vmul.f32 %v1092_v44, %v1238_v35  ;;  %v1094_v50 = vpop.eup %1093  ;;  %v443_v60 = vadd.f32 %v916_v52, %v428_v49  ;;  %v1366_v44 = vld [vmem:[%s1462_s4] ss:$0 sm:$0xff] }
 0x14b   : > { %v415_v58 = vmul.f32 %v1094_v50, %v1231_v28  ;;  %1101 = vrsqrt.f32 %v402_v51 }
 0x14c   : > { %v429_v53 = vmul.f32 %v915_v43, %v414_v48  ;;  %1103 = vrsqrt.f32 %v401_v57 }
 0x14d   : > { %v1096_v54 = vpop.eup %1095  ;;  %v430_v6 = vmul.f32 %v915_v43, %v415_v58  ;;  %1105 = vrsqrt.f32 %v403_v8 }
 0x14e   : > { %v416_v59 = vmul.f32 %v1096_v54, %v1241_v36  ;;  %v444_v61 = vadd.f32 %v916_v52, %v429_v53 }
 0x14f   : > { %v445_v13 = vadd.f32 %v916_v52, %v430_v6 }
 0x150   : > { %v452_v35 = vpack.c.bf16 %v444_v61, %v443_v60  ;;  %v431_v0 = vmul.f32 %v915_v43, %v416_v59 }
 0x151   : > { %v1098_v1 = vpop.eup %1097 }
 0x152   : > { %998 = vmatmul.mubr.msk.bf16.vlgmr.msra.gmra.mrb[0].mxu0 %vm303_vm0, %v452_v35  ;;  %v1100_v7 = vpop.eup %1099  ;;  %v418_v28 = vmul.f32 %v1098_v1, %v1253_v46  ;;  %v446_v10 = vadd.f32 %v916_v52, %v431_v0 }
 0x153   : > { %1001 = vmatprep.mubr.msk.bf16.mxu0 %vm1134_vm1, %v1133_v9  ;;  %v417_v36 = vmul.f32 %v1100_v7, %v1250_v45 }
 0x154   : > { %v453_v14 = vpack.c.bf16 %v446_v10, %v445_v13  ;;  %v433_v15 = vmul.f32 %v915_v43, %v418_v28 }
 0x155   : > { %v1102_v18 = vpop.eup %1101  ;;  %v432_v19 = vmul.f32 %v915_v43, %v417_v36 }
 0x156   : > { %v1104_v20 = vpop.eup %1103  ;;  %v420_v22 = vmul.f32 %v1102_v18, %v1265_v56  ;;  %v448_v23 = vadd.f32 %v916_v52, %v433_v15 }
 0x157   : > { %v419_v46 = vmul.f32 %v1104_v20, %v1262_v55  ;;  %v447_v24 = vadd.f32 %v916_v52, %v432_v19  ;;  %v1106_v26 = vpop.eup %1105 }
 0x158   : > { %v435_v45 = vmul.f32 %v915_v43, %v420_v22  ;;  %v421_v30 = vmul.f32 %v1106_v26, %v1274_v63  ;;  %v1081_v63 = vld [vmem:[%s1463_s5] sm:$0xff]  }
 0x159   : > { %v454_v25 = vpack.c.bf16 %v448_v23, %v447_v24  ;;  %v434_v29 = vmul.f32 %v915_v43, %v419_v46  ;;  %1018 = vmatpush3.bf16.msra.mxu0 %v1081_v63  ;;  %1061 = vmatpush3.bf16.msra.mxu1 %v1081_v63 }
 0x15a   : > { %1002 = vmatmul.mubr.msk.bf16.gmra.mrb[4].mxu0 %vm303_vm0, %v453_v14  ;;  %v450_v31 = vadd.f32 %v916_v52, %v435_v45  ;;  %v436_v34 = vmul.f32 %v915_v43, %v421_v30  ;;  %1019 = vmatprep.subr.bf16.mxu0 %v1133_v9  ;;  %v1088_v43 = vld [vmem:[%s1463_s5 + $0x38] sm:$0xff]  }
 0x15b   : > { %1005 = vmatprep.mubr.msk.bf16.mxu0 %vm1134_vm1, %v1133_v9  ;;  %v449_v32 = vadd.f32 %v916_v52, %v434_v29  ;;  %1054 = vmatprep.subr.bf16.mxu1 %v1133_v9 }
 0x15c   : > { %v451_v55 = vadd.f32 %v916_v52, %v436_v34 }
 0x15d   : > { %v455_v33 = vpack.c.bf16 %v450_v31, %v449_v32  ;;  %1020 = vmatpush3.bf16.msra.mxu0 %v1082_v37  ;;  %1062 = vmatpush3.bf16.msra.mxu1 %v1082_v37 }
 0x15e   : > { %v456_v56 = vpack.c.bf16 %v451_v55, %v451_v55  ;;  %1021 = vmatprep.subr.bf16.mxu0 %v1133_v9  ;;  %1055 = vmatprep.subr.bf16.mxu1 %v1133_v9 }
 0x161   : > { %1022 = vmatpush3.bf16.msra.mxu0 %v1083_v38  ;;  %1063 = vmatpush3.bf16.msra.mxu1 %v1083_v38 }
 0x162   : > { %1006 = vmatmul.mubr.msk.bf16.gmra.mrb[8].mxu0 %vm303_vm0, %v454_v25  ;;  %1023 = vmatprep.subr.bf16.mxu0 %v1133_v9 }
 0x163   : > { %1009 = vmatprep.mubr.msk.bf16.mxu0 %vm1134_vm1, %v1133_v9  ;;  %1056 = vmatprep.subr.bf16.mxu1 %v1133_v9 }
 0x165   : > { %1024 = vmatpush3.bf16.msra.mxu0 %v1084_v39  ;;  %1064 = vmatpush3.bf16.msra.mxu1 %v1084_v39 }
 0x166   : > { %1025 = vmatprep.subr.bf16.mxu0 %v1133_v9  ;;  %1057 = vmatprep.subr.bf16.mxu1 %v1133_v9 }
 0x169   : > { %1026 = vmatpush3.bf16.msra.mxu0 %v1085_v40  ;;  %1065 = vmatpush3.bf16.msra.mxu1 %v1085_v40 }
 0x16a   : > { %1010 = vmatmul.mubr.msk.bf16.gmra.mrb[12].mxu0 %vm303_vm0, %v455_v33  ;;  %1027 = vmatprep.subr.bf16.mxu0 %v1133_v9 }
 0x16b   : > { %1013 = vmatprep.mubr.msk.bf16.mxu0 %vm1134_vm1, %v1133_v9  ;;  %1058 = vmatprep.subr.bf16.mxu1 %v1133_v9 }
 0x16d   : > { %1028 = vmatpush3.bf16.msra.mxu0 %v1086_v41  ;;  %1066 = vmatpush3.bf16.msra.mxu1 %v1086_v41 }
 0x16e   : > { %1029 = vmatprep.subr.bf16.mxu0 %v1133_v9  ;;  %1059 = vmatprep.subr.bf16.mxu1 %v1133_v9 }
 0x171   : > { %1030 = vmatpush3.bf16.msra.mxu0 %v1087_v42  ;;  %1067 = vmatpush3.bf16.msra.mxu1 %v1087_v42 }
 0x172   : > { %1014 = vmatmul.mubr.msk.bf16.gmra.mrb[16].mxu0 %vm303_vm0, %v456_v56  ;;  %1031 = vmatprep.subr.bf16.mxu0 %v1133_v9 }
 0x173   : > { %1033 = vmatprep.mubr.msk.bf16.mxu0 %vm1134_vm1, %v1133_v9  ;;  %1060 = vmatprep.subr.bf16.mxu1 %v1133_v9 }
 0x175   : > { %1032 = vmatpush3.bf16.msra.mxu0 %v1088_v43  ;;  %1068 = vmatpush3.bf16.msra.mxu1 %v1088_v43 }
 0x225   : > { %v529_v47 = vpop.f32.mrb[0].mxu0 }
 0x226   : > { %v530_v48 = vadd.f32 %v1366_v44, %v529_v47  ;;  %v999_v49 = vpop.f32.mrb[1].mxu0 }
 0x227   : > { %v532_v50 = vpop.f32.mrb[2].mxu0 }
 0x228   : > { %v576_v51 = vmul.f32 0.044715, %v530_v48  ;;  %v533_v52 = vadd.f32 %v1366_v44, %v532_v50  ;;  %v1000_v27 = vpop.f32.mrb[3].mxu0  ;;  %v567_v42 = vmul.f32 0.5, %v530_v48 }
 0x22a   : > { %v585_v53 = vmul.f32 %v576_v51, %v530_v48  ;;  %v577_v54 = vmul.f32 0.044715, %v533_v52  ;;  %v568_v43 = vmul.f32 0.5, %v533_v52 }
 0x22c   : > { %v594_v57 = vmul.f32 %v585_v53, %v530_v48  ;;  %v586_v58 = vmul.f32 %v577_v54, %v533_v52 }
 0x22d   : > { %v537_v59 = vpop.f32.mrb[4].mxu0 }
 0x22e   : > { %v603_v60 = vadd.f32 %v594_v57, %v530_v48  ;;  %v595_v61 = vmul.f32 %v586_v58, %v533_v52  ;;  %v1371_v62 = vadd.f32 %v1366_v44, %v537_v59  ;;  %v1003_v35 = vpop.f32.mrb[5].mxu0 }
 0x22f   : > { %v540_v0 = vpop.f32.mrb[6].mxu0 }
 0x230   : > { %v612_v1 = vmul.f32 0.7978846, %v603_v60  ;;  %v604_v6 = vadd.f32 %v595_v61, %v533_v52  ;;  %v578_v7 = vmul.f32 0.044715, %v1371_v62  ;;  %v1375_v8 = vadd.f32 %v1366_v44, %v540_v0  ;;  %v1004_v28 = vpop.f32.mrb[7].mxu0 }
 0x232   : > { %1107 = vtanh.f32 %v612_v1  ;;  %v613_v10 = vmul.f32 0.7978846, %v604_v6  ;;  %v587_v36 = vmul.f32 %v578_v7, %v1371_v62  ;;  %v579_v13 = vmul.f32 0.044715, %v1375_v8 }
 0x234   : > { %1109 = vtanh.f32 %v613_v10  ;;  %v596_v14 = vmul.f32 %v587_v36, %v1371_v62  ;;  %v588_v15 = vmul.f32 %v579_v13, %v1375_v8 }
 0x235   : > { %v545_v18 = vpop.f32.mrb[8].mxu0 }
 0x236   : > { %v597_v19 = vmul.f32 %v588_v15, %v1375_v8  ;;  %v1383_v20 = vadd.f32 %v1366_v44, %v545_v18  ;;  %v1007_v22 = vpop.f32.mrb[9].mxu0  ;;  %v605_v23 = vadd.f32 %v596_v14, %v1371_v62  ;;  %v569_v15 = vmul.f32 0.5, %v1371_v62 }
 0x237   : > { %v548_v46 = vpop.f32.mrb[10].mxu0  ;;  %v570_v18 = vmul.f32 0.5, %v1375_v8 }
 0x238   : > { %v580_v24 = vmul.f32 0.044715, %v1383_v20  ;;  %v1388_v25 = vadd.f32 %v1366_v44, %v548_v46  ;;  %v1008_v45 = vpop.f32.mrb[11].mxu0  ;;  %v606_v26 = vadd.f32 %v597_v19, %v1375_v8  ;;  %v614_v29 = vmul.f32 0.7978846, %v605_v23 }
 0x239   : > { %v571_v8 = vmul.f32 0.5, %v1383_v20 }
 0x23a   : > { %v589_v30 = vmul.f32 %v580_v24, %v1383_v20  ;;  %v581_v31 = vmul.f32 0.044715, %v1388_v25  ;;  %v615_v32 = vmul.f32 0.7978846, %v606_v26  ;;  %1111 = vtanh.f32 %v614_v29 }
 0x23c   : > { %v1108_v33 = vpop.eup %1107  ;;  %v598_v34 = vmul.f32 %v589_v30, %v1383_v20  ;;  %v590_v55 = vmul.f32 %v581_v31, %v1388_v25  ;;  %1113 = vtanh.f32 %v615_v32 }
 0x23d   : > { %v553_v56 = vpop.f32.mrb[12].mxu0  ;;  %v630_v63 = vadd.f32 1.0, %v1108_v33 }
 0x23e   : > { %v1110_v37 = vpop.eup %1109  ;;  %v599_v38 = vmul.f32 %v590_v55, %v1388_v25  ;;  %v1397_v39 = vadd.f32 %v1366_v44, %v553_v56  ;;  %v1011_v40 = vpop.f32.mrb[13].mxu0  ;;  %v607_v41 = vadd.f32 %v598_v34, %v1383_v20  ;;  %v572_v55 = vmul.f32 0.5, %v1388_v25 }
 0x23f   : > { %v556_v47 = vpop.f32.mrb[14].mxu0  ;;  %v631_v49 = vadd.f32 1.0, %v1110_v37  ;;  %v639_v57 = vmul.f32 %v630_v63, %v567_v42 }
 0x240   : > { %v582_v50 = vmul.f32 0.044715, %v1397_v39  ;;  %v557_v51 = vadd.f32 %v1366_v44, %v556_v47  ;;  %v1012_v27 = vpop.f32.mrb[15].mxu0  ;;  %v608_v53 = vadd.f32 %v599_v38, %v1388_v25  ;;  %v616_v54 = vmul.f32 0.7978846, %v607_v41 }
 0x241   : > { %v640_v58 = vmul.f32 %v631_v49, %v568_v43  ;;  %v573_v47 = vmul.f32 0.5, %v1397_v39 }
 0x242   : > { %v591_v59 = vmul.f32 %v582_v50, %v1397_v39  ;;  %v583_v60 = vmul.f32 0.044715, %v557_v51  ;;  %v617_v61 = vmul.f32 0.7978846, %v608_v53  ;;  %1115 = vtanh.f32 %v616_v54 }
 0x243   : > { %v648_v35 = vpack.c.bf16 %v640_v58, %v639_v57  ;;  %v574_v49 = vmul.f32 0.5, %v557_v51 }
 0x244   : > { %v1112_v48 = vpop.eup %1111  ;;  %v600_v52 = vmul.f32 %v591_v59, %v1397_v39  ;;  %v592_v0 = vmul.f32 %v583_v60, %v557_v51  ;;  %1117 = vtanh.f32 %v617_v61 }
 0x245   : > { %v561_v1 = vpop.f32.mrb[16].mxu0  ;;  %1034 = vmatmul.mubr.bf16.vlgmr.msra.gmra.mrb[20].mxu0 %v648_v35  ;;  %v632_v6 = vadd.f32 1.0, %v1112_v48 }
 0x246   : > { %v1114_v7 = vpop.eup %1113  ;;  %v601_v28 = vmul.f32 %v592_v0, %v557_v51  ;;  %v562_v10 = vadd.f32 %v1366_v44, %v561_v1  ;;  %v1015_v36 = vpop.f32.mrb[17].mxu0  ;;  %v609_v13 = vadd.f32 %v600_v52, %v1397_v39  ;;  %v925_v39 = vld [vmem:[%s1464_s6] ss:$0 sm:$0xff] }
 0x247   : > { %v564_v14 = vpop.f32.mrb[18].mxu0  ;;  %v633_v19 = vadd.f32 1.0, %v1114_v7  ;;  %v641_v45 = vmul.f32 %v632_v6, %v569_v15 }
 0x248   : > { %v584_v22 = vmul.f32 0.044715, %v562_v10  ;;  %v1016_v23 = vpop.f32.mrb[19].mxu0  ;;  %v610_v46 = vadd.f32 %v601_v28, %v557_v51  ;;  %v618_v24 = vmul.f32 0.7978846, %v609_v13  ;;  %v575_v54 = vmul.f32 0.5, %v562_v10 }
 0x249   : > { %v642_v26 = vmul.f32 %v633_v19, %v570_v18 }
 0x24a   : > { %v593_v29 = vmul.f32 %v584_v22, %v562_v10  ;;  %v619_v30 = vmul.f32 0.7978846, %v610_v46  ;;  %1119 = vtanh.f32 %v618_v24 }
 0x24b   : > { %v649_v31 = vpack.c.bf16 %v642_v26, %v641_v45 }
 0x24c   : > { %v1116_v44 = vpop.eup %1115  ;;  %1121 = vtanh.f32 %v619_v30  ;;  %v602_v32 = vmul.f32 %v593_v29, %v562_v10 }
 0x24d   : > { %1038 = vmatmul.mubr.bf16.vlgmr.msra.gmra.mrb[0].mxu1 %v649_v31  ;;  %v634_v33 = vadd.f32 1.0, %v1116_v44 }
 0x24e   : > { %v1118_v34 = vpop.eup %1117  ;;  %1041 = vmatprep.mubr.msk.bf16.mxu1 %vm1134_vm1, %v1133_v9  ;;  %v611_v62 = vadd.f32 %v602_v32, %v562_v10 }
 0x24f   : > { %v635_v56 = vadd.f32 1.0, %v1118_v34  ;;  %v643_v37 = vmul.f32 %v634_v33, %v571_v8 }
 0x250   : > { %v620_v63 = vmul.f32 0.7978846, %v611_v62 }
 0x251   : > { %v644_v38 = vmul.f32 %v635_v56, %v572_v55 }
 0x252   : > { %1123 = vtanh.f32 %v620_v63 }
 0x253   : > { %v650_v40 = vpack.c.bf16 %v644_v38, %v643_v37 }
 0x254   : > { %v1120_v41 = vpop.eup %1119 }
 0x255   : > { %1042 = vmatmul.mubr.bf16.gmra.mrb[4].mxu1 %v650_v40  ;;  %v636_v42 = vadd.f32 1.0, %v1120_v41 }
 0x256   : > { %v1122_v43 = vpop.eup %1121  ;;  %1045 = vmatprep.mubr.msk.bf16.mxu1 %vm1134_vm1, %v1133_v9 }
 0x257   : > { %v637_v50 = vadd.f32 1.0, %v1122_v43  ;;  %v645_v20 = vmul.f32 %v636_v42, %v573_v47 }
 0x259   : > { %v646_v27 = vmul.f32 %v637_v50, %v574_v49 }
 0x25b   : > { %v651_v25 = vpack.c.bf16 %v646_v27, %v645_v20 }
 0x25c   : > { %v1124_v53 = vpop.eup %1123 }
 0x25d   : > { %1046 = vmatmul.mubr.bf16.gmra.mrb[8].mxu1 %v651_v25  ;;  %v638_v57 = vadd.f32 1.0, %v1124_v53 }
 0x25e   : > { %1049 = vmatprep.mubr.msk.bf16.mxu1 %vm1134_vm1, %v1133_v9 }
 0x25f   : > { %v647_v58 = vmul.f32 %v638_v57, %v575_v54 }
 0x261   : > { %v652_v59 = vpack.c.bf16 %v647_v58, %v647_v58 }
 0x265   : > { %1050 = vmatmul.mubr.bf16.gmra.mrb[12].mxu1 %v652_v59 }
 0x318   : > { %v758_v51 = vpop.f32.mrb[20].mxu0 }
 0x319   : > { %v759_v60 = vadd.f32 %v925_v39, %v758_v51  ;;  %v1035_v61 = vpop.f32.mrb[21].mxu0 }
 0x31a   : > { %v761_v35 = vpop.f32.mrb[22].mxu0 }
 0x31b   : > { %v796_v48 = vadd.f32 %v1191_v2, %v759_v60  ;;  %v762_v52 = vadd.f32 %v925_v39, %v761_v35  ;;  %v1036_v0 = vpop.f32.mrb[23].mxu0 }
 0x31d   : > { %v945_v9 = vpack.c.bf16 %v796_v48, %v796_v48  ;;  %v797_v1 = vadd.f32 %v1195_v4, %v762_v52 }
 0x31f   : > { %843 = vst.msk [vmem:[%s1427_s18] sm:$0xf] %vm842_vm2, %v945_v9  ;;  %v946_v6 = vpack.c.bf16 %v797_v1, %v797_v1 }
 0x320   : > { %v766_v2 = vpop.f32.mrb[0].mxu1 }
 0x321   : > { %844 = vst.msk [vmem:[%s1427_s18 + $0x4] sm:$0xf] %vm842_vm2, %v946_v6  ;;  %v767_v7 = vadd.f32 %v925_v39, %v766_v2  ;;  %v1039_v28 = vpop.f32.mrb[1].mxu1 }
 0x322   : > { %v769_v10 = vpop.f32.mrb[2].mxu1 }
 0x323   : > { %v798_v36 = vadd.f32 %v1193_v3, %v767_v7  ;;  %v770_v13 = vadd.f32 %v925_v39, %v769_v10  ;;  %v1040_v14 = vpop.f32.mrb[3].mxu1 }
 0x325   : > { %v947_v15 = vpack.c.bf16 %v798_v36, %v798_v36  ;;  %v799_v18 = vadd.f32 %v1197_v5, %v770_v13 }
 0x327   : > { %845 = vst.msk [vmem:[%s1427_s18 + $0x8] sm:$0xf] %vm842_vm2, %v947_v15  ;;  %v948_v4 = vpack.c.bf16 %v799_v18, %v799_v18 }
 0x328   : > { %v774_v19 = vpop.f32.mrb[4].mxu1 }
 0x329   : > { %846 = vst.msk [vmem:[%s1427_s18 + $0xc] sm:$0xf] %vm842_vm2, %v948_v4  ;;  %v775_v22 = vadd.f32 %v925_v39, %v774_v19  ;;  %v1043_v23 = vpop.f32.mrb[5].mxu1 }
 0x32a   : > { %v777_v46 = vpop.f32.mrb[6].mxu1 }
 0x32b   : > { %v800_v24 = vadd.f32 %v1207_v11, %v775_v22  ;;  %v778_v45 = vadd.f32 %v925_v39, %v777_v46  ;;  %v1044_v3 = vpop.f32.mrb[7].mxu1 }
 0x32d   : > { %v949_v26 = vpack.c.bf16 %v800_v24, %v800_v24  ;;  %v801_v29 = vadd.f32 %v1209_v12, %v778_v45 }
 0x32f   : > { %847 = vst.msk [vmem:[%s1427_s18 + $0x10] sm:$0xf] %vm842_vm2, %v949_v26  ;;  %v950_v5 = vpack.c.bf16 %v801_v29, %v801_v29 }
 0x330   : > { %v782_v30 = vpop.f32.mrb[8].mxu1 }
 0x331   : > { %848 = vst.msk [vmem:[%s1427_s18 + $0x14] sm:$0xf] %vm842_vm2, %v950_v5  ;;  %v783_v31 = vadd.f32 %v925_v39, %v782_v30  ;;  %v1047_v44 = vpop.f32.mrb[9].mxu1 }
 0x332   : > { %v785_v32 = vpop.f32.mrb[10].mxu1 }
 0x333   : > { %v802_v33 = vadd.f32 %v1215_v16, %v783_v31  ;;  %v786_v11 = vadd.f32 %v925_v39, %v785_v32  ;;  %v1048_v34 = vpop.f32.mrb[11].mxu1 }
 0x335   : > { %v951_v62 = vpack.c.bf16 %v802_v33, %v802_v33  ;;  %v803_v8 = vadd.f32 %v1217_v17, %v786_v11 }
 0x337   : > { %849 = vst.msk [vmem:[%s1427_s18 + $0x18] sm:$0xf] %vm842_vm2, %v951_v62  ;;  %v952_v12 = vpack.c.bf16 %v803_v8, %v803_v8 }
 0x338   : > { %v790_v55 = vpop.f32.mrb[12].mxu1 }
 0x339   : > { %850 = vst.msk [vmem:[%s1427_s18 + $0x1c] sm:$0xf] %vm842_vm2, %v952_v12  ;;  %v791_v56 = vadd.f32 %v925_v39, %v790_v55  ;;  %v1051_v63 = vpop.f32.mrb[13].mxu1 }
 0x33a   : > { %v793_v37 = vpop.f32.mrb[14].mxu1 }
 0x33b   : > { %v804_v38 = vadd.f32 %v791_v56, %v1223_v21  ;;  %v1052_v40 = vpop.f32.mrb[15].mxu1 }
 0x33d   : > { %v953_v41 = vpack.c.bf16 %v804_v38, %v804_v38 }
 0x33f   : > { %851 = vst.msk [vmem:[%s1427_s18 + $0x20] sm:$0xf] %vm842_vm2, %v953_v41 }
 0x340 PF: > { %s17_s24 = sadd.s32 1, %s1131_s24  }
 0x341   : > { %p14_p4 = scmp.ge.s32.totalorder %s17_s24, 4  }
 0x343   :  { %16 = sbr.rel (!%p14_p4) target bundleno = 1 (0x1), region = 78 }

// kernel: mvit_forward.16
= control target key start
LH: loop header
LB: loop body
LE: loop exit
PB: predicated region body
PF: predicated region fallthrough
CT: control target
= control target key end

     0   :  { %s1119_s27 = smov 0   ;;  %s1327_s0 = inlined_call_operand.vmem [shape: bf16[144,32], index: 0, kind: input, shape index: {}]   ;;  %s1328_s1 = inlined_call_operand.vmem [shape: f32[1,32], index: 1, kind: input, shape index: {}]   ;;  %s1329_s2 = inlined_call_operand.vmem [shape: f32[1,32], index: 2, kind: input, shape index: {}]   ;;  %s1330_s3 = inlined_call_operand.vmem [shape: bf16[32,32], index: 3, kind: input, shape index: {}]   ;;  %s1331_s4 = inlined_call_operand.vmem [shape: f32[1,32], index: 4, kind: input, shape index: {}]   ;;  %s1332_s5 = inlined_call_operand.vmem [shape: bf16[32,64], index: 5, kind: input, shape index: {}]   ;;  %s1333_s6 = inlined_call_operand.vmem [shape: f32[1,64], index: 6, kind: input, shape index: {}]   ;;  %s1334_s7 = inlined_call_operand.vmem [shape: bf16[144,32], index: 7, kind: output, shape index: {0}]   ;;  %s1335_s8 = inlined_call_operand.vmem [shape: bf16[144,64], index: 8, kind: output, shape index: {1}]  }
   0x1 LB: > { %s887_s28 = sadd.s32 4294967295, %s1070_s27   ;;  %p891_p0 = scmp.ge.s32.totalorder %s1070_s27, 1  ;;  %s1070_s27 = sphi %s1119_s27, %s19_s27  }
   0x2   : > { %p266_p1 = scmp.lt.s32.totalorder %s1070_s27, 3 }
   0x4   : > { %p267_p2 = pnand %p891_p0, %p266_p1 }
   0x5   : > { %s305_s29 = smul.u32 (!%p267_p2), 9, %s887_s28  ;;  %vm344_vm0 = vcmask (!%p267_p2), 261120   ;;  %vm1073_vm1 = vmmov (!%p267_p2), 0   ;;  %vm649_vm2 = vcmask (!%p267_p2), 257024   ;;  %vm787_vm3 = vcmask (!%p267_p2), 519168  }
   0x6   : > { %270 = sbr.rel (%p267_p2) target bundleno = 588 (0x24c), region = 48 }
   0x7   : > { %p306_p3 = scmp.lt.s32.totalorder (!%p267_p2), %s305_s29, 17 }
   0xd   : > { %s1337_s29 = smov (!%p306_p3, %s305_s29), 17 }
   0xe   : > { %s1127_s30 = sshll.u32 %s1337_s29, 2 }
   0xf   : > { %s309_s11 = scalar_lea.vmem %s1327_s0, %s1127_s30  ;;  %s1264_s10 = scalar_lea.vmem %s1334_s7, %s1127_s30 }
  0x10   : > { %v952_v0 = vld [vmem:[%s309_s11] sm:$0xff]   ;;  %v967_v1 = vld [vmem:[%s309_s11 + $0x8] sm:$0xff]   ;;  %v968_v6 = vld [vmem:[%s309_s11 + $0x10] sm:$0xff]   ;;  %s1270_s13 = scalar_lea.vmem %s1335_s8, %s1127_s30 }
  0x11   : > { %v953_v2 = vunpack.c.l.bf16 %v952_v0  ;;  %v957_v3 = vunpack.c.l.bf16 %v967_v1  ;;  %v954_v4 = vunpack.c.h.bf16 %v952_v0  ;;  %v958_v5 = vunpack.c.h.bf16 %v967_v1  ;;  %v969_v13 = vld [vmem:[%s309_s11 + $0x18] sm:$0xff]   ;;  %v332_v18 = vld [vmem:[%s309_s11 + $0x20] sm:$0xf] }
  0x12   : > { %v961_v11 = vunpack.c.l.bf16 %v968_v6  ;;  %v962_v12 = vunpack.c.h.bf16 %v968_v6  ;;  %v965_v16 = vunpack.c.l.bf16 %v969_v13  ;;  %v966_v17 = vunpack.c.h.bf16 %v969_v13 }
  0x13   : > { %v345_v7 = vsel %vm344_vm0, %v953_v2, 0.0  ;;  %v351_v8 = vsel %vm344_vm0, %v957_v3, 0.0  ;;  %v348_v9 = vsel %vm344_vm0, %v954_v4, 0.0  ;;  %v354_v10 = vsel %vm344_vm0, %v958_v5, 0.0 }
  0x14   : > { %346 = vadd.xlane.f32.xlu0 %v345_v7  ;;  %352 = vadd.xlane.f32.xlu1 %v351_v8  ;;  %v357_v14 = vsel %vm344_vm0, %v961_v11, 0.0  ;;  %v360_v15 = vsel %vm344_vm0, %v962_v12, 0.0  ;;  %v363_v19 = vsel %vm344_vm0, %v965_v16, 0.0  ;;  %v366_v20 = vsel %vm344_vm0, %v966_v17, 0.0  ;;  %v1044_v7 = vld [vmem:[%s1330_s3 + $0x8] sm:$0xff]  }
  0x15   : > { %v341_v21 = vunpack.c.l.bf16 %v332_v18  ;;  %v1072_v6 = vmov 0.0   ;;  %v1045_v8 = vld [vmem:[%s1332_s5 + $0x8] sm:$0xff]  }
  0x16   : > { %984 = vmatprep.subr.bf16.mxu0 %v1072_v6  ;;  %1008 = vmatprep.subr.bf16.mxu1 %v1072_v6 }
  0x17   : > { %v369_v22 = vsel %vm344_vm0, %v341_v21, 0.0  ;;  %988 = vmatprep.mubr.msk.bf16.mxu0 %vm1073_vm1, %v1072_v6  ;;  %1012 = vmatprep.mubr.msk.bf16.mxu1 %vm1073_vm1, %v1072_v6 }
  0x18   : > { %349 = vadd.xlane.f32.xlu0 %v348_v9  ;;  %355 = vadd.xlane.f32.xlu1 %v354_v10 }
  0x1c   : > { %358 = vadd.xlane.f32.xlu0 %v357_v14  ;;  %361 = vadd.xlane.f32.xlu1 %v360_v15 }
  0x20   : > { %364 = vadd.xlane.f32.xlu0 %v363_v19  ;;  %367 = vadd.xlane.f32.xlu1 %v366_v20 }
  0x24   : > { %370 = vadd.xlane.f32.xlu0 %v369_v22 }
  0xa1   : > { %v347_v23 = vpop.xlane.xlu0 %346  ;;  %v353_v24 = vpop.xlane.xlu1 %352 }
  0xa2   : > { %v373_v25 = vmul.f32 0.03125, %v347_v23  ;;  %v375_v26 = vmul.f32 0.03125, %v353_v24 }
  0xa4   : > { %v1142_v27 = vsub.f32 %v953_v2, %v373_v25  ;;  %v1144_v28 = vsub.f32 %v957_v3, %v375_v26 }
  0xa5   : > { %v350_v29 = vpop.xlane.xlu0 %349  ;;  %v356_v30 = vpop.xlane.xlu1 %355 }
  0xa6   : > { %v374_v31 = vmul.f32 0.03125, %v350_v29  ;;  %v376_v32 = vmul.f32 0.03125, %v356_v30  ;;  %v391_v33 = vmul.f32 %v1142_v27, %v1142_v27  ;;  %v393_v34 = vmul.f32 %v1144_v28, %v1144_v28 }
  0xa8   : > { %v1150_v35 = vsub.f32 %v954_v4, %v374_v31  ;;  %v1152_v36 = vsub.f32 %v958_v5, %v376_v32  ;;  %v400_v37 = vsel %vm344_vm0, %v391_v33, 0.0  ;;  %v406_v40 = vsel %vm344_vm0, %v393_v34, 0.0  ;;  %v1042_v4 = vld [vmem:[%s1330_s3] sm:$0xff]  }
  0xa9   : > { %401 = vadd.xlane.f32.xlu1 %v400_v37  ;;  %v359_v38 = vpop.xlane.xlu0 %358  ;;  %v362_v39 = vpop.xlane.xlu1 %361  ;;  %v1043_v5 = vld [vmem:[%s1332_s5] sm:$0xff]   ;;  %985 = vmatpush3.bf16.msra.mxu0 %v1042_v4 }
  0xaa   : > { %v377_v41 = vmul.f32 0.03125, %v359_v38  ;;  %v378_v42 = vmul.f32 0.03125, %v362_v39  ;;  %v392_v43 = vmul.f32 %v1150_v35, %v1150_v35  ;;  %v394_v44 = vmul.f32 %v1152_v36, %v1152_v36  ;;  %1009 = vmatpush3.bf16.msra.mxu1 %v1043_v5  ;;  %986 = vmatprep.subr.bf16.mxu0 %v1072_v6  ;;  %v895_v34 = vld [vmem:[%s1328_s1] ss:$0 sm:$0xff] }
  0xab   : > { %1010 = vmatprep.subr.bf16.mxu1 %v1072_v6 }
  0xac   : > { %v1160_v45 = vsub.f32 %v961_v11, %v377_v41  ;;  %v1162_v46 = vsub.f32 %v962_v12, %v378_v42  ;;  %v403_v47 = vsel %vm344_vm0, %v392_v43, 0.0  ;;  %v409_v50 = vsel %vm344_vm0, %v394_v44, 0.0  ;;  %v896_v43 = vld [vmem:[%s1329_s2] ss:$0 sm:$0xff] }
  0xad   : > { %407 = vadd.xlane.f32.xlu1 %v406_v40  ;;  %404 = vadd.xlane.f32.xlu0 %v403_v47  ;;  %v365_v48 = vpop.xlane.xlu0 %364  ;;  %v368_v49 = vpop.xlane.xlu1 %367 }
  0xae   : > { %v379_v51 = vmul.f32 0.03125, %v365_v48  ;;  %v380_v52 = vmul.f32 0.03125, %v368_v49  ;;  %v395_v53 = vmul.f32 %v1160_v45, %v1160_v45  ;;  %v396_v54 = vmul.f32 %v1162_v46, %v1162_v46  ;;  %987 = vmatpush3.bf16.msra.mxu0 %v1044_v7  ;;  %1011 = vmatpush3.bf16.msra.mxu1 %v1045_v8 }
  0xb0   : > { %v1170_v55 = vsub.f32 %v965_v16, %v379_v51  ;;  %v1172_v56 = vsub.f32 %v966_v17, %v380_v52  ;;  %v412_v57 = vsel %vm344_vm0, %v395_v53, 0.0  ;;  %v415_v60 = vsel %vm344_vm0, %v396_v54, 0.0 }
  0xb1   : > { %410 = vadd.xlane.f32.xlu0 %v409_v50  ;;  %413 = vadd.xlane.f32.xlu1 %v412_v57  ;;  %v371_v58 = vpop.xlane.xlu0 %370 }
  0xb2   : > { %v381_v59 = vmul.f32 0.03125, %v371_v58  ;;  %v397_v61 = vmul.f32 %v1170_v55, %v1170_v55  ;;  %v398_v62 = vmul.f32 %v1172_v56, %v1172_v56 }
  0xb4   : > { %v1180_v63 = vsub.f32 %v341_v21, %v381_v59  ;;  %v418_v0 = vsel %vm344_vm0, %v397_v61, 0.0  ;;  %v421_v1 = vsel %vm344_vm0, %v398_v62, 0.0 }
  0xb5   : > { %416 = vadd.xlane.f32.xlu0 %v415_v60  ;;  %419 = vadd.xlane.f32.xlu1 %v418_v0 }
  0xb6   : > { %v399_v2 = vmul.f32 %v1180_v63, %v1180_v63 }
  0xb8   : > { %v424_v3 = vsel %vm344_vm0, %v399_v2, 0.0 }
  0xb9   : > { %422 = vadd.xlane.f32.xlu0 %v421_v1  ;;  %425 = vadd.xlane.f32.xlu1 %v424_v3 }
 0x136   : > { %v402_v9 = vpop.xlane.xlu1 %401 }
 0x137   : > { %v427_v10 = vmul.f32 0.03125, %v402_v9 }
 0x139   : > { %v436_v11 = vadd.f32 1e-06, %v427_v10 }
 0x13a   : > { %v408_v12 = vpop.xlane.xlu1 %407  ;;  %v405_v13 = vpop.xlane.xlu0 %404 }
 0x13b   : > { %1046 = vrsqrt.f32 %v436_v11  ;;  %v429_v14 = vmul.f32 0.03125, %v408_v12  ;;  %v428_v15 = vmul.f32 0.03125, %v405_v13 }
 0x13d   : > { %v437_v16 = vadd.f32 1e-06, %v428_v15  ;;  %v438_v17 = vadd.f32 1e-06, %v429_v14 }
 0x13e   : > { %v411_v18 = vpop.xlane.xlu0 %410  ;;  %v414_v19 = vpop.xlane.xlu1 %413 }
 0x13f   : > { %v430_v20 = vmul.f32 0.03125, %v411_v18  ;;  %1048 = vrsqrt.f32 %v437_v16  ;;  %v431_v22 = vmul.f32 0.03125, %v414_v19 }
 0x140   : > { %1050 = vrsqrt.f32 %v438_v17  ;;  %v1256_v17 = vld [vmem:[%s1333_s6] ss:$0 sm:$0xff] }
 0x141   : > { %v439_v21 = vadd.f32 1e-06, %v430_v20  ;;  %v440_v29 = vadd.f32 1e-06, %v431_v22 }
 0x142   : > { %v417_v23 = vpop.xlane.xlu0 %416  ;;  %v420_v32 = vpop.xlane.xlu1 %419 }
 0x143   : > { %v432_v24 = vmul.f32 0.03125, %v417_v23  ;;  %1052 = vrsqrt.f32 %v439_v21  ;;  %v433_v38 = vmul.f32 0.03125, %v420_v32 }
 0x145   : > { %v1047_v25 = vpop.eup %1046  ;;  %v441_v26 = vadd.f32 1e-06, %v432_v24  ;;  %v442_v48 = vadd.f32 1e-06, %v433_v38 }
 0x146   : > { %v423_v30 = vpop.xlane.xlu0 %422  ;;  %v454_v31 = vmul.f32 %v1047_v25, %v1142_v27  ;;  %v426_v27 = vpop.xlane.xlu1 %425 }
 0x147   : > { %1054 = vrsqrt.f32 %v441_v26  ;;  %v434_v33 = vmul.f32 0.03125, %v423_v30  ;;  %v435_v53 = vmul.f32 0.03125, %v426_v27 }
 0x148   : > { %1056 = vrsqrt.f32 %v440_v29  ;;  %v469_v40 = vmul.f32 %v895_v34, %v454_v31 }
 0x149   : > { %v1049_v37 = vpop.eup %1048  ;;  %v443_v42 = vadd.f32 1e-06, %v434_v33  ;;  %v444_v60 = vadd.f32 1e-06, %v435_v53 }
 0x14a   : > { %v455_v39 = vmul.f32 %v1049_v37, %v1150_v35  ;;  %v1051_v41 = vpop.eup %1050  ;;  %v484_v51 = vadd.f32 %v896_v43, %v469_v40 }
 0x14b   : > { %v456_v49 = vmul.f32 %v1051_v41, %v1144_v28  ;;  %1058 = vrsqrt.f32 %v443_v42 }
 0x14c   : > { %v470_v44 = vmul.f32 %v895_v34, %v455_v39  ;;  %1060 = vrsqrt.f32 %v442_v48 }
 0x14d   : > { %v1053_v47 = vpop.eup %1052  ;;  %v471_v58 = vmul.f32 %v895_v34, %v456_v49  ;;  %1062 = vrsqrt.f32 %v444_v60 }
 0x14e   : > { %v457_v50 = vmul.f32 %v1053_v47, %v1152_v36  ;;  %v485_v52 = vadd.f32 %v896_v43, %v470_v44 }
 0x14f   : > { %v486_v62 = vadd.f32 %v896_v43, %v471_v58 }
 0x150   : > { %v493_v35 = vpack.c.bf16 %v485_v52, %v484_v51  ;;  %v472_v54 = vmul.f32 %v895_v34, %v457_v50 }
 0x151   : > { %v1055_v57 = vpop.eup %1054 }
 0x152   : > { %989 = vmatmul.mubr.msk.bf16.vlgmr.msra.gmra.mrb[0].mxu0 %vm344_vm0, %v493_v35  ;;  %1013 = vmatmul.mubr.msk.bf16.vlgmr.msra.gmra.mrb[0].mxu1 %vm344_vm0, %v493_v35  ;;  %v1057_v59 = vpop.eup %1056  ;;  %v459_v28 = vmul.f32 %v1055_v57, %v1162_v46  ;;  %v487_v36 = vadd.f32 %v896_v43, %v472_v54 }
 0x153   : > { %992 = vmatprep.mubr.msk.bf16.mxu0 %vm1073_vm1, %v1072_v6  ;;  %1016 = vmatprep.mubr.msk.bf16.mxu1 %vm1073_vm1, %v1072_v6  ;;  %v458_v61 = vmul.f32 %v1057_v59, %v1160_v45 }
 0x154   : > { %v494_v0 = vpack.c.bf16 %v487_v36, %v486_v62  ;;  %v474_v1 = vmul.f32 %v895_v34, %v459_v28 }
 0x155   : > { %v1059_v2 = vpop.eup %1058  ;;  %v473_v3 = vmul.f32 %v895_v34, %v458_v61 }
 0x156   : > { %v1061_v4 = vpop.eup %1060  ;;  %v461_v46 = vmul.f32 %v1059_v2, %v1172_v56  ;;  %v489_v45 = vadd.f32 %v896_v43, %v474_v1 }
 0x157   : > { %v460_v5 = vmul.f32 %v1061_v4, %v1170_v55  ;;  %v488_v7 = vadd.f32 %v896_v43, %v473_v3  ;;  %v1063_v10 = vpop.eup %1062 }
 0x158   : > { %v476_v9 = vmul.f32 %v895_v34, %v461_v46  ;;  %v462_v56 = vmul.f32 %v1063_v10, %v1180_v63  ;;  %v1251_v63 = vld [vmem:[%s1331_s4] ss:$0 sm:$0xff] }
 0x159   : > { %v495_v8 = vpack.c.bf16 %v489_v45, %v488_v7  ;;  %v475_v11 = vmul.f32 %v895_v34, %v460_v5 }
 0x15a   : > { %993 = vmatmul.mubr.msk.bf16.gmra.mrb[4].mxu0 %vm344_vm0, %v494_v0  ;;  %1017 = vmatmul.mubr.msk.bf16.gmra.mrb[4].mxu1 %vm344_vm0, %v494_v0  ;;  %v491_v12 = vadd.f32 %v896_v43, %v476_v9  ;;  %v477_v14 = vmul.f32 %v895_v34, %v462_v56 }
 0x15b   : > { %996 = vmatprep.mubr.msk.bf16.mxu0 %vm1073_vm1, %v1072_v6  ;;  %1020 = vmatprep.mubr.msk.bf16.mxu1 %vm1073_vm1, %v1072_v6  ;;  %v490_v13 = vadd.f32 %v896_v43, %v475_v11 }
 0x15c   : > { %v492_v15 = vadd.f32 %v896_v43, %v477_v14 }
 0x15d   : > { %v496_v55 = vpack.c.bf16 %v491_v12, %v490_v13 }
 0x15e   : > { %v497_v16 = vpack.c.bf16 %v492_v15, %v492_v15 }
 0x162   : > { %997 = vmatmul.mubr.msk.bf16.gmra.mrb[8].mxu0 %vm344_vm0, %v495_v8  ;;  %1021 = vmatmul.mubr.msk.bf16.gmra.mrb[8].mxu1 %vm344_vm0, %v495_v8 }
 0x163   : > { %1000 = vmatprep.mubr.msk.bf16.mxu0 %vm1073_vm1, %v1072_v6  ;;  %1024 = vmatprep.mubr.msk.bf16.mxu1 %vm1073_vm1, %v1072_v6 }
 0x16a   : > { %1001 = vmatmul.mubr.msk.bf16.gmra.mrb[12].mxu0 %vm344_vm0, %v496_v55  ;;  %1025 = vmatmul.mubr.msk.bf16.gmra.mrb[12].mxu1 %vm344_vm0, %v496_v55 }
 0x16b   : > { %1004 = vmatprep.mubr.msk.bf16.mxu0 %vm1073_vm1, %v1072_v6  ;;  %1028 = vmatprep.mubr.msk.bf16.mxu1 %vm1073_vm1, %v1072_v6 }
 0x172   : > { %1005 = vmatmul.mubr.msk.bf16.gmra.mrb[16].mxu0 %vm344_vm0, %v497_v16  ;;  %1029 = vmatmul.mubr.msk.bf16.gmra.mrb[16].mxu1 %vm344_vm0, %v497_v16 }
 0x225   : > { %v574_v18 = vpop.f32.mrb[0].mxu0  ;;  %v712_v19 = vpop.f32.mrb[0].mxu1 }
 0x226   : > { %v575_v6 = vadd.f32 %v1251_v63, %v574_v18  ;;  %v713_v20 = vadd.f32 %v1256_v17, %v712_v19  ;;  %v990_v21 = vpop.f32.mrb[1].mxu0  ;;  %v1014_v22 = vpop.f32.mrb[1].mxu1 }
 0x227   : > { %v577_v23 = vpop.f32.mrb[2].mxu0  ;;  %v715_v24 = vpop.f32.mrb[2].mxu1 }
 0x228   : > { %v933_v25 = vpack.c.bf16 %v575_v6, %v575_v6  ;;  %v942_v26 = vpack.c.bf16 %v713_v20, %v713_v20  ;;  %v578_v29 = vadd.f32 %v1251_v63, %v577_v23  ;;  %v716_v30 = vadd.f32 %v1256_v17, %v715_v24  ;;  %v991_v31 = vpop.f32.mrb[3].mxu0  ;;  %v1015_v32 = vpop.f32.mrb[3].mxu1 }
 0x22a   : > { %650 = vst.msk [vmem:[%s1264_s10] sm:$0xf] %vm649_vm2, %v933_v25  ;;  %v934_v33 = vpack.c.bf16 %v578_v29, %v578_v29  ;;  %v943_v34 = vpack.c.bf16 %v716_v30, %v716_v30 }
 0x22b   : > { %788 = vst.msk [vmem:[%s1270_s13] sm:$0xf] %vm787_vm3, %v942_v26 }
 0x22c   : > { %651 = vst.msk [vmem:[%s1264_s10 + $0x4] sm:$0xf] %vm649_vm2, %v934_v33 }
 0x22d   : > { %789 = vst.msk [vmem:[%s1270_s13 + $0x4] sm:$0xf] %vm787_vm3, %v943_v34  ;;  %v582_v37 = vpop.f32.mrb[4].mxu0  ;;  %v720_v38 = vpop.f32.mrb[4].mxu1 }
 0x22e   : > { %v583_v39 = vadd.f32 %v1251_v63, %v582_v37  ;;  %v721_v40 = vadd.f32 %v1256_v17, %v720_v38  ;;  %v994_v41 = vpop.f32.mrb[5].mxu0  ;;  %v1018_v42 = vpop.f32.mrb[5].mxu1 }
 0x22f   : > { %v585_v43 = vpop.f32.mrb[6].mxu0  ;;  %v723_v27 = vpop.f32.mrb[6].mxu1 }
 0x230   : > { %v935_v44 = vpack.c.bf16 %v583_v39, %v583_v39  ;;  %v944_v47 = vpack.c.bf16 %v721_v40, %v721_v40  ;;  %v586_v48 = vadd.f32 %v1251_v63, %v585_v43  ;;  %v724_v49 = vadd.f32 %v1256_v17, %v723_v27  ;;  %v995_v50 = vpop.f32.mrb[7].mxu0  ;;  %v1019_v51 = vpop.f32.mrb[7].mxu1 }
 0x232   : > { %652 = vst.msk [vmem:[%s1264_s10 + $0x8] sm:$0xf] %vm649_vm2, %v935_v44  ;;  %v936_v52 = vpack.c.bf16 %v586_v48, %v586_v48  ;;  %v945_v53 = vpack.c.bf16 %v724_v49, %v724_v49 }
 0x233   : > { %790 = vst.msk [vmem:[%s1270_s13 + $0x8] sm:$0xf] %vm787_vm3, %v944_v47 }
 0x234   : > { %653 = vst.msk [vmem:[%s1264_s10 + $0xc] sm:$0xf] %vm649_vm2, %v936_v52 }
 0x235   : > { %791 = vst.msk [vmem:[%s1270_s13 + $0xc] sm:$0xf] %vm787_vm3, %v945_v53  ;;  %v590_v35 = vpop.f32.mrb[8].mxu0  ;;  %v728_v54 = vpop.f32.mrb[8].mxu1 }
 0x236   : > { %v591_v57 = vadd.f32 %v1251_v63, %v590_v35  ;;  %v729_v58 = vadd.f32 %v1256_v17, %v728_v54  ;;  %v998_v59 = vpop.f32.mrb[9].mxu0  ;;  %v1022_v60 = vpop.f32.mrb[9].mxu1 }
 0x237   : > { %v593_v28 = vpop.f32.mrb[10].mxu0  ;;  %v731_v36 = vpop.f32.mrb[10].mxu1 }
 0x238   : > { %v937_v61 = vpack.c.bf16 %v591_v57, %v591_v57  ;;  %v946_v62 = vpack.c.bf16 %v729_v58, %v729_v58  ;;  %v594_v0 = vadd.f32 %v1251_v63, %v593_v28  ;;  %v732_v1 = vadd.f32 %v1256_v17, %v731_v36  ;;  %v999_v2 = vpop.f32.mrb[11].mxu0  ;;  %v1023_v3 = vpop.f32.mrb[11].mxu1 }
 0x23a   : > { %654 = vst.msk [vmem:[%s1264_s10 + $0x10] sm:$0xf] %vm649_vm2, %v937_v61  ;;  %v938_v4 = vpack.c.bf16 %v594_v0, %v594_v0  ;;  %v947_v46 = vpack.c.bf16 %v732_v1, %v732_v1 }
 0x23b   : > { %792 = vst.msk [vmem:[%s1270_s13 + $0x10] sm:$0xf] %vm787_vm3, %v946_v62 }
 0x23c   : > { %655 = vst.msk [vmem:[%s1264_s10 + $0x14] sm:$0xf] %vm649_vm2, %v938_v4 }
 0x23d   : > { %793 = vst.msk [vmem:[%s1270_s13 + $0x14] sm:$0xf] %vm787_vm3, %v947_v46  ;;  %v598_v45 = vpop.f32.mrb[12].mxu0  ;;  %v736_v5 = vpop.f32.mrb[12].mxu1 }
 0x23e   : > { %v599_v7 = vadd.f32 %v1251_v63, %v598_v45  ;;  %v737_v8 = vadd.f32 %v1256_v17, %v736_v5  ;;  %v1002_v9 = vpop.f32.mrb[13].mxu0  ;;  %v1026_v10 = vpop.f32.mrb[13].mxu1 }
 0x23f   : > { %v601_v11 = vpop.f32.mrb[14].mxu0  ;;  %v739_v56 = vpop.f32.mrb[14].mxu1 }
 0x240   : > { %v939_v12 = vpack.c.bf16 %v599_v7, %v599_v7  ;;  %v948_v13 = vpack.c.bf16 %v737_v8, %v737_v8  ;;  %v602_v55 = vadd.f32 %v1251_v63, %v601_v11  ;;  %v740_v14 = vadd.f32 %v1256_v17, %v739_v56  ;;  %v1003_v15 = vpop.f32.mrb[15].mxu0  ;;  %v1027_v16 = vpop.f32.mrb[15].mxu1 }
 0x242   : > { %656 = vst.msk [vmem:[%s1264_s10 + $0x18] sm:$0xf] %vm649_vm2, %v939_v12  ;;  %v940_v18 = vpack.c.bf16 %v602_v55, %v602_v55  ;;  %v949_v19 = vpack.c.bf16 %v740_v14, %v740_v14 }
 0x243   : > { %794 = vst.msk [vmem:[%s1270_s13 + $0x18] sm:$0xf] %vm787_vm3, %v948_v13 }
 0x244   : > { %657 = vst.msk [vmem:[%s1264_s10 + $0x1c] sm:$0xf] %vm649_vm2, %v940_v18 }
 0x245   : > { %795 = vst.msk [vmem:[%s1270_s13 + $0x1c] sm:$0xf] %vm787_vm3, %v949_v19  ;;  %v606_v6 = vpop.f32.mrb[16].mxu0  ;;  %v744_v20 = vpop.f32.mrb[16].mxu1 }
 0x246   : > { %v607_v21 = vadd.f32 %v1251_v63, %v606_v6  ;;  %v745_v22 = vadd.f32 %v1256_v17, %v744_v20  ;;  %v1006_v23 = vpop.f32.mrb[17].mxu0  ;;  %v1030_v24 = vpop.f32.mrb[17].mxu1 }
 0x247   : > { %v609_v25 = vpop.f32.mrb[18].mxu0  ;;  %v747_v26 = vpop.f32.mrb[18].mxu1 }
 0x248   : > { %v941_v29 = vpack.c.bf16 %v607_v21, %v607_v21  ;;  %v950_v30 = vpack.c.bf16 %v745_v22, %v745_v22  ;;  %v1007_v31 = vpop.f32.mrb[19].mxu0  ;;  %v1031_v32 = vpop.f32.mrb[19].mxu1 }
 0x24a   : > { %658 = vst.msk [vmem:[%s1264_s10 + $0x20] sm:$0xf] %vm649_vm2, %v941_v29 }
 0x24b   : > { %796 = vst.msk [vmem:[%s1270_s13 + $0x20] sm:$0xf] %vm787_vm3, %v950_v30 }
 0x24c PF: > { %s19_s27 = sadd.s32 1, %s1070_s27  }
 0x24d   : > { %p16_p4 = scmp.ge.s32.totalorder %s19_s27, 4  }
 0x24f   :  { %18 = sbr.rel (!%p16_p4) target bundleno = 1 (0x1), region = 90 }

// kernel: mvit_forward.18
= control target key start
LH: loop header
LB: loop body
LE: loop exit
PB: predicated region body
PF: predicated region fallthrough
CT: control target
= control target key end

     0   :  { %s1537_s24 = smov 0   ;;  %s1957_s0 = inlined_call_operand.vmem [shape: bf16[2,1,64], index: 0, kind: input, shape index: {}]   ;;  %s1958_s1 = inlined_call_operand.vmem [shape: bf16[2,16,27,64], index: 1, kind: input, shape index: {}]   ;;  %s1959_s2 = inlined_call_operand.vmem [shape: f32[27,64], index: 2, kind: input, shape index: {}]   ;;  %s1960_s3 = inlined_call_operand.vmem [shape: f32[1,64], index: 3, kind: input, shape index: {}]   ;;  %s1961_s4 = inlined_call_operand.vmem [shape: f32[1,64], index: 4, kind: input, shape index: {}]   ;;  %s1962_s5 = inlined_call_operand.vmem [shape: f32[64,8], index: 5, kind: input, shape index: {}]   ;;  %s1963_s6 = inlined_call_operand.vmem [shape: f32[8,64], index: 6, kind: input, shape index: {}]   ;;  %s1964_s7 = inlined_call_operand.vmem [shape: bf16[2,17,64], index: 7, kind: output, shape index: {}]  }
   0x1 LB: > { %s1230_s25 = sadd.s32 4294967295, %s1492_s24   ;;  %p1234_p0 = scmp.ge.s32.totalorder %s1492_s24, 1  ;;  %s1492_s24 = sphi %s1537_s24, %s17_s24  }
   0x2   : > { %p245_p1 = scmp.lt.s32.totalorder %s1492_s24, 3 }
   0x4   : > { %p246_p2 = pnand %p1234_p0, %p245_p1 }
   0x5   : > { %v742_v0 = vld [vmem:[%s1962_s5] sm:$0xff] (!%p246_p2)  ;;  %v743_v1 = vld [vmem:[%s1962_s5 + $0x8] sm:$0xff] (!%p246_p2)  ;;  %v744_v2 = vld [vmem:[%s1962_s5 + $0x10] sm:$0xff] (!%p246_p2)  ;;  %v1965_v3 = vmov (!%p246_p2), 0.0|0.0   ;;  %vm1495_vm0 = vmmov (!%p246_p2), 0   ;;  %v1496_v6 = vmov (!%p246_p2), 0.0  }
   0x6   : > { %249 = sbr.rel (%p246_p2) target bundleno = 996 (0x3e4), region = 48  ;;  %1442 = vmatprep.subr.bf16.mxu0 (!%p246_p2), %v1965_v3  ;;  %v1555_v4 = vpack.c.bf16 (!%p246_p2), %v743_v1, %v742_v0  ;;  %v745_v5 = vld [vmem:[%s1962_s5 + $0x18] sm:$0xff] (!%p246_p2)  ;;  %1386 = vmatprep.mubr.msk.f32.mxu0 (!%p246_p2), %vm1495_vm0, %v1496_v6  ;;  %p280_p3 = scmp.lt.s32.totalorder (!%p246_p2), %s1230_s25, 1  ;;  %v746_v8 = vld [vmem:[%s1962_s5 + $0x20] sm:$0xff] (!%p246_p2)  ;;  %v747_v9 = vld [vmem:[%s1962_s5 + $0x28] sm:$0xff] (!%p246_p2)  ;;  %vm489_vm1 = vcmask (!%p246_p2), 523264  }
   0x7   : > { %1395 = vmatprep.subr.mxu1 (!%p246_p2), %v1496_v6  ;;  %1397 = vmatprep.mubr.msk.f32.mxu1 (!%p246_p2), %vm1495_vm0, %v1496_v6  ;;  %v1566_v7 = vpack.c.bf16 (!%p246_p2), %v745_v5, %v744_v2  ;;  %v748_v10 = vld [vmem:[%s1962_s5 + $0x30] sm:$0xff] (!%p246_p2)  ;;  %v749_v11 = vld [vmem:[%s1962_s5 + $0x38] sm:$0xff] (!%p246_p2)  ;;  %v1596_v13 = vpack.c.bf16 (!%p246_p2), %v747_v9, %v746_v8  ;;  %v1621_v40 = vld [vmem:[%s1959_s2] sm:$0xff] (!%p246_p2)  ;;  %vm495_vm2 = vcmask (!%p246_p2), 518144   ;;  %vm717_vm3 = vcmask (!%p246_p2), 1042434  }
   0x8   : > { %1444 = vmatpush3.bf16.msra.mxu0 (!%p246_p2), %v1555_v4  ;;  %v1598_v14 = vpack.c.bf16 (!%p246_p2), %v749_v11, %v748_v10  ;;  %v1626_v41 = vld [vmem:[%s1959_s2 + $0x8] sm:$0xff] (!%p246_p2)  ;;  %v1631_v42 = vld [vmem:[%s1959_s2 + $0x10] sm:$0xff] (!%p246_p2)  ;;  %v1636_v43 = vld [vmem:[%s1959_s2 + $0x18] sm:$0x7] (!%p246_p2)  ;;  %vm719_vm4 = vcmask (!%p246_p2), 1043459   ;;  %vm721_vm5 = vcmask (!%p246_p2), 1044484  }
   0x9   : > { %1445 = vmatprep.subr.bf16.mxu0 (!%p246_p2), %v1965_v3  ;;  %vm723_vm6 = vcmask (!%p246_p2), 1045509   ;;  %vm725_vm7 = vcmask (!%p246_p2), 1046534   ;;  %vm727_vm8 = vcmask (!%p246_p2), 1047559   ;;  %vm740_vm9 = vcmask (!%p246_p2), 1040384  }
   0xa   : > { %vm729_vm10 = vcmask (!%p246_p2), 1041409   ;;  %vm843_vm11 = vcmask (!%p246_p2), 64512   ;;  %vm1157_vm12 = vcmask (!%p246_p2), 519168   ;;  %vm1160_vm13 = vcmask (!%p246_p2), 516096  }
   0xb   : > { %vm1161_vm14 = vsmask.f32 (!%p246_p2), 256 }
   0xc   : > { %1447 = vmatpush3.bf16.msra.mxu0 (!%p246_p2), %v1566_v7  ;;  %vm1162_vm15 = vmand (!%p246_p2), %vm1160_vm13, %vm1161_vm14 }
   0xd   : > { %s1969_s25 = smov (!%p280_p3, %s1230_s25), 1  ;;  %1448 = vmatprep.subr.bf16.mxu0 %v1965_v3 }
   0xe   : > { %s282_s21 = scalar_lea.vmem %s1957_s0, %s1969_s25  ;;  %s1257_s22 = sshll.u32 %s1969_s25, 8 }
   0xf   : > { %s1591_s27 = scalar_lea.vmem %s1958_s1, %s1257_s22  ;;  %v1593_v12 = vld [vmem:[%s282_s21] sm:$0x1]  ;;  %s1468_s17 = smul.u32 12, %s1969_s25 }
  0x10   : > { %v1262_v15 = vld [vmem:[%s1591_s27] sm:$0xff]   ;;  %v1602_v16 = vld [vmem:[%s1591_s27 + $0x8] ss:$16 sps:$4 sm:$0xff]   ;;  %v296_v17 = vld [vmem:[%s1591_s27 + $0xc] sm:$0x3]  ;;  %v700_v18 = vunpack.c.l.bf16 %v1593_v12  ;;  %1450 = vmatpush3.bf16.msra.mxu0 %v1596_v13 }
  0x11   : > { %v1263_v19 = vunpack.c.l.bf16 %v1262_v15  ;;  %v1264_v20 = vunpack.c.h.bf16 %v1262_v15  ;;  %v1325_v21 = vld [vmem:[%s1591_s27 + $0x10] sm:$0xff]   ;;  %v300_v22 = vld [vmem:[%s1591_s27 + $0x1c] sm:$0x3]  ;;  %v1326_v23 = vld [vmem:[%s1591_s27 + $0x20] sm:$0xff]   ;;  %v359_v24 = vunpack.c.l.bf16 %v1602_v16  ;;  %v360_v25 = vunpack.c.l.bf16 %v296_v17  ;;  %1451 = vmatprep.subr.bf16.mxu0 %v1965_v3  ;;  %s292_s22 = scalar_lea.vmem %s1964_s7, %s1468_s17 }
  0x12   : > { %v1267_v26 = vunpack.c.l.bf16 %v1325_v21  ;;  %v1268_v27 = vunpack.c.h.bf16 %v1325_v21  ;;  %v1271_v28 = vunpack.c.l.bf16 %v1326_v23  ;;  %v1272_v29 = vunpack.c.h.bf16 %v1326_v23  ;;  %v303_v30 = vld [vmem:[%s1591_s27 + $0x28] ss:$16 sps:$4 sm:$0xff]   ;;  %v304_v31 = vld [vmem:[%s1591_s27 + $0x2c] sm:$0x3]  ;;  %v1327_v32 = vld [vmem:[%s1591_s27 + $0x30] sm:$0xff]  }
  0x13   : > { %v1275_v33 = vunpack.c.l.bf16 %v1327_v32  ;;  %v1276_v34 = vunpack.c.h.bf16 %v1327_v32  ;;  %v308_v35 = vld [vmem:[%s1591_s27 + $0x3c] sm:$0x3]  ;;  %v1328_v36 = vld [vmem:[%s1591_s27 + $0x40] sm:$0xff]   ;;  %v311_v37 = vld [vmem:[%s1591_s27 + $0x48] ss:$16 sps:$4 sm:$0xff]   ;;  %v363_v38 = vunpack.c.h.bf16 %v1602_v16  ;;  %v364_v39 = vunpack.c.l.bf16 %v300_v22 }
  0x14   : > { %v1279_v44 = vunpack.c.l.bf16 %v1328_v36  ;;  %v1280_v45 = vunpack.c.h.bf16 %v1328_v36  ;;  %v312_v46 = vld [vmem:[%s1591_s27 + $0x4c] sm:$0x3]  ;;  %v1329_v47 = vld [vmem:[%s1591_s27 + $0x50] sm:$0xff]   ;;  %v316_v48 = vld [vmem:[%s1591_s27 + $0x5c] sm:$0x3]  ;;  %v367_v49 = vunpack.c.l.bf16 %v303_v30  ;;  %v368_v50 = vunpack.c.l.bf16 %v304_v31  ;;  %1453 = vmatpush3.bf16.msra.mxu0 %v1598_v14 }
  0x15   : > { %v1283_v51 = vunpack.c.l.bf16 %v1329_v47  ;;  %v1284_v52 = vunpack.c.h.bf16 %v1329_v47  ;;  %v1330_v53 = vld [vmem:[%s1591_s27 + $0x60] sm:$0xff]   ;;  %v1645_v54 = vld [vmem:[%s1591_s27 + $0x68] ss:$16 sps:$4 sm:$0xff]   ;;  %v320_v55 = vld [vmem:[%s1591_s27 + $0x6c] sm:$0x3]  ;;  %v371_v56 = vunpack.c.h.bf16 %v303_v30  ;;  %v372_v57 = vunpack.c.l.bf16 %v308_v35  ;;  %1431 = vmatprep.subr.mxu0 %v1496_v6 }
  0x16   : > { %v1287_v58 = vunpack.c.l.bf16 %v1330_v53  ;;  %v1288_v59 = vunpack.c.h.bf16 %v1330_v53  ;;  %v375_v60 = vunpack.c.l.bf16 %v311_v37  ;;  %v376_v61 = vunpack.c.l.bf16 %v312_v46 }
  0x17   : > { %v379_v62 = vunpack.c.h.bf16 %v311_v37  ;;  %v380_v63 = vunpack.c.l.bf16 %v316_v48  ;;  %v383_v0 = vunpack.c.l.bf16 %v1645_v54  ;;  %v384_v1 = vunpack.c.l.bf16 %v320_v55 }
  0x18   : > { %v425_v2 = vmul.f32 %v1263_v19, %v1621_v40  ;;  %v426_v5 = vmul.f32 %v1264_v20, %v1626_v41  ;;  %v427_v8 = vmul.f32 %v1631_v42, %v359_v24  ;;  %v428_v9 = vmul.f32 %v1636_v43, %v360_v25 }
  0x19   : > { %v429_v10 = vmul.f32 %v1267_v26, %v1621_v40  ;;  %v430_v11 = vmul.f32 %v1268_v27, %v1626_v41  ;;  %v431_v15 = vmul.f32 %v1631_v42, %v363_v38  ;;  %v432_v16 = vmul.f32 %v1636_v43, %v364_v39 }
  0x1a   : > { %v433_v17 = vmul.f32 %v1271_v28, %v1621_v40  ;;  %v434_v19 = vmul.f32 %v1272_v29, %v1626_v41  ;;  %v435_v20 = vmul.f32 %v1631_v42, %v367_v49  ;;  %v436_v21 = vmul.f32 %v1636_v43, %v368_v50 }
  0x1b   : > { %v437_v22 = vmul.f32 %v1275_v33, %v1621_v40  ;;  %v438_v23 = vmul.f32 %v1276_v34, %v1626_v41  ;;  %v439_v24 = vmul.f32 %v1631_v42, %v371_v56  ;;  %v440_v25 = vmul.f32 %v1636_v43, %v372_v57 }
  0x1c   : > { %v441_v26 = vmul.f32 %v1279_v44, %v1621_v40  ;;  %v442_v27 = vmul.f32 %v1280_v45, %v1626_v41  ;;  %v443_v28 = vmul.f32 %v1631_v42, %v375_v60  ;;  %v444_v29 = vmul.f32 %v1636_v43, %v376_v61 }
  0x1d   : > { %v445_v30 = vmul.f32 %v1283_v51, %v1621_v40  ;;  %v446_v31 = vmul.f32 %v1284_v52, %v1626_v41  ;;  %v447_v32 = vmul.f32 %v1631_v42, %v379_v62  ;;  %v448_v33 = vmul.f32 %v1636_v43, %v380_v63 }
  0x1e   : > { %v449_v34 = vmul.f32 %v1287_v58, %v1621_v40  ;;  %v450_v35 = vmul.f32 %v1288_v59, %v1626_v41  ;;  %v1678_v36 = vmul.f32 %v1631_v42, %v383_v0  ;;  %v1681_v37 = vmul.f32 %v1636_v43, %v384_v1 }
  0x1f   : > { %v490_v38 = vsel %vm489_vm1, %v425_v2, 0.0  ;;  %v491_v39 = vsel %vm489_vm1, %v426_v5, 0.0  ;;  %v493_v44 = vsel %vm489_vm1, %v427_v8, 0.0  ;;  %v496_v45 = vsel %vm495_vm2, %v428_v9, 0.0 }
  0x20   : > { %v492_v46 = vadd.f32 %v491_v39, %v490_v38  ;;  %v504_v47 = vsel %vm489_vm1, %v429_v10, 0.0  ;;  %v505_v48 = vsel %vm489_vm1, %v430_v11, 0.0  ;;  %v507_v49 = vsel %vm489_vm1, %v431_v15, 0.0 }
  0x21   : > { %v506_v50 = vadd.f32 %v505_v48, %v504_v47  ;;  %v509_v51 = vsel %vm495_vm2, %v432_v16, 0.0  ;;  %v517_v52 = vsel %vm489_vm1, %v433_v17, 0.0  ;;  %v518_v53 = vsel %vm489_vm1, %v434_v19, 0.0 }
  0x22   : > { %v494_v55 = vadd.f32 %v493_v44, %v492_v46  ;;  %v519_v56 = vadd.f32 %v518_v53, %v517_v52  ;;  %v520_v57 = vsel %vm489_vm1, %v435_v20, 0.0  ;;  %v522_v58 = vsel %vm495_vm2, %v436_v21, 0.0 }
  0x23   : > { %v508_v59 = vadd.f32 %v507_v49, %v506_v50  ;;  %v530_v60 = vsel %vm489_vm1, %v437_v22, 0.0  ;;  %v531_v61 = vsel %vm489_vm1, %v438_v23, 0.0  ;;  %v533_v62 = vsel %vm489_vm1, %v439_v24, 0.0 }
  0x24   : > { %v497_v63 = vadd.f32 %v496_v45, %v494_v55  ;;  %v521_v0 = vadd.f32 %v520_v57, %v519_v56  ;;  %v532_v1 = vadd.f32 %v531_v61, %v530_v60  ;;  %v535_v2 = vsel %vm495_vm2, %v440_v25, 0.0 }
  0x25   : > { %v510_v5 = vadd.f32 %v509_v51, %v508_v59  ;;  %v543_v8 = vsel %vm489_vm1, %v441_v26, 0.0  ;;  %v544_v9 = vsel %vm489_vm1, %v442_v27, 0.0  ;;  %v546_v10 = vsel %vm489_vm1, %v443_v28, 0.0  ;;  %v1712_v59 = vld [vmem:[%s1591_s27 + $0x70] sm:$0xff]  }
  0x26   : > { %v498_v11 = vrot.slane %v497_v63, 4  ;;  %v523_v15 = vadd.f32 %v522_v58, %v521_v0  ;;  %v534_v16 = vadd.f32 %v533_v62, %v532_v1  ;;  %v545_v17 = vadd.f32 %v544_v9, %v543_v8 }
  0x27   : > { %v511_v19 = vrot.slane %v510_v5, 4  ;;  %v548_v20 = vsel %vm495_vm2, %v444_v29, 0.0  ;;  %v556_v21 = vsel %vm489_vm1, %v445_v30, 0.0  ;;  %v557_v22 = vsel %vm489_vm1, %v446_v31, 0.0 }
  0x28   : > { %v499_v23 = vadd.f32 %v498_v11, %v497_v63  ;;  %v524_v24 = vrot.slane %v523_v15, 4  ;;  %v536_v25 = vadd.f32 %v535_v2, %v534_v16  ;;  %v547_v38 = vadd.f32 %v546_v10, %v545_v17 }
  0x29   : > { %v512_v26 = vadd.f32 %v511_v19, %v510_v5  ;;  %v558_v27 = vadd.f32 %v557_v22, %v556_v21  ;;  %v559_v28 = vsel %vm489_vm1, %v447_v32, 0.0  ;;  %v561_v39 = vsel %vm495_vm2, %v448_v33, 0.0 }
  0x2a   : > { %v500_v44 = vrot.slane %v499_v23, 2  ;;  %v525_v45 = vadd.f32 %v524_v24, %v523_v15  ;;  %v537_v46 = vrot.slane %v536_v25, 4  ;;  %v549_v29 = vadd.f32 %v548_v20, %v547_v38 }
  0x2b   : > { %v513_v47 = vrot.slane %v512_v26, 2  ;;  %v560_v30 = vadd.f32 %v559_v28, %v558_v27  ;;  %v569_v31 = vsel %vm489_vm1, %v449_v34, 0.0  ;;  %v570_v48 = vsel %vm489_vm1, %v450_v35, 0.0  ;;  %v1732_v27 = vld [vmem:[%s1591_s27 + $0xb0] sm:$0xff]  }
  0x2c   : > { %v501_v49 = vadd.f32 %v500_v44, %v499_v23  ;;  %v526_v50 = vrot.slane %v525_v45, 2  ;;  %v538_v51 = vadd.f32 %v537_v46, %v536_v25  ;;  %v550_v52 = vrot.slane %v549_v29, 4  ;;  %v1727_v23 = vld [vmem:[%s1591_s27 + $0xa0] sm:$0xff]  }
  0x2d   : > { %v514_v32 = vadd.f32 %v513_v47, %v512_v26  ;;  %v562_v53 = vadd.f32 %v561_v39, %v560_v30  ;;  %v571_v33 = vadd.f32 %v570_v48, %v569_v31  ;;  %v572_v55 = vsel %vm489_vm1, %v1678_v36, 0.0  ;;  %v1717_v36 = vld [vmem:[%s1591_s27 + $0x80] sm:$0xff]  }
  0x2e   : > { %v502_v56 = vrot.slane %v501_v49, 1  ;;  %v527_v57 = vadd.f32 %v526_v50, %v525_v45  ;;  %v539_v58 = vrot.slane %v538_v51, 2  ;;  %v551_v34 = vadd.f32 %v550_v52, %v549_v29  ;;  %v1737_v46 = vld [vmem:[%s1591_s27 + $0xc0] sm:$0xff]   ;;  %v1740_v29 = vld [vmem:[%s1591_s27 + $0xd0] sm:$0xff]   ;;  %v324_v52 = vld [vmem:[%s1591_s27 + $0x7c] sm:$0x3] }
  0x2f   : > { %v515_v35 = vrot.slane %v514_v32, 1  ;;  %v563_v60 = vrot.slane %v562_v53, 4  ;;  %v573_v61 = vadd.f32 %v572_v55, %v571_v33  ;;  %v574_v62 = vsel %vm495_vm2, %v1681_v37, 0.0  ;;  %v1722_v37 = vld [vmem:[%s1591_s27 + $0x90] sm:$0xff]  }
  0x30   : > { %v503_v63 = vadd.f32 %v502_v56, %v501_v49  ;;  %v528_v0 = vrot.slane %v527_v57, 1  ;;  %v540_v1 = vadd.f32 %v539_v58, %v538_v51  ;;  %v552_v2 = vrot.slane %v551_v34, 2  ;;  %v1746_v49 = vld [vmem:[%s1591_s27 + $0xe0] sm:$0xff]   ;;  %v328_v56 = vld [vmem:[%s1591_s27 + $0x8c] sm:$0x3] }
  0x31   : > { %v516_v5 = vadd.f32 %v515_v35, %v514_v32  ;;  %v564_v8 = vadd.f32 %v563_v60, %v562_v53  ;;  %v575_v9 = vadd.f32 %v574_v62, %v573_v61  ;;  %v1291_v10 = vunpack.c.l.bf16 %v1712_v59  ;;  %v327_v32 = vld [vmem:[%s1591_s27 + $0x88] ss:$16 sps:$4 sm:$0xff]  }
  0x32   : > { %v529_v11 = vadd.f32 %v528_v0, %v527_v57  ;;  %v541_v15 = vrot.slane %v540_v1, 1  ;;  %v553_v16 = vadd.f32 %v552_v2, %v551_v34  ;;  %v1292_v17 = vunpack.c.h.bf16 %v1712_v59  ;;  %v332_v57 = vld [vmem:[%s1591_s27 + $0x9c] sm:$0x3]  ;;  %v335_v62 = vld [vmem:[%s1591_s27 + $0xa8] ss:$16 sps:$4 sm:$0xff]  }
  0x33   : > { %v565_v19 = vrot.slane %v564_v8, 2  ;;  %v576_v20 = vrot.slane %v575_v9, 4  ;;  %v718_v21 = vsel %vm717_vm3, %v516_v5, %v503_v63  ;;  %v1295_v22 = vunpack.c.l.bf16 %v1717_v36  ;;  %v336_v63 = vld [vmem:[%s1591_s27 + $0xac] sm:$0x3]  ;;  %v340_v0 = vld [vmem:[%s1591_s27 + $0xbc] sm:$0x3] }
  0x34   : > { %v542_v24 = vadd.f32 %v541_v15, %v540_v1  ;;  %v554_v25 = vrot.slane %v553_v16, 1  ;;  %v720_v38 = vsel %vm719_vm4, %v529_v11, %v718_v21  ;;  %v1296_v26 = vunpack.c.h.bf16 %v1717_v36  ;;  %v343_v5 = vld [vmem:[%s1591_s27 + $0xc8] ss:$16 sps:$4 sm:$0xff]  }
  0x35   : > { %v566_v28 = vadd.f32 %v565_v19, %v564_v8  ;;  %v577_v39 = vadd.f32 %v576_v20, %v575_v9  ;;  %v1299_v44 = vunpack.c.l.bf16 %v1722_v37  ;;  %v1300_v45 = vunpack.c.h.bf16 %v1722_v37  ;;  %v344_v8 = vld [vmem:[%s1591_s27 + $0xcc] sm:$0x3]  ;;  %v348_v9 = vld [vmem:[%s1591_s27 + $0xdc] sm:$0x3] }
  0x36   : > { %v555_v47 = vadd.f32 %v554_v25, %v553_v16  ;;  %v722_v30 = vsel %vm721_vm5, %v542_v24, %v720_v38  ;;  %v1303_v31 = vunpack.c.l.bf16 %v1727_v23  ;;  %v1304_v48 = vunpack.c.h.bf16 %v1727_v23  ;;  %v1770_v24 = vld [vmem:[%s1591_s27 + $0xe8] ss:$16 sps:$4 sm:$0xff]   ;;  %v352_v25 = vld [vmem:[%s1591_s27 + $0xec] sm:$0x3] }
  0x37   : > { %v567_v50 = vrot.slane %v566_v28, 1  ;;  %v578_v51 = vrot.slane %v577_v39, 2  ;;  %v1307_v53 = vunpack.c.l.bf16 %v1732_v27  ;;  %v1308_v33 = vunpack.c.h.bf16 %v1732_v27 }
  0x38   : > { %v724_v55 = vsel %vm723_vm6, %v555_v47, %v722_v30  ;;  %v1311_v58 = vunpack.c.l.bf16 %v1737_v46  ;;  %v1312_v34 = vunpack.c.h.bf16 %v1737_v46  ;;  %v1315_v35 = vunpack.c.l.bf16 %v1740_v29 }
  0x39   : > { %v568_v60 = vadd.f32 %v567_v50, %v566_v28  ;;  %v579_v61 = vadd.f32 %v578_v51, %v577_v39  ;;  %v1316_v1 = vunpack.c.h.bf16 %v1740_v29  ;;  %v1319_v2 = vunpack.c.l.bf16 %v1746_v49 }
  0x3a   : > { %v1320_v11 = vunpack.c.h.bf16 %v1746_v49  ;;  %v387_v15 = vunpack.c.h.bf16 %v1645_v54  ;;  %v388_v16 = vunpack.c.l.bf16 %v324_v52  ;;  %v391_v19 = vunpack.c.l.bf16 %v327_v32 }
  0x3b   : > { %v580_v20 = vrot.slane %v579_v61, 1  ;;  %v726_v21 = vsel %vm725_vm7, %v568_v60, %v724_v55  ;;  %v392_v38 = vunpack.c.l.bf16 %v328_v56  ;;  %v395_v27 = vunpack.c.h.bf16 %v327_v32 }
  0x3c   : > { %v396_v28 = vunpack.c.l.bf16 %v332_v57  ;;  %v399_v39 = vunpack.c.l.bf16 %v335_v62  ;;  %v400_v46 = vunpack.c.l.bf16 %v336_v63  ;;  %v403_v29 = vunpack.c.h.bf16 %v335_v62 }
  0x3d   : > { %v581_v47 = vadd.f32 %v580_v20, %v579_v61  ;;  %v404_v30 = vunpack.c.l.bf16 %v340_v0  ;;  %v407_v50 = vunpack.c.l.bf16 %v343_v5  ;;  %v408_v49 = vunpack.c.l.bf16 %v344_v8 }
  0x3e   : > { %v411_v51 = vunpack.c.h.bf16 %v343_v5  ;;  %v412_v54 = vunpack.c.l.bf16 %v348_v9  ;;  %v415_v52 = vunpack.c.l.bf16 %v1770_v24  ;;  %v416_v3 = vunpack.c.l.bf16 %v352_v25 }
  0x3f   : > { %v728_v55 = vsel %vm727_vm8, %v581_v47, %v726_v21  ;;  %v453_v56 = vmul.f32 %v1291_v10, %v1621_v40  ;;  %v454_v32 = vmul.f32 %v1292_v17, %v1626_v41  ;;  %v455_v57 = vmul.f32 %v1631_v42, %v387_v15 }
  0x40   : > { %v1785_v60 = vsel %vm740_vm9, %v700_v18, %v728_v55  ;;  %v456_v61 = vmul.f32 %v1636_v43, %v388_v16  ;;  %v457_v62 = vmul.f32 %v1295_v22, %v1621_v40  ;;  %v458_v10 = vmul.f32 %v1296_v26, %v1626_v41 }
  0x41   : > { %1387 = vmatmul.mubr.msk.f32.vlgmr.msra.gmra.mrb[0].mxu0 %vm489_vm1, %v1785_v60  ;;  %v459_v59 = vmul.f32 %v1631_v42, %v391_v19  ;;  %v460_v12 = vmul.f32 %v1636_v43, %v392_v38  ;;  %v461_v18 = vmul.f32 %v1299_v44, %v1621_v40  ;;  %v462_v17 = vmul.f32 %v1300_v45, %v1626_v41 }
  0x42   : > { %1389 = vmatprep.mubr.msk.f32.mxu0 %vm1495_vm0, %v1496_v6  ;;  %v463_v36 = vmul.f32 %v1631_v42, %v395_v27  ;;  %v464_v22 = vmul.f32 %v1636_v43, %v396_v28  ;;  %v465_v26 = vmul.f32 %v1303_v31, %v1621_v40  ;;  %v466_v63 = vmul.f32 %v1304_v48, %v1626_v41 }
  0x43   : > { %v467_v44 = vmul.f32 %v1631_v42, %v399_v39  ;;  %v468_v37 = vmul.f32 %v1636_v43, %v400_v46  ;;  %v469_v45 = vmul.f32 %v1307_v53, %v1621_v40  ;;  %v470_v0 = vmul.f32 %v1308_v33, %v1626_v41 }
  0x44   : > { %v471_v5 = vmul.f32 %v1631_v42, %v403_v29  ;;  %v472_v8 = vmul.f32 %v1636_v43, %v404_v30  ;;  %v473_v9 = vmul.f32 %v1311_v58, %v1621_v40  ;;  %v474_v31 = vmul.f32 %v1312_v34, %v1626_v41 }
  0x45   : > { %v475_v15 = vmul.f32 %v1631_v42, %v407_v50  ;;  %v476_v23 = vmul.f32 %v1636_v43, %v408_v49  ;;  %v477_v48 = vmul.f32 %v1315_v35, %v1621_v40  ;;  %v478_v16 = vmul.f32 %v1316_v1, %v1626_v41 }
  0x46   : > { %v1827_v53 = vmul.f32 %v1631_v42, %v411_v51  ;;  %v1830_v33 = vmul.f32 %v1636_v43, %v412_v54  ;;  %v1833_v19 = vmul.f32 %v1319_v2, %v1621_v40  ;;  %v1836_v58 = vmul.f32 %v1320_v11, %v1626_v41 }
  0x47   : > { %v1839_v34 = vmul.f32 %v1631_v42, %v415_v52  ;;  %v1842_v20 = vmul.f32 %v1636_v43, %v416_v3  ;;  %v582_v35 = vsel %vm489_vm1, %v453_v56, 0.0  ;;  %v583_v1 = vsel %vm489_vm1, %v454_v32, 0.0 }
  0x48   : > { %v584_v21 = vadd.f32 %v583_v1, %v582_v35  ;;  %v585_v25 = vsel %vm489_vm1, %v455_v57, 0.0  ;;  %v587_v38 = vsel %vm495_vm2, %v456_v61, 0.0  ;;  %v595_v2 = vsel %vm489_vm1, %v457_v62, 0.0 }
  0x49   : > { %v596_v11 = vsel %vm489_vm1, %v458_v10, 0.0  ;;  %v598_v27 = vsel %vm489_vm1, %v459_v59, 0.0  ;;  %v600_v28 = vsel %vm495_vm2, %v460_v12, 0.0  ;;  %v608_v3 = vsel %vm489_vm1, %v461_v18, 0.0 }
  0x4a   : > { %v586_v39 = vadd.f32 %v585_v25, %v584_v21  ;;  %v597_v46 = vadd.f32 %v596_v11, %v595_v2  ;;  %v609_v29 = vsel %vm489_vm1, %v462_v17, 0.0  ;;  %v611_v47 = vsel %vm489_vm1, %v463_v36, 0.0 }
  0x4b   : > { %v610_v30 = vadd.f32 %v609_v29, %v608_v3  ;;  %v613_v50 = vsel %vm495_vm2, %v464_v22, 0.0  ;;  %v621_v49 = vsel %vm489_vm1, %v465_v26, 0.0  ;;  %v622_v51 = vsel %vm489_vm1, %v466_v63, 0.0 }
  0x4c   : > { %v588_v54 = vadd.f32 %v587_v38, %v586_v39  ;;  %v599_v52 = vadd.f32 %v598_v27, %v597_v46  ;;  %v623_v55 = vadd.f32 %v622_v51, %v621_v49  ;;  %v624_v56 = vsel %vm489_vm1, %v467_v44, 0.0 }
  0x4d   : > { %v612_v32 = vadd.f32 %v611_v47, %v610_v30  ;;  %v626_v57 = vsel %vm495_vm2, %v468_v37, 0.0  ;;  %v634_v61 = vsel %vm489_vm1, %v469_v45, 0.0  ;;  %v635_v62 = vsel %vm489_vm1, %v470_v0, 0.0 }
  0x4e   : > { %v589_v10 = vrot.slane %v588_v54, 4  ;;  %v601_v59 = vadd.f32 %v600_v28, %v599_v52  ;;  %v625_v12 = vadd.f32 %v624_v56, %v623_v55  ;;  %v636_v18 = vadd.f32 %v635_v62, %v634_v61 }
  0x4f   : > { %v614_v17 = vadd.f32 %v613_v50, %v612_v32  ;;  %v637_v36 = vsel %vm489_vm1, %v471_v5, 0.0  ;;  %v639_v22 = vsel %vm495_vm2, %v472_v8, 0.0  ;;  %v647_v26 = vsel %vm489_vm1, %v473_v9, 0.0 }
  0x50   : > { %v590_v63 = vadd.f32 %v589_v10, %v588_v54  ;;  %v602_v44 = vrot.slane %v601_v59, 4  ;;  %v627_v35 = vadd.f32 %v626_v57, %v625_v12  ;;  %v638_v1 = vadd.f32 %v637_v36, %v636_v18 }
  0x51   : > { %v615_v37 = vrot.slane %v614_v17, 4  ;;  %v648_v45 = vsel %vm489_vm1, %v474_v31, 0.0  ;;  %v650_v0 = vsel %vm489_vm1, %v475_v15, 0.0  ;;  %v652_v21 = vsel %vm495_vm2, %v476_v23, 0.0 }
  0x52   : > { %v591_v25 = vrot.slane %v590_v63, 2  ;;  %v603_v38 = vadd.f32 %v602_v44, %v601_v59  ;;  %v628_v2 = vrot.slane %v627_v35, 4  ;;  %v640_v11 = vadd.f32 %v639_v22, %v638_v1 }
  0x53   : > { %v616_v5 = vadd.f32 %v615_v37, %v614_v17  ;;  %v649_v8 = vadd.f32 %v648_v45, %v647_v26  ;;  %v660_v9 = vsel %vm489_vm1, %v477_v48, 0.0  ;;  %v661_v27 = vsel %vm489_vm1, %v478_v16, 0.0  ;;  %v1339_v26 = vld [vmem:[%s1591_s27 + $0xf0] sm:$0xff]  }
  0x54   : > { %v592_v28 = vadd.f32 %v591_v25, %v590_v63  ;;  %v604_v3 = vrot.slane %v603_v38, 2  ;;  %v629_v39 = vadd.f32 %v628_v2, %v627_v35  ;;  %v641_v46 = vrot.slane %v640_v11, 4 }
  0x55   : > { %v617_v31 = vrot.slane %v616_v5, 2  ;;  %v651_v29 = vadd.f32 %v650_v0, %v649_v8  ;;  %v662_v15 = vadd.f32 %v661_v27, %v660_v9  ;;  %v663_v23 = vsel %vm489_vm1, %v1827_v53, 0.0 }
  0x56   : > { %v593_v47 = vrot.slane %v592_v28, 1  ;;  %v605_v30 = vadd.f32 %v604_v3, %v603_v38  ;;  %v630_v50 = vrot.slane %v629_v39, 2  ;;  %v642_v49 = vadd.f32 %v641_v46, %v640_v11 }
  0x57   : > { %v618_v51 = vadd.f32 %v617_v31, %v616_v5  ;;  %v653_v54 = vadd.f32 %v652_v21, %v651_v29  ;;  %v664_v52 = vadd.f32 %v663_v23, %v662_v15  ;;  %v665_v48 = vsel %vm495_vm2, %v1830_v33, 0.0  ;;  %v356_v21 = vld [vmem:[%s1591_s27 + $0xfc] sm:$0x3] }
  0x58   : > { %v594_v16 = vadd.f32 %v593_v47, %v592_v28  ;;  %v606_v55 = vrot.slane %v605_v30, 1  ;;  %v631_v56 = vadd.f32 %v630_v50, %v629_v39  ;;  %v643_v32 = vrot.slane %v642_v49, 2 }
  0x59   : > { %v619_v57 = vrot.slane %v618_v51, 1  ;;  %v654_v61 = vrot.slane %v653_v54, 4  ;;  %v666_v62 = vadd.f32 %v665_v48, %v664_v52  ;;  %v673_v53 = vsel %vm489_vm1, %v1833_v19, 0.0 }
  0x5a   : > { %v607_v10 = vadd.f32 %v606_v55, %v605_v30  ;;  %v632_v59 = vrot.slane %v631_v56, 1  ;;  %v644_v12 = vadd.f32 %v643_v32, %v642_v49  ;;  %v674_v18 = vsel %vm489_vm1, %v1836_v58, 0.0 }
  0x5b   : > { %v620_v17 = vadd.f32 %v619_v57, %v618_v51  ;;  %v655_v33 = vadd.f32 %v654_v61, %v653_v54  ;;  %v667_v36 = vrot.slane %v666_v62, 4  ;;  %v675_v22 = vadd.f32 %v674_v18, %v673_v53 }
  0x5c   : > { %v633_v63 = vadd.f32 %v632_v59, %v631_v56  ;;  %v645_v44 = vrot.slane %v644_v12, 1  ;;  %v676_v35 = vsel %vm489_vm1, %v1839_v34, 0.0  ;;  %v678_v19 = vsel %vm495_vm2, %v1842_v20, 0.0 }
  0x5d   : > { %v656_v1 = vrot.slane %v655_v33, 2  ;;  %v668_v37 = vadd.f32 %v667_v36, %v666_v62  ;;  %v677_v45 = vadd.f32 %v676_v35, %v675_v22  ;;  %v730_v0 = vsel %vm729_vm10, %v607_v10, %v594_v16 }
  0x5e   : > { %v731_v58 = vsel %vm717_vm3, %v620_v17, %v730_v0  ;;  %v1323_v25 = vunpack.c.l.bf16 %v1339_v26  ;;  %v1324_v38 = vunpack.c.h.bf16 %v1339_v26  ;;  %v646_v2 = vadd.f32 %v645_v44, %v644_v12  ;;  %v750_v12 = vld [vmem:[%s1963_s6] sm:$0xff] }
  0x5f   : > { %v657_v11 = vadd.f32 %v656_v1, %v655_v33  ;;  %v669_v5 = vrot.slane %v668_v37, 2  ;;  %v679_v8 = vadd.f32 %v678_v19, %v677_v45  ;;  %v732_v9 = vsel %vm719_vm4, %v633_v63, %v731_v58  ;;  %1396 = vmatpush3.msra.mxu1 %v750_v12  ;;  %1432 = vmatpush3.msra.mxu0 %v750_v12 }
  0x60   : > { %v419_v34 = vunpack.c.h.bf16 %v1770_v24  ;;  %v420_v27 = vunpack.c.l.bf16 %v356_v21  ;;  %v485_v20 = vmul.f32 %v1323_v25, %v1621_v40  ;;  %v486_v46 = vmul.f32 %v1324_v38, %v1626_v41 }
  0x61   : > { %v658_v28 = vrot.slane %v657_v11, 1  ;;  %v670_v3 = vadd.f32 %v669_v5, %v668_v37  ;;  %v680_v39 = vrot.slane %v679_v8, 4  ;;  %v733_v24 = vsel %vm721_vm5, %v646_v2, %v732_v9 }
  0x62   : > { %v487_v31 = vmul.f32 %v1631_v42, %v419_v34  ;;  %v488_v29 = vmul.f32 %v1636_v43, %v420_v27  ;;  %v686_v15 = vsel %vm489_vm1, %v485_v20, 0.0  ;;  %v687_v50 = vsel %vm489_vm1, %v486_v46, 0.0 }
  0x63   : > { %v659_v23 = vadd.f32 %v658_v28, %v657_v11  ;;  %v671_v47 = vrot.slane %v670_v3, 1  ;;  %v681_v30 = vadd.f32 %v680_v39, %v679_v8  ;;  %v688_v49 = vadd.f32 %v687_v50, %v686_v15 }
  0x64   : > { %v689_v40 = vsel %vm489_vm1, %v487_v31, 0.0  ;;  %v691_v54 = vsel %vm495_vm2, %v488_v29, 0.0  ;;  %v1967_v18 = vmov 0.0|0.0   ;;  %v1251_v29 = vld [vmem:[%s1961_s4] ss:$0 sm:$0xff] }
  0x65   : > { %v682_v51 = vrot.slane %v681_v30, 2  ;;  %v672_v41 = vadd.f32 %v671_v47, %v670_v3  ;;  %v690_v52 = vadd.f32 %v689_v40, %v688_v49  ;;  %v734_v43 = vsel %vm723_vm6, %v659_v23, %v733_v24  ;;  %1454 = vmatprep.subr.bf16.mxu1 %v1967_v18 }
  0x67   : > { %v683_v42 = vadd.f32 %v682_v51, %v681_v30  ;;  %v692_v48 = vadd.f32 %v691_v54, %v690_v52  ;;  %v735_v55 = vsel %vm725_vm7, %v672_v41, %v734_v43 }
  0x69   : > { %v684_v16 = vrot.slane %v683_v42, 1  ;;  %v693_v56 = vrot.slane %v692_v48, 4 }
  0x6b   : > { %v685_v32 = vadd.f32 %v684_v16, %v683_v42  ;;  %v694_v57 = vadd.f32 %v693_v56, %v692_v48 }
  0x6d   : > { %v736_v61 = vsel %vm727_vm8, %v685_v32, %v735_v55  ;;  %v695_v62 = vrot.slane %v694_v57, 2  ;;  %v1163_v32 = vld [vmem:[%s292_s22 + $0x8] sm:$0x1] }
  0x6e   : > { %1390 = vmatmul.mubr.msk.f32.gmra.mrb[2].mxu0 %vm489_vm1, %v736_v61 }
  0x6f   : > { %1392 = vmatprep.mubr.msk.f32.mxu0 %vm1495_vm0, %v1496_v6  ;;  %v696_v53 = vadd.f32 %v695_v62, %v694_v57 }
  0x71   : > { %v697_v10 = vrot.slane %v696_v53, 1 }
  0x73   : > { %v698_v59 = vadd.f32 %v697_v10, %v696_v53 }
  0x75   : > { %1393 = vmatmul.mubr.msk.f32.gmra.mrb[4].mxu0 %vm489_vm1, %v698_v59 }
  0x76   : > { %1433 = vmatprep.mubr.msk.f32.mxu0 %vm1495_vm0, %v1496_v6 }
 0x114   : > { %v826_v17 = vpop.f32.mrb[0].mxu0 }
 0x115   : > { %v840_v33 = vmul.f32 0.125, %v826_v17  ;;  %v1388_v36 = vpop.f32.mrb[1].mxu0 }
 0x117   : > { %1398 = vmatmul.mubr.msk.f32.vlgmr.msra.gmra.mrb[0].mxu1 %vm843_vm11, %v840_v33 }
 0x118   : > { %1400 = vmatprep.mubr.msk.f32.mxu1 %vm1495_vm0, %v1496_v6  ;;  %1456 = vmatpush3.bf16.msra.mxu1 %v1555_v4 }
 0x119   : > { %1457 = vmatprep.subr.bf16.mxu1 %v1967_v18 }
 0x11c   : > { %1459 = vmatpush3.bf16.msra.mxu1 %v1566_v7 }
 0x11d   : > { %1460 = vmatprep.subr.bf16.mxu1 %v1967_v18 }
 0x120   : > { %1462 = vmatpush3.bf16.msra.mxu1 %v1596_v13 }
 0x121   : > { %1463 = vmatprep.subr.bf16.mxu1 %v1967_v18 }
 0x124   : > { %1465 = vmatpush3.bf16.msra.mxu1 %v1598_v14 }
 0x125   : > { %1466 = vmatprep.subr.mxu1 %v1496_v6 }
 0x141   : > { %v831_v22 = vpop.f32.mrb[2].mxu0 }
 0x142   : > { %v841_v26 = vmul.f32 0.125, %v831_v22  ;;  %v1391_v63 = vpop.f32.mrb[3].mxu0 }
 0x144   : > { %1401 = vmatmul.mubr.msk.f32.gmra.mrb[2].mxu1 %vm843_vm11, %v841_v26 }
 0x145   : > { %1403 = vmatprep.mubr.msk.f32.mxu1 %vm1495_vm0, %v1496_v6 }
 0x148   : > { %v836_v4 = vpop.f32.mrb[4].mxu0 }
 0x149   : > { %v842_v7 = vmul.f32 0.125, %v836_v4  ;;  %v1394_v44 = vpop.f32.mrb[5].mxu0 }
 0x14b   : > { %1404 = vmatmul.mubr.msk.f32.gmra.mrb[4].mxu1 %vm843_vm11, %v842_v7 }
 0x14c   : > { %1422 = vmatprep.mubr.msk.f32.mxu1 %vm1495_vm0, %v1496_v6 }
 0x1ea   : > { %v919_v13 = vpop.f32.mrb[0].mxu1 }
 0x1eb   : > { %v933_v14 = vsub.f32 %v1785_v60, %v919_v13  ;;  %v1399_v35 = vpop.f32.mrb[1].mxu1 }
 0x1ed   : > { %v936_v19 = vmul.f32 %v933_v14, %v933_v14 }
 0x1ef   : > { %1423 = vmatmul.mubr.msk.f32.vlgmr.msra.gmra.mrb[6].mxu1 %vm489_vm1, %v936_v19 }
 0x1f0   : > { %1425 = vmatprep.mubr.msk.f32.mxu1 %vm1495_vm0, %v1496_v6  ;;  %1467 = vmatpush3.msra.mxu1 %v750_v12 }
 0x217   : > { %v924_v1 = vpop.f32.mrb[2].mxu1 }
 0x218   : > { %v934_v37 = vsub.f32 %v736_v61, %v924_v1  ;;  %v1402_v45 = vpop.f32.mrb[3].mxu1 }
 0x21a   : > { %v937_v0 = vmul.f32 %v934_v37, %v934_v37 }
 0x21c   : > { %1426 = vmatmul.mubr.msk.f32.gmra.mrb[8].mxu1 %vm489_vm1, %v937_v0 }
 0x21d   : > { %1428 = vmatprep.mubr.msk.f32.mxu1 %vm1495_vm0, %v1496_v6 }
 0x21e   : > { %v929_v21 = vpop.f32.mrb[4].mxu1 }
 0x21f   : > { %v935_v58 = vsub.f32 %v698_v59, %v929_v21  ;;  %v1405_v60 = vpop.f32.mrb[5].mxu1 }
 0x221   : > { %v938_v25 = vmul.f32 %v935_v58, %v935_v58 }
 0x223   : > { %1429 = vmatmul.mubr.msk.f32.gmra.mrb[10].mxu1 %vm489_vm1, %v938_v25 }
 0x224   : > { %1439 = vmatprep.mubr.msk.f32.mxu1 %vm1495_vm0, %v1496_v6 }
 0x2c2   : > { %v1014_v38 = vpop.f32.mrb[6].mxu1 }
 0x2c3   : > { %v1028_v2 = vmul.f32 0.125, %v1014_v38  ;;  %v1424_v11 = vpop.f32.mrb[7].mxu1 }
 0x2c5   : > { %1434 = vmatmul.mubr.msk.f32.vlgmr.msra.gmra.mrb[6].mxu0 %vm843_vm11, %v1028_v2 }
 0x2c6   : > { %1436 = vmatprep.mubr.msk.f32.mxu0 %vm1495_vm0, %v1496_v6  ;;  %v1250_v6 = vld [vmem:[%s1960_s3] ss:$0 sm:$0xff] }
 0x2ef   : > { %v1019_v5 = vpop.f32.mrb[8].mxu1 }
 0x2f0   : > { %v1029_v8 = vmul.f32 0.125, %v1019_v5  ;;  %v1427_v9 = vpop.f32.mrb[9].mxu1 }
 0x2f2   : > { %1437 = vmatmul.mubr.msk.f32.gmra.mrb[8].mxu0 %vm843_vm11, %v1029_v8 }
 0x2f6   : > { %v1024_v34 = vpop.f32.mrb[10].mxu1 }
 0x2f7   : > { %v1030_v27 = vmul.f32 0.125, %v1024_v34  ;;  %v1430_v20 = vpop.f32.mrb[11].mxu1 }
 0x2f9   : > { %1440 = vmatmul.mubr.msk.f32.vlgmr.msra.gmra.mrb[12].mxu1 %vm843_vm11, %v1030_v27 }
 0x398   : > { %v1106_v28 = vpop.f32.mrb[6].mxu0 }
 0x399   : > { %v1107_v3 = vadd.f32 1e-06, %v1106_v28  ;;  %v1435_v39 = vpop.f32.mrb[7].mxu0 }
 0x39b   : > { %1480 = vrsqrt.f32 %v1107_v3 }
 0x3a5   : > { %v1481_v46 = vpop.eup %1480 }
 0x3a6   : > { %v1123_v31 = vmul.f32 %v1481_v46, %v933_v14 }
 0x3a8   : > { %v1132_v15 = vmul.f32 %v1250_v6, %v1123_v31 }
 0x3aa   : > { %v1141_v23 = vadd.f32 %v1251_v29, %v1132_v15 }
 0x3ac   : > { %v1258_v47 = vpack.c.bf16 %v1141_v23, %v1141_v23 }
 0x3ae   : > { %1158 = vst.msk [vmem:[%s292_s22] sm:$0xf] %vm1157_vm12, %v1258_v47 }
 0x3c5   : > { %v1111_v30 = vpop.f32.mrb[8].mxu0 }
 0x3c6   : > { %v1112_v50 = vadd.f32 1e-06, %v1111_v30  ;;  %v1438_v24 = vpop.f32.mrb[9].mxu0 }
 0x3c8   : > { %1482 = vrsqrt.f32 %v1112_v50 }
 0x3cc   : > { %v1116_v49 = vpop.f32.mrb[12].mxu1 }
 0x3cd   : > { %v1117_v40 = vadd.f32 1e-06, %v1116_v49  ;;  %v1441_v51 = vpop.f32.mrb[13].mxu1 }
 0x3cf   : > { %1484 = vrsqrt.f32 %v1117_v40 }
 0x3d2   : > { %v1483_v54 = vpop.eup %1482 }
 0x3d3   : > { %v1124_v41 = vmul.f32 %v1483_v54, %v934_v37 }
 0x3d5   : > { %v1133_v52 = vmul.f32 %v1250_v6, %v1124_v41 }
 0x3d7   : > { %v1142_v42 = vadd.f32 %v1251_v29, %v1133_v52 }
 0x3d9   : > { %v1259_v43 = vpack.c.bf16 %v1142_v42, %v1142_v42  ;;  %v1485_v48 = vpop.eup %1484 }
 0x3da   : > { %v1125_v16 = vmul.f32 %v1485_v48, %v935_v58 }
 0x3db   : > { %1159 = vst.msk [vmem:[%s292_s22 + $0x4] sm:$0xf] %vm1157_vm12, %v1259_v43 }
 0x3dc   : > { %v1134_v55 = vmul.f32 %v1250_v6, %v1125_v16 }
 0x3de   : > { %v1143_v56 = vadd.f32 %v1251_v29, %v1134_v55 }
 0x3e0   : > { %v1260_v57 = vpack.c.bf16 %v1143_v56, %v1143_v56 }
 0x3e2   : > { %v1164_v61 = vsel %vm1162_vm15, %v1260_v57, %v1163_v32 }
 0x3e3   : > { %1165 = vst [vmem:[%s292_s22 + $0x8] sm:$0x1] %v1164_v61 }
 0x3e4 PF: > { %s17_s24 = sadd.s32 1, %s1492_s24  }
 0x3e5   : > { %p14_p4 = scmp.ge.s32.totalorder %s17_s24, 4  }
 0x3e7   :  { %16 = sbr.rel (!%p14_p4) target bundleno = 1 (0x1), region = 81 }

// kernel: mvit_forward.20
= control target key start
LH: loop header
LB: loop body
LE: loop exit
PB: predicated region body
PF: predicated region fallthrough
CT: control target
= control target key end

     0   :  { %s971_s30 = smov 0   ;;  %s1056_s0 = inlined_call_operand.vmem [shape: bf16[48,32], index: 0, kind: input, shape index: {}]   ;;  %s1057_s1 = inlined_call_operand.vmem [shape: f32[1,32], index: 1, kind: input, shape index: {}]   ;;  %s1058_s2 = inlined_call_operand.vmem [shape: f32[1,32], index: 2, kind: input, shape index: {}]   ;;  %s1059_s3 = inlined_call_operand.vmem [shape: bf16[32,128], index: 3, kind: input, shape index: {}]   ;;  %s1060_s4 = inlined_call_operand.vmem [shape: f32[1,128], index: 4, kind: input, shape index: {}]   ;;  %s1061_s5 = inlined_call_operand.vmem [shape: bf16[128,64], index: 5, kind: input, shape index: {}]   ;;  %s1062_s6 = inlined_call_operand.vmem [shape: f32[1,64], index: 6, kind: input, shape index: {}]   ;;  %s1063_s7 = inlined_call_operand.vmem [shape: bf16[32,64], index: 7, kind: input, shape index: {}]   ;;  %s1064_s8 = inlined_call_operand.vmem [shape: f32[1,64], index: 8, kind: input, shape index: {}]   ;;  %s1065_s9 = inlined_call_operand.vmem [shape: bf16[48,64], index: 9, kind: output, shape index: {}]  }
   0x1 LB: > { %s778_s10 = sadd.s32 4294967295, %s919_s30   ;;  %p782_p0 = scmp.ge.s32.totalorder %s919_s30, 1  ;;  %s919_s30 = sphi %s971_s30, %s19_s30  }
   0x2   : > { %p288_p1 = scmp.lt.s32.totalorder %s919_s30, 3 }
   0x4   : > { %p289_p2 = pnand %p782_p0, %p288_p1 }
   0x5   : > { %s324_s11 = smul.u32 (!%p289_p2), 3, %s778_s10  ;;  %vm345_vm0 = vcmask (!%p289_p2), 261120   ;;  %v889_v23 = vld [vmem:[%s1059_s3] sm:$0xff] (!%p289_p2)   ;;  %v890_v24 = vld [vmem:[%s1059_s3 + $0x8] sm:$0xff] (!%p289_p2)   ;;  %v895_v54 = vld [vmem:[%s1061_s5 + $0x10] sm:$0xff] (!%p289_p2)   ;;  %vm718_vm1 = vcmask (!%p289_p2), 519168  }
   0x6   : > { %292 = sbr.rel (%p289_p2) target bundleno = 809 (0x329), region = 56  ;;  %836 = vmatprep.subr.bf16.mxu0 (!%p289_p2), %v889_v23  ;;  %v891_v25 = vld [vmem:[%s1063_s7] sm:$0xff] (!%p289_p2)   ;;  %v892_v51 = vld [vmem:[%s1063_s7 + $0x8] sm:$0xff] (!%p289_p2)   ;;  %v896_v55 = vld [vmem:[%s1061_s5 + $0x18] sm:$0xff] (!%p289_p2)  }
   0x7   : > { %p325_p3 = scmp.lt.s32.totalorder (!%p289_p2), %s324_s11, 5  ;;  %837 = vmatpush3.bf16.msra.mxu0 (!%p289_p2), %v889_v23  ;;  %v785_v37 = vld [vmem:[%s1057_s1] ss:$0 sm:$0xff] (!%p289_p2)  ;;  %v894_v53 = vld [vmem:[%s1061_s5 + $0x8] sm:$0xff] (!%p289_p2)   ;;  %v899_v58 = vld [vmem:[%s1061_s5 + $0x30] sm:$0xff] (!%p289_p2)  }
   0x8   : > { %838 = vmatprep.subr.bf16.mxu0 (!%p289_p2), %v890_v24  ;;  %v786_v43 = vld [vmem:[%s1058_s2] ss:$0 sm:$0xff] (!%p289_p2)  ;;  %v898_v57 = vld [vmem:[%s1061_s5 + $0x28] sm:$0xff] (!%p289_p2)   ;;  %v900_v59 = vld [vmem:[%s1061_s5 + $0x38] sm:$0xff] (!%p289_p2)  }
   0x9   : > { %v893_v52 = vld [vmem:[%s1061_s5] sm:$0xff] (!%p289_p2)  }
   0xa   : > { %844 = vmatprep.subr.bf16.mxu1 (!%p289_p2), %v893_v52  ;;  %v897_v56 = vld [vmem:[%s1061_s5 + $0x20] sm:$0xff] (!%p289_p2)  }
   0xb   : > { %839 = vmatpush3.bf16.msra.mxu0 (!%p289_p2), %v890_v24  ;;  %845 = vmatpush3.bf16.msra.mxu1 (!%p289_p2), %v893_v52  ;;  %v787_v60 = vld [vmem:[%s1060_s4] ss:$0 sm:$0xff] (!%p289_p2) }
   0xc   : > { %864 = vmatprep.subr.bf16.mxu0 (!%p289_p2), %v891_v25  ;;  %846 = vmatprep.subr.bf16.mxu1 (!%p289_p2), %v894_v53 }
   0xd   : > { %s1067_s11 = smov (!%p325_p3, %s324_s11), 5 }
   0xe   : > { %s783_s12 = sshll.u32 %s1067_s11, 2 }
   0xf   : > { %s328_s15 = scalar_lea.vmem %s1056_s0, %s783_s12  ;;  %847 = vmatpush3.bf16.msra.mxu1 %v894_v53  ;;  %s334_s16 = scalar_lea.vmem %s1065_s9, %s783_s12 }
  0x10   : > { %v815_v0 = vld [vmem:[%s328_s15] sm:$0xff]   ;;  %v339_v1 = vld [vmem:[%s328_s15 + $0x8] sm:$0xf]  ;;  %848 = vmatprep.subr.bf16.mxu1 %v895_v54 }
  0x11   : > { %v816_v2 = vunpack.c.l.bf16 %v815_v0  ;;  %v342_v3 = vunpack.c.l.bf16 %v339_v1  ;;  %v817_v4 = vunpack.c.h.bf16 %v815_v0 }
  0x13   : > { %v346_v5 = vsel %vm345_vm0, %v816_v2, 0.0  ;;  %v352_v6 = vsel %vm345_vm0, %v342_v3, 0.0  ;;  %v349_v7 = vsel %vm345_vm0, %v817_v4, 0.0  ;;  %849 = vmatpush3.bf16.msra.mxu1 %v895_v54 }
  0x14   : > { %347 = vadd.xlane.f32.xlu0 %v346_v5  ;;  %353 = vadd.xlane.f32.xlu1 %v352_v6 }
  0x15   : > { %850 = vmatprep.subr.bf16.mxu1 %v896_v55 }
  0x17   : > { %851 = vmatpush3.bf16.msra.mxu1 %v896_v55 }
  0x18   : > { %350 = vadd.xlane.f32.xlu0 %v349_v7  ;;  %852 = vmatprep.subr.bf16.mxu1 %v897_v56 }
  0x1b   : > { %853 = vmatpush3.bf16.msra.mxu1 %v897_v56 }
  0x1c   : > { %854 = vmatprep.subr.bf16.mxu1 %v898_v57 }
  0x1f   : > { %855 = vmatpush3.bf16.msra.mxu1 %v898_v57 }
  0x20   : > { %856 = vmatprep.subr.bf16.mxu1 %v899_v58 }
  0x23   : > { %857 = vmatpush3.bf16.msra.mxu1 %v899_v58 }
  0x24   : > { %858 = vmatprep.subr.bf16.mxu1 %v900_v59 }
  0x27   : > { %859 = vmatpush3.bf16.msra.mxu1 %v900_v59 }
  0xa1   : > { %v348_v8 = vpop.xlane.xlu0 %347  ;;  %v354_v9 = vpop.xlane.xlu1 %353 }
  0xa2   : > { %v356_v10 = vmul.f32 0.03125, %v348_v8  ;;  %v358_v11 = vmul.f32 0.03125, %v354_v9 }
  0xa4   : > { %v359_v12 = vsub.f32 %v816_v2, %v356_v10  ;;  %v361_v13 = vsub.f32 %v342_v3, %v358_v11 }
  0xa5   : > { %v351_v14 = vpop.xlane.xlu0 %350 }
  0xa6   : > { %v357_v15 = vmul.f32 0.03125, %v351_v14  ;;  %v362_v16 = vmul.f32 %v359_v12, %v359_v12  ;;  %v364_v17 = vmul.f32 %v361_v13, %v361_v13 }
  0xa8   : > { %v360_v18 = vsub.f32 %v817_v4, %v357_v15  ;;  %v365_v19 = vsel %vm345_vm0, %v362_v16, 0.0  ;;  %v371_v20 = vsel %vm345_vm0, %v364_v17, 0.0 }
  0xa9   : > { %366 = vadd.xlane.f32.xlu1 %v365_v19 }
  0xaa   : > { %v363_v21 = vmul.f32 %v360_v18, %v360_v18 }
  0xac   : > { %v368_v22 = vsel %vm345_vm0, %v363_v21, 0.0 }
  0xad   : > { %372 = vadd.xlane.f32.xlu1 %v371_v20  ;;  %369 = vadd.xlane.f32.xlu0 %v368_v22 }
 0x136   : > { %v367_v26 = vpop.xlane.xlu1 %366 }
 0x137   : > { %v374_v27 = vmul.f32 0.03125, %v367_v26 }
 0x139   : > { %v377_v28 = vadd.f32 1e-06, %v374_v27 }
 0x13a   : > { %v373_v29 = vpop.xlane.xlu1 %372  ;;  %v370_v30 = vpop.xlane.xlu0 %369 }
 0x13b   : > { %901 = vrsqrt.f32 %v377_v28  ;;  %v376_v31 = vmul.f32 0.03125, %v373_v29  ;;  %v375_v32 = vmul.f32 0.03125, %v370_v30 }
 0x13d   : > { %v379_v33 = vadd.f32 1e-06, %v376_v31  ;;  %v378_v34 = vadd.f32 1e-06, %v375_v32 }
 0x13f   : > { %903 = vrsqrt.f32 %v379_v33 }
 0x140   : > { %905 = vrsqrt.f32 %v378_v34 }
 0x145   : > { %v902_v35 = vpop.eup %901 }
 0x146   : > { %v383_v36 = vmul.f32 %v902_v35, %v359_v12 }
 0x148   : > { %v392_v42 = vmul.f32 %v785_v37, %v383_v36 }
 0x149   : > { %v904_v38 = vpop.eup %903 }
 0x14a   : > { %v906_v39 = vpop.eup %905  ;;  %v385_v40 = vmul.f32 %v904_v38, %v361_v13  ;;  %v401_v47 = vadd.f32 %v786_v43, %v392_v42 }
 0x14b   : > { %v384_v41 = vmul.f32 %v906_v39, %v360_v18 }
 0x14c   : > { %v394_v44 = vmul.f32 %v785_v37, %v385_v40 }
 0x14d   : > { %v393_v45 = vmul.f32 %v785_v37, %v384_v41  ;;  %v792_v37 = vld [vmem:[%s1062_s6] ss:$0 sm:$0xff] }
 0x14e   : > { %v403_v46 = vadd.f32 %v786_v43, %v394_v44  ;;  %v801_v41 = vld [vmem:[%s1064_s8] ss:$0 sm:$0xff] }
 0x14f   : > { %v402_v48 = vadd.f32 %v786_v43, %v393_v45 }
 0x150   : > { %v405_v49 = vpack.c.bf16 %v403_v46, %v403_v46 }
 0x151   : > { %v404_v50 = vpack.c.bf16 %v402_v48, %v401_v47 }
 0x153   : > { %840 = vmatprep.mubr.msk.bf16.mxu0 %vm345_vm0, %v404_v50 }
 0x154   : > { %841 = vmatmul.mubr.msk.bf16.vlgmr.msra.gmra.mrb[0].mxu0 %vm345_vm0, %v405_v49 }
 0x155   : > { %865 = vmatpush3.bf16.msra.mxu0 %v891_v25  ;;  %868 = vmatprep.mubr.msk.bf16.mxu0 %vm345_vm0, %v404_v50 }
 0x156   : > { %866 = vmatprep.subr.bf16.mxu0 %v892_v51 }
 0x159   : > { %867 = vmatpush3.bf16.msra.mxu0 %v892_v51 }
 0x15c   : > { %869 = vmatmul.mubr.msk.bf16.vlgmr.msra.gmra.mrb[4].mxu0 %vm345_vm0, %v405_v49 }
 0x227   : > { %v842_v61 = vpop.f32.mrb[0].mxu0 }
 0x228   : > { %v478_v62 = vadd.f32 %v842_v61, %v787_v60  ;;  %v469_v63 = vpop.f32.mrb[1].mxu0 }
 0x229   : > { %v470_v0 = vadd.f32 %v787_v60, %v469_v63  ;;  %v843_v1 = vpop.f32.mrb[2].mxu0 }
 0x22a   : > { %v488_v2 = vmul.f32 0.044715, %v478_v62  ;;  %v472_v3 = vpop.f32.mrb[3].mxu0  ;;  %v485_v28 = vmul.f32 0.5, %v478_v62 }
 0x22b   : > { %v486_v4 = vmul.f32 0.044715, %v470_v0  ;;  %v473_v5 = vadd.f32 %v787_v60, %v472_v3  ;;  %v483_v29 = vmul.f32 0.5, %v470_v0 }
 0x22c   : > { %v491_v6 = vmul.f32 %v488_v2, %v478_v62 }
 0x22d   : > { %v487_v7 = vmul.f32 0.044715, %v473_v5  ;;  %v489_v8 = vmul.f32 %v486_v4, %v470_v0  ;;  %v484_v30 = vmul.f32 0.5, %v473_v5 }
 0x22e   : > { %v494_v9 = vmul.f32 %v491_v6, %v478_v62 }
 0x22f   : > { %v870_v10 = vpop.f32.mrb[4].mxu0  ;;  %v490_v11 = vmul.f32 %v487_v7, %v473_v5  ;;  %v492_v12 = vmul.f32 %v489_v8, %v470_v0 }
 0x230   : > { %v688_v13 = vpop.f32.mrb[5].mxu0  ;;  %v497_v14 = vadd.f32 %v494_v9, %v478_v62 }
 0x231   : > { %v871_v15 = vpop.f32.mrb[6].mxu0  ;;  %v493_v16 = vmul.f32 %v490_v11, %v473_v5  ;;  %v495_v17 = vadd.f32 %v492_v12, %v470_v0 }
 0x232   : > { %v691_v18 = vpop.f32.mrb[7].mxu0  ;;  %v500_v19 = vmul.f32 0.7978846, %v497_v14 }
 0x233   : > { %v496_v20 = vadd.f32 %v493_v16, %v473_v5  ;;  %v498_v21 = vmul.f32 0.7978846, %v495_v17 }
 0x234   : > { %907 = vtanh.f32 %v500_v19 }
 0x235   : > { %v499_v22 = vmul.f32 0.7978846, %v496_v20  ;;  %909 = vtanh.f32 %v498_v21 }
 0x237   : > { %911 = vtanh.f32 %v499_v22 }
 0x23e   : > { %v908_v23 = vpop.eup %907 }
 0x23f   : > { %v910_v24 = vpop.eup %909  ;;  %v506_v25 = vadd.f32 1.0, %v908_v23 }
 0x240   : > { %v504_v26 = vadd.f32 1.0, %v910_v24 }
 0x241   : > { %v912_v27 = vpop.eup %911  ;;  %v509_v32 = vmul.f32 %v506_v25, %v485_v28 }
 0x242   : > { %v505_v31 = vadd.f32 1.0, %v912_v27  ;;  %v507_v33 = vmul.f32 %v504_v26, %v483_v29 }
 0x243   : > { %v511_v36 = vpack.c.bf16 %v509_v32, %v509_v32 }
 0x244   : > { %v508_v34 = vmul.f32 %v505_v31, %v484_v30 }
 0x246   : > { %v510_v35 = vpack.c.bf16 %v508_v34, %v507_v33 }
 0x248   : > { %860 = vmatprep.mubr.bf16.mxu1 %v510_v35 }
 0x249   : > { %861 = vmatmul.mubr.bf16.vlgmr.msra.gmra.mrb[0].mxu1 %v511_v36 }
 0x31c   : > { %v862_v38 = vpop.f32.mrb[0].mxu1 }
 0x31d   : > { %v626_v39 = vadd.f32 %v862_v38, %v792_v37  ;;  %v617_v40 = vpop.f32.mrb[1].mxu1 }
 0x31e   : > { %v618_v42 = vadd.f32 %v792_v37, %v617_v40  ;;  %v863_v43 = vpop.f32.mrb[2].mxu1 }
 0x31f   : > { %v873_v44 = vadd.f32 %v870_v10, %v626_v39  ;;  %v620_v45 = vpop.f32.mrb[3].mxu1 }
 0x320   : > { %v876_v46 = vadd.f32 %v688_v13, %v618_v42  ;;  %v621_v47 = vadd.f32 %v792_v37, %v620_v45 }
 0x321   : > { %v874_v48 = vadd.f32 %v873_v44, %v801_v41 }
 0x322   : > { %v877_v49 = vadd.f32 %v876_v46, %v801_v41  ;;  %v879_v50 = vadd.f32 %v801_v41, %v621_v47 }
 0x323   : > { %v813_v51 = vpack.c.bf16 %v874_v48, %v874_v48 }
 0x324   : > { %v811_v52 = vpack.c.bf16 %v877_v49, %v877_v49  ;;  %v880_v53 = vadd.f32 %v879_v50, %v691_v18 }
 0x325   : > { %721 = vst.msk [vmem:[%s334_s16 + $0x8] sm:$0xf] %vm718_vm1, %v813_v51 }
 0x326   : > { %719 = vst.msk [vmem:[%s334_s16] sm:$0xf] %vm718_vm1, %v811_v52  ;;  %v812_v54 = vpack.c.bf16 %v880_v53, %v880_v53 }
 0x328   : > { %720 = vst.msk [vmem:[%s334_s16 + $0x4] sm:$0xf] %vm718_vm1, %v812_v54 }
 0x329 PF: > { %s19_s30 = sadd.s32 1, %s919_s30  }
 0x32a   : > { %p16_p4 = scmp.ge.s32.totalorder %s19_s30, 4  }
 0x32c   :  { %18 = sbr.rel (!%p16_p4) target bundleno = 1 (0x1), region = 86 }

// kernel: mvit_forward.19
= control target key start
LH: loop header
LB: loop body
LE: loop exit
PB: predicated region body
PF: predicated region fallthrough
CT: control target
= control target key end

     0   :  { %s1624_s18 = smov 0   ;;  %s1806_s0 = inlined_call_operand.vmem [shape: bf16[2,17,32], index: 0, kind: input, shape index: {}]   ;;  %s1807_s1 = inlined_call_operand.vmem [shape: bf16[2,17,64], index: 1, kind: input, shape index: {}]   ;;  %s1808_s2 = inlined_call_operand.vmem [shape: bf16[2,17,32], index: 2, kind: input, shape index: {}]   ;;  %s1809_s3 = inlined_call_operand.vmem [shape: bf16[32,32], index: 3, kind: input, shape index: {}]   ;;  %s1810_s4 = inlined_call_operand.vmem [shape: f32[1,32], index: 4, kind: input, shape index: {}]   ;;  %s1811_s5 = inlined_call_operand.vmem [shape: bf16[2,17,32], index: 5, kind: output, shape index: {}]  }
   0x1 LB: > { %s1315_s19 = sadd.s32 4294967295, %s1584_s18   ;;  %p1319_p0 = scmp.ge.s32.totalorder %s1584_s18, 1  ;;  %s1584_s18 = sphi %s1624_s18, %s15_s18  }
   0x2   : > { %p207_p1 = scmp.lt.s32.totalorder %s1584_s18, 3 }
   0x4   : > { %p208_p2 = pnand %p1319_p0, %p207_p1 }
   0x5   : > { %p245_p3 = scmp.lt.s32.totalorder (!%p208_p2), %s1315_s19, 1  ;;  %vm288_vm0 = vcmask (!%p208_p2), 64512   ;;  %vm356_vm1 = vcmask (!%p208_p2), 131072   ;;  %vm349_vm2 = vcmask (!%p208_p2), 138240   ;;  %s1586_s27 = smov (!%p208_p2), 96   ;;  %vm397_vm3 = vcmask (!%p208_p2), 1040384  }
   0x6   : > { %211 = sbr.rel (%p208_p2) target bundleno = 2555 (0x9fb), region = 40  ;;  %s1587_s28 = smov (!%p208_p2), 120   ;;  %v1588_v39 = vmov (!%p208_p2), 0   ;;  %v453_v58 = vld [vmem:[%s1809_s3] sm:$0xf] (!%p208_p2)  ;;  %vm630_vm4 = vcmask (!%p208_p2), 1043456  }
   0x7   : > { %v1674_v40 = vsel (!%p208_p2), %vm397_vm3, 65535, %v1588_v39  ;;  %v689_v59 = vsel (!%p208_p2), %vm630_vm4, %v453_v58, 0  ;;  %s1589_s6 = smov (!%p208_p2), 88   ;;  %s1590_s7 = smov (!%p208_p2), 112   ;;  %vm1230_vm5 = vcmask (!%p208_p2), 253952   ;;  %vm1227_vm8 = vcmask (!%p208_p2), 257024  }
   0x8   : > { %s1591_s10 = smov (!%p208_p2), 104   ;;  %s1592_s11 = smov (!%p208_p2), 80   ;;  %vm1231_vm6 = vsmask.f32 (!%p208_p2), 256 }
   0x9   : > { %s1593_s12 = smov (!%p208_p2), 72   ;;  %vm1232_vm7 = vmand (!%p208_p2), %vm1230_vm5, %vm1231_vm6 }
   0xd   : > { %s1813_s19 = smov (!%p245_p3, %s1315_s19), 1 }
   0xe   : > { %s1632_s20 = smul.u32 12, %s1813_s19 }
  0x10   : > { %s254_s23 = scalar_lea.vmem %s1807_s1, %s1632_s20  ;;  %s249_s26 = scalar_lea.vmem %s1806_s0, %s1632_s20 }
  0x11   : > { %v1642_v0 = vld [vmem:[%s254_s23] sm:$0xff]   ;;  %v1644_v1 = vld [vmem:[%s254_s23 + $0x8] ss:$0 sps:$4 sm:$0x11]   ;;  %s259_s21 = scalar_lea.vmem %s1808_s2, %s1632_s20 }
  0x12   : > { %v1360_v2 = vld [vmem:[%s249_s26] sm:$0xff]   ;;  %1499 = vmatprep.subr.msk.bf16.mxu0 %vm288_vm0, %v1642_v0  ;;  %v296_v3 = vsel %vm288_vm0, %v1642_v0, 0  ;;  %v268_v6 = vld [vmem:[%s249_s26 + $0x8] sm:$0x1]  ;;  %v299_v11 = vsel %vm288_vm0, %v1644_v1, 0  ;;  %s264_s26 = scalar_lea.vmem %s1811_s5, %s1632_s20 }
  0x13   : > { %v1361_v4 = vunpack.c.l.bf16 %v1360_v2  ;;  %v1362_v5 = vunpack.c.h.bf16 %v1360_v2  ;;  %1412 = vmatpush3.bf16.xpose.msra.mxu0 %v296_v3  ;;  %v271_v10 = vunpack.c.l.bf16 %v268_v6 }
  0x14   : > { %1500 = vmatprep.subr.msk.bf16.mxu0 %vm288_vm0, %v1644_v1 }
  0x15   : > { %v272_v7 = vmul.f32 0.35355338, %v1361_v4  ;;  %v273_v8 = vmul.f32 0.35355338, %v1362_v5  ;;  %v274_v12 = vmul.f32 0.35355338, %v271_v10 }
  0x17   : > { %v1652_v9 = vpack.c.bf16 %v273_v8, %v272_v7  ;;  %v1658_v13 = vpack.c.bf16 %v274_v12, %v274_v12 }
  0x19   : > { %1415 = vmatprep.mubr.msk.bf16.mxu0 %vm288_vm0, %v1652_v9 }
  0x1b   : > { %1414 = vmatpush3.bf16.xpose.msra.mxu0 %v299_v11 }
  0x22   : > { %1416 = vmatmul.mubr.msk.bf16.vlgmr.msra.gmra.mrb[0].mxu0 %vm288_vm0, %v1658_v13 }
  0xf5   : > { %v1417_v14 = vpop.f32.mrb[0].mxu0 }
  0xf6   : > { %v335_v15 = vpop.f32.mrb[1].mxu0  ;;  %v357_v16 = vsel %vm356_vm1, %v1417_v14, -inf }
  0xf7   : > { %358 = vmax.xlane.f32.xlu1 %v357_v16  ;;  %v1418_v17 = vpop.f32.mrb[2].mxu0  ;;  %v350_v18 = vsel %vm349_vm2, %v335_v15, -inf }
  0xf8   : > { %351 = vmax.xlane.f32.xlu0 %v350_v18  ;;  %v338_v19 = vpop.f32.mrb[3].mxu0 }
  0xf9   : > { %v353_v20 = vsel %vm349_vm2, %v338_v19, -inf }
  0xfc   : > { %354 = vmax.xlane.f32.xlu0 %v353_v20 }
 0x184   : > { %v359_v21 = vpop.xlane.xlu1 %358 }
 0x185   : > { %v362_v22 = vsub.f32 %v1417_v14, %v359_v21  ;;  %v352_v23 = vpop.xlane.xlu0 %351 }
 0x186   : > { %v360_v24 = vsub.f32 %v335_v15, %v352_v23 }
 0x187   : > { %v367_v25 = vmul.f32 1.442695, %v362_v22 }
 0x188   : > { %v363_v26 = vmul.f32 1.442695, %v360_v24 }
 0x189   : > { %1530 = vpow2.f32 %v367_v25  ;;  %v355_v27 = vpop.xlane.xlu0 %354 }
 0x18a   : > { %v361_v28 = vsub.f32 %v338_v19, %v355_v27  ;;  %1532 = vpow2.f32 %v363_v26 }
 0x18c   : > { %v365_v29 = vmul.f32 1.442695, %v361_v28 }
 0x18e   : > { %1534 = vpow2.f32 %v365_v29 }
 0x193   : > { %v1531_v30 = vpop.eup %1530 }
 0x194   : > { %v375_v31 = vsel %vm356_vm1, %v1531_v30, 0.0  ;;  %v1533_v32 = vpop.eup %1532 }
 0x195   : > { %376 = vadd.xlane.f32.xlu1 %v375_v31  ;;  %v369_v34 = vsel %vm349_vm2, %v1533_v32, 0.0 }
 0x198   : > { %v1535_v33 = vpop.eup %1534 }
 0x199   : > { %370 = vadd.xlane.f32.xlu1 %v369_v34  ;;  %v372_v35 = vsel %vm349_vm2, %v1535_v33, 0.0 }
 0x19a   : > { %373 = vadd.xlane.f32.xlu0 %v372_v35 }
 0x1aa   : > { %388 = vrot.lane.b32.xlu1 %v1644_v1, %s1586_s27 }
 0x1ae   : > { %460 = vrot.lane.b32.xlu1 %v1642_v0, %s1587_s28 }
 0x1b0   : > { %386 = vrot.lane.b32.xlu0 %v1642_v0, %s1586_s27 }
 0x1b2   : > { %462 = vrot.lane.b32.xlu1 %v1644_v1, %s1587_s28 }
 0x1b4   : > { %456 = vrot.lane.b32.xlu0 %v1652_v9, %s1587_s28 }
 0x1b6   : > { %458 = vrot.lane.b32.xlu1 %v1658_v13, %s1587_s28 }
 0x222   : > { %v377_v36 = vpop.xlane.xlu1 %376 }
 0x223   : > { %1536 = vrcp.f32 %v377_v36 }
 0x226   : > { %v371_v37 = vpop.xlane.xlu1 %370 }
 0x227   : > { %1538 = vrcp.f32 %v371_v37  ;;  %v374_v38 = vpop.xlane.xlu0 %373 }
 0x228   : > { %1540 = vrcp.f32 %v374_v38  ;;  %v623_v38 = vld [vmem:[%s1809_s3 + $0x4] sm:$0xf] }
 0x22a   : > { %v389_v41 = vpop.permute.xlu1 %388 }
 0x22b   : > { %v387_v42 = vpop.permute.xlu0 %386  ;;  %v401_v43 = vand.u32 %v1674_v40, %v389_v41 }
 0x22c   : > { %1419 = vmatprep.subr.bf16.mxu1 %v387_v42 }
 0x22d   : > { %1420 = vmatpush3.bf16.msra.mxu1 %v387_v42  ;;  %v1537_v44 = vpop.eup %1536 }
 0x22e   : > { %1421 = vmatprep.subr.bf16.mxu1 %v401_v43  ;;  %v461_v45 = vpop.permute.xlu1 %460  ;;  %v383_v49 = vmul.f32 %v1537_v44, %v1531_v30 }
 0x22f   : > { %v457_v53 = vpop.permute.xlu0 %456  ;;  %v471_v54 = vsel %vm288_vm0, %v461_v45, 0 }
 0x230   : > { %v385_v52 = vpack.c.bf16 %v383_v49, %v383_v49 }
 0x231   : > { %v1539_v46 = vpop.eup %1538  ;;  %1422 = vmatpush3.bf16.msra.mxu1 %v401_v43 }
 0x232   : > { %v1541_v47 = vpop.eup %1540  ;;  %v381_v48 = vmul.f32 %v1539_v46, %v1533_v32  ;;  %1501 = vmatprep.subr.msk.bf16.mxu1 %vm288_vm0, %v461_v45  ;;  %v463_v55 = vpop.permute.xlu1 %462 }
 0x233   : > { %v382_v50 = vmul.f32 %v1541_v47, %v1535_v33  ;;  %v474_v56 = vsel %vm288_vm0, %v463_v55, 0 }
 0x235   : > { %v384_v51 = vpack.c.bf16 %v382_v50, %v381_v48  ;;  %v632_v48 = vsel %vm630_vm4, %v623_v38, 0 }
 0x236   : > { %v459_v57 = vpop.permute.xlu1 %458 }
 0x237   : > { %1423 = vmatprep.mubr.msk.bf16.mxu1 %vm349_vm2, %v384_v51 }
 0x238   : > { %1424 = vmatmul.mubr.msk.bf16.vlgmr.msra.gmra.mrb[0].mxu1 %vm349_vm2, %v385_v52 }
 0x239   : > { %1431 = vmatprep.mubr.msk.bf16.mxu1 %vm288_vm0, %v457_v53 }
 0x23a   : > { %1428 = vmatpush3.bf16.xpose.msra.mxu1 %v471_v54 }
 0x23b   : > { %1502 = vmatprep.subr.msk.bf16.mxu1 %vm288_vm0, %v463_v55 }
 0x242   : > { %1430 = vmatpush3.bf16.xpose.msra.mxu1 %v474_v56 }
 0x243   : > { %1504 = vmatprep.subr.msk.bf16.mxu1 %vm630_vm4, %v453_v58 }
 0x249   : > { %1432 = vmatmul.mubr.msk.bf16.vlgmr.msra.gmra.mrb[4].mxu1 %vm288_vm0, %v459_v57 }
 0x24a   : > { %1450 = vmatpush3.bf16.msra.mxu1 %v689_v59 }
 0x30b   : > { %v1425_v60 = vpop.f32.mrb[0].mxu1 }
 0x30c   : > { %v437_v61 = vpop.f32.mrb[1].mxu1  ;;  %v452_v3 = vpack.c.bf16 %v1425_v60, %v1425_v60 }
 0x30d   : > { %v1426_v62 = vpop.f32.mrb[2].mxu1 }
 0x30e   : > { %v440_v63 = vpop.f32.mrb[3].mxu1 }
 0x30f   : > { %v451_v2 = vpack.c.bf16 %v440_v63, %v437_v61 }
 0x311   : > { %1451 = vmatprep.mubr.msk.bf16.mxu1 %vm288_vm0, %v451_v2 }
 0x312   : > { %1452 = vmatmul.mubr.msk.bf16.vlgmr.msra.gmra.mrb[8].mxu1 %vm288_vm0, %v452_v3 }
 0x31c   : > { %v1433_v4 = vpop.f32.mrb[4].mxu1 }
 0x31d   : > { %v510_v5 = vpop.f32.mrb[5].mxu1  ;;  %v530_v11 = vsel %vm356_vm1, %v1433_v4, -inf }
 0x31e   : > { %v1434_v6 = vpop.f32.mrb[6].mxu1  ;;  %v524_v7 = vsel %vm349_vm2, %v510_v5, -inf }
 0x31f   : > { %525 = vmax.xlane.f32.xlu0 %v524_v7  ;;  %v513_v8 = vpop.f32.mrb[7].mxu1 }
 0x320   : > { %v527_v10 = vsel %vm349_vm2, %v513_v8, -inf }
 0x321   : > { %528 = vmax.xlane.f32.xlu1 %v527_v10 }
 0x323   : > { %531 = vmax.xlane.f32.xlu0 %v530_v11 }
 0x3ac   : > { %v526_v12 = vpop.xlane.xlu0 %525 }
 0x3ad   : > { %v533_v14 = vsub.f32 %v510_v5, %v526_v12 }
 0x3ae   : > { %v529_v15 = vpop.xlane.xlu1 %528 }
 0x3af   : > { %v536_v16 = vmul.f32 1.442695, %v533_v14  ;;  %v534_v17 = vsub.f32 %v513_v8, %v529_v15 }
 0x3b0   : > { %v532_v18 = vpop.xlane.xlu0 %531 }
 0x3b1   : > { %1542 = vpow2.f32 %v536_v16  ;;  %v538_v19 = vmul.f32 1.442695, %v534_v17  ;;  %v535_v20 = vsub.f32 %v1433_v4, %v532_v18 }
 0x3b3   : > { %1544 = vpow2.f32 %v538_v19  ;;  %v540_v21 = vmul.f32 1.442695, %v535_v20 }
 0x3b5   : > { %1546 = vpow2.f32 %v540_v21 }
 0x3bb   : > { %v1543_v22 = vpop.eup %1542 }
 0x3bc   : > { %v542_v23 = vsel %vm349_vm2, %v1543_v22, 0.0 }
 0x3bd   : > { %v1545_v24 = vpop.eup %1544  ;;  %543 = vadd.xlane.f32.xlu0 %v542_v23 }
 0x3be   : > { %v545_v27 = vsel %vm349_vm2, %v1545_v24, 0.0 }
 0x3bf   : > { %v1547_v25 = vpop.eup %1546 }
 0x3c0   : > { %v548_v26 = vsel %vm356_vm1, %v1547_v25, 0.0 }
 0x3c1   : > { %549 = vadd.xlane.f32.xlu1 %v548_v26  ;;  %546 = vadd.xlane.f32.xlu0 %v545_v27 }
 0x3d2   : > { %561 = vrot.lane.b32.xlu1 %v1644_v1, %s1589_s6 }
 0x3d6   : > { %743 = vrot.lane.b32.xlu1 %v1642_v0, %s1590_s7 }
 0x3d7   : > { %559 = vrot.lane.b32.xlu0 %v1642_v0, %s1589_s6 }
 0x3da   : > { %745 = vrot.lane.b32.xlu1 %v1644_v1, %s1590_s7 }
 0x3db   : > { %739 = vrot.lane.b32.xlu0 %v1652_v9, %s1590_s7 }
 0x3de   : > { %741 = vrot.lane.b32.xlu1 %v1658_v13, %s1590_s7 }
 0x3df   : > { %971 = vrot.lane.b32.xlu0 %v1642_v0, %s1591_s10 }
 0x3e2   : > { %973 = vrot.lane.b32.xlu1 %v1644_v1, %s1591_s10 }
 0x3e3   : > { %967 = vrot.lane.b32.xlu0 %v1652_v9, %s1591_s10 }
 0x3e5   : > { %v1703_v28 = vpop.f32.mrb[8].mxu1 }
 0x3e6   : > { %v1705_v29 = vpop.f32.mrb[9].mxu1  ;;  %969 = vrot.lane.b32.xlu1 %v1658_v13, %s1591_s10 }
 0x3e7   : > { %v1454_v30 = vpop.f32.mrb[10].mxu1 }
 0x3e8   : > { %v1707_v31 = vpop.f32.mrb[11].mxu1 }
 0x44a   : > { %v544_v32 = vpop.xlane.xlu0 %543 }
 0x44b   : > { %1548 = vrcp.f32 %v544_v32 }
 0x44e   : > { %v547_v33 = vpop.xlane.xlu0 %546  ;;  %v550_v34 = vpop.xlane.xlu1 %549 }
 0x44f   : > { %1550 = vrcp.f32 %v547_v33 }
 0x450   : > { %1552 = vrcp.f32 %v550_v34 }
 0x452   : > { %v560_v35 = vpop.permute.xlu0 %559  ;;  %v562_v36 = vpop.permute.xlu1 %561 }
 0x453   : > { %1435 = vmatprep.subr.bf16.mxu0 %v560_v35  ;;  %v571_v37 = vand.u32 %v562_v36, %v1674_v40 }
 0x454   : > { %1436 = vmatpush3.bf16.msra.mxu0 %v560_v35 }
 0x455   : > { %1437 = vmatprep.subr.bf16.mxu0 %v571_v37  ;;  %v1549_v39 = vpop.eup %1548 }
 0x456   : > { %v554_v43 = vmul.f32 %v1549_v39, %v1543_v22  ;;  %v744_v49 = vpop.permute.xlu1 %743  ;;  %v740_v57 = vpop.permute.xlu0 %739 }
 0x457   : > { %v754_v56 = vsel %vm288_vm0, %v744_v49, 0 }
 0x458   : > { %1438 = vmatpush3.bf16.msra.mxu0 %v571_v37 }
 0x459   : > { %v1551_v41 = vpop.eup %1550  ;;  %1503 = vmatprep.subr.msk.bf16.mxu0 %vm630_vm4, %v623_v38 }
 0x45a   : > { %v1553_v42 = vpop.eup %1552  ;;  %v555_v44 = vmul.f32 %v1551_v41, %v1545_v24  ;;  %v746_v58 = vpop.permute.xlu1 %745 }
 0x45b   : > { %v556_v45 = vmul.f32 %v1553_v42, %v1547_v25  ;;  %v757_v9 = vsel %vm288_vm0, %v746_v58, 0  ;;  %v972_v13 = vpop.permute.xlu0 %971 }
 0x45c   : > { %v557_v46 = vpack.c.bf16 %v555_v44, %v554_v43  ;;  %v982_v60 = vsel %vm288_vm0, %v972_v13, 0 }
 0x45d   : > { %v558_v47 = vpack.c.bf16 %v556_v45, %v556_v45 }
 0x45e   : > { %1439 = vmatprep.mubr.msk.bf16.mxu0 %vm349_vm2, %v557_v46  ;;  %v742_v59 = vpop.permute.xlu1 %741 }
 0x45f   : > { %1440 = vmatmul.mubr.msk.bf16.vlgmr.msra.gmra.mrb[4].mxu0 %vm349_vm2, %v558_v47  ;;  %v968_v62 = vpop.permute.xlu0 %967 }
 0x460   : > { %1444 = vmatpush3.bf16.msra.mxu0 %v632_v48 }
 0x461   : > { %1505 = vmatprep.subr.msk.bf16.mxu0 %vm288_vm0, %v744_v49 }
 0x462   : > { %v974_v61 = vpop.permute.xlu1 %973 }
 0x463   : > { %v985_v63 = vsel %vm288_vm0, %v974_v61, 0 }
 0x466   : > { %v970_v2 = vpop.permute.xlu1 %969 }
 0x532   : > { %v1441_v50 = vpop.f32.mrb[4].mxu0 }
 0x533   : > { %v607_v51 = vpop.f32.mrb[5].mxu0  ;;  %v622_v55 = vpack.c.bf16 %v1441_v50, %v1441_v50 }
 0x534   : > { %v1442_v52 = vpop.f32.mrb[6].mxu0 }
 0x535   : > { %v610_v53 = vpop.f32.mrb[7].mxu0 }
 0x536   : > { %v621_v54 = vpack.c.bf16 %v610_v53, %v607_v51 }
 0x538   : > { %1445 = vmatprep.mubr.msk.bf16.mxu0 %vm288_vm0, %v621_v54 }
 0x539   : > { %1446 = vmatmul.mubr.msk.bf16.vlgmr.msra.gmra.mrb[8].mxu0 %vm288_vm0, %v622_v55 }
 0x53a   : > { %1456 = vmatpush3.bf16.xpose.msra.mxu0 %v754_v56  ;;  %1459 = vmatprep.mubr.msk.bf16.mxu0 %vm288_vm0, %v740_v57 }
 0x53b   : > { %1506 = vmatprep.subr.msk.bf16.mxu0 %vm288_vm0, %v746_v58 }
 0x542   : > { %1458 = vmatpush3.bf16.xpose.msra.mxu0 %v757_v9 }
 0x543   : > { %1508 = vmatprep.subr.msk.bf16.mxu0 %vm288_vm0, %v972_v13 }
 0x549   : > { %1460 = vmatmul.mubr.msk.bf16.vlgmr.msra.gmra.mrb[12].mxu0 %vm288_vm0, %v742_v59 }
 0x54a   : > { %1478 = vmatpush3.bf16.xpose.msra.mxu0 %v982_v60  ;;  %1481 = vmatprep.mubr.msk.bf16.mxu0 %vm288_vm0, %v968_v62 }
 0x54b   : > { %1509 = vmatprep.subr.msk.bf16.mxu0 %vm288_vm0, %v974_v61 }
 0x552   : > { %1480 = vmatpush3.bf16.xpose.msra.mxu0 %v985_v63 }
 0x559   : > { %1482 = vmatmul.mubr.msk.bf16.vlgmr.msra.gmra.mrb[16].mxu0 %vm288_vm0, %v970_v2 }
 0x60c   : > { %v1447_v3 = vpop.f32.mrb[8].mxu0 }
 0x60d   : > { %v1737_v4 = vadd.f32 %v1703_v28, %v1447_v3  ;;  %v668_v5 = vpop.f32.mrb[9].mxu0 }
 0x60e   : > { %v1740_v6 = vadd.f32 %v1705_v29, %v668_v5  ;;  %v1448_v7 = vpop.f32.mrb[10].mxu0 }
 0x60f   : > { %v671_v8 = vpop.f32.mrb[11].mxu0 }
 0x610   : > { %v1743_v10 = vadd.f32 %v1707_v31, %v671_v8 }
 0x61c   : > { %v1461_v11 = vpop.f32.mrb[12].mxu0 }
 0x61d   : > { %v793_v12 = vpop.f32.mrb[13].mxu0  ;;  %v813_v18 = vsel %vm356_vm1, %v1461_v11, -inf }
 0x61e   : > { %v1462_v14 = vpop.f32.mrb[14].mxu0  ;;  %v807_v15 = vsel %vm349_vm2, %v793_v12, -inf }
 0x61f   : > { %808 = vmax.xlane.f32.xlu0 %v807_v15  ;;  %v796_v16 = vpop.f32.mrb[15].mxu0 }
 0x620   : > { %v810_v17 = vsel %vm349_vm2, %v796_v16, -inf }
 0x621   : > { %811 = vmax.xlane.f32.xlu1 %v810_v17 }
 0x623   : > { %814 = vmax.xlane.f32.xlu0 %v813_v18 }
 0x62c   : > { %v1748_v19 = vpop.f32.mrb[16].mxu0 }
 0x62d   : > { %v1750_v20 = vpop.f32.mrb[17].mxu0  ;;  %v1041_v41 = vsel %vm356_vm1, %v1748_v19, -inf }
 0x62e   : > { %v1484_v21 = vpop.f32.mrb[18].mxu0  ;;  %v1035_v38 = vsel %vm349_vm2, %v1750_v20, -inf }
 0x62f   : > { %v1024_v22 = vpop.f32.mrb[19].mxu0 }
 0x630   : > { %v1038_v39 = vsel %vm349_vm2, %v1024_v22, -inf }
 0x6ac   : > { %v809_v23 = vpop.xlane.xlu0 %808 }
 0x6ad   : > { %v816_v24 = vsub.f32 %v793_v12, %v809_v23 }
 0x6ae   : > { %v812_v25 = vpop.xlane.xlu1 %811 }
 0x6af   : > { %v819_v26 = vmul.f32 1.442695, %v816_v24  ;;  %v817_v27 = vsub.f32 %v796_v16, %v812_v25 }
 0x6b0   : > { %v815_v28 = vpop.xlane.xlu0 %814 }
 0x6b1   : > { %1554 = vpow2.f32 %v819_v26  ;;  %v821_v29 = vmul.f32 1.442695, %v817_v27  ;;  %v818_v30 = vsub.f32 %v1461_v11, %v815_v28  ;;  %v906_v11 = vld [vmem:[%s1809_s3 + $0x8] sm:$0xf] }
 0x6b2   : > { %v914_v12 = vsel %vm630_vm4, %v906_v11, 0 }
 0x6b3   : > { %1556 = vpow2.f32 %v821_v29  ;;  %v823_v31 = vmul.f32 1.442695, %v818_v30 }
 0x6b5   : > { %1558 = vpow2.f32 %v823_v31 }
 0x6bb   : > { %v1555_v32 = vpop.eup %1554 }
 0x6bc   : > { %v825_v33 = vsel %vm349_vm2, %v1555_v32, 0.0 }
 0x6bd   : > { %v1557_v34 = vpop.eup %1556  ;;  %826 = vadd.xlane.f32.xlu0 %v825_v33 }
 0x6be   : > { %v828_v37 = vsel %vm349_vm2, %v1557_v34, 0.0 }
 0x6bf   : > { %v1559_v35 = vpop.eup %1558 }
 0x6c0   : > { %v831_v36 = vsel %vm356_vm1, %v1559_v35, 0.0 }
 0x6c1   : > { %832 = vadd.xlane.f32.xlu1 %v831_v36  ;;  %829 = vadd.xlane.f32.xlu0 %v828_v37 }
 0x6d2   : > { %844 = vrot.lane.b32.xlu1 %v1644_v1, %s1592_s11 }
 0x6d7   : > { %842 = vrot.lane.b32.xlu0 %v1642_v0, %s1592_s11 }
 0x6f6   : > { %1036 = vmax.xlane.f32.xlu1 %v1035_v38  ;;  %1039 = vmax.xlane.f32.xlu0 %v1038_v39 }
 0x6fa   : > { %1042 = vmax.xlane.f32.xlu0 %v1041_v41 }
 0x74a   : > { %v827_v42 = vpop.xlane.xlu0 %826 }
 0x74b   : > { %1560 = vrcp.f32 %v827_v42 }
 0x74e   : > { %v830_v43 = vpop.xlane.xlu0 %829  ;;  %v833_v44 = vpop.xlane.xlu1 %832 }
 0x74f   : > { %1562 = vrcp.f32 %v830_v43 }
 0x750   : > { %1564 = vrcp.f32 %v833_v44 }
 0x752   : > { %v843_v45 = vpop.permute.xlu0 %842  ;;  %v845_v46 = vpop.permute.xlu1 %844 }
 0x753   : > { %1463 = vmatprep.subr.bf16.mxu1 %v843_v45  ;;  %v854_v47 = vand.u32 %v845_v46, %v1674_v40 }
 0x754   : > { %1464 = vmatpush3.bf16.msra.mxu1 %v843_v45 }
 0x755   : > { %1465 = vmatprep.subr.bf16.mxu1 %v854_v47  ;;  %v1561_v48 = vpop.eup %1560 }
 0x756   : > { %v837_v51 = vmul.f32 %v1561_v48, %v1555_v32  ;;  %v1134_v32 = vld [vmem:[%s1809_s3 + $0xc] sm:$0xf] }
 0x758   : > { %1466 = vmatpush3.bf16.msra.mxu1 %v854_v47 }
 0x759   : > { %v1563_v49 = vpop.eup %1562  ;;  %1507 = vmatprep.subr.msk.bf16.mxu1 %vm630_vm4, %v906_v11 }
 0x75a   : > { %v1565_v50 = vpop.eup %1564  ;;  %v838_v52 = vmul.f32 %v1563_v49, %v1557_v34 }
 0x75b   : > { %v839_v53 = vmul.f32 %v1565_v50, %v1559_v35 }
 0x75c   : > { %v840_v54 = vpack.c.bf16 %v838_v52, %v837_v51 }
 0x75d   : > { %v841_v55 = vpack.c.bf16 %v839_v53, %v839_v53 }
 0x75e   : > { %1467 = vmatprep.mubr.msk.bf16.mxu1 %vm349_vm2, %v840_v54 }
 0x75f   : > { %1468 = vmatmul.mubr.msk.bf16.vlgmr.msra.gmra.mrb[12].mxu1 %vm349_vm2, %v841_v55 }
 0x760   : > { %1472 = vmatpush3.bf16.msra.mxu1 %v914_v12 }
 0x783   : > { %v1040_v56 = vpop.xlane.xlu0 %1039  ;;  %v1037_v57 = vpop.xlane.xlu1 %1036 }
 0x784   : > { %v1045_v58 = vsub.f32 %v1024_v22, %v1040_v56  ;;  %v1044_v13 = vsub.f32 %v1750_v20, %v1037_v57 }
 0x786   : > { %v1049_v9 = vmul.f32 1.442695, %v1045_v58  ;;  %v1047_v61 = vmul.f32 1.442695, %v1044_v13  ;;  %v1233_v13 = vld [vmem:[%s264_s26 + $0x8] sm:$0x1] }
 0x787   : > { %v1043_v59 = vpop.xlane.xlu0 %1042 }
 0x788   : > { %1566 = vpow2.f32 %v1049_v9  ;;  %v1046_v60 = vsub.f32 %v1748_v19, %v1043_v59 }
 0x78a   : > { %v1051_v62 = vmul.f32 1.442695, %v1046_v60 }
 0x78c   : > { %1568 = vpow2.f32 %v1051_v62 }
 0x78d   : > { %1570 = vpow2.f32 %v1047_v61 }
 0x792   : > { %v1567_v63 = vpop.eup %1566 }
 0x793   : > { %v1056_v2 = vsel %vm349_vm2, %v1567_v63, 0.0 }
 0x794   : > { %1057 = vadd.xlane.f32.xlu0 %v1056_v2 }
 0x796   : > { %v1569_v3 = vpop.eup %1568 }
 0x797   : > { %v1059_v5 = vsel %vm356_vm1, %v1569_v3, 0.0  ;;  %v1571_v7 = vpop.eup %1570 }
 0x798   : > { %1060 = vadd.xlane.f32.xlu1 %v1059_v5  ;;  %v1053_v8 = vsel %vm349_vm2, %v1571_v7, 0.0 }
 0x79c   : > { %1054 = vadd.xlane.f32.xlu1 %v1053_v8 }
 0x7aa   : > { %1070 = vrot.lane.b32.xlu0 %v1642_v0, %s1593_s12 }
 0x7ad   : > { %1072 = vrot.lane.b32.xlu1 %v1644_v1, %s1593_s12 }
 0x821   : > { %v1058_v14 = vpop.xlane.xlu0 %1057 }
 0x822   : > { %1572 = vrcp.f32 %v1058_v14 }
 0x825   : > { %v1061_v15 = vpop.xlane.xlu1 %1060  ;;  %v1071_v16 = vpop.permute.xlu0 %1070 }
 0x826   : > { %1485 = vmatprep.subr.bf16.mxu1 %v1071_v16 }
 0x829   : > { %v1055_v17 = vpop.xlane.xlu1 %1054 }
 0x82a   : > { %1574 = vrcp.f32 %v1055_v17 }
 0x82b   : > { %1576 = vrcp.f32 %v1061_v15 }
 0x82c   : > { %v1573_v0 = vpop.eup %1572 }
 0x82d   : > { %v1073_v21 = vpop.permute.xlu1 %1072  ;;  %v1066_v24 = vmul.f32 %v1573_v0, %v1567_v63 }
 0x82e   : > { %v1082_v27 = vand.u32 %v1073_v21, %v1674_v40  ;;  %v1142_v40 = vsel %vm630_vm4, %v1134_v32, 0 }
 0x832   : > { %v1469_v18 = vpop.f32.mrb[12].mxu1 }
 0x833   : > { %v890_v1 = vpop.f32.mrb[13].mxu1  ;;  %v905_v26 = vpack.c.bf16 %v1469_v18, %v1469_v18 }
 0x834   : > { %v1575_v19 = vpop.eup %1574  ;;  %v1470_v20 = vpop.f32.mrb[14].mxu1 }
 0x835   : > { %v893_v22 = vpop.f32.mrb[15].mxu1  ;;  %v1065_v23 = vmul.f32 %v1575_v19, %v1571_v7  ;;  %v1577_v29 = vpop.eup %1576 }
 0x836   : > { %v904_v25 = vpack.c.bf16 %v893_v22, %v890_v1  ;;  %v1067_v30 = vmul.f32 %v1577_v29, %v1569_v3 }
 0x837   : > { %v1068_v28 = vpack.c.bf16 %v1066_v24, %v1065_v23 }
 0x838   : > { %1473 = vmatprep.mubr.msk.bf16.mxu1 %vm288_vm0, %v904_v25  ;;  %v1069_v31 = vpack.c.bf16 %v1067_v30, %v1067_v30 }
 0x839   : > { %1474 = vmatmul.mubr.msk.bf16.vlgmr.msra.gmra.mrb[16].mxu1 %vm288_vm0, %v905_v26 }
 0x83a   : > { %1486 = vmatpush3.bf16.msra.mxu1 %v1071_v16  ;;  %1489 = vmatprep.mubr.msk.bf16.mxu1 %vm349_vm2, %v1068_v28 }
 0x83b   : > { %1487 = vmatprep.subr.bf16.mxu1 %v1082_v27 }
 0x83e   : > { %1488 = vmatpush3.bf16.msra.mxu1 %v1082_v27 }
 0x83f   : > { %1510 = vmatprep.subr.msk.bf16.mxu1 %vm630_vm4, %v1134_v32 }
 0x841   : > { %1490 = vmatmul.mubr.msk.bf16.vlgmr.msra.gmra.mrb[20].mxu1 %vm349_vm2, %v1069_v31 }
 0x842   : > { %1494 = vmatpush3.bf16.msra.mxu1 %v1142_v40 }
 0x90c   : > { %v1475_v33 = vpop.f32.mrb[16].mxu1 }
 0x90d   : > { %v966_v34 = vadd.f32 %v1475_v33, %v1737_v4  ;;  %v950_v35 = vpop.f32.mrb[17].mxu1  ;;  %v1207_v4 = vld [vmem:[%s259_s21 + $0x8] sm:$0x1] }
 0x90e   : > { %v964_v36 = vadd.f32 %v950_v35, %v1740_v6  ;;  %v1476_v37 = vpop.f32.mrb[18].mxu1  ;;  %v1364_v6 = vld [vmem:[%s259_s21] sm:$0xff]   ;;  %v1210_v49 = vunpack.c.l.bf16 %v1207_v4 }
 0x90f   : > { %v953_v38 = vpop.f32.mrb[19].mxu1  ;;  %v1365_v52 = vunpack.c.l.bf16 %v1364_v6  ;;  %v1366_v58 = vunpack.c.h.bf16 %v1364_v6 }
 0x910   : > { %v965_v39 = vadd.f32 %v953_v38, %v1743_v10  ;;  %v1350_v10 = vld [vmem:[%s1810_s4] ss:$0 sm:$0xff] }
 0x914   : > { %v1491_v41 = vpop.f32.mrb[20].mxu1 }
 0x915   : > { %v1118_v42 = vpop.f32.mrb[21].mxu1  ;;  %v1133_v46 = vpack.c.bf16 %v1491_v41, %v1491_v41 }
 0x916   : > { %v1492_v43 = vpop.f32.mrb[22].mxu1 }
 0x917   : > { %v1121_v44 = vpop.f32.mrb[23].mxu1 }
 0x918   : > { %v1132_v45 = vpack.c.bf16 %v1121_v44, %v1118_v42 }
 0x91a   : > { %1495 = vmatprep.mubr.msk.bf16.mxu1 %vm288_vm0, %v1132_v45 }
 0x91b   : > { %1496 = vmatmul.mubr.msk.bf16.vlgmr.msra.gmra.mrb[24].mxu1 %vm288_vm0, %v1133_v46 }
 0x9ee   : > { %v1497_v47 = vpop.f32.mrb[24].mxu1 }
 0x9ef   : > { %v1194_v48 = vadd.f32 %v1497_v47, %v966_v34  ;;  %v1178_v50 = vpop.f32.mrb[25].mxu1 }
 0x9f0   : > { %v1192_v51 = vadd.f32 %v1178_v50, %v964_v36  ;;  %v1498_v53 = vpop.f32.mrb[26].mxu1 }
 0x9f1   : > { %v1204_v54 = vadd.f32 %v1350_v10, %v1194_v48  ;;  %v1181_v55 = vpop.f32.mrb[27].mxu1 }
 0x9f2   : > { %v1202_v56 = vadd.f32 %v1350_v10, %v1192_v51  ;;  %v1193_v57 = vadd.f32 %v1181_v55, %v965_v39 }
 0x9f3   : > { %v1213_v9 = vadd.f32 %v1210_v49, %v1204_v54 }
 0x9f4   : > { %v1211_v59 = vadd.f32 %v1365_v52, %v1202_v56  ;;  %v1203_v60 = vadd.f32 %v1350_v10, %v1193_v57 }
 0x9f5   : > { %v1358_v61 = vpack.c.bf16 %v1213_v9, %v1213_v9 }
 0x9f6   : > { %v1356_v62 = vpack.c.bf16 %v1211_v59, %v1211_v59  ;;  %v1212_v63 = vadd.f32 %v1366_v58, %v1203_v60 }
 0x9f7   : > { %v1234_v2 = vsel %vm1232_vm7, %v1358_v61, %v1233_v13 }
 0x9f8   : > { %1235 = vst [vmem:[%s264_s26 + $0x8] sm:$0x1] %v1234_v2  ;;  %1228 = vst.msk [vmem:[%s264_s26] sm:$0xf] %vm1227_vm8, %v1356_v62  ;;  %v1357_v3 = vpack.c.bf16 %v1212_v63, %v1212_v63 }
 0x9fa   : > { %1229 = vst.msk [vmem:[%s264_s26 + $0x4] sm:$0xf] %vm1227_vm8, %v1357_v3 }
 0x9fb PF: > { %s15_s18 = sadd.s32 1, %s1584_s18  }
 0x9fc   : > { %p12_p4 = scmp.ge.s32.totalorder %s15_s18, 4  }
 0x9fe   :  { %14 = sbr.rel (!%p12_p4) target bundleno = 1 (0x1), region = 76 }

// kernel: mvit_forward.17
= control target key start
LH: loop header
LB: loop body
LE: loop exit
PB: predicated region body
PF: predicated region fallthrough
CT: control target
= control target key end

     0   :  { %s1501_s24 = smov 0   ;;  %s1892_s0 = inlined_call_operand.vmem [shape: bf16[2,1,32], index: 0, kind: input, shape index: {}]   ;;  %s1893_s1 = inlined_call_operand.vmem [shape: bf16[2,16,27,32], index: 1, kind: input, shape index: {}]   ;;  %s1894_s2 = inlined_call_operand.vmem [shape: f32[27,32], index: 2, kind: input, shape index: {}]   ;;  %s1895_s3 = inlined_call_operand.vmem [shape: f32[1,32], index: 3, kind: input, shape index: {}]   ;;  %s1896_s4 = inlined_call_operand.vmem [shape: f32[1,32], index: 4, kind: input, shape index: {}]   ;;  %s1897_s5 = inlined_call_operand.vmem [shape: f32[32,4], index: 5, kind: input, shape index: {}]   ;;  %s1898_s6 = inlined_call_operand.vmem [shape: f32[4,32], index: 6, kind: input, shape index: {}]   ;;  %s1899_s7 = inlined_call_operand.vmem [shape: bf16[2,17,32], index: 7, kind: output, shape index: {}]  }
   0x1 LB: > { %s1230_s25 = sadd.s32 4294967295, %s1456_s24   ;;  %p1234_p0 = scmp.ge.s32.totalorder %s1456_s24, 1  ;;  %s1456_s24 = sphi %s1501_s24, %s17_s24  }
   0x2   : > { %p245_p1 = scmp.lt.s32.totalorder %s1456_s24, 3 }
   0x4   : > { %p246_p2 = pnand %p1234_p0, %p245_p1 }
   0x5   : > { %v742_v0 = vld [vmem:[%s1897_s5] sm:$0xff] (!%p246_p2)  ;;  %v743_v1 = vld [vmem:[%s1897_s5 + $0x8] sm:$0xff] (!%p246_p2)  ;;  %v744_v2 = vld [vmem:[%s1897_s5 + $0x10] sm:$0xff] (!%p246_p2)  ;;  %v1458_v3 = vmov (!%p246_p2), 0.0|0.0   ;;  %vm1459_vm0 = vmmov (!%p246_p2), 0   ;;  %v1460_v6 = vmov (!%p246_p2), 0.0  }
   0x6   : > { %249 = sbr.rel (%p246_p2) target bundleno = 996 (0x3e4), region = 48  ;;  %1420 = vmatprep.subr.bf16.mxu0 (!%p246_p2), %v1458_v3  ;;  %v1519_v4 = vpack.c.bf16 (!%p246_p2), %v743_v1, %v742_v0  ;;  %v745_v5 = vld [vmem:[%s1897_s5 + $0x18] sm:$0xff] (!%p246_p2)  ;;  %1372 = vmatprep.mubr.msk.f32.mxu0 (!%p246_p2), %vm1459_vm0, %v1460_v6  ;;  %p280_p3 = scmp.lt.s32.totalorder (!%p246_p2), %s1230_s25, 1  ;;  %v1565_v34 = vld [vmem:[%s1894_s2] sm:$0xff] (!%p246_p2)  ;;  %v1570_v35 = vld [vmem:[%s1894_s2 + $0x8] sm:$0xff] (!%p246_p2)  ;;  %vm489_vm1 = vcmask (!%p246_p2), 261120  }
   0x7   : > { %1381 = vmatprep.subr.mxu1 (!%p246_p2), %v1460_v6  ;;  %1383 = vmatprep.mubr.msk.f32.mxu1 (!%p246_p2), %vm1459_vm0, %v1460_v6  ;;  %v1530_v7 = vpack.c.bf16 (!%p246_p2), %v745_v5, %v744_v2  ;;  %v1575_v36 = vld [vmem:[%s1894_s2 + $0x10] sm:$0xff] (!%p246_p2)  ;;  %v1580_v37 = vld [vmem:[%s1894_s2 + $0x18] sm:$0x7] (!%p246_p2)  ;;  %vm495_vm2 = vcmask (!%p246_p2), 256000   ;;  %vm717_vm3 = vcmask (!%p246_p2), 1042434   ;;  %vm719_vm4 = vcmask (!%p246_p2), 1043459  }
   0x8   : > { %1422 = vmatpush3.bf16.msra.mxu0 (!%p246_p2), %v1519_v4  ;;  %vm721_vm5 = vcmask (!%p246_p2), 1044484   ;;  %vm723_vm6 = vcmask (!%p246_p2), 1045509   ;;  %vm725_vm7 = vcmask (!%p246_p2), 1046534   ;;  %vm727_vm8 = vcmask (!%p246_p2), 1047559  }
   0x9   : > { %1423 = vmatprep.subr.bf16.mxu0 (!%p246_p2), %v1458_v3  ;;  %vm740_vm9 = vcmask (!%p246_p2), 1040384   ;;  %vm729_vm10 = vcmask (!%p246_p2), 1041409   ;;  %vm849_vm11 = vcmask (!%p246_p2), 1043456   ;;  %vm839_vm12 = vcmask (!%p246_p2), 31744  }
   0xa   : > { %vm1157_vm13 = vcmask (!%p246_p2), 257024   ;;  %vm1160_vm14 = vcmask (!%p246_p2), 253952   ;;  %vm1161_vm15 = vsmask.f32 (!%p246_p2), 256 }
   0xc   : > { %1425 = vmatpush3.bf16.msra.mxu0 (!%p246_p2), %v1530_v7 }
   0xd   : > { %s1901_s25 = smov (!%p280_p3, %s1230_s25), 1  ;;  %1409 = vmatprep.subr.mxu0 %v1460_v6 }
   0xe   : > { %s282_s13 = scalar_lea.vmem %s1892_s0, %s1901_s25  ;;  %s1259_s14 = sshll.u32 %s1901_s25, 8 }
   0xf   : > { %s1543_s17 = scalar_lea.vmem %s1893_s1, %s1259_s14  ;;  %v1545_v8 = vld [vmem:[%s282_s13] sm:$0x1]  ;;  %s1432_s9 = smul.u32 12, %s1901_s25 }
  0x10   : > { %v1264_v9 = vld [vmem:[%s1543_s17] sm:$0xff]   ;;  %v295_v10 = vld [vmem:[%s1543_s17 + $0x8] ss:$16 sps:$4 sm:$0xff]   ;;  %v296_v11 = vld [vmem:[%s1543_s17 + $0xc] sm:$0x3]  ;;  %v700_v12 = vunpack.c.l.bf16 %v1545_v8 }
  0x11   : > { %v1265_v13 = vunpack.c.l.bf16 %v1264_v9  ;;  %v1266_v14 = vunpack.c.h.bf16 %v1264_v9  ;;  %v1327_v15 = vld [vmem:[%s1543_s17 + $0x10] sm:$0xff]   ;;  %v300_v16 = vld [vmem:[%s1543_s17 + $0x1c] sm:$0x3]  ;;  %v1328_v17 = vld [vmem:[%s1543_s17 + $0x20] sm:$0xff]   ;;  %v359_v18 = vunpack.c.l.bf16 %v295_v10  ;;  %v360_v19 = vunpack.c.l.bf16 %v296_v11  ;;  %s292_s14 = scalar_lea.vmem %s1899_s7, %s1432_s9 }
  0x12   : > { %v1269_v20 = vunpack.c.l.bf16 %v1327_v15  ;;  %v1270_v21 = vunpack.c.h.bf16 %v1327_v15  ;;  %v1273_v22 = vunpack.c.l.bf16 %v1328_v17  ;;  %v1274_v23 = vunpack.c.h.bf16 %v1328_v17  ;;  %v303_v24 = vld [vmem:[%s1543_s17 + $0x28] ss:$16 sps:$4 sm:$0xff]   ;;  %v304_v25 = vld [vmem:[%s1543_s17 + $0x2c] sm:$0x3]  ;;  %v1329_v26 = vld [vmem:[%s1543_s17 + $0x30] sm:$0xff]  }
  0x13   : > { %v1277_v27 = vunpack.c.l.bf16 %v1329_v26  ;;  %v1278_v28 = vunpack.c.h.bf16 %v1329_v26  ;;  %v308_v29 = vld [vmem:[%s1543_s17 + $0x3c] sm:$0x3]  ;;  %v1330_v30 = vld [vmem:[%s1543_s17 + $0x40] sm:$0xff]   ;;  %v311_v31 = vld [vmem:[%s1543_s17 + $0x48] ss:$16 sps:$4 sm:$0xff]   ;;  %v363_v32 = vunpack.c.h.bf16 %v295_v10  ;;  %v364_v33 = vunpack.c.l.bf16 %v300_v16 }
  0x14   : > { %v1281_v38 = vunpack.c.l.bf16 %v1330_v30  ;;  %v1282_v39 = vunpack.c.h.bf16 %v1330_v30  ;;  %v312_v40 = vld [vmem:[%s1543_s17 + $0x4c] sm:$0x3]  ;;  %v1331_v41 = vld [vmem:[%s1543_s17 + $0x50] sm:$0xff]   ;;  %v316_v42 = vld [vmem:[%s1543_s17 + $0x5c] sm:$0x3]  ;;  %v367_v43 = vunpack.c.l.bf16 %v303_v24  ;;  %v368_v44 = vunpack.c.l.bf16 %v304_v25 }
  0x15   : > { %v1285_v45 = vunpack.c.l.bf16 %v1331_v41  ;;  %v1286_v46 = vunpack.c.h.bf16 %v1331_v41  ;;  %v1332_v47 = vld [vmem:[%s1543_s17 + $0x60] sm:$0xff]   ;;  %v1587_v48 = vld [vmem:[%s1543_s17 + $0x68] ss:$16 sps:$4 sm:$0xff]   ;;  %v320_v49 = vld [vmem:[%s1543_s17 + $0x6c] sm:$0x3]  ;;  %v371_v50 = vunpack.c.h.bf16 %v303_v24  ;;  %v372_v51 = vunpack.c.l.bf16 %v308_v29 }
  0x16   : > { %v1289_v52 = vunpack.c.l.bf16 %v1332_v47  ;;  %v1290_v53 = vunpack.c.h.bf16 %v1332_v47  ;;  %v375_v54 = vunpack.c.l.bf16 %v311_v31  ;;  %v376_v55 = vunpack.c.l.bf16 %v312_v40 }
  0x17   : > { %v379_v56 = vunpack.c.h.bf16 %v311_v31  ;;  %v380_v57 = vunpack.c.l.bf16 %v316_v42  ;;  %v383_v58 = vunpack.c.l.bf16 %v1587_v48  ;;  %v384_v59 = vunpack.c.l.bf16 %v320_v49 }
  0x18   : > { %v425_v60 = vmul.f32 %v1265_v13, %v1565_v34  ;;  %v426_v61 = vmul.f32 %v1266_v14, %v1570_v35  ;;  %v427_v62 = vmul.f32 %v1575_v36, %v359_v18  ;;  %v428_v63 = vmul.f32 %v1580_v37, %v360_v19 }
  0x19   : > { %v429_v0 = vmul.f32 %v1269_v20, %v1565_v34  ;;  %v430_v1 = vmul.f32 %v1270_v21, %v1570_v35  ;;  %v431_v2 = vmul.f32 %v1575_v36, %v363_v32  ;;  %v432_v5 = vmul.f32 %v1580_v37, %v364_v33 }
  0x1a   : > { %v433_v9 = vmul.f32 %v1273_v22, %v1565_v34  ;;  %v434_v10 = vmul.f32 %v1274_v23, %v1570_v35  ;;  %v435_v11 = vmul.f32 %v1575_v36, %v367_v43  ;;  %v436_v13 = vmul.f32 %v1580_v37, %v368_v44 }
  0x1b   : > { %v437_v14 = vmul.f32 %v1277_v27, %v1565_v34  ;;  %v438_v15 = vmul.f32 %v1278_v28, %v1570_v35  ;;  %v439_v16 = vmul.f32 %v1575_v36, %v371_v50  ;;  %v440_v17 = vmul.f32 %v1580_v37, %v372_v51 }
  0x1c   : > { %v441_v18 = vmul.f32 %v1281_v38, %v1565_v34  ;;  %v442_v19 = vmul.f32 %v1282_v39, %v1570_v35  ;;  %v443_v20 = vmul.f32 %v1575_v36, %v375_v54  ;;  %v444_v21 = vmul.f32 %v1580_v37, %v376_v55 }
  0x1d   : > { %v445_v22 = vmul.f32 %v1285_v45, %v1565_v34  ;;  %v446_v23 = vmul.f32 %v1286_v46, %v1570_v35  ;;  %v447_v24 = vmul.f32 %v1575_v36, %v379_v56  ;;  %v448_v25 = vmul.f32 %v1580_v37, %v380_v57 }
  0x1e   : > { %v449_v26 = vmul.f32 %v1289_v52, %v1565_v34  ;;  %v450_v27 = vmul.f32 %v1290_v53, %v1570_v35  ;;  %v1618_v28 = vmul.f32 %v1575_v36, %v383_v58  ;;  %v1621_v29 = vmul.f32 %v1580_v37, %v384_v59 }
  0x1f   : > { %v490_v30 = vsel %vm489_vm1, %v425_v60, 0.0  ;;  %v491_v31 = vsel %vm489_vm1, %v426_v61, 0.0  ;;  %v493_v32 = vsel %vm489_vm1, %v427_v62, 0.0  ;;  %v496_v33 = vsel %vm495_vm2, %v428_v63, 0.0 }
  0x20   : > { %v492_v38 = vadd.f32 %v491_v31, %v490_v30  ;;  %v504_v39 = vsel %vm489_vm1, %v429_v0, 0.0  ;;  %v505_v40 = vsel %vm489_vm1, %v430_v1, 0.0  ;;  %v507_v41 = vsel %vm489_vm1, %v431_v2, 0.0 }
  0x21   : > { %v506_v42 = vadd.f32 %v505_v40, %v504_v39  ;;  %v509_v43 = vsel %vm495_vm2, %v432_v5, 0.0  ;;  %v517_v44 = vsel %vm489_vm1, %v433_v9, 0.0  ;;  %v518_v45 = vsel %vm489_vm1, %v434_v10, 0.0 }
  0x22   : > { %v494_v46 = vadd.f32 %v493_v32, %v492_v38  ;;  %v519_v47 = vadd.f32 %v518_v45, %v517_v44  ;;  %v520_v49 = vsel %vm489_vm1, %v435_v11, 0.0  ;;  %v522_v50 = vsel %vm495_vm2, %v436_v13, 0.0 }
  0x23   : > { %v508_v51 = vadd.f32 %v507_v41, %v506_v42  ;;  %v530_v52 = vsel %vm489_vm1, %v437_v14, 0.0  ;;  %v531_v53 = vsel %vm489_vm1, %v438_v15, 0.0  ;;  %v533_v54 = vsel %vm489_vm1, %v439_v16, 0.0 }
  0x24   : > { %v497_v55 = vadd.f32 %v496_v33, %v494_v46  ;;  %v521_v56 = vadd.f32 %v520_v49, %v519_v47  ;;  %v532_v57 = vadd.f32 %v531_v53, %v530_v52  ;;  %v535_v58 = vsel %vm495_vm2, %v440_v17, 0.0  ;;  %v1652_v49 = vld [vmem:[%s1543_s17 + $0x70] sm:$0xff]  }
  0x25   : > { %v510_v59 = vadd.f32 %v509_v43, %v508_v51  ;;  %v543_v60 = vsel %vm489_vm1, %v441_v18, 0.0  ;;  %v544_v61 = vsel %vm489_vm1, %v442_v19, 0.0  ;;  %v546_v62 = vsel %vm489_vm1, %v443_v20, 0.0 }
  0x26   : > { %v498_v63 = vrot.slane %v497_v55, 4  ;;  %v523_v0 = vadd.f32 %v522_v50, %v521_v56  ;;  %v534_v1 = vadd.f32 %v533_v54, %v532_v57  ;;  %v545_v2 = vadd.f32 %v544_v61, %v543_v60 }
  0x27   : > { %v511_v5 = vrot.slane %v510_v59, 4  ;;  %v548_v9 = vsel %vm495_vm2, %v444_v21, 0.0  ;;  %v556_v10 = vsel %vm489_vm1, %v445_v22, 0.0  ;;  %v557_v11 = vsel %vm489_vm1, %v446_v23, 0.0 }
  0x28   : > { %v499_v13 = vadd.f32 %v498_v63, %v497_v55  ;;  %v524_v14 = vrot.slane %v523_v0, 4  ;;  %v536_v15 = vadd.f32 %v535_v58, %v534_v1  ;;  %v547_v16 = vadd.f32 %v546_v62, %v545_v2 }
  0x29   : > { %v512_v17 = vadd.f32 %v511_v5, %v510_v59  ;;  %v558_v18 = vadd.f32 %v557_v11, %v556_v10  ;;  %v559_v19 = vsel %vm489_vm1, %v447_v24, 0.0  ;;  %v561_v20 = vsel %vm495_vm2, %v448_v25, 0.0  ;;  %v1667_v10 = vld [vmem:[%s1543_s17 + $0xa0] sm:$0xff]  }
  0x2a   : > { %v500_v30 = vrot.slane %v499_v13, 2  ;;  %v525_v31 = vadd.f32 %v524_v14, %v523_v0  ;;  %v537_v32 = vrot.slane %v536_v15, 4  ;;  %v549_v21 = vadd.f32 %v548_v9, %v547_v16  ;;  %v1672_v16 = vld [vmem:[%s1543_s17 + $0xb0] sm:$0xff]  }
  0x2b   : > { %v513_v33 = vrot.slane %v512_v17, 2  ;;  %v560_v22 = vadd.f32 %v559_v19, %v558_v18  ;;  %v569_v23 = vsel %vm489_vm1, %v449_v26, 0.0  ;;  %v570_v38 = vsel %vm489_vm1, %v450_v27, 0.0 }
  0x2c   : > { %v501_v39 = vadd.f32 %v500_v30, %v499_v13  ;;  %v526_v40 = vrot.slane %v525_v31, 2  ;;  %v538_v41 = vadd.f32 %v537_v32, %v536_v15  ;;  %v550_v42 = vrot.slane %v549_v21, 4  ;;  %v1677_v30 = vld [vmem:[%s1543_s17 + $0xc0] sm:$0xff]  }
  0x2d   : > { %v514_v24 = vadd.f32 %v513_v33, %v512_v17  ;;  %v562_v43 = vadd.f32 %v561_v20, %v560_v22  ;;  %v571_v25 = vadd.f32 %v570_v38, %v569_v23  ;;  %v572_v44 = vsel %vm489_vm1, %v1618_v28, 0.0  ;;  %v1657_v28 = vld [vmem:[%s1543_s17 + $0x80] sm:$0xff]  }
  0x2e   : > { %v502_v45 = vrot.slane %v501_v39, 1  ;;  %v527_v46 = vadd.f32 %v526_v40, %v525_v31  ;;  %v539_v47 = vrot.slane %v538_v41, 2  ;;  %v551_v26 = vadd.f32 %v550_v42, %v549_v21  ;;  %v1680_v31 = vld [vmem:[%s1543_s17 + $0xd0] sm:$0xff]   ;;  %v1686_v23 = vld [vmem:[%s1543_s17 + $0xe0] sm:$0xff]   ;;  %v324_v40 = vld [vmem:[%s1543_s17 + $0x7c] sm:$0x3] }
  0x2f   : > { %v515_v27 = vrot.slane %v514_v24, 1  ;;  %v563_v50 = vrot.slane %v562_v43, 4  ;;  %v573_v51 = vadd.f32 %v572_v44, %v571_v25  ;;  %v574_v52 = vsel %vm495_vm2, %v1621_v29, 0.0  ;;  %v1662_v29 = vld [vmem:[%s1543_s17 + $0x90] sm:$0xff]   ;;  %v328_v25 = vld [vmem:[%s1543_s17 + $0x8c] sm:$0x3] }
  0x30   : > { %v503_v53 = vadd.f32 %v502_v45, %v501_v39  ;;  %v528_v54 = vrot.slane %v527_v46, 1  ;;  %v540_v55 = vadd.f32 %v539_v47, %v538_v41  ;;  %v552_v56 = vrot.slane %v551_v26, 2  ;;  %v327_v41 = vld [vmem:[%s1543_s17 + $0x88] ss:$16 sps:$4 sm:$0xff]   ;;  %v332_v44 = vld [vmem:[%s1543_s17 + $0x9c] sm:$0x3] }
  0x31   : > { %v516_v57 = vadd.f32 %v515_v27, %v514_v24  ;;  %v564_v58 = vadd.f32 %v563_v50, %v562_v43  ;;  %v575_v59 = vadd.f32 %v574_v52, %v573_v51  ;;  %v1293_v60 = vunpack.c.l.bf16 %v1652_v49  ;;  %v335_v50 = vld [vmem:[%s1543_s17 + $0xa8] ss:$16 sps:$4 sm:$0xff]   ;;  %v336_v51 = vld [vmem:[%s1543_s17 + $0xac] sm:$0x3]  ;;  %v340_v52 = vld [vmem:[%s1543_s17 + $0xbc] sm:$0x3] }
  0x32   : > { %v529_v61 = vadd.f32 %v528_v54, %v527_v46  ;;  %v541_v62 = vrot.slane %v540_v55, 1  ;;  %v553_v63 = vadd.f32 %v552_v56, %v551_v26  ;;  %v1294_v0 = vunpack.c.h.bf16 %v1652_v49  ;;  %v344_v56 = vld [vmem:[%s1543_s17 + $0xcc] sm:$0x3] }
  0x33   : > { %v565_v1 = vrot.slane %v564_v58, 2  ;;  %v576_v2 = vrot.slane %v575_v59, 4  ;;  %v718_v5 = vsel %vm717_vm3, %v516_v57, %v503_v53  ;;  %v1297_v9 = vunpack.c.l.bf16 %v1657_v28  ;;  %v348_v57 = vld [vmem:[%s1543_s17 + $0xdc] sm:$0x3] }
  0x34   : > { %v542_v11 = vadd.f32 %v541_v62, %v540_v55  ;;  %v554_v13 = vrot.slane %v553_v63, 1  ;;  %v720_v14 = vsel %vm719_vm4, %v529_v61, %v718_v5  ;;  %v1298_v15 = vunpack.c.h.bf16 %v1657_v28  ;;  %v343_v55 = vld [vmem:[%s1543_s17 + $0xc8] ss:$16 sps:$4 sm:$0xff]   ;;  %v352_v5 = vld [vmem:[%s1543_s17 + $0xec] sm:$0x3] }
  0x35   : > { %v566_v17 = vadd.f32 %v565_v1, %v564_v58  ;;  %v577_v18 = vadd.f32 %v576_v2, %v575_v59  ;;  %v1301_v19 = vunpack.c.l.bf16 %v1662_v29  ;;  %v1302_v20 = vunpack.c.h.bf16 %v1662_v29  ;;  %v1710_v2 = vld [vmem:[%s1543_s17 + $0xe8] ss:$16 sps:$4 sm:$0xff]  }
  0x36   : > { %v555_v32 = vadd.f32 %v554_v13, %v553_v63  ;;  %v722_v21 = vsel %vm721_vm5, %v542_v11, %v720_v14  ;;  %v1305_v33 = vunpack.c.l.bf16 %v1667_v10  ;;  %v1306_v22 = vunpack.c.h.bf16 %v1667_v10 }
  0x37   : > { %v567_v38 = vrot.slane %v566_v17, 1  ;;  %v578_v39 = vrot.slane %v577_v18, 2  ;;  %v1309_v42 = vunpack.c.l.bf16 %v1672_v16  ;;  %v1310_v24 = vunpack.c.h.bf16 %v1672_v16 }
  0x38   : > { %v724_v43 = vsel %vm723_vm6, %v555_v32, %v722_v21  ;;  %v1313_v45 = vunpack.c.l.bf16 %v1677_v30  ;;  %v1314_v46 = vunpack.c.h.bf16 %v1677_v30  ;;  %v1317_v47 = vunpack.c.l.bf16 %v1680_v31 }
  0x39   : > { %v568_v26 = vadd.f32 %v567_v38, %v566_v17  ;;  %v579_v27 = vadd.f32 %v578_v39, %v577_v18  ;;  %v1318_v53 = vunpack.c.h.bf16 %v1680_v31  ;;  %v1321_v54 = vunpack.c.l.bf16 %v1686_v23 }
  0x3a   : > { %v1322_v58 = vunpack.c.h.bf16 %v1686_v23  ;;  %v387_v59 = vunpack.c.h.bf16 %v1587_v48  ;;  %v388_v61 = vunpack.c.l.bf16 %v324_v40  ;;  %v391_v62 = vunpack.c.l.bf16 %v327_v41 }
  0x3b   : > { %v580_v63 = vrot.slane %v579_v27, 1  ;;  %v726_v1 = vsel %vm725_vm7, %v568_v26, %v724_v43  ;;  %v392_v11 = vunpack.c.l.bf16 %v328_v25  ;;  %v395_v13 = vunpack.c.h.bf16 %v327_v41 }
  0x3c   : > { %v396_v14 = vunpack.c.l.bf16 %v332_v44  ;;  %v399_v16 = vunpack.c.l.bf16 %v335_v50  ;;  %v400_v17 = vunpack.c.l.bf16 %v336_v51  ;;  %v403_v18 = vunpack.c.h.bf16 %v335_v50 }
  0x3d   : > { %v581_v30 = vadd.f32 %v580_v63, %v579_v27  ;;  %v404_v31 = vunpack.c.l.bf16 %v340_v52  ;;  %v407_v32 = vunpack.c.l.bf16 %v343_v55  ;;  %v408_v21 = vunpack.c.l.bf16 %v344_v56 }
  0x3e   : > { %v411_v23 = vunpack.c.h.bf16 %v343_v55  ;;  %v412_v48 = vunpack.c.l.bf16 %v348_v57  ;;  %v415_v38 = vunpack.c.l.bf16 %v1710_v2  ;;  %v416_v39 = vunpack.c.l.bf16 %v352_v5 }
  0x3f   : > { %v728_v40 = vsel %vm727_vm8, %v581_v30, %v726_v1  ;;  %v453_v43 = vmul.f32 %v1293_v60, %v1565_v34  ;;  %v454_v41 = vmul.f32 %v1294_v0, %v1570_v35  ;;  %v455_v25 = vmul.f32 %v1575_v36, %v387_v59 }
  0x40   : > { %v1725_v44 = vsel %vm740_vm9, %v700_v12, %v728_v40  ;;  %v456_v26 = vmul.f32 %v1580_v37, %v388_v61  ;;  %v457_v27 = vmul.f32 %v1297_v9, %v1565_v34  ;;  %v458_v60 = vmul.f32 %v1298_v15, %v1570_v35 }
  0x41   : > { %1373 = vmatmul.mubr.msk.f32.vlgmr.msra.gmra.mrb[0].mxu0 %vm489_vm1, %v1725_v44  ;;  %v459_v49 = vmul.f32 %v1575_v36, %v391_v62  ;;  %v460_v8 = vmul.f32 %v1580_v37, %v392_v11  ;;  %v461_v12 = vmul.f32 %v1301_v19, %v1565_v34  ;;  %v462_v0 = vmul.f32 %v1302_v20, %v1570_v35 }
  0x42   : > { %1375 = vmatprep.mubr.msk.f32.mxu0 %vm1459_vm0, %v1460_v6  ;;  %v463_v28 = vmul.f32 %v1575_v36, %v395_v13  ;;  %v464_v9 = vmul.f32 %v1580_v37, %v396_v14  ;;  %v465_v15 = vmul.f32 %v1305_v33, %v1565_v34  ;;  %v466_v50 = vmul.f32 %v1306_v22, %v1570_v35 }
  0x43   : > { %v467_v19 = vmul.f32 %v1575_v36, %v399_v16  ;;  %v468_v29 = vmul.f32 %v1580_v37, %v400_v17  ;;  %v469_v20 = vmul.f32 %v1309_v42, %v1565_v34  ;;  %v470_v51 = vmul.f32 %v1310_v24, %v1570_v35 }
  0x44   : > { %v471_v52 = vmul.f32 %v1575_v36, %v403_v18  ;;  %v472_v55 = vmul.f32 %v1580_v37, %v404_v31  ;;  %v473_v56 = vmul.f32 %v1313_v45, %v1565_v34  ;;  %v474_v33 = vmul.f32 %v1314_v46, %v1570_v35 }
  0x45   : > { %v475_v57 = vmul.f32 %v1575_v36, %v407_v32  ;;  %v476_v10 = vmul.f32 %v1580_v37, %v408_v21  ;;  %v477_v22 = vmul.f32 %v1317_v47, %v1565_v34  ;;  %v478_v59 = vmul.f32 %v1318_v53, %v1570_v35 }
  0x46   : > { %v1767_v42 = vmul.f32 %v1575_v36, %v411_v23  ;;  %v1770_v24 = vmul.f32 %v1580_v37, %v412_v48  ;;  %v1773_v61 = vmul.f32 %v1321_v54, %v1565_v34  ;;  %v1776_v45 = vmul.f32 %v1322_v58, %v1570_v35 }
  0x47   : > { %v1779_v46 = vmul.f32 %v1575_v36, %v415_v38  ;;  %v1782_v62 = vmul.f32 %v1580_v37, %v416_v39  ;;  %v582_v47 = vsel %vm489_vm1, %v453_v43, 0.0  ;;  %v583_v53 = vsel %vm489_vm1, %v454_v41, 0.0 }
  0x48   : > { %v584_v63 = vadd.f32 %v583_v53, %v582_v47  ;;  %v585_v1 = vsel %vm489_vm1, %v455_v25, 0.0  ;;  %v587_v5 = vsel %vm495_vm2, %v456_v26, 0.0  ;;  %v595_v54 = vsel %vm489_vm1, %v457_v27, 0.0 }
  0x49   : > { %v596_v58 = vsel %vm489_vm1, %v458_v60, 0.0  ;;  %v598_v11 = vsel %vm489_vm1, %v459_v49, 0.0  ;;  %v600_v13 = vsel %vm495_vm2, %v460_v8, 0.0  ;;  %v608_v14 = vsel %vm489_vm1, %v461_v12, 0.0 }
  0x4a   : > { %v586_v16 = vadd.f32 %v585_v1, %v584_v63  ;;  %v597_v17 = vadd.f32 %v596_v58, %v595_v54  ;;  %v609_v18 = vsel %vm489_vm1, %v462_v0, 0.0  ;;  %v611_v30 = vsel %vm489_vm1, %v463_v28, 0.0 }
  0x4b   : > { %v610_v31 = vadd.f32 %v609_v18, %v608_v14  ;;  %v613_v32 = vsel %vm495_vm2, %v464_v9, 0.0  ;;  %v621_v21 = vsel %vm489_vm1, %v465_v15, 0.0  ;;  %v622_v23 = vsel %vm489_vm1, %v466_v50, 0.0 }
  0x4c   : > { %v588_v48 = vadd.f32 %v587_v5, %v586_v16  ;;  %v599_v38 = vadd.f32 %v598_v11, %v597_v17  ;;  %v623_v39 = vadd.f32 %v622_v23, %v621_v21  ;;  %v624_v40 = vsel %vm489_vm1, %v467_v19, 0.0 }
  0x4d   : > { %v612_v43 = vadd.f32 %v611_v30, %v610_v31  ;;  %v626_v41 = vsel %vm495_vm2, %v468_v29, 0.0  ;;  %v634_v25 = vsel %vm489_vm1, %v469_v20, 0.0  ;;  %v635_v26 = vsel %vm489_vm1, %v470_v51, 0.0 }
  0x4e   : > { %v589_v27 = vrot.slane %v588_v48, 4  ;;  %v601_v60 = vadd.f32 %v600_v13, %v599_v38  ;;  %v625_v49 = vadd.f32 %v624_v40, %v623_v39  ;;  %v636_v8 = vadd.f32 %v635_v26, %v634_v25 }
  0x4f   : > { %v614_v12 = vadd.f32 %v613_v32, %v612_v43  ;;  %v637_v0 = vsel %vm489_vm1, %v471_v52, 0.0  ;;  %v639_v28 = vsel %vm495_vm2, %v472_v55, 0.0  ;;  %v647_v9 = vsel %vm489_vm1, %v473_v56, 0.0 }
  0x50   : > { %v590_v15 = vadd.f32 %v589_v27, %v588_v48  ;;  %v602_v50 = vrot.slane %v601_v60, 4  ;;  %v627_v19 = vadd.f32 %v626_v41, %v625_v49  ;;  %v638_v47 = vadd.f32 %v637_v0, %v636_v8 }
  0x51   : > { %v615_v29 = vrot.slane %v614_v12, 4  ;;  %v648_v20 = vsel %vm489_vm1, %v474_v33, 0.0  ;;  %v650_v51 = vsel %vm489_vm1, %v475_v57, 0.0  ;;  %v652_v53 = vsel %vm495_vm2, %v476_v10, 0.0 }
  0x52   : > { %v591_v63 = vrot.slane %v590_v15, 2  ;;  %v603_v1 = vadd.f32 %v602_v50, %v601_v60  ;;  %v628_v5 = vrot.slane %v627_v19, 4  ;;  %v640_v54 = vadd.f32 %v639_v28, %v638_v47  ;;  %v1341_v28 = vld [vmem:[%s1543_s17 + $0xf0] sm:$0xff]  }
  0x53   : > { %v616_v52 = vadd.f32 %v615_v29, %v614_v12  ;;  %v649_v55 = vadd.f32 %v648_v20, %v647_v9  ;;  %v660_v56 = vsel %vm489_vm1, %v477_v22, 0.0  ;;  %v661_v58 = vsel %vm489_vm1, %v478_v59, 0.0 }
  0x54   : > { %v592_v11 = vadd.f32 %v591_v63, %v590_v15  ;;  %v604_v13 = vrot.slane %v603_v1, 2  ;;  %v629_v14 = vadd.f32 %v628_v5, %v627_v19  ;;  %v641_v16 = vrot.slane %v640_v54, 4 }
  0x55   : > { %v617_v33 = vrot.slane %v616_v52, 2  ;;  %v651_v17 = vadd.f32 %v650_v51, %v649_v55  ;;  %v662_v57 = vadd.f32 %v661_v58, %v660_v56  ;;  %v663_v10 = vsel %vm489_vm1, %v1767_v42, 0.0  ;;  %v356_v51 = vld [vmem:[%s1543_s17 + $0xfc] sm:$0x3] }
  0x56   : > { %v593_v18 = vrot.slane %v592_v11, 1  ;;  %v605_v30 = vadd.f32 %v604_v13, %v603_v1  ;;  %v630_v31 = vrot.slane %v629_v14, 2  ;;  %v642_v32 = vadd.f32 %v641_v16, %v640_v54 }
  0x57   : > { %v618_v21 = vadd.f32 %v617_v33, %v616_v52  ;;  %v653_v23 = vadd.f32 %v652_v53, %v651_v17  ;;  %v664_v48 = vadd.f32 %v663_v10, %v662_v57  ;;  %v665_v22 = vsel %vm495_vm2, %v1770_v24, 0.0 }
  0x58   : > { %v594_v59 = vadd.f32 %v593_v18, %v592_v11  ;;  %v606_v38 = vrot.slane %v605_v30, 1  ;;  %v631_v39 = vadd.f32 %v630_v31, %v629_v14  ;;  %v643_v40 = vrot.slane %v642_v32, 2 }
  0x59   : > { %v619_v43 = vrot.slane %v618_v21, 1  ;;  %v654_v41 = vrot.slane %v653_v23, 4  ;;  %v666_v25 = vadd.f32 %v665_v22, %v664_v48  ;;  %v673_v42 = vsel %vm489_vm1, %v1773_v61, 0.0 }
  0x5a   : > { %v607_v26 = vadd.f32 %v606_v38, %v605_v30  ;;  %v632_v27 = vrot.slane %v631_v39, 1  ;;  %v644_v60 = vadd.f32 %v643_v40, %v642_v32  ;;  %v674_v49 = vsel %vm489_vm1, %v1776_v45, 0.0 }
  0x5b   : > { %v620_v8 = vadd.f32 %v619_v43, %v618_v21  ;;  %v655_v24 = vadd.f32 %v654_v41, %v653_v23  ;;  %v667_v12 = vrot.slane %v666_v25, 4  ;;  %v675_v0 = vadd.f32 %v674_v49, %v673_v42 }
  0x5c   : > { %v633_v9 = vadd.f32 %v632_v27, %v631_v39  ;;  %v645_v15 = vrot.slane %v644_v60, 1  ;;  %v676_v50 = vsel %vm489_vm1, %v1779_v46, 0.0  ;;  %v678_v61 = vsel %vm495_vm2, %v1782_v62, 0.0  ;;  %v746_v27 = vld [vmem:[%s1898_s6] sm:$0xf] }
  0x5d   : > { %v656_v19 = vrot.slane %v655_v24, 2  ;;  %v668_v47 = vadd.f32 %v667_v12, %v666_v25  ;;  %v677_v29 = vadd.f32 %v676_v50, %v675_v0  ;;  %v730_v20 = vsel %vm729_vm10, %v607_v26, %v594_v59  ;;  %1382 = vmatpush3.msk.msra.mxu1 %vm849_vm11, %v746_v27  ;;  %1410 = vmatpush3.msk.msra.mxu0 %vm849_vm11, %v746_v27 }
  0x5e   : > { %v731_v45 = vsel %vm717_vm3, %v620_v8, %v730_v20  ;;  %v1325_v53 = vunpack.c.l.bf16 %v1341_v28  ;;  %v1326_v63 = vunpack.c.h.bf16 %v1341_v28  ;;  %v646_v1 = vadd.f32 %v645_v15, %v644_v60  ;;  %1426 = vmatprep.subr.bf16.mxu1 %v1458_v3 }
  0x5f   : > { %v657_v5 = vadd.f32 %v656_v19, %v655_v24  ;;  %v669_v54 = vrot.slane %v668_v47, 2  ;;  %v679_v52 = vadd.f32 %v678_v61, %v677_v29  ;;  %v732_v55 = vsel %vm719_vm4, %v633_v9, %v731_v45 }
  0x60   : > { %v419_v46 = vunpack.c.h.bf16 %v1710_v2  ;;  %v420_v56 = vunpack.c.l.bf16 %v356_v51  ;;  %v485_v62 = vmul.f32 %v1325_v53, %v1565_v34  ;;  %v486_v14 = vmul.f32 %v1326_v63, %v1570_v35 }
  0x61   : > { %v658_v58 = vrot.slane %v657_v5, 1  ;;  %v670_v11 = vadd.f32 %v669_v54, %v668_v47  ;;  %v680_v13 = vrot.slane %v679_v52, 4  ;;  %v733_v2 = vsel %vm721_vm5, %v646_v1, %v732_v55 }
  0x62   : > { %v487_v16 = vmul.f32 %v1575_v36, %v419_v46  ;;  %v488_v33 = vmul.f32 %v1580_v37, %v420_v56  ;;  %v686_v17 = vsel %vm489_vm1, %v485_v62, 0.0  ;;  %v687_v30 = vsel %vm489_vm1, %v486_v14, 0.0  ;;  %v1252_v14 = vld [vmem:[%s1895_s3] ss:$0 sm:$0xff] }
  0x63   : > { %v659_v57 = vadd.f32 %v658_v58, %v657_v5  ;;  %v671_v10 = vrot.slane %v670_v11, 1  ;;  %v681_v18 = vadd.f32 %v680_v13, %v679_v52  ;;  %v688_v31 = vadd.f32 %v687_v30, %v686_v17 }
  0x64   : > { %v689_v34 = vsel %vm489_vm1, %v487_v16, 0.0  ;;  %v691_v21 = vsel %vm495_vm2, %v488_v33, 0.0 }
  0x65   : > { %v682_v32 = vrot.slane %v681_v18, 2  ;;  %v672_v35 = vadd.f32 %v671_v10, %v670_v11  ;;  %v690_v23 = vadd.f32 %v689_v34, %v688_v31  ;;  %v734_v37 = vsel %vm723_vm6, %v659_v57, %v733_v2 }
  0x67   : > { %v683_v36 = vadd.f32 %v682_v32, %v681_v18  ;;  %v692_v48 = vadd.f32 %v691_v21, %v690_v23  ;;  %v735_v59 = vsel %vm725_vm7, %v672_v35, %v734_v37 }
  0x69   : > { %v684_v22 = vrot.slane %v683_v36, 1  ;;  %v693_v38 = vrot.slane %v692_v48, 4 }
  0x6b   : > { %v685_v39 = vadd.f32 %v684_v22, %v683_v36  ;;  %v694_v40 = vadd.f32 %v693_v38, %v692_v48  ;;  %v1163_v38 = vld [vmem:[%s292_s14 + $0x8] sm:$0x1] }
  0x6d   : > { %v736_v43 = vsel %vm727_vm8, %v685_v39, %v735_v59  ;;  %v695_v41 = vrot.slane %v694_v40, 2 }
  0x6e   : > { %1376 = vmatmul.mubr.msk.f32.gmra.mrb[2].mxu0 %vm489_vm1, %v736_v43 }
  0x6f   : > { %1378 = vmatprep.mubr.msk.f32.mxu0 %vm1459_vm0, %v1460_v6  ;;  %v696_v25 = vadd.f32 %v695_v41, %v694_v40 }
  0x71   : > { %v697_v42 = vrot.slane %v696_v25, 1 }
  0x73   : > { %v698_v26 = vadd.f32 %v697_v42, %v696_v25 }
  0x75   : > { %1379 = vmatmul.mubr.msk.f32.gmra.mrb[4].mxu0 %vm489_vm1, %v698_v26 }
  0x76   : > { %1411 = vmatprep.mubr.msk.f32.mxu0 %vm1459_vm0, %v1460_v6 }
 0x114   : > { %v822_v60 = vpop.f32.mrb[0].mxu0 }
 0x115   : > { %v836_v49 = vmul.f32 0.125, %v822_v60  ;;  %v1374_v8 = vpop.f32.mrb[1].mxu0 }
 0x117   : > { %1384 = vmatmul.mubr.msk.f32.vlgmr.msra.gmra.mrb[0].mxu1 %vm839_vm12, %v836_v49 }
 0x118   : > { %1386 = vmatprep.mubr.msk.f32.mxu1 %vm1459_vm0, %v1460_v6  ;;  %1428 = vmatpush3.bf16.msra.mxu1 %v1519_v4 }
 0x119   : > { %1429 = vmatprep.subr.bf16.mxu1 %v1458_v3 }
 0x11c   : > { %1431 = vmatpush3.bf16.msra.mxu1 %v1530_v7 }
 0x141   : > { %v827_v24 = vpop.f32.mrb[2].mxu0 }
 0x142   : > { %v837_v12 = vmul.f32 0.125, %v827_v24  ;;  %v1377_v0 = vpop.f32.mrb[3].mxu0 }
 0x144   : > { %1387 = vmatmul.mubr.msk.f32.gmra.mrb[2].mxu1 %vm839_vm12, %v837_v12 }
 0x145   : > { %1389 = vmatprep.mubr.msk.f32.mxu1 %vm1459_vm0, %v1460_v6 }
 0x148   : > { %v832_v28 = vpop.f32.mrb[4].mxu0 }
 0x149   : > { %v838_v9 = vmul.f32 0.125, %v832_v28  ;;  %v1380_v15 = vpop.f32.mrb[5].mxu0 }
 0x14b   : > { %1390 = vmatmul.mubr.msk.f32.gmra.mrb[4].mxu1 %vm839_vm12, %v838_v9 }
 0x14c   : > { %1400 = vmatprep.mubr.msk.f32.mxu1 %vm1459_vm0, %v1460_v6 }
 0x1ea   : > { %v919_v4 = vpop.f32.mrb[0].mxu1 }
 0x1eb   : > { %v933_v3 = vsub.f32 %v1725_v44, %v919_v4  ;;  %v1385_v7 = vpop.f32.mrb[1].mxu1 }
 0x1ed   : > { %v936_v50 = vmul.f32 %v933_v3, %v933_v3 }
 0x1ef   : > { %1401 = vmatmul.mubr.msk.f32.vlgmr.msra.gmra.mrb[6].mxu1 %vm489_vm1, %v936_v50 }
 0x1f0   : > { %1403 = vmatprep.mubr.msk.f32.mxu1 %vm1459_vm0, %v1460_v6 }
 0x217   : > { %v924_v61 = vpop.f32.mrb[2].mxu1 }
 0x218   : > { %v934_v19 = vsub.f32 %v736_v43, %v924_v61  ;;  %v1388_v47 = vpop.f32.mrb[3].mxu1 }
 0x21a   : > { %v937_v29 = vmul.f32 %v934_v19, %v934_v19 }
 0x21c   : > { %1404 = vmatmul.mubr.msk.f32.gmra.mrb[8].mxu1 %vm489_vm1, %v937_v29 }
 0x21d   : > { %1406 = vmatprep.mubr.msk.f32.mxu1 %vm1459_vm0, %v1460_v6 }
 0x21e   : > { %v929_v20 = vpop.f32.mrb[4].mxu1 }
 0x21f   : > { %v935_v51 = vsub.f32 %v698_v26, %v929_v20  ;;  %v1391_v45 = vpop.f32.mrb[5].mxu1 }
 0x221   : > { %v938_v44 = vmul.f32 %v935_v51, %v935_v51 }
 0x223   : > { %1407 = vmatmul.mubr.msk.f32.gmra.mrb[10].mxu1 %vm489_vm1, %v938_v44 }
 0x2c2   : > { %v1014_v53 = vpop.f32.mrb[6].mxu1 }
 0x2c3   : > { %v1028_v63 = vmul.f32 0.125, %v1014_v53  ;;  %v1402_v1 = vpop.f32.mrb[7].mxu1 }
 0x2c5   : > { %1412 = vmatmul.mubr.msk.f32.vlgmr.msra.gmra.mrb[6].mxu0 %vm839_vm12, %v1028_v63 }
 0x2c6   : > { %1414 = vmatprep.mubr.msk.f32.mxu0 %vm1459_vm0, %v1460_v6 }
 0x2ef   : > { %v1019_v5 = vpop.f32.mrb[8].mxu1 }
 0x2f0   : > { %v1029_v54 = vmul.f32 0.125, %v1019_v5  ;;  %v1405_v52 = vpop.f32.mrb[9].mxu1 }
 0x2f2   : > { %1415 = vmatmul.mubr.msk.f32.gmra.mrb[8].mxu0 %vm839_vm12, %v1029_v54 }
 0x2f3   : > { %1417 = vmatprep.mubr.msk.f32.mxu0 %vm1459_vm0, %v1460_v6  ;;  %v1253_v6 = vld [vmem:[%s1896_s4] ss:$0 sm:$0xff]  ;;  %vm1162_vm0 = vmand %vm1160_vm14, %vm1161_vm15 }
 0x2f6   : > { %v1024_v55 = vpop.f32.mrb[10].mxu1 }
 0x2f7   : > { %v1030_v46 = vmul.f32 0.125, %v1024_v55  ;;  %v1408_v56 = vpop.f32.mrb[11].mxu1 }
 0x2f9   : > { %1418 = vmatmul.mubr.msk.f32.gmra.mrb[10].mxu0 %vm839_vm12, %v1030_v46 }
 0x398   : > { %v1106_v62 = vpop.f32.mrb[6].mxu0 }
 0x399   : > { %v1107_v58 = vadd.f32 1e-06, %v1106_v62  ;;  %v1413_v11 = vpop.f32.mrb[7].mxu0 }
 0x39b   : > { %1444 = vrsqrt.f32 %v1107_v58 }
 0x3a5   : > { %v1445_v13 = vpop.eup %1444 }
 0x3a6   : > { %v1123_v16 = vmul.f32 %v1445_v13, %v933_v3 }
 0x3a8   : > { %v1132_v33 = vmul.f32 %v1252_v14, %v1123_v16 }
 0x3aa   : > { %v1141_v17 = vadd.f32 %v1253_v6, %v1132_v33 }
 0x3ac   : > { %v1260_v57 = vpack.c.bf16 %v1141_v17, %v1141_v17 }
 0x3ae   : > { %1158 = vst.msk [vmem:[%s292_s14] sm:$0xf] %vm1157_vm13, %v1260_v57 }
 0x3c5   : > { %v1111_v10 = vpop.f32.mrb[8].mxu0 }
 0x3c6   : > { %v1112_v18 = vadd.f32 1e-06, %v1111_v10  ;;  %v1416_v30 = vpop.f32.mrb[9].mxu0 }
 0x3c8   : > { %1446 = vrsqrt.f32 %v1112_v18 }
 0x3cc   : > { %v1116_v2 = vpop.f32.mrb[10].mxu0 }
 0x3cd   : > { %v1117_v31 = vadd.f32 1e-06, %v1116_v2  ;;  %v1419_v34 = vpop.f32.mrb[11].mxu0 }
 0x3cf   : > { %1448 = vrsqrt.f32 %v1117_v31 }
 0x3d2   : > { %v1447_v32 = vpop.eup %1446 }
 0x3d3   : > { %v1124_v21 = vmul.f32 %v1447_v32, %v934_v19 }
 0x3d5   : > { %v1133_v35 = vmul.f32 %v1252_v14, %v1124_v21 }
 0x3d7   : > { %v1142_v23 = vadd.f32 %v1253_v6, %v1133_v35 }
 0x3d9   : > { %v1261_v36 = vpack.c.bf16 %v1142_v23, %v1142_v23  ;;  %v1449_v37 = vpop.eup %1448 }
 0x3da   : > { %v1125_v48 = vmul.f32 %v1449_v37, %v935_v51 }
 0x3db   : > { %1159 = vst.msk [vmem:[%s292_s14 + $0x4] sm:$0xf] %vm1157_vm13, %v1261_v36 }
 0x3dc   : > { %v1134_v22 = vmul.f32 %v1252_v14, %v1125_v48 }
 0x3de   : > { %v1143_v59 = vadd.f32 %v1253_v6, %v1134_v22 }
 0x3e0   : > { %v1262_v39 = vpack.c.bf16 %v1143_v59, %v1143_v59 }
 0x3e2   : > { %v1164_v40 = vsel %vm1162_vm0, %v1262_v39, %v1163_v38 }
 0x3e3   : > { %1165 = vst [vmem:[%s292_s14 + $0x8] sm:$0x1] %v1164_v40 }
 0x3e4 PF: > { %s17_s24 = sadd.s32 1, %s1456_s24  }
 0x3e5   : > { %p14_p4 = scmp.ge.s32.totalorder %s17_s24, 4  }
 0x3e7   :  { %16 = sbr.rel (!%p14_p4) target bundleno = 1 (0x1), region = 81 }

// kernel: mvit_forward.21
= control target key start
LH: loop header
LB: loop body
LE: loop exit
PB: predicated region body
PF: predicated region fallthrough
CT: control target
= control target key end

     0   :  { %vm18_vm0 = vcmask 523264   ;;  %s91_s0 = inlined_call_operand.vmem [shape: bf16[8,64], index: 0, kind: input, shape index: {}]   ;;  %s92_s1 = inlined_call_operand.vmem [shape: f32[1,64], index: 1, kind: input, shape index: {}]   ;;  %s93_s2 = inlined_call_operand.vmem [shape: f32[1,64], index: 2, kind: input, shape index: {}]   ;;  %s94_s3 = inlined_call_operand.vmem [shape: f32[8,64], index: 3, kind: output, shape index: {}]  }
   0x1   :  { %v14_v0 = vld [vmem:[%s91_s0] sm:$0xf] }
   0x2   :  { %v15_v1 = vunpack.c.l.bf16 %v14_v0  ;;  %v52_v12 = vld [vmem:[%s92_s1] ss:$0 sm:$0xff] }
   0x3   :  { %v53_v14 = vld [vmem:[%s93_s2] ss:$0 sm:$0xff] }
   0x4   :  { %v19_v2 = vsel %vm18_vm0, %v15_v1, 0.0 }
   0x5   :  { %20 = vadd.xlane.f32.xlu0 %v19_v2 }
  0x92   :  { %v21_v3 = vpop.xlane.xlu0 %20 }
  0x93   :  { %v23_v4 = vmul.f32 0.015625, %v21_v3 }
  0x95   :  { %v24_v5 = vsub.f32 %v15_v1, %v23_v4 }
  0x97   :  { %v25_v6 = vmul.f32 %v24_v5, %v24_v5 }
  0x99   :  { %v26_v7 = vsel %vm18_vm0, %v25_v6, 0.0 }
  0x9a   :  { %27 = vadd.xlane.f32.xlu0 %v26_v7 }
 0x127   :  { %v28_v8 = vpop.xlane.xlu0 %27 }
 0x128   :  { %v29_v9 = vmul.f32 0.015625, %v28_v8 }
 0x12a   :  { %v30_v10 = vadd.f32 1e-06, %v29_v9 }
 0x12c   :  { %54 = vrsqrt.f32 %v30_v10 }
 0x136   :  { %v55_v11 = vpop.eup %54 }
 0x137   :  { %v32_v13 = vmul.f32 %v55_v11, %v24_v5 }
 0x139   :  { %v39_v15 = vmul.f32 %v52_v12, %v32_v13 }
 0x13b   :  { %v46_v16 = vadd.f32 %v53_v14, %v39_v15 }
 0x13d   :  { %47 = vst.msk [vmem:[%s94_s3] sm:$0xff] %vm18_vm0, %v46_v16 }

</bundles_post_ra>
